<compile_context>
chip_gen: v6e
topology: v6e:2x2x1
jax: 0.10.0
libtpu: 0.0.40
codegen_flags: <defaults>
</compile_context>

<pallas_src>
import functools

import jax
import jax.numpy as jnp
from jax.experimental import pallas as pl
from jax.experimental.pallas import tpu as pltpu

INPUT_DIM = 6
HIDDEN_DIM = 64
BOTTLENECK_DIM = 16
NUM_BLOCKS = 3 + 4 + 6 + 3          # layer1..layer4
OUT_HIDDEN = 16
BN_EPS = 1e-5
LEAKY_SLOPE = 0.01                  # torch.nn.LeakyReLU default negative_slope


def _leaky_relu(x):
    return jnp.where(x > 0, x, LEAKY_SLOPE * x)


def _bn_train_folded(x, gamma, beta):
    """Training-mode BatchNorm1d (batch mean, biased variance) with the
    inv_std * gamma product folded into one per-feature scale."""
    mean = jnp.mean(x, axis=0, keepdims=True)
    centered = x - mean
    var = jnp.mean(centered * centered, axis=0, keepdims=True)   # biased (1/N)
    scale = jax.lax.rsqrt(var + BN_EPS) * gamma                  # EUP rsqrt
    return centered * scale + beta


def _resnet50_mlp_kernel(
    x_ref,        # (B, 6)
    stem_ref,     # (7, 64)   rows 0..5 = w_in, row 6 = b_in
    w1p_ref,      # (64, NB*16)  lane-packed per block
    w2p_ref,      # (16, NB*16)
    w3p_ref,      # (16, NB*64)
    bn16_ref,     # (4, NB*16)   rows = [gamma1, beta1, gamma2, beta2]
    bn64_ref,     # (2, NB*64)   rows = [gamma3, beta3]
    head_ref,     # (67, 16)  rows 0..63 = w_out1, 64 = b_out1,
                  #           65 = w_out2^T, 66 = [b_out2, 0, ...]
    out_ref,      # (B, 1)
    *, num_blocks: int,
):
    x = x_ref[...].astype(jnp.float32)

    # Stem: fc_in + LeakyReLU (bias kept: no BN follows it).
    w_in = stem_ref[0:INPUT_DIM, :]
    b_in = stem_ref[INPUT_DIM:INPUT_DIM + 1, :]
    h = _leaky_relu(jnp.dot(x, w_in, preferred_element_type=jnp.float32) + b_in)

    # 16 BottleneckFCBlocks, statically unrolled (static lane offsets into the
    # lane-packed parameter slabs; fc biases dropped — they cancel in BN).
    for i in range(num_blocks):
        identity = h
        c16 = slice(i * BOTTLENECK_DIM, (i + 1) * BOTTLENECK_DIM)
        c64 = slice(i * HIDDEN_DIM, (i + 1) * HIDDEN_DIM)

        bn_s = bn16_ref[:, c16]      # (4, 16)
        bn_l = bn64_ref[:, c64]      # (2, 64)

        o = jnp.dot(h, w1p_ref[:, c16], preferred_element_type=jnp.float32)
        o = _leaky_relu(_bn_train_folded(o, bn_s[0:1, :], bn_s[1:2, :]))

        o = jnp.dot(o, w2p_ref[:, c16], preferred_element_type=jnp.float32)
        o = _leaky_relu(_bn_train_folded(o, bn_s[2:3, :], bn_s[3:4, :]))

        o = jnp.dot(o, w3p_ref[:, c64], preferred_element_type=jnp.float32)
        o = _bn_train_folded(o, bn_l[0:1, :], bn_l[1:2, :])

        h = _leaky_relu(o + identity)            # fused residual + LeakyReLU

    # Head: fc_out1 + LeakyReLU, then fc_out2 as VPU mul + lane-sum (no MXU).
    w_out1 = head_ref[0:HIDDEN_DIM, :]
    b_out1 = head_ref[HIDDEN_DIM:HIDDEN_DIM + 1, :]
    w_out2_row = head_ref[HIDDEN_DIM + 1:HIDDEN_DIM + 2, :]        # (1, 16)
    b_out2 = head_ref[HIDDEN_DIM + 2:HIDDEN_DIM + 3, 0:1]          # (1, 1)

    h = _leaky_relu(jnp.dot(h, w_out1, preferred_element_type=jnp.float32) + b_out1)
    out = jnp.sum(h * w_out2_row, axis=-1, keepdims=True) + b_out2

    out_ref[...] = out.astype(out_ref.dtype)


def resnet50_mlp_forward(x, packed):
    """Run the fused forward pass.  x: (B, INPUT_DIM) float32."""
    batch = x.shape[0]
    args = (x, packed["stem"], packed["w1p"], packed["w2p"], packed["w3p"],
            packed["bn16"], packed["bn64"], packed["head"])
    kernel = functools.partial(_resnet50_mlp_kernel, num_blocks=NUM_BLOCKS)
    vmem_spec = pl.BlockSpec(memory_space=pltpu.MemorySpace.VMEM)
    return pl.pallas_call(
        kernel,
        out_shape=jax.ShapeDtypeStruct((batch, 1), jnp.float32),
        in_specs=[vmem_spec] * len(args),
        out_specs=vmem_spec,
    )(*args)


def init_params(key):
    """PyTorch-style uniform(-1/sqrt(fan_in), 1/sqrt(fan_in)) linear init;
    BatchNorm gamma=1, beta=0 (fresh-module defaults)."""
    ks = jax.random.split(key, 12)

    def lin(k, fan_in, shape):
        bound = 1.0 / (fan_in ** 0.5)
        return jax.random.uniform(k, shape, jnp.float32, -bound, bound)

    nb, hd, bd, oh = NUM_BLOCKS, HIDDEN_DIM, BOTTLENECK_DIM, OUT_HIDDEN
    return {
        "w_in":   lin(ks[0], INPUT_DIM, (INPUT_DIM, hd)),
        "b_in":   lin(ks[1], INPUT_DIM, (1, hd)),
        "w1":     lin(ks[2], hd, (nb, hd, bd)),
        "b1":     lin(ks[3], hd, (nb, bd)),
        "g1":     jnp.ones((nb, bd), jnp.float32),
        "be1":    jnp.zeros((nb, bd), jnp.float32),
        "w2":     lin(ks[4], bd, (nb, bd, bd)),
        "b2":     lin(ks[5], bd, (nb, bd)),
        "g2":     jnp.ones((nb, bd), jnp.float32),
        "be2":    jnp.zeros((nb, bd), jnp.float32),
        "w3":     lin(ks[6], bd, (nb, bd, hd)),
        "b3":     lin(ks[7], bd, (nb, hd)),
        "g3":     jnp.ones((nb, hd), jnp.float32),
        "be3":    jnp.zeros((nb, hd), jnp.float32),
        "w_out1": lin(ks[8], hd, (hd, oh)),
        "b_out1": lin(ks[9], hd, (1, oh)),
        "w_out2": lin(ks[10], oh, (oh, 1)),
        "b_out2": lin(ks[11], oh, (1, 1)),
    }


def pack_params(p):
    """Pack the per-block / head parameters into the kernel's 7 dense slabs.
    Done once at setup time (not per forward call)."""
    nb, hd, bd = NUM_BLOCKS, HIDDEN_DIM, BOTTLENECK_DIM
    # (nb, in, out) -> (in, nb*out): block i occupies lanes [i*out, (i+1)*out).
    w1p = jnp.transpose(p["w1"], (1, 0, 2)).reshape(hd, nb * bd)
    w2p = jnp.transpose(p["w2"], (1, 0, 2)).reshape(bd, nb * bd)
    w3p = jnp.transpose(p["w3"], (1, 0, 2)).reshape(bd, nb * hd)
    bn16 = jnp.stack([p["g1"], p["be1"], p["g2"], p["be2"]], axis=0).reshape(4, nb * bd)
    bn64 = jnp.stack([p["g3"], p["be3"]], axis=0).reshape(2, nb * hd)
    stem = jnp.concatenate([p["w_in"], p["b_in"]], axis=0)            # (7, 64)
    b_out2_row = jnp.zeros((1, OUT_HIDDEN), jnp.float32).at[0, 0].set(p["b_out2"][0, 0])
    head = jnp.concatenate(
        [p["w_out1"], p["b_out1"], p["w_out2"].T, b_out2_row], axis=0)  # (67, 16)
    return {"stem": stem, "w1p": w1p, "w2p": w2p, "w3p": w3p,
            "bn16": bn16, "bn64": bn64, "head": head}


def _batchnorm_ref(x, gamma, beta):
    mean = jnp.mean(x, axis=0, keepdims=True)
    var = jnp.mean((x - mean) ** 2, axis=0, keepdims=True)   # biased (1/N)
    return (x - mean) / jnp.sqrt(var + BN_EPS) * gamma + beta


def reference_forward(x, p):
    """Pure-JAX reference mirroring the PyTorch forward (training-mode BN),
    *including* the fc biases that the kernel omits (they cancel in BN)."""
    h = _leaky_relu(x @ p["w_in"] + p["b_in"])
    for i in range(NUM_BLOCKS):
        identity = h
        o = _leaky_relu(_batchnorm_ref(
            h @ p["w1"][i] + p["b1"][i:i + 1], p["g1"][i:i + 1], p["be1"][i:i + 1]))
        o = _leaky_relu(_batchnorm_ref(
            o @ p["w2"][i] + p["b2"][i:i + 1], p["g2"][i:i + 1], p["be2"][i:i + 1]))
        o = _batchnorm_ref(
            o @ p["w3"][i] + p["b3"][i:i + 1], p["g3"][i:i + 1], p["be3"][i:i + 1])
        h = _leaky_relu(o + identity)
    h = _leaky_relu(h @ p["w_out1"] + p["b_out1"])
    return h @ p["w_out2"] + p["b_out2"]


if __name__ == "__main__":
    key = jax.random.PRNGKey(0)
    pkey, xkey = jax.random.split(key)
    params = init_params(pkey)
    packed = pack_params(params)

    batch = 8
    x = jax.random.normal(xkey, (batch, INPUT_DIM), dtype=jnp.float32)

    out = jax.block_until_ready(resnet50_mlp_forward(x, packed))
    assert out.shape == (batch, 1), out.shape

    ref = jax.block_until_ready(reference_forward(x, params))
    max_err = float(jnp.max(jnp.abs(out - ref)))
    if max_err > 5e-4:
        raise AssertionError(f"Pallas kernel mismatch vs reference: max|err|={max_err}")

    print("KERNEL_OK")
</pallas_src>

<mosaic_0001>
module attributes {stable_mosaic.version = 11 : i64} {
  func.func @_resnet50_mlp_kernel(%arg0: memref<8x6xf32, #tpu.memory_space<vmem>>, %arg1: memref<7x64xf32, #tpu.memory_space<vmem>>, %arg2: memref<64x256xf32, #tpu.memory_space<vmem>>, %arg3: memref<16x256xf32, #tpu.memory_space<vmem>>, %arg4: memref<16x1024xf32, #tpu.memory_space<vmem>>, %arg5: memref<4x256xf32, #tpu.memory_space<vmem>>, %arg6: memref<2x1024xf32, #tpu.memory_space<vmem>>, %arg7: memref<67x16xf32, #tpu.memory_space<vmem>>, %arg8: memref<8x1xf32, #tpu.memory_space<vmem>>) attributes {dimension_semantics = [], scalar_prefetch = 0 : i64, scratch_operands = 0 : i64, tpu.core_type = #tpu.core_type<tc>} {
    %c0 = arith.constant 0 : index
    %c0_0 = arith.constant 0 : index
    %0 = vector.load %arg0[%c0, %c0_0] : memref<8x6xf32, #tpu.memory_space<vmem>>, vector<8x6xf32>
    %c0_1 = arith.constant 0 : index
    %c0_2 = arith.constant 0 : index
    %1 = vector.load %arg1[%c0_1, %c0_2] : memref<7x64xf32, #tpu.memory_space<vmem>>, vector<6x64xf32>
    %c6 = arith.constant 6 : index
    %c0_3 = arith.constant 0 : index
    %2 = vector.load %arg1[%c6, %c0_3] : memref<7x64xf32, #tpu.memory_space<vmem>>, vector<1x64xf32>
    %cst = arith.constant dense<0.000000e+00> : vector<8x64xf32>
    %3 = tpu.matmul %0, %1, %cst {dimension_numbers = #tpu.dot_dimension_numbers<[1], [0], [0], [1], [0, 0, 1, 1], [], []>} : vector<8x6xf32>, vector<6x64xf32>, vector<8x64xf32> -> vector<8x64xf32>
    %4 = vector.broadcast %2 : vector<1x64xf32> to vector<8x64xf32>
    %5 = arith.addf %3, %4 : vector<8x64xf32>
    %cst_4 = arith.constant 0.000000e+00 : f32
    %6 = vector.broadcast %cst_4 : f32 to vector<8x64xf32>
    %7 = arith.cmpf ogt, %5, %6 : vector<8x64xf32>
    %cst_5 = arith.constant 0.00999999977 : f32
    %8 = vector.broadcast %cst_5 : f32 to vector<8x64xf32>
    %9 = arith.mulf %8, %5 : vector<8x64xf32>
    %10 = arith.select %7, %5, %9 : vector<8x64xi1>, vector<8x64xf32>
    %c0_6 = arith.constant 0 : index
    %c0_7 = arith.constant 0 : index
    %11 = vector.load %arg5[%c0_6, %c0_7] : memref<4x256xf32, #tpu.memory_space<vmem>>, vector<4x16xf32>
    %c0_8 = arith.constant 0 : index
    %c0_9 = arith.constant 0 : index
    %12 = vector.load %arg6[%c0_8, %c0_9] : memref<2x1024xf32, #tpu.memory_space<vmem>>, vector<2x64xf32>
    %c0_10 = arith.constant 0 : index
    %c0_11 = arith.constant 0 : index
    %13 = vector.load %arg2[%c0_10, %c0_11] : memref<64x256xf32, #tpu.memory_space<vmem>>, vector<64x16xf32>
    %cst_12 = arith.constant dense<0.000000e+00> : vector<8x16xf32>
    %14 = tpu.matmul %10, %13, %cst_12 {dimension_numbers = #tpu.dot_dimension_numbers<[1], [0], [0], [1], [0, 0, 1, 1], [], []>} : vector<8x64xf32>, vector<64x16xf32>, vector<8x16xf32> -> vector<8x16xf32>
    %15 = vector.extract_strided_slice %11 {offsets = [0, 0], sizes = [1, 16], strides = [1, 1]} : vector<4x16xf32> to vector<1x16xf32>
    %16 = vector.extract_strided_slice %11 {offsets = [1, 0], sizes = [1, 16], strides = [1, 1]} : vector<4x16xf32> to vector<1x16xf32>
    %cst_13 = arith.constant dense<0.000000e+00> : vector<16xf32>
    %17 = vector.multi_reduction <add>, %14, %cst_13 [0] : vector<8x16xf32> to vector<16xf32>
    %18 = vector.shape_cast %17 : vector<16xf32> to vector<1x16xf32>
    %cst_14 = arith.constant 8.000000e+00 : f32
    %19 = vector.broadcast %cst_14 : f32 to vector<1x16xf32>
    %20 = arith.divf %18, %19 : vector<1x16xf32>
    %21 = vector.broadcast %20 : vector<1x16xf32> to vector<8x16xf32>
    %22 = arith.subf %14, %21 : vector<8x16xf32>
    %23 = arith.mulf %22, %22 : vector<8x16xf32>
    %cst_15 = arith.constant dense<0.000000e+00> : vector<16xf32>
    %24 = vector.multi_reduction <add>, %23, %cst_15 [0] : vector<8x16xf32> to vector<16xf32>
    %25 = vector.shape_cast %24 : vector<16xf32> to vector<1x16xf32>
    %cst_16 = arith.constant 8.000000e+00 : f32
    %26 = vector.broadcast %cst_16 : f32 to vector<1x16xf32>
    %27 = arith.divf %25, %26 : vector<1x16xf32>
    %cst_17 = arith.constant 9.99999974E-6 : f32
    %28 = vector.broadcast %cst_17 : f32 to vector<1x16xf32>
    %29 = arith.addf %27, %28 : vector<1x16xf32>
    %30 = math.rsqrt %29 : vector<1x16xf32>
    %31 = arith.mulf %30, %15 : vector<1x16xf32>
    %32 = vector.broadcast %31 : vector<1x16xf32> to vector<8x16xf32>
    %33 = arith.mulf %22, %32 : vector<8x16xf32>
    %34 = vector.broadcast %16 : vector<1x16xf32> to vector<8x16xf32>
    %35 = arith.addf %33, %34 : vector<8x16xf32>
    %cst_18 = arith.constant 0.000000e+00 : f32
    %36 = vector.broadcast %cst_18 : f32 to vector<8x16xf32>
    %37 = arith.cmpf ogt, %35, %36 : vector<8x16xf32>
    %cst_19 = arith.constant 0.00999999977 : f32
    %38 = vector.broadcast %cst_19 : f32 to vector<8x16xf32>
    %39 = arith.mulf %38, %35 : vector<8x16xf32>
    %40 = arith.select %37, %35, %39 : vector<8x16xi1>, vector<8x16xf32>
    %c0_20 = arith.constant 0 : index
    %c0_21 = arith.constant 0 : index
    %41 = vector.load %arg3[%c0_20, %c0_21] : memref<16x256xf32, #tpu.memory_space<vmem>>, vector<16x16xf32>
    %cst_22 = arith.constant dense<0.000000e+00> : vector<8x16xf32>
    %42 = tpu.matmul %40, %41, %cst_22 {dimension_numbers = #tpu.dot_dimension_numbers<[1], [0], [0], [1], [0, 0, 1, 1], [], []>} : vector<8x16xf32>, vector<16x16xf32>, vector<8x16xf32> -> vector<8x16xf32>
    %43 = vector.extract_strided_slice %11 {offsets = [2, 0], sizes = [1, 16], strides = [1, 1]} : vector<4x16xf32> to vector<1x16xf32>
    %44 = vector.extract_strided_slice %11 {offsets = [3, 0], sizes = [1, 16], strides = [1, 1]} : vector<4x16xf32> to vector<1x16xf32>
    %cst_23 = arith.constant dense<0.000000e+00> : vector<16xf32>
    %45 = vector.multi_reduction <add>, %42, %cst_23 [0] : vector<8x16xf32> to vector<16xf32>
    %46 = vector.shape_cast %45 : vector<16xf32> to vector<1x16xf32>
    %cst_24 = arith.constant 8.000000e+00 : f32
    %47 = vector.broadcast %cst_24 : f32 to vector<1x16xf32>
    %48 = arith.divf %46, %47 : vector<1x16xf32>
    %49 = vector.broadcast %48 : vector<1x16xf32> to vector<8x16xf32>
    %50 = arith.subf %42, %49 : vector<8x16xf32>
    %51 = arith.mulf %50, %50 : vector<8x16xf32>
    %cst_25 = arith.constant dense<0.000000e+00> : vector<16xf32>
    %52 = vector.multi_reduction <add>, %51, %cst_25 [0] : vector<8x16xf32> to vector<16xf32>
    %53 = vector.shape_cast %52 : vector<16xf32> to vector<1x16xf32>
    %cst_26 = arith.constant 8.000000e+00 : f32
    %54 = vector.broadcast %cst_26 : f32 to vector<1x16xf32>
    %55 = arith.divf %53, %54 : vector<1x16xf32>
    %cst_27 = arith.constant 9.99999974E-6 : f32
    %56 = vector.broadcast %cst_27 : f32 to vector<1x16xf32>
    %57 = arith.addf %55, %56 : vector<1x16xf32>
    %58 = math.rsqrt %57 : vector<1x16xf32>
    %59 = arith.mulf %58, %43 : vector<1x16xf32>
    %60 = vector.broadcast %59 : vector<1x16xf32> to vector<8x16xf32>
    %61 = arith.mulf %50, %60 : vector<8x16xf32>
    %62 = vector.broadcast %44 : vector<1x16xf32> to vector<8x16xf32>
    %63 = arith.addf %61, %62 : vector<8x16xf32>
    %cst_28 = arith.constant 0.000000e+00 : f32
    %64 = vector.broadcast %cst_28 : f32 to vector<8x16xf32>
    %65 = arith.cmpf ogt, %63, %64 : vector<8x16xf32>
    %cst_29 = arith.constant 0.00999999977 : f32
    %66 = vector.broadcast %cst_29 : f32 to vector<8x16xf32>
    %67 = arith.mulf %66, %63 : vector<8x16xf32>
    %68 = arith.select %65, %63, %67 : vector<8x16xi1>, vector<8x16xf32>
    %c0_30 = arith.constant 0 : index
    %c0_31 = arith.constant 0 : index
    %69 = vector.load %arg4[%c0_30, %c0_31] : memref<16x1024xf32, #tpu.memory_space<vmem>>, vector<16x64xf32>
    %cst_32 = arith.constant dense<0.000000e+00> : vector<8x64xf32>
    %70 = tpu.matmul %68, %69, %cst_32 {dimension_numbers = #tpu.dot_dimension_numbers<[1], [0], [0], [1], [0, 0, 1, 1], [], []>} : vector<8x16xf32>, vector<16x64xf32>, vector<8x64xf32> -> vector<8x64xf32>
    %71 = vector.extract_strided_slice %12 {offsets = [0, 0], sizes = [1, 64], strides = [1, 1]} : vector<2x64xf32> to vector<1x64xf32>
    %72 = vector.extract_strided_slice %12 {offsets = [1, 0], sizes = [1, 64], strides = [1, 1]} : vector<2x64xf32> to vector<1x64xf32>
    %cst_33 = arith.constant dense<0.000000e+00> : vector<64xf32>
    %73 = vector.multi_reduction <add>, %70, %cst_33 [0] : vector<8x64xf32> to vector<64xf32>
    %74 = vector.shape_cast %73 : vector<64xf32> to vector<1x64xf32>
    %cst_34 = arith.constant 8.000000e+00 : f32
    %75 = vector.broadcast %cst_34 : f32 to vector<1x64xf32>
    %76 = arith.divf %74, %75 : vector<1x64xf32>
    %77 = vector.broadcast %76 : vector<1x64xf32> to vector<8x64xf32>
    %78 = arith.subf %70, %77 : vector<8x64xf32>
    %79 = arith.mulf %78, %78 : vector<8x64xf32>
    %cst_35 = arith.constant dense<0.000000e+00> : vector<64xf32>
    %80 = vector.multi_reduction <add>, %79, %cst_35 [0] : vector<8x64xf32> to vector<64xf32>
    %81 = vector.shape_cast %80 : vector<64xf32> to vector<1x64xf32>
    %cst_36 = arith.constant 8.000000e+00 : f32
    %82 = vector.broadcast %cst_36 : f32 to vector<1x64xf32>
    %83 = arith.divf %81, %82 : vector<1x64xf32>
    %cst_37 = arith.constant 9.99999974E-6 : f32
    %84 = vector.broadcast %cst_37 : f32 to vector<1x64xf32>
    %85 = arith.addf %83, %84 : vector<1x64xf32>
    %86 = math.rsqrt %85 : vector<1x64xf32>
    %87 = arith.mulf %86, %71 : vector<1x64xf32>
    %88 = vector.broadcast %87 : vector<1x64xf32> to vector<8x64xf32>
    %89 = arith.mulf %78, %88 : vector<8x64xf32>
    %90 = vector.broadcast %72 : vector<1x64xf32> to vector<8x64xf32>
    %91 = arith.addf %89, %90 : vector<8x64xf32>
    %92 = arith.addf %91, %10 : vector<8x64xf32>
    %cst_38 = arith.constant 0.000000e+00 : f32
    %93 = vector.broadcast %cst_38 : f32 to vector<8x64xf32>
    %94 = arith.cmpf ogt, %92, %93 : vector<8x64xf32>
    %cst_39 = arith.constant 0.00999999977 : f32
    %95 = vector.broadcast %cst_39 : f32 to vector<8x64xf32>
    %96 = arith.mulf %95, %92 : vector<8x64xf32>
    %97 = arith.select %94, %92, %96 : vector<8x64xi1>, vector<8x64xf32>
    %c0_40 = arith.constant 0 : index
    %c16 = arith.constant 16 : index
    %98 = vector.load %arg5[%c0_40, %c16] : memref<4x256xf32, #tpu.memory_space<vmem>>, vector<4x16xf32>
    %c0_41 = arith.constant 0 : index
    %c64 = arith.constant 64 : index
    %99 = vector.load %arg6[%c0_41, %c64] : memref<2x1024xf32, #tpu.memory_space<vmem>>, vector<2x64xf32>
    %c0_42 = arith.constant 0 : index
    %c16_43 = arith.constant 16 : index
    %100 = vector.load %arg2[%c0_42, %c16_43] : memref<64x256xf32, #tpu.memory_space<vmem>>, vector<64x16xf32>
    %cst_44 = arith.constant dense<0.000000e+00> : vector<8x16xf32>
    %101 = tpu.matmul %97, %100, %cst_44 {dimension_numbers = #tpu.dot_dimension_numbers<[1], [0], [0], [1], [0, 0, 1, 1], [], []>} : vector<8x64xf32>, vector<64x16xf32>, vector<8x16xf32> -> vector<8x16xf32>
    %102 = vector.extract_strided_slice %98 {offsets = [0, 0], sizes = [1, 16], strides = [1, 1]} : vector<4x16xf32> to vector<1x16xf32>
    %103 = vector.extract_strided_slice %98 {offsets = [1, 0], sizes = [1, 16], strides = [1, 1]} : vector<4x16xf32> to vector<1x16xf32>
    %cst_45 = arith.constant dense<0.000000e+00> : vector<16xf32>
    %104 = vector.multi_reduction <add>, %101, %cst_45 [0] : vector<8x16xf32> to vector<16xf32>
    %105 = vector.shape_cast %104 : vector<16xf32> to vector<1x16xf32>
    %cst_46 = arith.constant 8.000000e+00 : f32
    %106 = vector.broadcast %cst_46 : f32 to vector<1x16xf32>
    %107 = arith.divf %105, %106 : vector<1x16xf32>
    %108 = vector.broadcast %107 : vector<1x16xf32> to vector<8x16xf32>
    %109 = arith.subf %101, %108 : vector<8x16xf32>
    %110 = arith.mulf %109, %109 : vector<8x16xf32>
    %cst_47 = arith.constant dense<0.000000e+00> : vector<16xf32>
    %111 = vector.multi_reduction <add>, %110, %cst_47 [0] : vector<8x16xf32> to vector<16xf32>
    %112 = vector.shape_cast %111 : vector<16xf32> to vector<1x16xf32>
    %cst_48 = arith.constant 8.000000e+00 : f32
    %113 = vector.broadcast %cst_48 : f32 to vector<1x16xf32>
    %114 = arith.divf %112, %113 : vector<1x16xf32>
    %cst_49 = arith.constant 9.99999974E-6 : f32
    %115 = vector.broadcast %cst_49 : f32 to vector<1x16xf32>
    %116 = arith.addf %114, %115 : vector<1x16xf32>
    %117 = math.rsqrt %116 : vector<1x16xf32>
    %118 = arith.mulf %117, %102 : vector<1x16xf32>
    %119 = vector.broadcast %118 : vector<1x16xf32> to vector<8x16xf32>
    %120 = arith.mulf %109, %119 : vector<8x16xf32>
    %121 = vector.broadcast %103 : vector<1x16xf32> to vector<8x16xf32>
    %122 = arith.addf %120, %121 : vector<8x16xf32>
    %cst_50 = arith.constant 0.000000e+00 : f32
    %123 = vector.broadcast %cst_50 : f32 to vector<8x16xf32>
    %124 = arith.cmpf ogt, %122, %123 : vector<8x16xf32>
    %cst_51 = arith.constant 0.00999999977 : f32
    %125 = vector.broadcast %cst_51 : f32 to vector<8x16xf32>
    %126 = arith.mulf %125, %122 : vector<8x16xf32>
    %127 = arith.select %124, %122, %126 : vector<8x16xi1>, vector<8x16xf32>
    %c0_52 = arith.constant 0 : index
    %c16_53 = arith.constant 16 : index
    %128 = vector.load %arg3[%c0_52, %c16_53] : memref<16x256xf32, #tpu.memory_space<vmem>>, vector<16x16xf32>
    %cst_54 = arith.constant dense<0.000000e+00> : vector<8x16xf32>
    %129 = tpu.matmul %127, %128, %cst_54 {dimension_numbers = #tpu.dot_dimension_numbers<[1], [0], [0], [1], [0, 0, 1, 1], [], []>} : vector<8x16xf32>, vector<16x16xf32>, vector<8x16xf32> -> vector<8x16xf32>
    %130 = vector.extract_strided_slice %98 {offsets = [2, 0], sizes = [1, 16], strides = [1, 1]} : vector<4x16xf32> to vector<1x16xf32>
    %131 = vector.extract_strided_slice %98 {offsets = [3, 0], sizes = [1, 16], strides = [1, 1]} : vector<4x16xf32> to vector<1x16xf32>
    %cst_55 = arith.constant dense<0.000000e+00> : vector<16xf32>
    %132 = vector.multi_reduction <add>, %129, %cst_55 [0] : vector<8x16xf32> to vector<16xf32>
    %133 = vector.shape_cast %132 : vector<16xf32> to vector<1x16xf32>
    %cst_56 = arith.constant 8.000000e+00 : f32
    %134 = vector.broadcast %cst_56 : f32 to vector<1x16xf32>
    %135 = arith.divf %133, %134 : vector<1x16xf32>
    %136 = vector.broadcast %135 : vector<1x16xf32> to vector<8x16xf32>
    %137 = arith.subf %129, %136 : vector<8x16xf32>
    %138 = arith.mulf %137, %137 : vector<8x16xf32>
    %cst_57 = arith.constant dense<0.000000e+00> : vector<16xf32>
    %139 = vector.multi_reduction <add>, %138, %cst_57 [0] : vector<8x16xf32> to vector<16xf32>
    %140 = vector.shape_cast %139 : vector<16xf32> to vector<1x16xf32>
    %cst_58 = arith.constant 8.000000e+00 : f32
    %141 = vector.broadcast %cst_58 : f32 to vector<1x16xf32>
    %142 = arith.divf %140, %141 : vector<1x16xf32>
    %cst_59 = arith.constant 9.99999974E-6 : f32
    %143 = vector.broadcast %cst_59 : f32 to vector<1x16xf32>
    %144 = arith.addf %142, %143 : vector<1x16xf32>
    %145 = math.rsqrt %144 : vector<1x16xf32>
    %146 = arith.mulf %145, %130 : vector<1x16xf32>
    %147 = vector.broadcast %146 : vector<1x16xf32> to vector<8x16xf32>
    %148 = arith.mulf %137, %147 : vector<8x16xf32>
    %149 = vector.broadcast %131 : vector<1x16xf32> to vector<8x16xf32>
    %150 = arith.addf %148, %149 : vector<8x16xf32>
    %cst_60 = arith.constant 0.000000e+00 : f32
    %151 = vector.broadcast %cst_60 : f32 to vector<8x16xf32>
    %152 = arith.cmpf ogt, %150, %151 : vector<8x16xf32>
    %cst_61 = arith.constant 0.00999999977 : f32
    %153 = vector.broadcast %cst_61 : f32 to vector<8x16xf32>
    %154 = arith.mulf %153, %150 : vector<8x16xf32>
    %155 = arith.select %152, %150, %154 : vector<8x16xi1>, vector<8x16xf32>
    %c0_62 = arith.constant 0 : index
    %c64_63 = arith.constant 64 : index
    %156 = vector.load %arg4[%c0_62, %c64_63] : memref<16x1024xf32, #tpu.memory_space<vmem>>, vector<16x64xf32>
    %cst_64 = arith.constant dense<0.000000e+00> : vector<8x64xf32>
    %157 = tpu.matmul %155, %156, %cst_64 {dimension_numbers = #tpu.dot_dimension_numbers<[1], [0], [0], [1], [0, 0, 1, 1], [], []>} : vector<8x16xf32>, vector<16x64xf32>, vector<8x64xf32> -> vector<8x64xf32>
    %158 = vector.extract_strided_slice %99 {offsets = [0, 0], sizes = [1, 64], strides = [1, 1]} : vector<2x64xf32> to vector<1x64xf32>
    %159 = vector.extract_strided_slice %99 {offsets = [1, 0], sizes = [1, 64], strides = [1, 1]} : vector<2x64xf32> to vector<1x64xf32>
    %cst_65 = arith.constant dense<0.000000e+00> : vector<64xf32>
    %160 = vector.multi_reduction <add>, %157, %cst_65 [0] : vector<8x64xf32> to vector<64xf32>
    %161 = vector.shape_cast %160 : vector<64xf32> to vector<1x64xf32>
    %cst_66 = arith.constant 8.000000e+00 : f32
    %162 = vector.broadcast %cst_66 : f32 to vector<1x64xf32>
    %163 = arith.divf %161, %162 : vector<1x64xf32>
    %164 = vector.broadcast %163 : vector<1x64xf32> to vector<8x64xf32>
    %165 = arith.subf %157, %164 : vector<8x64xf32>
    %166 = arith.mulf %165, %165 : vector<8x64xf32>
    %cst_67 = arith.constant dense<0.000000e+00> : vector<64xf32>
    %167 = vector.multi_reduction <add>, %166, %cst_67 [0] : vector<8x64xf32> to vector<64xf32>
    %168 = vector.shape_cast %167 : vector<64xf32> to vector<1x64xf32>
    %cst_68 = arith.constant 8.000000e+00 : f32
    %169 = vector.broadcast %cst_68 : f32 to vector<1x64xf32>
    %170 = arith.divf %168, %169 : vector<1x64xf32>
    %cst_69 = arith.constant 9.99999974E-6 : f32
    %171 = vector.broadcast %cst_69 : f32 to vector<1x64xf32>
    %172 = arith.addf %170, %171 : vector<1x64xf32>
    %173 = math.rsqrt %172 : vector<1x64xf32>
    %174 = arith.mulf %173, %158 : vector<1x64xf32>
    %175 = vector.broadcast %174 : vector<1x64xf32> to vector<8x64xf32>
    %176 = arith.mulf %165, %175 : vector<8x64xf32>
    %177 = vector.broadcast %159 : vector<1x64xf32> to vector<8x64xf32>
    %178 = arith.addf %176, %177 : vector<8x64xf32>
    %179 = arith.addf %178, %97 : vector<8x64xf32>
    %cst_70 = arith.constant 0.000000e+00 : f32
    %180 = vector.broadcast %cst_70 : f32 to vector<8x64xf32>
    %181 = arith.cmpf ogt, %179, %180 : vector<8x64xf32>
    %cst_71 = arith.constant 0.00999999977 : f32
    %182 = vector.broadcast %cst_71 : f32 to vector<8x64xf32>
    %183 = arith.mulf %182, %179 : vector<8x64xf32>
    %184 = arith.select %181, %179, %183 : vector<8x64xi1>, vector<8x64xf32>
    %c0_72 = arith.constant 0 : index
    %c32 = arith.constant 32 : index
    %185 = vector.load %arg5[%c0_72, %c32] : memref<4x256xf32, #tpu.memory_space<vmem>>, vector<4x16xf32>
    %c0_73 = arith.constant 0 : index
    %c128 = arith.constant 128 : index
    %186 = vector.load %arg6[%c0_73, %c128] : memref<2x1024xf32, #tpu.memory_space<vmem>>, vector<2x64xf32>
    %c0_74 = arith.constant 0 : index
    %c32_75 = arith.constant 32 : index
    %187 = vector.load %arg2[%c0_74, %c32_75] : memref<64x256xf32, #tpu.memory_space<vmem>>, vector<64x16xf32>
    %cst_76 = arith.constant dense<0.000000e+00> : vector<8x16xf32>
    %188 = tpu.matmul %184, %187, %cst_76 {dimension_numbers = #tpu.dot_dimension_numbers<[1], [0], [0], [1], [0, 0, 1, 1], [], []>} : vector<8x64xf32>, vector<64x16xf32>, vector<8x16xf32> -> vector<8x16xf32>
    %189 = vector.extract_strided_slice %185 {offsets = [0, 0], sizes = [1, 16], strides = [1, 1]} : vector<4x16xf32> to vector<1x16xf32>
    %190 = vector.extract_strided_slice %185 {offsets = [1, 0], sizes = [1, 16], strides = [1, 1]} : vector<4x16xf32> to vector<1x16xf32>
    %cst_77 = arith.constant dense<0.000000e+00> : vector<16xf32>
    %191 = vector.multi_reduction <add>, %188, %cst_77 [0] : vector<8x16xf32> to vector<16xf32>
    %192 = vector.shape_cast %191 : vector<16xf32> to vector<1x16xf32>
    %cst_78 = arith.constant 8.000000e+00 : f32
    %193 = vector.broadcast %cst_78 : f32 to vector<1x16xf32>
    %194 = arith.divf %192, %193 : vector<1x16xf32>
    %195 = vector.broadcast %194 : vector<1x16xf32> to vector<8x16xf32>
    %196 = arith.subf %188, %195 : vector<8x16xf32>
    %197 = arith.mulf %196, %196 : vector<8x16xf32>
    %cst_79 = arith.constant dense<0.000000e+00> : vector<16xf32>
    %198 = vector.multi_reduction <add>, %197, %cst_79 [0] : vector<8x16xf32> to vector<16xf32>
    %199 = vector.shape_cast %198 : vector<16xf32> to vector<1x16xf32>
    %cst_80 = arith.constant 8.000000e+00 : f32
    %200 = vector.broadcast %cst_80 : f32 to vector<1x16xf32>
    %201 = arith.divf %199, %200 : vector<1x16xf32>
    %cst_81 = arith.constant 9.99999974E-6 : f32
    %202 = vector.broadcast %cst_81 : f32 to vector<1x16xf32>
    %203 = arith.addf %201, %202 : vector<1x16xf32>
    %204 = math.rsqrt %203 : vector<1x16xf32>
    %205 = arith.mulf %204, %189 : vector<1x16xf32>
    %206 = vector.broadcast %205 : vector<1x16xf32> to vector<8x16xf32>
    %207 = arith.mulf %196, %206 : vector<8x16xf32>
    %208 = vector.broadcast %190 : vector<1x16xf32> to vector<8x16xf32>
    %209 = arith.addf %207, %208 : vector<8x16xf32>
    %cst_82 = arith.constant 0.000000e+00 : f32
    %210 = vector.broadcast %cst_82 : f32 to vector<8x16xf32>
    %211 = arith.cmpf ogt, %209, %210 : vector<8x16xf32>
    %cst_83 = arith.constant 0.00999999977 : f32
    %212 = vector.broadcast %cst_83 : f32 to vector<8x16xf32>
    %213 = arith.mulf %212, %209 : vector<8x16xf32>
    %214 = arith.select %211, %209, %213 : vector<8x16xi1>, vector<8x16xf32>
    %c0_84 = arith.constant 0 : index
    %c32_85 = arith.constant 32 : index
    %215 = vector.load %arg3[%c0_84, %c32_85] : memref<16x256xf32, #tpu.memory_space<vmem>>, vector<16x16xf32>
    %cst_86 = arith.constant dense<0.000000e+00> : vector<8x16xf32>
    %216 = tpu.matmul %214, %215, %cst_86 {dimension_numbers = #tpu.dot_dimension_numbers<[1], [0], [0], [1], [0, 0, 1, 1], [], []>} : vector<8x16xf32>, vector<16x16xf32>, vector<8x16xf32> -> vector<8x16xf32>
    %217 = vector.extract_strided_slice %185 {offsets = [2, 0], sizes = [1, 16], strides = [1, 1]} : vector<4x16xf32> to vector<1x16xf32>
    %218 = vector.extract_strided_slice %185 {offsets = [3, 0], sizes = [1, 16], strides = [1, 1]} : vector<4x16xf32> to vector<1x16xf32>
    %cst_87 = arith.constant dense<0.000000e+00> : vector<16xf32>
    %219 = vector.multi_reduction <add>, %216, %cst_87 [0] : vector<8x16xf32> to vector<16xf32>
    %220 = vector.shape_cast %219 : vector<16xf32> to vector<1x16xf32>
    %cst_88 = arith.constant 8.000000e+00 : f32
    %221 = vector.broadcast %cst_88 : f32 to vector<1x16xf32>
    %222 = arith.divf %220, %221 : vector<1x16xf32>
    %223 = vector.broadcast %222 : vector<1x16xf32> to vector<8x16xf32>
    %224 = arith.subf %216, %223 : vector<8x16xf32>
    %225 = arith.mulf %224, %224 : vector<8x16xf32>
    %cst_89 = arith.constant dense<0.000000e+00> : vector<16xf32>
    %226 = vector.multi_reduction <add>, %225, %cst_89 [0] : vector<8x16xf32> to vector<16xf32>
    %227 = vector.shape_cast %226 : vector<16xf32> to vector<1x16xf32>
    %cst_90 = arith.constant 8.000000e+00 : f32
    %228 = vector.broadcast %cst_90 : f32 to vector<1x16xf32>
    %229 = arith.divf %227, %228 : vector<1x16xf32>
    %cst_91 = arith.constant 9.99999974E-6 : f32
    %230 = vector.broadcast %cst_91 : f32 to vector<1x16xf32>
    %231 = arith.addf %229, %230 : vector<1x16xf32>
    %232 = math.rsqrt %231 : vector<1x16xf32>
    %233 = arith.mulf %232, %217 : vector<1x16xf32>
    %234 = vector.broadcast %233 : vector<1x16xf32> to vector<8x16xf32>
    %235 = arith.mulf %224, %234 : vector<8x16xf32>
    %236 = vector.broadcast %218 : vector<1x16xf32> to vector<8x16xf32>
    %237 = arith.addf %235, %236 : vector<8x16xf32>
    %cst_92 = arith.constant 0.000000e+00 : f32
    %238 = vector.broadcast %cst_92 : f32 to vector<8x16xf32>
    %239 = arith.cmpf ogt, %237, %238 : vector<8x16xf32>
    %cst_93 = arith.constant 0.00999999977 : f32
    %240 = vector.broadcast %cst_93 : f32 to vector<8x16xf32>
    %241 = arith.mulf %240, %237 : vector<8x16xf32>
    %242 = arith.select %239, %237, %241 : vector<8x16xi1>, vector<8x16xf32>
    %c0_94 = arith.constant 0 : index
    %c128_95 = arith.constant 128 : index
    %243 = vector.load %arg4[%c0_94, %c128_95] : memref<16x1024xf32, #tpu.memory_space<vmem>>, vector<16x64xf32>
    %cst_96 = arith.constant dense<0.000000e+00> : vector<8x64xf32>
    %244 = tpu.matmul %242, %243, %cst_96 {dimension_numbers = #tpu.dot_dimension_numbers<[1], [0], [0], [1], [0, 0, 1, 1], [], []>} : vector<8x16xf32>, vector<16x64xf32>, vector<8x64xf32> -> vector<8x64xf32>
    %245 = vector.extract_strided_slice %186 {offsets = [0, 0], sizes = [1, 64], strides = [1, 1]} : vector<2x64xf32> to vector<1x64xf32>
    %246 = vector.extract_strided_slice %186 {offsets = [1, 0], sizes = [1, 64], strides = [1, 1]} : vector<2x64xf32> to vector<1x64xf32>
    %cst_97 = arith.constant dense<0.000000e+00> : vector<64xf32>
    %247 = vector.multi_reduction <add>, %244, %cst_97 [0] : vector<8x64xf32> to vector<64xf32>
    %248 = vector.shape_cast %247 : vector<64xf32> to vector<1x64xf32>
    %cst_98 = arith.constant 8.000000e+00 : f32
    %249 = vector.broadcast %cst_98 : f32 to vector<1x64xf32>
    %250 = arith.divf %248, %249 : vector<1x64xf32>
    %251 = vector.broadcast %250 : vector<1x64xf32> to vector<8x64xf32>
    %252 = arith.subf %244, %251 : vector<8x64xf32>
    %253 = arith.mulf %252, %252 : vector<8x64xf32>
    %cst_99 = arith.constant dense<0.000000e+00> : vector<64xf32>
    %254 = vector.multi_reduction <add>, %253, %cst_99 [0] : vector<8x64xf32> to vector<64xf32>
    %255 = vector.shape_cast %254 : vector<64xf32> to vector<1x64xf32>
    %cst_100 = arith.constant 8.000000e+00 : f32
    %256 = vector.broadcast %cst_100 : f32 to vector<1x64xf32>
    %257 = arith.divf %255, %256 : vector<1x64xf32>
    %cst_101 = arith.constant 9.99999974E-6 : f32
    %258 = vector.broadcast %cst_101 : f32 to vector<1x64xf32>
    %259 = arith.addf %257, %258 : vector<1x64xf32>
    %260 = math.rsqrt %259 : vector<1x64xf32>
    %261 = arith.mulf %260, %245 : vector<1x64xf32>
    %262 = vector.broadcast %261 : vector<1x64xf32> to vector<8x64xf32>
    %263 = arith.mulf %252, %262 : vector<8x64xf32>
    %264 = vector.broadcast %246 : vector<1x64xf32> to vector<8x64xf32>
    %265 = arith.addf %263, %264 : vector<8x64xf32>
    %266 = arith.addf %265, %184 : vector<8x64xf32>
    %cst_102 = arith.constant 0.000000e+00 : f32
    %267 = vector.broadcast %cst_102 : f32 to vector<8x64xf32>
    %268 = arith.cmpf ogt, %266, %267 : vector<8x64xf32>
    %cst_103 = arith.constant 0.00999999977 : f32
    %269 = vector.broadcast %cst_103 : f32 to vector<8x64xf32>
    %270 = arith.mulf %269, %266 : vector<8x64xf32>
    %271 = arith.select %268, %266, %270 : vector<8x64xi1>, vector<8x64xf32>
    %c0_104 = arith.constant 0 : index
    %c48 = arith.constant 48 : index
    %272 = vector.load %arg5[%c0_104, %c48] : memref<4x256xf32, #tpu.memory_space<vmem>>, vector<4x16xf32>
    %c0_105 = arith.constant 0 : index
    %c192 = arith.constant 192 : index
    %273 = vector.load %arg6[%c0_105, %c192] : memref<2x1024xf32, #tpu.memory_space<vmem>>, vector<2x64xf32>
    %c0_106 = arith.constant 0 : index
    %c48_107 = arith.constant 48 : index
    %274 = vector.load %arg2[%c0_106, %c48_107] : memref<64x256xf32, #tpu.memory_space<vmem>>, vector<64x16xf32>
    %cst_108 = arith.constant dense<0.000000e+00> : vector<8x16xf32>
    %275 = tpu.matmul %271, %274, %cst_108 {dimension_numbers = #tpu.dot_dimension_numbers<[1], [0], [0], [1], [0, 0, 1, 1], [], []>} : vector<8x64xf32>, vector<64x16xf32>, vector<8x16xf32> -> vector<8x16xf32>
    %276 = vector.extract_strided_slice %272 {offsets = [0, 0], sizes = [1, 16], strides = [1, 1]} : vector<4x16xf32> to vector<1x16xf32>
    %277 = vector.extract_strided_slice %272 {offsets = [1, 0], sizes = [1, 16], strides = [1, 1]} : vector<4x16xf32> to vector<1x16xf32>
    %cst_109 = arith.constant dense<0.000000e+00> : vector<16xf32>
    %278 = vector.multi_reduction <add>, %275, %cst_109 [0] : vector<8x16xf32> to vector<16xf32>
    %279 = vector.shape_cast %278 : vector<16xf32> to vector<1x16xf32>
    %cst_110 = arith.constant 8.000000e+00 : f32
    %280 = vector.broadcast %cst_110 : f32 to vector<1x16xf32>
    %281 = arith.divf %279, %280 : vector<1x16xf32>
    %282 = vector.broadcast %281 : vector<1x16xf32> to vector<8x16xf32>
    %283 = arith.subf %275, %282 : vector<8x16xf32>
    %284 = arith.mulf %283, %283 : vector<8x16xf32>
    %cst_111 = arith.constant dense<0.000000e+00> : vector<16xf32>
    %285 = vector.multi_reduction <add>, %284, %cst_111 [0] : vector<8x16xf32> to vector<16xf32>
    %286 = vector.shape_cast %285 : vector<16xf32> to vector<1x16xf32>
    %cst_112 = arith.constant 8.000000e+00 : f32
    %287 = vector.broadcast %cst_112 : f32 to vector<1x16xf32>
    %288 = arith.divf %286, %287 : vector<1x16xf32>
    %cst_113 = arith.constant 9.99999974E-6 : f32
    %289 = vector.broadcast %cst_113 : f32 to vector<1x16xf32>
    %290 = arith.addf %288, %289 : vector<1x16xf32>
    %291 = math.rsqrt %290 : vector<1x16xf32>
    %292 = arith.mulf %291, %276 : vector<1x16xf32>
    %293 = vector.broadcast %292 : vector<1x16xf32> to vector<8x16xf32>
    %294 = arith.mulf %283, %293 : vector<8x16xf32>
    %295 = vector.broadcast %277 : vector<1x16xf32> to vector<8x16xf32>
    %296 = arith.addf %294, %295 : vector<8x16xf32>
    %cst_114 = arith.constant 0.000000e+00 : f32
    %297 = vector.broadcast %cst_114 : f32 to vector<8x16xf32>
    %298 = arith.cmpf ogt, %296, %297 : vector<8x16xf32>
    %cst_115 = arith.constant 0.00999999977 : f32
    %299 = vector.broadcast %cst_115 : f32 to vector<8x16xf32>
    %300 = arith.mulf %299, %296 : vector<8x16xf32>
    %301 = arith.select %298, %296, %300 : vector<8x16xi1>, vector<8x16xf32>
    %c0_116 = arith.constant 0 : index
    %c48_117 = arith.constant 48 : index
    %302 = vector.load %arg3[%c0_116, %c48_117] : memref<16x256xf32, #tpu.memory_space<vmem>>, vector<16x16xf32>
    %cst_118 = arith.constant dense<0.000000e+00> : vector<8x16xf32>
    %303 = tpu.matmul %301, %302, %cst_118 {dimension_numbers = #tpu.dot_dimension_numbers<[1], [0], [0], [1], [0, 0, 1, 1], [], []>} : vector<8x16xf32>, vector<16x16xf32>, vector<8x16xf32> -> vector<8x16xf32>
    %304 = vector.extract_strided_slice %272 {offsets = [2, 0], sizes = [1, 16], strides = [1, 1]} : vector<4x16xf32> to vector<1x16xf32>
    %305 = vector.extract_strided_slice %272 {offsets = [3, 0], sizes = [1, 16], strides = [1, 1]} : vector<4x16xf32> to vector<1x16xf32>
    %cst_119 = arith.constant dense<0.000000e+00> : vector<16xf32>
    %306 = vector.multi_reduction <add>, %303, %cst_119 [0] : vector<8x16xf32> to vector<16xf32>
    %307 = vector.shape_cast %306 : vector<16xf32> to vector<1x16xf32>
    %cst_120 = arith.constant 8.000000e+00 : f32
    %308 = vector.broadcast %cst_120 : f32 to vector<1x16xf32>
    %309 = arith.divf %307, %308 : vector<1x16xf32>
    %310 = vector.broadcast %309 : vector<1x16xf32> to vector<8x16xf32>
    %311 = arith.subf %303, %310 : vector<8x16xf32>
    %312 = arith.mulf %311, %311 : vector<8x16xf32>
    %cst_121 = arith.constant dense<0.000000e+00> : vector<16xf32>
    %313 = vector.multi_reduction <add>, %312, %cst_121 [0] : vector<8x16xf32> to vector<16xf32>
    %314 = vector.shape_cast %313 : vector<16xf32> to vector<1x16xf32>
    %cst_122 = arith.constant 8.000000e+00 : f32
    %315 = vector.broadcast %cst_122 : f32 to vector<1x16xf32>
    %316 = arith.divf %314, %315 : vector<1x16xf32>
    %cst_123 = arith.constant 9.99999974E-6 : f32
    %317 = vector.broadcast %cst_123 : f32 to vector<1x16xf32>
    %318 = arith.addf %316, %317 : vector<1x16xf32>
    %319 = math.rsqrt %318 : vector<1x16xf32>
    %320 = arith.mulf %319, %304 : vector<1x16xf32>
    %321 = vector.broadcast %320 : vector<1x16xf32> to vector<8x16xf32>
    %322 = arith.mulf %311, %321 : vector<8x16xf32>
    %323 = vector.broadcast %305 : vector<1x16xf32> to vector<8x16xf32>
    %324 = arith.addf %322, %323 : vector<8x16xf32>
    %cst_124 = arith.constant 0.000000e+00 : f32
    %325 = vector.broadcast %cst_124 : f32 to vector<8x16xf32>
    %326 = arith.cmpf ogt, %324, %325 : vector<8x16xf32>
    %cst_125 = arith.constant 0.00999999977 : f32
    %327 = vector.broadcast %cst_125 : f32 to vector<8x16xf32>
    %328 = arith.mulf %327, %324 : vector<8x16xf32>
    %329 = arith.select %326, %324, %328 : vector<8x16xi1>, vector<8x16xf32>
    %c0_126 = arith.constant 0 : index
    %c192_127 = arith.constant 192 : index
    %330 = vector.load %arg4[%c0_126, %c192_127] : memref<16x1024xf32, #tpu.memory_space<vmem>>, vector<16x64xf32>
    %cst_128 = arith.constant dense<0.000000e+00> : vector<8x64xf32>
    %331 = tpu.matmul %329, %330, %cst_128 {dimension_numbers = #tpu.dot_dimension_numbers<[1], [0], [0], [1], [0, 0, 1, 1], [], []>} : vector<8x16xf32>, vector<16x64xf32>, vector<8x64xf32> -> vector<8x64xf32>
    %332 = vector.extract_strided_slice %273 {offsets = [0, 0], sizes = [1, 64], strides = [1, 1]} : vector<2x64xf32> to vector<1x64xf32>
    %333 = vector.extract_strided_slice %273 {offsets = [1, 0], sizes = [1, 64], strides = [1, 1]} : vector<2x64xf32> to vector<1x64xf32>
    %cst_129 = arith.constant dense<0.000000e+00> : vector<64xf32>
    %334 = vector.multi_reduction <add>, %331, %cst_129 [0] : vector<8x64xf32> to vector<64xf32>
    %335 = vector.shape_cast %334 : vector<64xf32> to vector<1x64xf32>
    %cst_130 = arith.constant 8.000000e+00 : f32
    %336 = vector.broadcast %cst_130 : f32 to vector<1x64xf32>
    %337 = arith.divf %335, %336 : vector<1x64xf32>
    %338 = vector.broadcast %337 : vector<1x64xf32> to vector<8x64xf32>
    %339 = arith.subf %331, %338 : vector<8x64xf32>
    %340 = arith.mulf %339, %339 : vector<8x64xf32>
    %cst_131 = arith.constant dense<0.000000e+00> : vector<64xf32>
    %341 = vector.multi_reduction <add>, %340, %cst_131 [0] : vector<8x64xf32> to vector<64xf32>
    %342 = vector.shape_cast %341 : vector<64xf32> to vector<1x64xf32>
    %cst_132 = arith.constant 8.000000e+00 : f32
    %343 = vector.broadcast %cst_132 : f32 to vector<1x64xf32>
    %344 = arith.divf %342, %343 : vector<1x64xf32>
    %cst_133 = arith.constant 9.99999974E-6 : f32
    %345 = vector.broadcast %cst_133 : f32 to vector<1x64xf32>
    %346 = arith.addf %344, %345 : vector<1x64xf32>
    %347 = math.rsqrt %346 : vector<1x64xf32>
    %348 = arith.mulf %347, %332 : vector<1x64xf32>
    %349 = vector.broadcast %348 : vector<1x64xf32> to vector<8x64xf32>
    %350 = arith.mulf %339, %349 : vector<8x64xf32>
    %351 = vector.broadcast %333 : vector<1x64xf32> to vector<8x64xf32>
    %352 = arith.addf %350, %351 : vector<8x64xf32>
    %353 = arith.addf %352, %271 : vector<8x64xf32>
    %cst_134 = arith.constant 0.000000e+00 : f32
    %354 = vector.broadcast %cst_134 : f32 to vector<8x64xf32>
    %355 = arith.cmpf ogt, %353, %354 : vector<8x64xf32>
    %cst_135 = arith.constant 0.00999999977 : f32
    %356 = vector.broadcast %cst_135 : f32 to vector<8x64xf32>
    %357 = arith.mulf %356, %353 : vector<8x64xf32>
    %358 = arith.select %355, %353, %357 : vector<8x64xi1>, vector<8x64xf32>
    %c0_136 = arith.constant 0 : index
    %c64_137 = arith.constant 64 : index
    %359 = vector.load %arg5[%c0_136, %c64_137] : memref<4x256xf32, #tpu.memory_space<vmem>>, vector<4x16xf32>
    %c0_138 = arith.constant 0 : index
    %c256 = arith.constant 256 : index
    %360 = vector.load %arg6[%c0_138, %c256] : memref<2x1024xf32, #tpu.memory_space<vmem>>, vector<2x64xf32>
    %c0_139 = arith.constant 0 : index
    %c64_140 = arith.constant 64 : index
    %361 = vector.load %arg2[%c0_139, %c64_140] : memref<64x256xf32, #tpu.memory_space<vmem>>, vector<64x16xf32>
    %cst_141 = arith.constant dense<0.000000e+00> : vector<8x16xf32>
    %362 = tpu.matmul %358, %361, %cst_141 {dimension_numbers = #tpu.dot_dimension_numbers<[1], [0], [0], [1], [0, 0, 1, 1], [], []>} : vector<8x64xf32>, vector<64x16xf32>, vector<8x16xf32> -> vector<8x16xf32>
    %363 = vector.extract_strided_slice %359 {offsets = [0, 0], sizes = [1, 16], strides = [1, 1]} : vector<4x16xf32> to vector<1x16xf32>
    %364 = vector.extract_strided_slice %359 {offsets = [1, 0], sizes = [1, 16], strides = [1, 1]} : vector<4x16xf32> to vector<1x16xf32>
    %cst_142 = arith.constant dense<0.000000e+00> : vector<16xf32>
    %365 = vector.multi_reduction <add>, %362, %cst_142 [0] : vector<8x16xf32> to vector<16xf32>
    %366 = vector.shape_cast %365 : vector<16xf32> to vector<1x16xf32>
    %cst_143 = arith.constant 8.000000e+00 : f32
    %367 = vector.broadcast %cst_143 : f32 to vector<1x16xf32>
    %368 = arith.divf %366, %367 : vector<1x16xf32>
    %369 = vector.broadcast %368 : vector<1x16xf32> to vector<8x16xf32>
    %370 = arith.subf %362, %369 : vector<8x16xf32>
    %371 = arith.mulf %370, %370 : vector<8x16xf32>
    %cst_144 = arith.constant dense<0.000000e+00> : vector<16xf32>
    %372 = vector.multi_reduction <add>, %371, %cst_144 [0] : vector<8x16xf32> to vector<16xf32>
    %373 = vector.shape_cast %372 : vector<16xf32> to vector<1x16xf32>
    %cst_145 = arith.constant 8.000000e+00 : f32
    %374 = vector.broadcast %cst_145 : f32 to vector<1x16xf32>
    %375 = arith.divf %373, %374 : vector<1x16xf32>
    %cst_146 = arith.constant 9.99999974E-6 : f32
    %376 = vector.broadcast %cst_146 : f32 to vector<1x16xf32>
    %377 = arith.addf %375, %376 : vector<1x16xf32>
    %378 = math.rsqrt %377 : vector<1x16xf32>
    %379 = arith.mulf %378, %363 : vector<1x16xf32>
    %380 = vector.broadcast %379 : vector<1x16xf32> to vector<8x16xf32>
    %381 = arith.mulf %370, %380 : vector<8x16xf32>
    %382 = vector.broadcast %364 : vector<1x16xf32> to vector<8x16xf32>
    %383 = arith.addf %381, %382 : vector<8x16xf32>
    %cst_147 = arith.constant 0.000000e+00 : f32
    %384 = vector.broadcast %cst_147 : f32 to vector<8x16xf32>
    %385 = arith.cmpf ogt, %383, %384 : vector<8x16xf32>
    %cst_148 = arith.constant 0.00999999977 : f32
    %386 = vector.broadcast %cst_148 : f32 to vector<8x16xf32>
    %387 = arith.mulf %386, %383 : vector<8x16xf32>
    %388 = arith.select %385, %383, %387 : vector<8x16xi1>, vector<8x16xf32>
    %c0_149 = arith.constant 0 : index
    %c64_150 = arith.constant 64 : index
    %389 = vector.load %arg3[%c0_149, %c64_150] : memref<16x256xf32, #tpu.memory_space<vmem>>, vector<16x16xf32>
    %cst_151 = arith.constant dense<0.000000e+00> : vector<8x16xf32>
    %390 = tpu.matmul %388, %389, %cst_151 {dimension_numbers = #tpu.dot_dimension_numbers<[1], [0], [0], [1], [0, 0, 1, 1], [], []>} : vector<8x16xf32>, vector<16x16xf32>, vector<8x16xf32> -> vector<8x16xf32>
    %391 = vector.extract_strided_slice %359 {offsets = [2, 0], sizes = [1, 16], strides = [1, 1]} : vector<4x16xf32> to vector<1x16xf32>
    %392 = vector.extract_strided_slice %359 {offsets = [3, 0], sizes = [1, 16], strides = [1, 1]} : vector<4x16xf32> to vector<1x16xf32>
    %cst_152 = arith.constant dense<0.000000e+00> : vector<16xf32>
    %393 = vector.multi_reduction <add>, %390, %cst_152 [0] : vector<8x16xf32> to vector<16xf32>
    %394 = vector.shape_cast %393 : vector<16xf32> to vector<1x16xf32>
    %cst_153 = arith.constant 8.000000e+00 : f32
    %395 = vector.broadcast %cst_153 : f32 to vector<1x16xf32>
    %396 = arith.divf %394, %395 : vector<1x16xf32>
    %397 = vector.broadcast %396 : vector<1x16xf32> to vector<8x16xf32>
    %398 = arith.subf %390, %397 : vector<8x16xf32>
    %399 = arith.mulf %398, %398 : vector<8x16xf32>
    %cst_154 = arith.constant dense<0.000000e+00> : vector<16xf32>
    %400 = vector.multi_reduction <add>, %399, %cst_154 [0] : vector<8x16xf32> to vector<16xf32>
    %401 = vector.shape_cast %400 : vector<16xf32> to vector<1x16xf32>
    %cst_155 = arith.constant 8.000000e+00 : f32
    %402 = vector.broadcast %cst_155 : f32 to vector<1x16xf32>
    %403 = arith.divf %401, %402 : vector<1x16xf32>
    %cst_156 = arith.constant 9.99999974E-6 : f32
    %404 = vector.broadcast %cst_156 : f32 to vector<1x16xf32>
    %405 = arith.addf %403, %404 : vector<1x16xf32>
    %406 = math.rsqrt %405 : vector<1x16xf32>
    %407 = arith.mulf %406, %391 : vector<1x16xf32>
    %408 = vector.broadcast %407 : vector<1x16xf32> to vector<8x16xf32>
    %409 = arith.mulf %398, %408 : vector<8x16xf32>
    %410 = vector.broadcast %392 : vector<1x16xf32> to vector<8x16xf32>
    %411 = arith.addf %409, %410 : vector<8x16xf32>
    %cst_157 = arith.constant 0.000000e+00 : f32
    %412 = vector.broadcast %cst_157 : f32 to vector<8x16xf32>
    %413 = arith.cmpf ogt, %411, %412 : vector<8x16xf32>
    %cst_158 = arith.constant 0.00999999977 : f32
    %414 = vector.broadcast %cst_158 : f32 to vector<8x16xf32>
    %415 = arith.mulf %414, %411 : vector<8x16xf32>
    %416 = arith.select %413, %411, %415 : vector<8x16xi1>, vector<8x16xf32>
    %c0_159 = arith.constant 0 : index
    %c256_160 = arith.constant 256 : index
    %417 = vector.load %arg4[%c0_159, %c256_160] : memref<16x1024xf32, #tpu.memory_space<vmem>>, vector<16x64xf32>
    %cst_161 = arith.constant dense<0.000000e+00> : vector<8x64xf32>
    %418 = tpu.matmul %416, %417, %cst_161 {dimension_numbers = #tpu.dot_dimension_numbers<[1], [0], [0], [1], [0, 0, 1, 1], [], []>} : vector<8x16xf32>, vector<16x64xf32>, vector<8x64xf32> -> vector<8x64xf32>
    %419 = vector.extract_strided_slice %360 {offsets = [0, 0], sizes = [1, 64], strides = [1, 1]} : vector<2x64xf32> to vector<1x64xf32>
    %420 = vector.extract_strided_slice %360 {offsets = [1, 0], sizes = [1, 64], strides = [1, 1]} : vector<2x64xf32> to vector<1x64xf32>
    %cst_162 = arith.constant dense<0.000000e+00> : vector<64xf32>
    %421 = vector.multi_reduction <add>, %418, %cst_162 [0] : vector<8x64xf32> to vector<64xf32>
    %422 = vector.shape_cast %421 : vector<64xf32> to vector<1x64xf32>
    %cst_163 = arith.constant 8.000000e+00 : f32
    %423 = vector.broadcast %cst_163 : f32 to vector<1x64xf32>
    %424 = arith.divf %422, %423 : vector<1x64xf32>
    %425 = vector.broadcast %424 : vector<1x64xf32> to vector<8x64xf32>
    %426 = arith.subf %418, %425 : vector<8x64xf32>
    %427 = arith.mulf %426, %426 : vector<8x64xf32>
    %cst_164 = arith.constant dense<0.000000e+00> : vector<64xf32>
    %428 = vector.multi_reduction <add>, %427, %cst_164 [0] : vector<8x64xf32> to vector<64xf32>
    %429 = vector.shape_cast %428 : vector<64xf32> to vector<1x64xf32>
    %cst_165 = arith.constant 8.000000e+00 : f32
    %430 = vector.broadcast %cst_165 : f32 to vector<1x64xf32>
    %431 = arith.divf %429, %430 : vector<1x64xf32>
    %cst_166 = arith.constant 9.99999974E-6 : f32
    %432 = vector.broadcast %cst_166 : f32 to vector<1x64xf32>
    %433 = arith.addf %431, %432 : vector<1x64xf32>
    %434 = math.rsqrt %433 : vector<1x64xf32>
    %435 = arith.mulf %434, %419 : vector<1x64xf32>
    %436 = vector.broadcast %435 : vector<1x64xf32> to vector<8x64xf32>
    %437 = arith.mulf %426, %436 : vector<8x64xf32>
    %438 = vector.broadcast %420 : vector<1x64xf32> to vector<8x64xf32>
    %439 = arith.addf %437, %438 : vector<8x64xf32>
    %440 = arith.addf %439, %358 : vector<8x64xf32>
    %cst_167 = arith.constant 0.000000e+00 : f32
    %441 = vector.broadcast %cst_167 : f32 to vector<8x64xf32>
    %442 = arith.cmpf ogt, %440, %441 : vector<8x64xf32>
    %cst_168 = arith.constant 0.00999999977 : f32
    %443 = vector.broadcast %cst_168 : f32 to vector<8x64xf32>
    %444 = arith.mulf %443, %440 : vector<8x64xf32>
    %445 = arith.select %442, %440, %444 : vector<8x64xi1>, vector<8x64xf32>
    %c0_169 = arith.constant 0 : index
    %c80 = arith.constant 80 : index
    %446 = vector.load %arg5[%c0_169, %c80] : memref<4x256xf32, #tpu.memory_space<vmem>>, vector<4x16xf32>
    %c0_170 = arith.constant 0 : index
    %c320 = arith.constant 320 : index
    %447 = vector.load %arg6[%c0_170, %c320] : memref<2x1024xf32, #tpu.memory_space<vmem>>, vector<2x64xf32>
    %c0_171 = arith.constant 0 : index
    %c80_172 = arith.constant 80 : index
    %448 = vector.load %arg2[%c0_171, %c80_172] : memref<64x256xf32, #tpu.memory_space<vmem>>, vector<64x16xf32>
    %cst_173 = arith.constant dense<0.000000e+00> : vector<8x16xf32>
    %449 = tpu.matmul %445, %448, %cst_173 {dimension_numbers = #tpu.dot_dimension_numbers<[1], [0], [0], [1], [0, 0, 1, 1], [], []>} : vector<8x64xf32>, vector<64x16xf32>, vector<8x16xf32> -> vector<8x16xf32>
    %450 = vector.extract_strided_slice %446 {offsets = [0, 0], sizes = [1, 16], strides = [1, 1]} : vector<4x16xf32> to vector<1x16xf32>
    %451 = vector.extract_strided_slice %446 {offsets = [1, 0], sizes = [1, 16], strides = [1, 1]} : vector<4x16xf32> to vector<1x16xf32>
    %cst_174 = arith.constant dense<0.000000e+00> : vector<16xf32>
    %452 = vector.multi_reduction <add>, %449, %cst_174 [0] : vector<8x16xf32> to vector<16xf32>
    %453 = vector.shape_cast %452 : vector<16xf32> to vector<1x16xf32>
    %cst_175 = arith.constant 8.000000e+00 : f32
    %454 = vector.broadcast %cst_175 : f32 to vector<1x16xf32>
    %455 = arith.divf %453, %454 : vector<1x16xf32>
    %456 = vector.broadcast %455 : vector<1x16xf32> to vector<8x16xf32>
    %457 = arith.subf %449, %456 : vector<8x16xf32>
    %458 = arith.mulf %457, %457 : vector<8x16xf32>
    %cst_176 = arith.constant dense<0.000000e+00> : vector<16xf32>
    %459 = vector.multi_reduction <add>, %458, %cst_176 [0] : vector<8x16xf32> to vector<16xf32>
    %460 = vector.shape_cast %459 : vector<16xf32> to vector<1x16xf32>
    %cst_177 = arith.constant 8.000000e+00 : f32
    %461 = vector.broadcast %cst_177 : f32 to vector<1x16xf32>
    %462 = arith.divf %460, %461 : vector<1x16xf32>
    %cst_178 = arith.constant 9.99999974E-6 : f32
    %463 = vector.broadcast %cst_178 : f32 to vector<1x16xf32>
    %464 = arith.addf %462, %463 : vector<1x16xf32>
    %465 = math.rsqrt %464 : vector<1x16xf32>
    %466 = arith.mulf %465, %450 : vector<1x16xf32>
    %467 = vector.broadcast %466 : vector<1x16xf32> to vector<8x16xf32>
    %468 = arith.mulf %457, %467 : vector<8x16xf32>
    %469 = vector.broadcast %451 : vector<1x16xf32> to vector<8x16xf32>
    %470 = arith.addf %468, %469 : vector<8x16xf32>
    %cst_179 = arith.constant 0.000000e+00 : f32
    %471 = vector.broadcast %cst_179 : f32 to vector<8x16xf32>
    %472 = arith.cmpf ogt, %470, %471 : vector<8x16xf32>
    %cst_180 = arith.constant 0.00999999977 : f32
    %473 = vector.broadcast %cst_180 : f32 to vector<8x16xf32>
    %474 = arith.mulf %473, %470 : vector<8x16xf32>
    %475 = arith.select %472, %470, %474 : vector<8x16xi1>, vector<8x16xf32>
    %c0_181 = arith.constant 0 : index
    %c80_182 = arith.constant 80 : index
    %476 = vector.load %arg3[%c0_181, %c80_182] : memref<16x256xf32, #tpu.memory_space<vmem>>, vector<16x16xf32>
    %cst_183 = arith.constant dense<0.000000e+00> : vector<8x16xf32>
    %477 = tpu.matmul %475, %476, %cst_183 {dimension_numbers = #tpu.dot_dimension_numbers<[1], [0], [0], [1], [0, 0, 1, 1], [], []>} : vector<8x16xf32>, vector<16x16xf32>, vector<8x16xf32> -> vector<8x16xf32>
    %478 = vector.extract_strided_slice %446 {offsets = [2, 0], sizes = [1, 16], strides = [1, 1]} : vector<4x16xf32> to vector<1x16xf32>
    %479 = vector.extract_strided_slice %446 {offsets = [3, 0], sizes = [1, 16], strides = [1, 1]} : vector<4x16xf32> to vector<1x16xf32>
    %cst_184 = arith.constant dense<0.000000e+00> : vector<16xf32>
    %480 = vector.multi_reduction <add>, %477, %cst_184 [0] : vector<8x16xf32> to vector<16xf32>
    %481 = vector.shape_cast %480 : vector<16xf32> to vector<1x16xf32>
    %cst_185 = arith.constant 8.000000e+00 : f32
    %482 = vector.broadcast %cst_185 : f32 to vector<1x16xf32>
    %483 = arith.divf %481, %482 : vector<1x16xf32>
    %484 = vector.broadcast %483 : vector<1x16xf32> to vector<8x16xf32>
    %485 = arith.subf %477, %484 : vector<8x16xf32>
    %486 = arith.mulf %485, %485 : vector<8x16xf32>
    %cst_186 = arith.constant dense<0.000000e+00> : vector<16xf32>
    %487 = vector.multi_reduction <add>, %486, %cst_186 [0] : vector<8x16xf32> to vector<16xf32>
    %488 = vector.shape_cast %487 : vector<16xf32> to vector<1x16xf32>
    %cst_187 = arith.constant 8.000000e+00 : f32
    %489 = vector.broadcast %cst_187 : f32 to vector<1x16xf32>
    %490 = arith.divf %488, %489 : vector<1x16xf32>
    %cst_188 = arith.constant 9.99999974E-6 : f32
    %491 = vector.broadcast %cst_188 : f32 to vector<1x16xf32>
    %492 = arith.addf %490, %491 : vector<1x16xf32>
    %493 = math.rsqrt %492 : vector<1x16xf32>
    %494 = arith.mulf %493, %478 : vector<1x16xf32>
    %495 = vector.broadcast %494 : vector<1x16xf32> to vector<8x16xf32>
    %496 = arith.mulf %485, %495 : vector<8x16xf32>
    %497 = vector.broadcast %479 : vector<1x16xf32> to vector<8x16xf32>
    %498 = arith.addf %496, %497 : vector<8x16xf32>
    %cst_189 = arith.constant 0.000000e+00 : f32
    %499 = vector.broadcast %cst_189 : f32 to vector<8x16xf32>
    %500 = arith.cmpf ogt, %498, %499 : vector<8x16xf32>
    %cst_190 = arith.constant 0.00999999977 : f32
    %501 = vector.broadcast %cst_190 : f32 to vector<8x16xf32>
    %502 = arith.mulf %501, %498 : vector<8x16xf32>
    %503 = arith.select %500, %498, %502 : vector<8x16xi1>, vector<8x16xf32>
    %c0_191 = arith.constant 0 : index
    %c320_192 = arith.constant 320 : index
    %504 = vector.load %arg4[%c0_191, %c320_192] : memref<16x1024xf32, #tpu.memory_space<vmem>>, vector<16x64xf32>
    %cst_193 = arith.constant dense<0.000000e+00> : vector<8x64xf32>
    %505 = tpu.matmul %503, %504, %cst_193 {dimension_numbers = #tpu.dot_dimension_numbers<[1], [0], [0], [1], [0, 0, 1, 1], [], []>} : vector<8x16xf32>, vector<16x64xf32>, vector<8x64xf32> -> vector<8x64xf32>
    %506 = vector.extract_strided_slice %447 {offsets = [0, 0], sizes = [1, 64], strides = [1, 1]} : vector<2x64xf32> to vector<1x64xf32>
    %507 = vector.extract_strided_slice %447 {offsets = [1, 0], sizes = [1, 64], strides = [1, 1]} : vector<2x64xf32> to vector<1x64xf32>
    %cst_194 = arith.constant dense<0.000000e+00> : vector<64xf32>
    %508 = vector.multi_reduction <add>, %505, %cst_194 [0] : vector<8x64xf32> to vector<64xf32>
    %509 = vector.shape_cast %508 : vector<64xf32> to vector<1x64xf32>
    %cst_195 = arith.constant 8.000000e+00 : f32
    %510 = vector.broadcast %cst_195 : f32 to vector<1x64xf32>
    %511 = arith.divf %509, %510 : vector<1x64xf32>
    %512 = vector.broadcast %511 : vector<1x64xf32> to vector<8x64xf32>
    %513 = arith.subf %505, %512 : vector<8x64xf32>
    %514 = arith.mulf %513, %513 : vector<8x64xf32>
    %cst_196 = arith.constant dense<0.000000e+00> : vector<64xf32>
    %515 = vector.multi_reduction <add>, %514, %cst_196 [0] : vector<8x64xf32> to vector<64xf32>
    %516 = vector.shape_cast %515 : vector<64xf32> to vector<1x64xf32>
    %cst_197 = arith.constant 8.000000e+00 : f32
    %517 = vector.broadcast %cst_197 : f32 to vector<1x64xf32>
    %518 = arith.divf %516, %517 : vector<1x64xf32>
    %cst_198 = arith.constant 9.99999974E-6 : f32
    %519 = vector.broadcast %cst_198 : f32 to vector<1x64xf32>
    %520 = arith.addf %518, %519 : vector<1x64xf32>
    %521 = math.rsqrt %520 : vector<1x64xf32>
    %522 = arith.mulf %521, %506 : vector<1x64xf32>
    %523 = vector.broadcast %522 : vector<1x64xf32> to vector<8x64xf32>
    %524 = arith.mulf %513, %523 : vector<8x64xf32>
    %525 = vector.broadcast %507 : vector<1x64xf32> to vector<8x64xf32>
    %526 = arith.addf %524, %525 : vector<8x64xf32>
    %527 = arith.addf %526, %445 : vector<8x64xf32>
    %cst_199 = arith.constant 0.000000e+00 : f32
    %528 = vector.broadcast %cst_199 : f32 to vector<8x64xf32>
    %529 = arith.cmpf ogt, %527, %528 : vector<8x64xf32>
    %cst_200 = arith.constant 0.00999999977 : f32
    %530 = vector.broadcast %cst_200 : f32 to vector<8x64xf32>
    %531 = arith.mulf %530, %527 : vector<8x64xf32>
    %532 = arith.select %529, %527, %531 : vector<8x64xi1>, vector<8x64xf32>
    %c0_201 = arith.constant 0 : index
    %c96 = arith.constant 96 : index
    %533 = vector.load %arg5[%c0_201, %c96] : memref<4x256xf32, #tpu.memory_space<vmem>>, vector<4x16xf32>
    %c0_202 = arith.constant 0 : index
    %c384 = arith.constant 384 : index
    %534 = vector.load %arg6[%c0_202, %c384] : memref<2x1024xf32, #tpu.memory_space<vmem>>, vector<2x64xf32>
    %c0_203 = arith.constant 0 : index
    %c96_204 = arith.constant 96 : index
    %535 = vector.load %arg2[%c0_203, %c96_204] : memref<64x256xf32, #tpu.memory_space<vmem>>, vector<64x16xf32>
    %cst_205 = arith.constant dense<0.000000e+00> : vector<8x16xf32>
    %536 = tpu.matmul %532, %535, %cst_205 {dimension_numbers = #tpu.dot_dimension_numbers<[1], [0], [0], [1], [0, 0, 1, 1], [], []>} : vector<8x64xf32>, vector<64x16xf32>, vector<8x16xf32> -> vector<8x16xf32>
    %537 = vector.extract_strided_slice %533 {offsets = [0, 0], sizes = [1, 16], strides = [1, 1]} : vector<4x16xf32> to vector<1x16xf32>
    %538 = vector.extract_strided_slice %533 {offsets = [1, 0], sizes = [1, 16], strides = [1, 1]} : vector<4x16xf32> to vector<1x16xf32>
    %cst_206 = arith.constant dense<0.000000e+00> : vector<16xf32>
    %539 = vector.multi_reduction <add>, %536, %cst_206 [0] : vector<8x16xf32> to vector<16xf32>
    %540 = vector.shape_cast %539 : vector<16xf32> to vector<1x16xf32>
    %cst_207 = arith.constant 8.000000e+00 : f32
    %541 = vector.broadcast %cst_207 : f32 to vector<1x16xf32>
    %542 = arith.divf %540, %541 : vector<1x16xf32>
    %543 = vector.broadcast %542 : vector<1x16xf32> to vector<8x16xf32>
    %544 = arith.subf %536, %543 : vector<8x16xf32>
    %545 = arith.mulf %544, %544 : vector<8x16xf32>
    %cst_208 = arith.constant dense<0.000000e+00> : vector<16xf32>
    %546 = vector.multi_reduction <add>, %545, %cst_208 [0] : vector<8x16xf32> to vector<16xf32>
    %547 = vector.shape_cast %546 : vector<16xf32> to vector<1x16xf32>
    %cst_209 = arith.constant 8.000000e+00 : f32
    %548 = vector.broadcast %cst_209 : f32 to vector<1x16xf32>
    %549 = arith.divf %547, %548 : vector<1x16xf32>
    %cst_210 = arith.constant 9.99999974E-6 : f32
    %550 = vector.broadcast %cst_210 : f32 to vector<1x16xf32>
    %551 = arith.addf %549, %550 : vector<1x16xf32>
    %552 = math.rsqrt %551 : vector<1x16xf32>
    %553 = arith.mulf %552, %537 : vector<1x16xf32>
    %554 = vector.broadcast %553 : vector<1x16xf32> to vector<8x16xf32>
    %555 = arith.mulf %544, %554 : vector<8x16xf32>
    %556 = vector.broadcast %538 : vector<1x16xf32> to vector<8x16xf32>
    %557 = arith.addf %555, %556 : vector<8x16xf32>
    %cst_211 = arith.constant 0.000000e+00 : f32
    %558 = vector.broadcast %cst_211 : f32 to vector<8x16xf32>
    %559 = arith.cmpf ogt, %557, %558 : vector<8x16xf32>
    %cst_212 = arith.constant 0.00999999977 : f32
    %560 = vector.broadcast %cst_212 : f32 to vector<8x16xf32>
    %561 = arith.mulf %560, %557 : vector<8x16xf32>
    %562 = arith.select %559, %557, %561 : vector<8x16xi1>, vector<8x16xf32>
    %c0_213 = arith.constant 0 : index
    %c96_214 = arith.constant 96 : index
    %563 = vector.load %arg3[%c0_213, %c96_214] : memref<16x256xf32, #tpu.memory_space<vmem>>, vector<16x16xf32>
    %cst_215 = arith.constant dense<0.000000e+00> : vector<8x16xf32>
    %564 = tpu.matmul %562, %563, %cst_215 {dimension_numbers = #tpu.dot_dimension_numbers<[1], [0], [0], [1], [0, 0, 1, 1], [], []>} : vector<8x16xf32>, vector<16x16xf32>, vector<8x16xf32> -> vector<8x16xf32>
    %565 = vector.extract_strided_slice %533 {offsets = [2, 0], sizes = [1, 16], strides = [1, 1]} : vector<4x16xf32> to vector<1x16xf32>
    %566 = vector.extract_strided_slice %533 {offsets = [3, 0], sizes = [1, 16], strides = [1, 1]} : vector<4x16xf32> to vector<1x16xf32>
    %cst_216 = arith.constant dense<0.000000e+00> : vector<16xf32>
    %567 = vector.multi_reduction <add>, %564, %cst_216 [0] : vector<8x16xf32> to vector<16xf32>
    %568 = vector.shape_cast %567 : vector<16xf32> to vector<1x16xf32>
    %cst_217 = arith.constant 8.000000e+00 : f32
    %569 = vector.broadcast %cst_217 : f32 to vector<1x16xf32>
    %570 = arith.divf %568, %569 : vector<1x16xf32>
    %571 = vector.broadcast %570 : vector<1x16xf32> to vector<8x16xf32>
    %572 = arith.subf %564, %571 : vector<8x16xf32>
    %573 = arith.mulf %572, %572 : vector<8x16xf32>
    %cst_218 = arith.constant dense<0.000000e+00> : vector<16xf32>
    %574 = vector.multi_reduction <add>, %573, %cst_218 [0] : vector<8x16xf32> to vector<16xf32>
    %575 = vector.shape_cast %574 : vector<16xf32> to vector<1x16xf32>
    %cst_219 = arith.constant 8.000000e+00 : f32
    %576 = vector.broadcast %cst_219 : f32 to vector<1x16xf32>
    %577 = arith.divf %575, %576 : vector<1x16xf32>
    %cst_220 = arith.constant 9.99999974E-6 : f32
    %578 = vector.broadcast %cst_220 : f32 to vector<1x16xf32>
    %579 = arith.addf %577, %578 : vector<1x16xf32>
    %580 = math.rsqrt %579 : vector<1x16xf32>
    %581 = arith.mulf %580, %565 : vector<1x16xf32>
    %582 = vector.broadcast %581 : vector<1x16xf32> to vector<8x16xf32>
    %583 = arith.mulf %572, %582 : vector<8x16xf32>
    %584 = vector.broadcast %566 : vector<1x16xf32> to vector<8x16xf32>
    %585 = arith.addf %583, %584 : vector<8x16xf32>
    %cst_221 = arith.constant 0.000000e+00 : f32
    %586 = vector.broadcast %cst_221 : f32 to vector<8x16xf32>
    %587 = arith.cmpf ogt, %585, %586 : vector<8x16xf32>
    %cst_222 = arith.constant 0.00999999977 : f32
    %588 = vector.broadcast %cst_222 : f32 to vector<8x16xf32>
    %589 = arith.mulf %588, %585 : vector<8x16xf32>
    %590 = arith.select %587, %585, %589 : vector<8x16xi1>, vector<8x16xf32>
    %c0_223 = arith.constant 0 : index
    %c384_224 = arith.constant 384 : index
    %591 = vector.load %arg4[%c0_223, %c384_224] : memref<16x1024xf32, #tpu.memory_space<vmem>>, vector<16x64xf32>
    %cst_225 = arith.constant dense<0.000000e+00> : vector<8x64xf32>
    %592 = tpu.matmul %590, %591, %cst_225 {dimension_numbers = #tpu.dot_dimension_numbers<[1], [0], [0], [1], [0, 0, 1, 1], [], []>} : vector<8x16xf32>, vector<16x64xf32>, vector<8x64xf32> -> vector<8x64xf32>
    %593 = vector.extract_strided_slice %534 {offsets = [0, 0], sizes = [1, 64], strides = [1, 1]} : vector<2x64xf32> to vector<1x64xf32>
    %594 = vector.extract_strided_slice %534 {offsets = [1, 0], sizes = [1, 64], strides = [1, 1]} : vector<2x64xf32> to vector<1x64xf32>
    %cst_226 = arith.constant dense<0.000000e+00> : vector<64xf32>
    %595 = vector.multi_reduction <add>, %592, %cst_226 [0] : vector<8x64xf32> to vector<64xf32>
    %596 = vector.shape_cast %595 : vector<64xf32> to vector<1x64xf32>
    %cst_227 = arith.constant 8.000000e+00 : f32
    %597 = vector.broadcast %cst_227 : f32 to vector<1x64xf32>
    %598 = arith.divf %596, %597 : vector<1x64xf32>
    %599 = vector.broadcast %598 : vector<1x64xf32> to vector<8x64xf32>
    %600 = arith.subf %592, %599 : vector<8x64xf32>
    %601 = arith.mulf %600, %600 : vector<8x64xf32>
    %cst_228 = arith.constant dense<0.000000e+00> : vector<64xf32>
    %602 = vector.multi_reduction <add>, %601, %cst_228 [0] : vector<8x64xf32> to vector<64xf32>
    %603 = vector.shape_cast %602 : vector<64xf32> to vector<1x64xf32>
    %cst_229 = arith.constant 8.000000e+00 : f32
    %604 = vector.broadcast %cst_229 : f32 to vector<1x64xf32>
    %605 = arith.divf %603, %604 : vector<1x64xf32>
    %cst_230 = arith.constant 9.99999974E-6 : f32
    %606 = vector.broadcast %cst_230 : f32 to vector<1x64xf32>
    %607 = arith.addf %605, %606 : vector<1x64xf32>
    %608 = math.rsqrt %607 : vector<1x64xf32>
    %609 = arith.mulf %608, %593 : vector<1x64xf32>
    %610 = vector.broadcast %609 : vector<1x64xf32> to vector<8x64xf32>
    %611 = arith.mulf %600, %610 : vector<8x64xf32>
    %612 = vector.broadcast %594 : vector<1x64xf32> to vector<8x64xf32>
    %613 = arith.addf %611, %612 : vector<8x64xf32>
    %614 = arith.addf %613, %532 : vector<8x64xf32>
    %cst_231 = arith.constant 0.000000e+00 : f32
    %615 = vector.broadcast %cst_231 : f32 to vector<8x64xf32>
    %616 = arith.cmpf ogt, %614, %615 : vector<8x64xf32>
    %cst_232 = arith.constant 0.00999999977 : f32
    %617 = vector.broadcast %cst_232 : f32 to vector<8x64xf32>
    %618 = arith.mulf %617, %614 : vector<8x64xf32>
    %619 = arith.select %616, %614, %618 : vector<8x64xi1>, vector<8x64xf32>
    %c0_233 = arith.constant 0 : index
    %c112 = arith.constant 112 : index
    %620 = vector.load %arg5[%c0_233, %c112] : memref<4x256xf32, #tpu.memory_space<vmem>>, vector<4x16xf32>
    %c0_234 = arith.constant 0 : index
    %c448 = arith.constant 448 : index
    %621 = vector.load %arg6[%c0_234, %c448] : memref<2x1024xf32, #tpu.memory_space<vmem>>, vector<2x64xf32>
    %c0_235 = arith.constant 0 : index
    %c112_236 = arith.constant 112 : index
    %622 = vector.load %arg2[%c0_235, %c112_236] : memref<64x256xf32, #tpu.memory_space<vmem>>, vector<64x16xf32>
    %cst_237 = arith.constant dense<0.000000e+00> : vector<8x16xf32>
    %623 = tpu.matmul %619, %622, %cst_237 {dimension_numbers = #tpu.dot_dimension_numbers<[1], [0], [0], [1], [0, 0, 1, 1], [], []>} : vector<8x64xf32>, vector<64x16xf32>, vector<8x16xf32> -> vector<8x16xf32>
    %624 = vector.extract_strided_slice %620 {offsets = [0, 0], sizes = [1, 16], strides = [1, 1]} : vector<4x16xf32> to vector<1x16xf32>
    %625 = vector.extract_strided_slice %620 {offsets = [1, 0], sizes = [1, 16], strides = [1, 1]} : vector<4x16xf32> to vector<1x16xf32>
    %cst_238 = arith.constant dense<0.000000e+00> : vector<16xf32>
    %626 = vector.multi_reduction <add>, %623, %cst_238 [0] : vector<8x16xf32> to vector<16xf32>
    %627 = vector.shape_cast %626 : vector<16xf32> to vector<1x16xf32>
    %cst_239 = arith.constant 8.000000e+00 : f32
    %628 = vector.broadcast %cst_239 : f32 to vector<1x16xf32>
    %629 = arith.divf %627, %628 : vector<1x16xf32>
    %630 = vector.broadcast %629 : vector<1x16xf32> to vector<8x16xf32>
    %631 = arith.subf %623, %630 : vector<8x16xf32>
    %632 = arith.mulf %631, %631 : vector<8x16xf32>
    %cst_240 = arith.constant dense<0.000000e+00> : vector<16xf32>
    %633 = vector.multi_reduction <add>, %632, %cst_240 [0] : vector<8x16xf32> to vector<16xf32>
    %634 = vector.shape_cast %633 : vector<16xf32> to vector<1x16xf32>
    %cst_241 = arith.constant 8.000000e+00 : f32
    %635 = vector.broadcast %cst_241 : f32 to vector<1x16xf32>
    %636 = arith.divf %634, %635 : vector<1x16xf32>
    %cst_242 = arith.constant 9.99999974E-6 : f32
    %637 = vector.broadcast %cst_242 : f32 to vector<1x16xf32>
    %638 = arith.addf %636, %637 : vector<1x16xf32>
    %639 = math.rsqrt %638 : vector<1x16xf32>
    %640 = arith.mulf %639, %624 : vector<1x16xf32>
    %641 = vector.broadcast %640 : vector<1x16xf32> to vector<8x16xf32>
    %642 = arith.mulf %631, %641 : vector<8x16xf32>
    %643 = vector.broadcast %625 : vector<1x16xf32> to vector<8x16xf32>
    %644 = arith.addf %642, %643 : vector<8x16xf32>
    %cst_243 = arith.constant 0.000000e+00 : f32
    %645 = vector.broadcast %cst_243 : f32 to vector<8x16xf32>
    %646 = arith.cmpf ogt, %644, %645 : vector<8x16xf32>
    %cst_244 = arith.constant 0.00999999977 : f32
    %647 = vector.broadcast %cst_244 : f32 to vector<8x16xf32>
    %648 = arith.mulf %647, %644 : vector<8x16xf32>
    %649 = arith.select %646, %644, %648 : vector<8x16xi1>, vector<8x16xf32>
    %c0_245 = arith.constant 0 : index
    %c112_246 = arith.constant 112 : index
    %650 = vector.load %arg3[%c0_245, %c112_246] : memref<16x256xf32, #tpu.memory_space<vmem>>, vector<16x16xf32>
    %cst_247 = arith.constant dense<0.000000e+00> : vector<8x16xf32>
    %651 = tpu.matmul %649, %650, %cst_247 {dimension_numbers = #tpu.dot_dimension_numbers<[1], [0], [0], [1], [0, 0, 1, 1], [], []>} : vector<8x16xf32>, vector<16x16xf32>, vector<8x16xf32> -> vector<8x16xf32>
    %652 = vector.extract_strided_slice %620 {offsets = [2, 0], sizes = [1, 16], strides = [1, 1]} : vector<4x16xf32> to vector<1x16xf32>
    %653 = vector.extract_strided_slice %620 {offsets = [3, 0], sizes = [1, 16], strides = [1, 1]} : vector<4x16xf32> to vector<1x16xf32>
    %cst_248 = arith.constant dense<0.000000e+00> : vector<16xf32>
    %654 = vector.multi_reduction <add>, %651, %cst_248 [0] : vector<8x16xf32> to vector<16xf32>
    %655 = vector.shape_cast %654 : vector<16xf32> to vector<1x16xf32>
    %cst_249 = arith.constant 8.000000e+00 : f32
    %656 = vector.broadcast %cst_249 : f32 to vector<1x16xf32>
    %657 = arith.divf %655, %656 : vector<1x16xf32>
    %658 = vector.broadcast %657 : vector<1x16xf32> to vector<8x16xf32>
    %659 = arith.subf %651, %658 : vector<8x16xf32>
    %660 = arith.mulf %659, %659 : vector<8x16xf32>
    %cst_250 = arith.constant dense<0.000000e+00> : vector<16xf32>
    %661 = vector.multi_reduction <add>, %660, %cst_250 [0] : vector<8x16xf32> to vector<16xf32>
    %662 = vector.shape_cast %661 : vector<16xf32> to vector<1x16xf32>
    %cst_251 = arith.constant 8.000000e+00 : f32
    %663 = vector.broadcast %cst_251 : f32 to vector<1x16xf32>
    %664 = arith.divf %662, %663 : vector<1x16xf32>
    %cst_252 = arith.constant 9.99999974E-6 : f32
    %665 = vector.broadcast %cst_252 : f32 to vector<1x16xf32>
    %666 = arith.addf %664, %665 : vector<1x16xf32>
    %667 = math.rsqrt %666 : vector<1x16xf32>
    %668 = arith.mulf %667, %652 : vector<1x16xf32>
    %669 = vector.broadcast %668 : vector<1x16xf32> to vector<8x16xf32>
    %670 = arith.mulf %659, %669 : vector<8x16xf32>
    %671 = vector.broadcast %653 : vector<1x16xf32> to vector<8x16xf32>
    %672 = arith.addf %670, %671 : vector<8x16xf32>
    %cst_253 = arith.constant 0.000000e+00 : f32
    %673 = vector.broadcast %cst_253 : f32 to vector<8x16xf32>
    %674 = arith.cmpf ogt, %672, %673 : vector<8x16xf32>
    %cst_254 = arith.constant 0.00999999977 : f32
    %675 = vector.broadcast %cst_254 : f32 to vector<8x16xf32>
    %676 = arith.mulf %675, %672 : vector<8x16xf32>
    %677 = arith.select %674, %672, %676 : vector<8x16xi1>, vector<8x16xf32>
    %c0_255 = arith.constant 0 : index
    %c448_256 = arith.constant 448 : index
    %678 = vector.load %arg4[%c0_255, %c448_256] : memref<16x1024xf32, #tpu.memory_space<vmem>>, vector<16x64xf32>
    %cst_257 = arith.constant dense<0.000000e+00> : vector<8x64xf32>
    %679 = tpu.matmul %677, %678, %cst_257 {dimension_numbers = #tpu.dot_dimension_numbers<[1], [0], [0], [1], [0, 0, 1, 1], [], []>} : vector<8x16xf32>, vector<16x64xf32>, vector<8x64xf32> -> vector<8x64xf32>
    %680 = vector.extract_strided_slice %621 {offsets = [0, 0], sizes = [1, 64], strides = [1, 1]} : vector<2x64xf32> to vector<1x64xf32>
    %681 = vector.extract_strided_slice %621 {offsets = [1, 0], sizes = [1, 64], strides = [1, 1]} : vector<2x64xf32> to vector<1x64xf32>
    %cst_258 = arith.constant dense<0.000000e+00> : vector<64xf32>
    %682 = vector.multi_reduction <add>, %679, %cst_258 [0] : vector<8x64xf32> to vector<64xf32>
    %683 = vector.shape_cast %682 : vector<64xf32> to vector<1x64xf32>
    %cst_259 = arith.constant 8.000000e+00 : f32
    %684 = vector.broadcast %cst_259 : f32 to vector<1x64xf32>
    %685 = arith.divf %683, %684 : vector<1x64xf32>
    %686 = vector.broadcast %685 : vector<1x64xf32> to vector<8x64xf32>
    %687 = arith.subf %679, %686 : vector<8x64xf32>
    %688 = arith.mulf %687, %687 : vector<8x64xf32>
    %cst_260 = arith.constant dense<0.000000e+00> : vector<64xf32>
    %689 = vector.multi_reduction <add>, %688, %cst_260 [0] : vector<8x64xf32> to vector<64xf32>
    %690 = vector.shape_cast %689 : vector<64xf32> to vector<1x64xf32>
    %cst_261 = arith.constant 8.000000e+00 : f32
    %691 = vector.broadcast %cst_261 : f32 to vector<1x64xf32>
    %692 = arith.divf %690, %691 : vector<1x64xf32>
    %cst_262 = arith.constant 9.99999974E-6 : f32
    %693 = vector.broadcast %cst_262 : f32 to vector<1x64xf32>
    %694 = arith.addf %692, %693 : vector<1x64xf32>
    %695 = math.rsqrt %694 : vector<1x64xf32>
    %696 = arith.mulf %695, %680 : vector<1x64xf32>
    %697 = vector.broadcast %696 : vector<1x64xf32> to vector<8x64xf32>
    %698 = arith.mulf %687, %697 : vector<8x64xf32>
    %699 = vector.broadcast %681 : vector<1x64xf32> to vector<8x64xf32>
    %700 = arith.addf %698, %699 : vector<8x64xf32>
    %701 = arith.addf %700, %619 : vector<8x64xf32>
    %cst_263 = arith.constant 0.000000e+00 : f32
    %702 = vector.broadcast %cst_263 : f32 to vector<8x64xf32>
    %703 = arith.cmpf ogt, %701, %702 : vector<8x64xf32>
    %cst_264 = arith.constant 0.00999999977 : f32
    %704 = vector.broadcast %cst_264 : f32 to vector<8x64xf32>
    %705 = arith.mulf %704, %701 : vector<8x64xf32>
    %706 = arith.select %703, %701, %705 : vector<8x64xi1>, vector<8x64xf32>
    %c0_265 = arith.constant 0 : index
    %c128_266 = arith.constant 128 : index
    %707 = vector.load %arg5[%c0_265, %c128_266] : memref<4x256xf32, #tpu.memory_space<vmem>>, vector<4x16xf32>
    %c0_267 = arith.constant 0 : index
    %c512 = arith.constant 512 : index
    %708 = vector.load %arg6[%c0_267, %c512] : memref<2x1024xf32, #tpu.memory_space<vmem>>, vector<2x64xf32>
    %c0_268 = arith.constant 0 : index
    %c128_269 = arith.constant 128 : index
    %709 = vector.load %arg2[%c0_268, %c128_269] : memref<64x256xf32, #tpu.memory_space<vmem>>, vector<64x16xf32>
    %cst_270 = arith.constant dense<0.000000e+00> : vector<8x16xf32>
    %710 = tpu.matmul %706, %709, %cst_270 {dimension_numbers = #tpu.dot_dimension_numbers<[1], [0], [0], [1], [0, 0, 1, 1], [], []>} : vector<8x64xf32>, vector<64x16xf32>, vector<8x16xf32> -> vector<8x16xf32>
    %711 = vector.extract_strided_slice %707 {offsets = [0, 0], sizes = [1, 16], strides = [1, 1]} : vector<4x16xf32> to vector<1x16xf32>
    %712 = vector.extract_strided_slice %707 {offsets = [1, 0], sizes = [1, 16], strides = [1, 1]} : vector<4x16xf32> to vector<1x16xf32>
    %cst_271 = arith.constant dense<0.000000e+00> : vector<16xf32>
    %713 = vector.multi_reduction <add>, %710, %cst_271 [0] : vector<8x16xf32> to vector<16xf32>
    %714 = vector.shape_cast %713 : vector<16xf32> to vector<1x16xf32>
    %cst_272 = arith.constant 8.000000e+00 : f32
    %715 = vector.broadcast %cst_272 : f32 to vector<1x16xf32>
    %716 = arith.divf %714, %715 : vector<1x16xf32>
    %717 = vector.broadcast %716 : vector<1x16xf32> to vector<8x16xf32>
    %718 = arith.subf %710, %717 : vector<8x16xf32>
    %719 = arith.mulf %718, %718 : vector<8x16xf32>
    %cst_273 = arith.constant dense<0.000000e+00> : vector<16xf32>
    %720 = vector.multi_reduction <add>, %719, %cst_273 [0] : vector<8x16xf32> to vector<16xf32>
    %721 = vector.shape_cast %720 : vector<16xf32> to vector<1x16xf32>
    %cst_274 = arith.constant 8.000000e+00 : f32
    %722 = vector.broadcast %cst_274 : f32 to vector<1x16xf32>
    %723 = arith.divf %721, %722 : vector<1x16xf32>
    %cst_275 = arith.constant 9.99999974E-6 : f32
    %724 = vector.broadcast %cst_275 : f32 to vector<1x16xf32>
    %725 = arith.addf %723, %724 : vector<1x16xf32>
    %726 = math.rsqrt %725 : vector<1x16xf32>
    %727 = arith.mulf %726, %711 : vector<1x16xf32>
    %728 = vector.broadcast %727 : vector<1x16xf32> to vector<8x16xf32>
    %729 = arith.mulf %718, %728 : vector<8x16xf32>
    %730 = vector.broadcast %712 : vector<1x16xf32> to vector<8x16xf32>
    %731 = arith.addf %729, %730 : vector<8x16xf32>
    %cst_276 = arith.constant 0.000000e+00 : f32
    %732 = vector.broadcast %cst_276 : f32 to vector<8x16xf32>
    %733 = arith.cmpf ogt, %731, %732 : vector<8x16xf32>
    %cst_277 = arith.constant 0.00999999977 : f32
    %734 = vector.broadcast %cst_277 : f32 to vector<8x16xf32>
    %735 = arith.mulf %734, %731 : vector<8x16xf32>
    %736 = arith.select %733, %731, %735 : vector<8x16xi1>, vector<8x16xf32>
    %c0_278 = arith.constant 0 : index
    %c128_279 = arith.constant 128 : index
    %737 = vector.load %arg3[%c0_278, %c128_279] : memref<16x256xf32, #tpu.memory_space<vmem>>, vector<16x16xf32>
    %cst_280 = arith.constant dense<0.000000e+00> : vector<8x16xf32>
    %738 = tpu.matmul %736, %737, %cst_280 {dimension_numbers = #tpu.dot_dimension_numbers<[1], [0], [0], [1], [0, 0, 1, 1], [], []>} : vector<8x16xf32>, vector<16x16xf32>, vector<8x16xf32> -> vector<8x16xf32>
    %739 = vector.extract_strided_slice %707 {offsets = [2, 0], sizes = [1, 16], strides = [1, 1]} : vector<4x16xf32> to vector<1x16xf32>
    %740 = vector.extract_strided_slice %707 {offsets = [3, 0], sizes = [1, 16], strides = [1, 1]} : vector<4x16xf32> to vector<1x16xf32>
    %cst_281 = arith.constant dense<0.000000e+00> : vector<16xf32>
    %741 = vector.multi_reduction <add>, %738, %cst_281 [0] : vector<8x16xf32> to vector<16xf32>
    %742 = vector.shape_cast %741 : vector<16xf32> to vector<1x16xf32>
    %cst_282 = arith.constant 8.000000e+00 : f32
    %743 = vector.broadcast %cst_282 : f32 to vector<1x16xf32>
    %744 = arith.divf %742, %743 : vector<1x16xf32>
    %745 = vector.broadcast %744 : vector<1x16xf32> to vector<8x16xf32>
    %746 = arith.subf %738, %745 : vector<8x16xf32>
    %747 = arith.mulf %746, %746 : vector<8x16xf32>
    %cst_283 = arith.constant dense<0.000000e+00> : vector<16xf32>
    %748 = vector.multi_reduction <add>, %747, %cst_283 [0] : vector<8x16xf32> to vector<16xf32>
    %749 = vector.shape_cast %748 : vector<16xf32> to vector<1x16xf32>
    %cst_284 = arith.constant 8.000000e+00 : f32
    %750 = vector.broadcast %cst_284 : f32 to vector<1x16xf32>
    %751 = arith.divf %749, %750 : vector<1x16xf32>
    %cst_285 = arith.constant 9.99999974E-6 : f32
    %752 = vector.broadcast %cst_285 : f32 to vector<1x16xf32>
    %753 = arith.addf %751, %752 : vector<1x16xf32>
    %754 = math.rsqrt %753 : vector<1x16xf32>
    %755 = arith.mulf %754, %739 : vector<1x16xf32>
    %756 = vector.broadcast %755 : vector<1x16xf32> to vector<8x16xf32>
    %757 = arith.mulf %746, %756 : vector<8x16xf32>
    %758 = vector.broadcast %740 : vector<1x16xf32> to vector<8x16xf32>
    %759 = arith.addf %757, %758 : vector<8x16xf32>
    %cst_286 = arith.constant 0.000000e+00 : f32
    %760 = vector.broadcast %cst_286 : f32 to vector<8x16xf32>
    %761 = arith.cmpf ogt, %759, %760 : vector<8x16xf32>
    %cst_287 = arith.constant 0.00999999977 : f32
    %762 = vector.broadcast %cst_287 : f32 to vector<8x16xf32>
    %763 = arith.mulf %762, %759 : vector<8x16xf32>
    %764 = arith.select %761, %759, %763 : vector<8x16xi1>, vector<8x16xf32>
    %c0_288 = arith.constant 0 : index
    %c512_289 = arith.constant 512 : index
    %765 = vector.load %arg4[%c0_288, %c512_289] : memref<16x1024xf32, #tpu.memory_space<vmem>>, vector<16x64xf32>
    %cst_290 = arith.constant dense<0.000000e+00> : vector<8x64xf32>
    %766 = tpu.matmul %764, %765, %cst_290 {dimension_numbers = #tpu.dot_dimension_numbers<[1], [0], [0], [1], [0, 0, 1, 1], [], []>} : vector<8x16xf32>, vector<16x64xf32>, vector<8x64xf32> -> vector<8x64xf32>
    %767 = vector.extract_strided_slice %708 {offsets = [0, 0], sizes = [1, 64], strides = [1, 1]} : vector<2x64xf32> to vector<1x64xf32>
    %768 = vector.extract_strided_slice %708 {offsets = [1, 0], sizes = [1, 64], strides = [1, 1]} : vector<2x64xf32> to vector<1x64xf32>
    %cst_291 = arith.constant dense<0.000000e+00> : vector<64xf32>
    %769 = vector.multi_reduction <add>, %766, %cst_291 [0] : vector<8x64xf32> to vector<64xf32>
    %770 = vector.shape_cast %769 : vector<64xf32> to vector<1x64xf32>
    %cst_292 = arith.constant 8.000000e+00 : f32
    %771 = vector.broadcast %cst_292 : f32 to vector<1x64xf32>
    %772 = arith.divf %770, %771 : vector<1x64xf32>
    %773 = vector.broadcast %772 : vector<1x64xf32> to vector<8x64xf32>
    %774 = arith.subf %766, %773 : vector<8x64xf32>
    %775 = arith.mulf %774, %774 : vector<8x64xf32>
    %cst_293 = arith.constant dense<0.000000e+00> : vector<64xf32>
    %776 = vector.multi_reduction <add>, %775, %cst_293 [0] : vector<8x64xf32> to vector<64xf32>
    %777 = vector.shape_cast %776 : vector<64xf32> to vector<1x64xf32>
    %cst_294 = arith.constant 8.000000e+00 : f32
    %778 = vector.broadcast %cst_294 : f32 to vector<1x64xf32>
    %779 = arith.divf %777, %778 : vector<1x64xf32>
    %cst_295 = arith.constant 9.99999974E-6 : f32
    %780 = vector.broadcast %cst_295 : f32 to vector<1x64xf32>
    %781 = arith.addf %779, %780 : vector<1x64xf32>
    %782 = math.rsqrt %781 : vector<1x64xf32>
    %783 = arith.mulf %782, %767 : vector<1x64xf32>
    %784 = vector.broadcast %783 : vector<1x64xf32> to vector<8x64xf32>
    %785 = arith.mulf %774, %784 : vector<8x64xf32>
    %786 = vector.broadcast %768 : vector<1x64xf32> to vector<8x64xf32>
    %787 = arith.addf %785, %786 : vector<8x64xf32>
    %788 = arith.addf %787, %706 : vector<8x64xf32>
    %cst_296 = arith.constant 0.000000e+00 : f32
    %789 = vector.broadcast %cst_296 : f32 to vector<8x64xf32>
    %790 = arith.cmpf ogt, %788, %789 : vector<8x64xf32>
    %cst_297 = arith.constant 0.00999999977 : f32
    %791 = vector.broadcast %cst_297 : f32 to vector<8x64xf32>
    %792 = arith.mulf %791, %788 : vector<8x64xf32>
    %793 = arith.select %790, %788, %792 : vector<8x64xi1>, vector<8x64xf32>
    %c0_298 = arith.constant 0 : index
    %c144 = arith.constant 144 : index
    %794 = vector.load %arg5[%c0_298, %c144] : memref<4x256xf32, #tpu.memory_space<vmem>>, vector<4x16xf32>
    %c0_299 = arith.constant 0 : index
    %c576 = arith.constant 576 : index
    %795 = vector.load %arg6[%c0_299, %c576] : memref<2x1024xf32, #tpu.memory_space<vmem>>, vector<2x64xf32>
    %c0_300 = arith.constant 0 : index
    %c144_301 = arith.constant 144 : index
    %796 = vector.load %arg2[%c0_300, %c144_301] : memref<64x256xf32, #tpu.memory_space<vmem>>, vector<64x16xf32>
    %cst_302 = arith.constant dense<0.000000e+00> : vector<8x16xf32>
    %797 = tpu.matmul %793, %796, %cst_302 {dimension_numbers = #tpu.dot_dimension_numbers<[1], [0], [0], [1], [0, 0, 1, 1], [], []>} : vector<8x64xf32>, vector<64x16xf32>, vector<8x16xf32> -> vector<8x16xf32>
    %798 = vector.extract_strided_slice %794 {offsets = [0, 0], sizes = [1, 16], strides = [1, 1]} : vector<4x16xf32> to vector<1x16xf32>
    %799 = vector.extract_strided_slice %794 {offsets = [1, 0], sizes = [1, 16], strides = [1, 1]} : vector<4x16xf32> to vector<1x16xf32>
    %cst_303 = arith.constant dense<0.000000e+00> : vector<16xf32>
    %800 = vector.multi_reduction <add>, %797, %cst_303 [0] : vector<8x16xf32> to vector<16xf32>
    %801 = vector.shape_cast %800 : vector<16xf32> to vector<1x16xf32>
    %cst_304 = arith.constant 8.000000e+00 : f32
    %802 = vector.broadcast %cst_304 : f32 to vector<1x16xf32>
    %803 = arith.divf %801, %802 : vector<1x16xf32>
    %804 = vector.broadcast %803 : vector<1x16xf32> to vector<8x16xf32>
    %805 = arith.subf %797, %804 : vector<8x16xf32>
    %806 = arith.mulf %805, %805 : vector<8x16xf32>
    %cst_305 = arith.constant dense<0.000000e+00> : vector<16xf32>
    %807 = vector.multi_reduction <add>, %806, %cst_305 [0] : vector<8x16xf32> to vector<16xf32>
    %808 = vector.shape_cast %807 : vector<16xf32> to vector<1x16xf32>
    %cst_306 = arith.constant 8.000000e+00 : f32
    %809 = vector.broadcast %cst_306 : f32 to vector<1x16xf32>
    %810 = arith.divf %808, %809 : vector<1x16xf32>
    %cst_307 = arith.constant 9.99999974E-6 : f32
    %811 = vector.broadcast %cst_307 : f32 to vector<1x16xf32>
    %812 = arith.addf %810, %811 : vector<1x16xf32>
    %813 = math.rsqrt %812 : vector<1x16xf32>
    %814 = arith.mulf %813, %798 : vector<1x16xf32>
    %815 = vector.broadcast %814 : vector<1x16xf32> to vector<8x16xf32>
    %816 = arith.mulf %805, %815 : vector<8x16xf32>
    %817 = vector.broadcast %799 : vector<1x16xf32> to vector<8x16xf32>
    %818 = arith.addf %816, %817 : vector<8x16xf32>
    %cst_308 = arith.constant 0.000000e+00 : f32
    %819 = vector.broadcast %cst_308 : f32 to vector<8x16xf32>
    %820 = arith.cmpf ogt, %818, %819 : vector<8x16xf32>
    %cst_309 = arith.constant 0.00999999977 : f32
    %821 = vector.broadcast %cst_309 : f32 to vector<8x16xf32>
    %822 = arith.mulf %821, %818 : vector<8x16xf32>
    %823 = arith.select %820, %818, %822 : vector<8x16xi1>, vector<8x16xf32>
    %c0_310 = arith.constant 0 : index
    %c144_311 = arith.constant 144 : index
    %824 = vector.load %arg3[%c0_310, %c144_311] : memref<16x256xf32, #tpu.memory_space<vmem>>, vector<16x16xf32>
    %cst_312 = arith.constant dense<0.000000e+00> : vector<8x16xf32>
    %825 = tpu.matmul %823, %824, %cst_312 {dimension_numbers = #tpu.dot_dimension_numbers<[1], [0], [0], [1], [0, 0, 1, 1], [], []>} : vector<8x16xf32>, vector<16x16xf32>, vector<8x16xf32> -> vector<8x16xf32>
    %826 = vector.extract_strided_slice %794 {offsets = [2, 0], sizes = [1, 16], strides = [1, 1]} : vector<4x16xf32> to vector<1x16xf32>
    %827 = vector.extract_strided_slice %794 {offsets = [3, 0], sizes = [1, 16], strides = [1, 1]} : vector<4x16xf32> to vector<1x16xf32>
    %cst_313 = arith.constant dense<0.000000e+00> : vector<16xf32>
    %828 = vector.multi_reduction <add>, %825, %cst_313 [0] : vector<8x16xf32> to vector<16xf32>
    %829 = vector.shape_cast %828 : vector<16xf32> to vector<1x16xf32>
    %cst_314 = arith.constant 8.000000e+00 : f32
    %830 = vector.broadcast %cst_314 : f32 to vector<1x16xf32>
    %831 = arith.divf %829, %830 : vector<1x16xf32>
    %832 = vector.broadcast %831 : vector<1x16xf32> to vector<8x16xf32>
    %833 = arith.subf %825, %832 : vector<8x16xf32>
    %834 = arith.mulf %833, %833 : vector<8x16xf32>
    %cst_315 = arith.constant dense<0.000000e+00> : vector<16xf32>
    %835 = vector.multi_reduction <add>, %834, %cst_315 [0] : vector<8x16xf32> to vector<16xf32>
    %836 = vector.shape_cast %835 : vector<16xf32> to vector<1x16xf32>
    %cst_316 = arith.constant 8.000000e+00 : f32
    %837 = vector.broadcast %cst_316 : f32 to vector<1x16xf32>
    %838 = arith.divf %836, %837 : vector<1x16xf32>
    %cst_317 = arith.constant 9.99999974E-6 : f32
    %839 = vector.broadcast %cst_317 : f32 to vector<1x16xf32>
    %840 = arith.addf %838, %839 : vector<1x16xf32>
    %841 = math.rsqrt %840 : vector<1x16xf32>
    %842 = arith.mulf %841, %826 : vector<1x16xf32>
    %843 = vector.broadcast %842 : vector<1x16xf32> to vector<8x16xf32>
    %844 = arith.mulf %833, %843 : vector<8x16xf32>
    %845 = vector.broadcast %827 : vector<1x16xf32> to vector<8x16xf32>
    %846 = arith.addf %844, %845 : vector<8x16xf32>
    %cst_318 = arith.constant 0.000000e+00 : f32
    %847 = vector.broadcast %cst_318 : f32 to vector<8x16xf32>
    %848 = arith.cmpf ogt, %846, %847 : vector<8x16xf32>
    %cst_319 = arith.constant 0.00999999977 : f32
    %849 = vector.broadcast %cst_319 : f32 to vector<8x16xf32>
    %850 = arith.mulf %849, %846 : vector<8x16xf32>
    %851 = arith.select %848, %846, %850 : vector<8x16xi1>, vector<8x16xf32>
    %c0_320 = arith.constant 0 : index
    %c576_321 = arith.constant 576 : index
    %852 = vector.load %arg4[%c0_320, %c576_321] : memref<16x1024xf32, #tpu.memory_space<vmem>>, vector<16x64xf32>
    %cst_322 = arith.constant dense<0.000000e+00> : vector<8x64xf32>
    %853 = tpu.matmul %851, %852, %cst_322 {dimension_numbers = #tpu.dot_dimension_numbers<[1], [0], [0], [1], [0, 0, 1, 1], [], []>} : vector<8x16xf32>, vector<16x64xf32>, vector<8x64xf32> -> vector<8x64xf32>
    %854 = vector.extract_strided_slice %795 {offsets = [0, 0], sizes = [1, 64], strides = [1, 1]} : vector<2x64xf32> to vector<1x64xf32>
    %855 = vector.extract_strided_slice %795 {offsets = [1, 0], sizes = [1, 64], strides = [1, 1]} : vector<2x64xf32> to vector<1x64xf32>
    %cst_323 = arith.constant dense<0.000000e+00> : vector<64xf32>
    %856 = vector.multi_reduction <add>, %853, %cst_323 [0] : vector<8x64xf32> to vector<64xf32>
    %857 = vector.shape_cast %856 : vector<64xf32> to vector<1x64xf32>
    %cst_324 = arith.constant 8.000000e+00 : f32
    %858 = vector.broadcast %cst_324 : f32 to vector<1x64xf32>
    %859 = arith.divf %857, %858 : vector<1x64xf32>
    %860 = vector.broadcast %859 : vector<1x64xf32> to vector<8x64xf32>
    %861 = arith.subf %853, %860 : vector<8x64xf32>
    %862 = arith.mulf %861, %861 : vector<8x64xf32>
    %cst_325 = arith.constant dense<0.000000e+00> : vector<64xf32>
    %863 = vector.multi_reduction <add>, %862, %cst_325 [0] : vector<8x64xf32> to vector<64xf32>
    %864 = vector.shape_cast %863 : vector<64xf32> to vector<1x64xf32>
    %cst_326 = arith.constant 8.000000e+00 : f32
    %865 = vector.broadcast %cst_326 : f32 to vector<1x64xf32>
    %866 = arith.divf %864, %865 : vector<1x64xf32>
    %cst_327 = arith.constant 9.99999974E-6 : f32
    %867 = vector.broadcast %cst_327 : f32 to vector<1x64xf32>
    %868 = arith.addf %866, %867 : vector<1x64xf32>
    %869 = math.rsqrt %868 : vector<1x64xf32>
    %870 = arith.mulf %869, %854 : vector<1x64xf32>
    %871 = vector.broadcast %870 : vector<1x64xf32> to vector<8x64xf32>
    %872 = arith.mulf %861, %871 : vector<8x64xf32>
    %873 = vector.broadcast %855 : vector<1x64xf32> to vector<8x64xf32>
    %874 = arith.addf %872, %873 : vector<8x64xf32>
    %875 = arith.addf %874, %793 : vector<8x64xf32>
    %cst_328 = arith.constant 0.000000e+00 : f32
    %876 = vector.broadcast %cst_328 : f32 to vector<8x64xf32>
    %877 = arith.cmpf ogt, %875, %876 : vector<8x64xf32>
    %cst_329 = arith.constant 0.00999999977 : f32
    %878 = vector.broadcast %cst_329 : f32 to vector<8x64xf32>
    %879 = arith.mulf %878, %875 : vector<8x64xf32>
    %880 = arith.select %877, %875, %879 : vector<8x64xi1>, vector<8x64xf32>
    %c0_330 = arith.constant 0 : index
    %c160 = arith.constant 160 : index
    %881 = vector.load %arg5[%c0_330, %c160] : memref<4x256xf32, #tpu.memory_space<vmem>>, vector<4x16xf32>
    %c0_331 = arith.constant 0 : index
    %c640 = arith.constant 640 : index
    %882 = vector.load %arg6[%c0_331, %c640] : memref<2x1024xf32, #tpu.memory_space<vmem>>, vector<2x64xf32>
    %c0_332 = arith.constant 0 : index
    %c160_333 = arith.constant 160 : index
    %883 = vector.load %arg2[%c0_332, %c160_333] : memref<64x256xf32, #tpu.memory_space<vmem>>, vector<64x16xf32>
    %cst_334 = arith.constant dense<0.000000e+00> : vector<8x16xf32>
    %884 = tpu.matmul %880, %883, %cst_334 {dimension_numbers = #tpu.dot_dimension_numbers<[1], [0], [0], [1], [0, 0, 1, 1], [], []>} : vector<8x64xf32>, vector<64x16xf32>, vector<8x16xf32> -> vector<8x16xf32>
    %885 = vector.extract_strided_slice %881 {offsets = [0, 0], sizes = [1, 16], strides = [1, 1]} : vector<4x16xf32> to vector<1x16xf32>
    %886 = vector.extract_strided_slice %881 {offsets = [1, 0], sizes = [1, 16], strides = [1, 1]} : vector<4x16xf32> to vector<1x16xf32>
    %cst_335 = arith.constant dense<0.000000e+00> : vector<16xf32>
    %887 = vector.multi_reduction <add>, %884, %cst_335 [0] : vector<8x16xf32> to vector<16xf32>
    %888 = vector.shape_cast %887 : vector<16xf32> to vector<1x16xf32>
    %cst_336 = arith.constant 8.000000e+00 : f32
    %889 = vector.broadcast %cst_336 : f32 to vector<1x16xf32>
    %890 = arith.divf %888, %889 : vector<1x16xf32>
    %891 = vector.broadcast %890 : vector<1x16xf32> to vector<8x16xf32>
    %892 = arith.subf %884, %891 : vector<8x16xf32>
    %893 = arith.mulf %892, %892 : vector<8x16xf32>
    %cst_337 = arith.constant dense<0.000000e+00> : vector<16xf32>
    %894 = vector.multi_reduction <add>, %893, %cst_337 [0] : vector<8x16xf32> to vector<16xf32>
    %895 = vector.shape_cast %894 : vector<16xf32> to vector<1x16xf32>
    %cst_338 = arith.constant 8.000000e+00 : f32
    %896 = vector.broadcast %cst_338 : f32 to vector<1x16xf32>
    %897 = arith.divf %895, %896 : vector<1x16xf32>
    %cst_339 = arith.constant 9.99999974E-6 : f32
    %898 = vector.broadcast %cst_339 : f32 to vector<1x16xf32>
    %899 = arith.addf %897, %898 : vector<1x16xf32>
    %900 = math.rsqrt %899 : vector<1x16xf32>
    %901 = arith.mulf %900, %885 : vector<1x16xf32>
    %902 = vector.broadcast %901 : vector<1x16xf32> to vector<8x16xf32>
    %903 = arith.mulf %892, %902 : vector<8x16xf32>
    %904 = vector.broadcast %886 : vector<1x16xf32> to vector<8x16xf32>
    %905 = arith.addf %903, %904 : vector<8x16xf32>
    %cst_340 = arith.constant 0.000000e+00 : f32
    %906 = vector.broadcast %cst_340 : f32 to vector<8x16xf32>
    %907 = arith.cmpf ogt, %905, %906 : vector<8x16xf32>
    %cst_341 = arith.constant 0.00999999977 : f32
    %908 = vector.broadcast %cst_341 : f32 to vector<8x16xf32>
    %909 = arith.mulf %908, %905 : vector<8x16xf32>
    %910 = arith.select %907, %905, %909 : vector<8x16xi1>, vector<8x16xf32>
    %c0_342 = arith.constant 0 : index
    %c160_343 = arith.constant 160 : index
    %911 = vector.load %arg3[%c0_342, %c160_343] : memref<16x256xf32, #tpu.memory_space<vmem>>, vector<16x16xf32>
    %cst_344 = arith.constant dense<0.000000e+00> : vector<8x16xf32>
    %912 = tpu.matmul %910, %911, %cst_344 {dimension_numbers = #tpu.dot_dimension_numbers<[1], [0], [0], [1], [0, 0, 1, 1], [], []>} : vector<8x16xf32>, vector<16x16xf32>, vector<8x16xf32> -> vector<8x16xf32>
    %913 = vector.extract_strided_slice %881 {offsets = [2, 0], sizes = [1, 16], strides = [1, 1]} : vector<4x16xf32> to vector<1x16xf32>
    %914 = vector.extract_strided_slice %881 {offsets = [3, 0], sizes = [1, 16], strides = [1, 1]} : vector<4x16xf32> to vector<1x16xf32>
    %cst_345 = arith.constant dense<0.000000e+00> : vector<16xf32>
    %915 = vector.multi_reduction <add>, %912, %cst_345 [0] : vector<8x16xf32> to vector<16xf32>
    %916 = vector.shape_cast %915 : vector<16xf32> to vector<1x16xf32>
    %cst_346 = arith.constant 8.000000e+00 : f32
    %917 = vector.broadcast %cst_346 : f32 to vector<1x16xf32>
    %918 = arith.divf %916, %917 : vector<1x16xf32>
    %919 = vector.broadcast %918 : vector<1x16xf32> to vector<8x16xf32>
    %920 = arith.subf %912, %919 : vector<8x16xf32>
    %921 = arith.mulf %920, %920 : vector<8x16xf32>
    %cst_347 = arith.constant dense<0.000000e+00> : vector<16xf32>
    %922 = vector.multi_reduction <add>, %921, %cst_347 [0] : vector<8x16xf32> to vector<16xf32>
    %923 = vector.shape_cast %922 : vector<16xf32> to vector<1x16xf32>
    %cst_348 = arith.constant 8.000000e+00 : f32
    %924 = vector.broadcast %cst_348 : f32 to vector<1x16xf32>
    %925 = arith.divf %923, %924 : vector<1x16xf32>
    %cst_349 = arith.constant 9.99999974E-6 : f32
    %926 = vector.broadcast %cst_349 : f32 to vector<1x16xf32>
    %927 = arith.addf %925, %926 : vector<1x16xf32>
    %928 = math.rsqrt %927 : vector<1x16xf32>
    %929 = arith.mulf %928, %913 : vector<1x16xf32>
    %930 = vector.broadcast %929 : vector<1x16xf32> to vector<8x16xf32>
    %931 = arith.mulf %920, %930 : vector<8x16xf32>
    %932 = vector.broadcast %914 : vector<1x16xf32> to vector<8x16xf32>
    %933 = arith.addf %931, %932 : vector<8x16xf32>
    %cst_350 = arith.constant 0.000000e+00 : f32
    %934 = vector.broadcast %cst_350 : f32 to vector<8x16xf32>
    %935 = arith.cmpf ogt, %933, %934 : vector<8x16xf32>
    %cst_351 = arith.constant 0.00999999977 : f32
    %936 = vector.broadcast %cst_351 : f32 to vector<8x16xf32>
    %937 = arith.mulf %936, %933 : vector<8x16xf32>
    %938 = arith.select %935, %933, %937 : vector<8x16xi1>, vector<8x16xf32>
    %c0_352 = arith.constant 0 : index
    %c640_353 = arith.constant 640 : index
    %939 = vector.load %arg4[%c0_352, %c640_353] : memref<16x1024xf32, #tpu.memory_space<vmem>>, vector<16x64xf32>
    %cst_354 = arith.constant dense<0.000000e+00> : vector<8x64xf32>
    %940 = tpu.matmul %938, %939, %cst_354 {dimension_numbers = #tpu.dot_dimension_numbers<[1], [0], [0], [1], [0, 0, 1, 1], [], []>} : vector<8x16xf32>, vector<16x64xf32>, vector<8x64xf32> -> vector<8x64xf32>
    %941 = vector.extract_strided_slice %882 {offsets = [0, 0], sizes = [1, 64], strides = [1, 1]} : vector<2x64xf32> to vector<1x64xf32>
    %942 = vector.extract_strided_slice %882 {offsets = [1, 0], sizes = [1, 64], strides = [1, 1]} : vector<2x64xf32> to vector<1x64xf32>
    %cst_355 = arith.constant dense<0.000000e+00> : vector<64xf32>
    %943 = vector.multi_reduction <add>, %940, %cst_355 [0] : vector<8x64xf32> to vector<64xf32>
    %944 = vector.shape_cast %943 : vector<64xf32> to vector<1x64xf32>
    %cst_356 = arith.constant 8.000000e+00 : f32
    %945 = vector.broadcast %cst_356 : f32 to vector<1x64xf32>
    %946 = arith.divf %944, %945 : vector<1x64xf32>
    %947 = vector.broadcast %946 : vector<1x64xf32> to vector<8x64xf32>
    %948 = arith.subf %940, %947 : vector<8x64xf32>
    %949 = arith.mulf %948, %948 : vector<8x64xf32>
    %cst_357 = arith.constant dense<0.000000e+00> : vector<64xf32>
    %950 = vector.multi_reduction <add>, %949, %cst_357 [0] : vector<8x64xf32> to vector<64xf32>
    %951 = vector.shape_cast %950 : vector<64xf32> to vector<1x64xf32>
    %cst_358 = arith.constant 8.000000e+00 : f32
    %952 = vector.broadcast %cst_358 : f32 to vector<1x64xf32>
    %953 = arith.divf %951, %952 : vector<1x64xf32>
    %cst_359 = arith.constant 9.99999974E-6 : f32
    %954 = vector.broadcast %cst_359 : f32 to vector<1x64xf32>
    %955 = arith.addf %953, %954 : vector<1x64xf32>
    %956 = math.rsqrt %955 : vector<1x64xf32>
    %957 = arith.mulf %956, %941 : vector<1x64xf32>
    %958 = vector.broadcast %957 : vector<1x64xf32> to vector<8x64xf32>
    %959 = arith.mulf %948, %958 : vector<8x64xf32>
    %960 = vector.broadcast %942 : vector<1x64xf32> to vector<8x64xf32>
    %961 = arith.addf %959, %960 : vector<8x64xf32>
    %962 = arith.addf %961, %880 : vector<8x64xf32>
    %cst_360 = arith.constant 0.000000e+00 : f32
    %963 = vector.broadcast %cst_360 : f32 to vector<8x64xf32>
    %964 = arith.cmpf ogt, %962, %963 : vector<8x64xf32>
    %cst_361 = arith.constant 0.00999999977 : f32
    %965 = vector.broadcast %cst_361 : f32 to vector<8x64xf32>
    %966 = arith.mulf %965, %962 : vector<8x64xf32>
    %967 = arith.select %964, %962, %966 : vector<8x64xi1>, vector<8x64xf32>
    %c0_362 = arith.constant 0 : index
    %c176 = arith.constant 176 : index
    %968 = vector.load %arg5[%c0_362, %c176] : memref<4x256xf32, #tpu.memory_space<vmem>>, vector<4x16xf32>
    %c0_363 = arith.constant 0 : index
    %c704 = arith.constant 704 : index
    %969 = vector.load %arg6[%c0_363, %c704] : memref<2x1024xf32, #tpu.memory_space<vmem>>, vector<2x64xf32>
    %c0_364 = arith.constant 0 : index
    %c176_365 = arith.constant 176 : index
    %970 = vector.load %arg2[%c0_364, %c176_365] : memref<64x256xf32, #tpu.memory_space<vmem>>, vector<64x16xf32>
    %cst_366 = arith.constant dense<0.000000e+00> : vector<8x16xf32>
    %971 = tpu.matmul %967, %970, %cst_366 {dimension_numbers = #tpu.dot_dimension_numbers<[1], [0], [0], [1], [0, 0, 1, 1], [], []>} : vector<8x64xf32>, vector<64x16xf32>, vector<8x16xf32> -> vector<8x16xf32>
    %972 = vector.extract_strided_slice %968 {offsets = [0, 0], sizes = [1, 16], strides = [1, 1]} : vector<4x16xf32> to vector<1x16xf32>
    %973 = vector.extract_strided_slice %968 {offsets = [1, 0], sizes = [1, 16], strides = [1, 1]} : vector<4x16xf32> to vector<1x16xf32>
    %cst_367 = arith.constant dense<0.000000e+00> : vector<16xf32>
    %974 = vector.multi_reduction <add>, %971, %cst_367 [0] : vector<8x16xf32> to vector<16xf32>
    %975 = vector.shape_cast %974 : vector<16xf32> to vector<1x16xf32>
    %cst_368 = arith.constant 8.000000e+00 : f32
    %976 = vector.broadcast %cst_368 : f32 to vector<1x16xf32>
    %977 = arith.divf %975, %976 : vector<1x16xf32>
    %978 = vector.broadcast %977 : vector<1x16xf32> to vector<8x16xf32>
    %979 = arith.subf %971, %978 : vector<8x16xf32>
    %980 = arith.mulf %979, %979 : vector<8x16xf32>
    %cst_369 = arith.constant dense<0.000000e+00> : vector<16xf32>
    %981 = vector.multi_reduction <add>, %980, %cst_369 [0] : vector<8x16xf32> to vector<16xf32>
    %982 = vector.shape_cast %981 : vector<16xf32> to vector<1x16xf32>
    %cst_370 = arith.constant 8.000000e+00 : f32
    %983 = vector.broadcast %cst_370 : f32 to vector<1x16xf32>
    %984 = arith.divf %982, %983 : vector<1x16xf32>
    %cst_371 = arith.constant 9.99999974E-6 : f32
    %985 = vector.broadcast %cst_371 : f32 to vector<1x16xf32>
    %986 = arith.addf %984, %985 : vector<1x16xf32>
    %987 = math.rsqrt %986 : vector<1x16xf32>
    %988 = arith.mulf %987, %972 : vector<1x16xf32>
    %989 = vector.broadcast %988 : vector<1x16xf32> to vector<8x16xf32>
    %990 = arith.mulf %979, %989 : vector<8x16xf32>
    %991 = vector.broadcast %973 : vector<1x16xf32> to vector<8x16xf32>
    %992 = arith.addf %990, %991 : vector<8x16xf32>
    %cst_372 = arith.constant 0.000000e+00 : f32
    %993 = vector.broadcast %cst_372 : f32 to vector<8x16xf32>
    %994 = arith.cmpf ogt, %992, %993 : vector<8x16xf32>
    %cst_373 = arith.constant 0.00999999977 : f32
    %995 = vector.broadcast %cst_373 : f32 to vector<8x16xf32>
    %996 = arith.mulf %995, %992 : vector<8x16xf32>
    %997 = arith.select %994, %992, %996 : vector<8x16xi1>, vector<8x16xf32>
    %c0_374 = arith.constant 0 : index
    %c176_375 = arith.constant 176 : index
    %998 = vector.load %arg3[%c0_374, %c176_375] : memref<16x256xf32, #tpu.memory_space<vmem>>, vector<16x16xf32>
    %cst_376 = arith.constant dense<0.000000e+00> : vector<8x16xf32>
    %999 = tpu.matmul %997, %998, %cst_376 {dimension_numbers = #tpu.dot_dimension_numbers<[1], [0], [0], [1], [0, 0, 1, 1], [], []>} : vector<8x16xf32>, vector<16x16xf32>, vector<8x16xf32> -> vector<8x16xf32>
    %1000 = vector.extract_strided_slice %968 {offsets = [2, 0], sizes = [1, 16], strides = [1, 1]} : vector<4x16xf32> to vector<1x16xf32>
    %1001 = vector.extract_strided_slice %968 {offsets = [3, 0], sizes = [1, 16], strides = [1, 1]} : vector<4x16xf32> to vector<1x16xf32>
    %cst_377 = arith.constant dense<0.000000e+00> : vector<16xf32>
    %1002 = vector.multi_reduction <add>, %999, %cst_377 [0] : vector<8x16xf32> to vector<16xf32>
    %1003 = vector.shape_cast %1002 : vector<16xf32> to vector<1x16xf32>
    %cst_378 = arith.constant 8.000000e+00 : f32
    %1004 = vector.broadcast %cst_378 : f32 to vector<1x16xf32>
    %1005 = arith.divf %1003, %1004 : vector<1x16xf32>
    %1006 = vector.broadcast %1005 : vector<1x16xf32> to vector<8x16xf32>
    %1007 = arith.subf %999, %1006 : vector<8x16xf32>
    %1008 = arith.mulf %1007, %1007 : vector<8x16xf32>
    %cst_379 = arith.constant dense<0.000000e+00> : vector<16xf32>
    %1009 = vector.multi_reduction <add>, %1008, %cst_379 [0] : vector<8x16xf32> to vector<16xf32>
    %1010 = vector.shape_cast %1009 : vector<16xf32> to vector<1x16xf32>
    %cst_380 = arith.constant 8.000000e+00 : f32
    %1011 = vector.broadcast %cst_380 : f32 to vector<1x16xf32>
    %1012 = arith.divf %1010, %1011 : vector<1x16xf32>
    %cst_381 = arith.constant 9.99999974E-6 : f32
    %1013 = vector.broadcast %cst_381 : f32 to vector<1x16xf32>
    %1014 = arith.addf %1012, %1013 : vector<1x16xf32>
    %1015 = math.rsqrt %1014 : vector<1x16xf32>
    %1016 = arith.mulf %1015, %1000 : vector<1x16xf32>
    %1017 = vector.broadcast %1016 : vector<1x16xf32> to vector<8x16xf32>
    %1018 = arith.mulf %1007, %1017 : vector<8x16xf32>
    %1019 = vector.broadcast %1001 : vector<1x16xf32> to vector<8x16xf32>
    %1020 = arith.addf %1018, %1019 : vector<8x16xf32>
    %cst_382 = arith.constant 0.000000e+00 : f32
    %1021 = vector.broadcast %cst_382 : f32 to vector<8x16xf32>
    %1022 = arith.cmpf ogt, %1020, %1021 : vector<8x16xf32>
    %cst_383 = arith.constant 0.00999999977 : f32
    %1023 = vector.broadcast %cst_383 : f32 to vector<8x16xf32>
    %1024 = arith.mulf %1023, %1020 : vector<8x16xf32>
    %1025 = arith.select %1022, %1020, %1024 : vector<8x16xi1>, vector<8x16xf32>
    %c0_384 = arith.constant 0 : index
    %c704_385 = arith.constant 704 : index
    %1026 = vector.load %arg4[%c0_384, %c704_385] : memref<16x1024xf32, #tpu.memory_space<vmem>>, vector<16x64xf32>
    %cst_386 = arith.constant dense<0.000000e+00> : vector<8x64xf32>
    %1027 = tpu.matmul %1025, %1026, %cst_386 {dimension_numbers = #tpu.dot_dimension_numbers<[1], [0], [0], [1], [0, 0, 1, 1], [], []>} : vector<8x16xf32>, vector<16x64xf32>, vector<8x64xf32> -> vector<8x64xf32>
    %1028 = vector.extract_strided_slice %969 {offsets = [0, 0], sizes = [1, 64], strides = [1, 1]} : vector<2x64xf32> to vector<1x64xf32>
    %1029 = vector.extract_strided_slice %969 {offsets = [1, 0], sizes = [1, 64], strides = [1, 1]} : vector<2x64xf32> to vector<1x64xf32>
    %cst_387 = arith.constant dense<0.000000e+00> : vector<64xf32>
    %1030 = vector.multi_reduction <add>, %1027, %cst_387 [0] : vector<8x64xf32> to vector<64xf32>
    %1031 = vector.shape_cast %1030 : vector<64xf32> to vector<1x64xf32>
    %cst_388 = arith.constant 8.000000e+00 : f32
    %1032 = vector.broadcast %cst_388 : f32 to vector<1x64xf32>
    %1033 = arith.divf %1031, %1032 : vector<1x64xf32>
    %1034 = vector.broadcast %1033 : vector<1x64xf32> to vector<8x64xf32>
    %1035 = arith.subf %1027, %1034 : vector<8x64xf32>
    %1036 = arith.mulf %1035, %1035 : vector<8x64xf32>
    %cst_389 = arith.constant dense<0.000000e+00> : vector<64xf32>
    %1037 = vector.multi_reduction <add>, %1036, %cst_389 [0] : vector<8x64xf32> to vector<64xf32>
    %1038 = vector.shape_cast %1037 : vector<64xf32> to vector<1x64xf32>
    %cst_390 = arith.constant 8.000000e+00 : f32
    %1039 = vector.broadcast %cst_390 : f32 to vector<1x64xf32>
    %1040 = arith.divf %1038, %1039 : vector<1x64xf32>
    %cst_391 = arith.constant 9.99999974E-6 : f32
    %1041 = vector.broadcast %cst_391 : f32 to vector<1x64xf32>
    %1042 = arith.addf %1040, %1041 : vector<1x64xf32>
    %1043 = math.rsqrt %1042 : vector<1x64xf32>
    %1044 = arith.mulf %1043, %1028 : vector<1x64xf32>
    %1045 = vector.broadcast %1044 : vector<1x64xf32> to vector<8x64xf32>
    %1046 = arith.mulf %1035, %1045 : vector<8x64xf32>
    %1047 = vector.broadcast %1029 : vector<1x64xf32> to vector<8x64xf32>
    %1048 = arith.addf %1046, %1047 : vector<8x64xf32>
    %1049 = arith.addf %1048, %967 : vector<8x64xf32>
    %cst_392 = arith.constant 0.000000e+00 : f32
    %1050 = vector.broadcast %cst_392 : f32 to vector<8x64xf32>
    %1051 = arith.cmpf ogt, %1049, %1050 : vector<8x64xf32>
    %cst_393 = arith.constant 0.00999999977 : f32
    %1052 = vector.broadcast %cst_393 : f32 to vector<8x64xf32>
    %1053 = arith.mulf %1052, %1049 : vector<8x64xf32>
    %1054 = arith.select %1051, %1049, %1053 : vector<8x64xi1>, vector<8x64xf32>
    %c0_394 = arith.constant 0 : index
    %c192_395 = arith.constant 192 : index
    %1055 = vector.load %arg5[%c0_394, %c192_395] : memref<4x256xf32, #tpu.memory_space<vmem>>, vector<4x16xf32>
    %c0_396 = arith.constant 0 : index
    %c768 = arith.constant 768 : index
    %1056 = vector.load %arg6[%c0_396, %c768] : memref<2x1024xf32, #tpu.memory_space<vmem>>, vector<2x64xf32>
    %c0_397 = arith.constant 0 : index
    %c192_398 = arith.constant 192 : index
    %1057 = vector.load %arg2[%c0_397, %c192_398] : memref<64x256xf32, #tpu.memory_space<vmem>>, vector<64x16xf32>
    %cst_399 = arith.constant dense<0.000000e+00> : vector<8x16xf32>
    %1058 = tpu.matmul %1054, %1057, %cst_399 {dimension_numbers = #tpu.dot_dimension_numbers<[1], [0], [0], [1], [0, 0, 1, 1], [], []>} : vector<8x64xf32>, vector<64x16xf32>, vector<8x16xf32> -> vector<8x16xf32>
    %1059 = vector.extract_strided_slice %1055 {offsets = [0, 0], sizes = [1, 16], strides = [1, 1]} : vector<4x16xf32> to vector<1x16xf32>
    %1060 = vector.extract_strided_slice %1055 {offsets = [1, 0], sizes = [1, 16], strides = [1, 1]} : vector<4x16xf32> to vector<1x16xf32>
    %cst_400 = arith.constant dense<0.000000e+00> : vector<16xf32>
    %1061 = vector.multi_reduction <add>, %1058, %cst_400 [0] : vector<8x16xf32> to vector<16xf32>
    %1062 = vector.shape_cast %1061 : vector<16xf32> to vector<1x16xf32>
    %cst_401 = arith.constant 8.000000e+00 : f32
    %1063 = vector.broadcast %cst_401 : f32 to vector<1x16xf32>
    %1064 = arith.divf %1062, %1063 : vector<1x16xf32>
    %1065 = vector.broadcast %1064 : vector<1x16xf32> to vector<8x16xf32>
    %1066 = arith.subf %1058, %1065 : vector<8x16xf32>
    %1067 = arith.mulf %1066, %1066 : vector<8x16xf32>
    %cst_402 = arith.constant dense<0.000000e+00> : vector<16xf32>
    %1068 = vector.multi_reduction <add>, %1067, %cst_402 [0] : vector<8x16xf32> to vector<16xf32>
    %1069 = vector.shape_cast %1068 : vector<16xf32> to vector<1x16xf32>
    %cst_403 = arith.constant 8.000000e+00 : f32
    %1070 = vector.broadcast %cst_403 : f32 to vector<1x16xf32>
    %1071 = arith.divf %1069, %1070 : vector<1x16xf32>
    %cst_404 = arith.constant 9.99999974E-6 : f32
    %1072 = vector.broadcast %cst_404 : f32 to vector<1x16xf32>
    %1073 = arith.addf %1071, %1072 : vector<1x16xf32>
    %1074 = math.rsqrt %1073 : vector<1x16xf32>
    %1075 = arith.mulf %1074, %1059 : vector<1x16xf32>
    %1076 = vector.broadcast %1075 : vector<1x16xf32> to vector<8x16xf32>
    %1077 = arith.mulf %1066, %1076 : vector<8x16xf32>
    %1078 = vector.broadcast %1060 : vector<1x16xf32> to vector<8x16xf32>
    %1079 = arith.addf %1077, %1078 : vector<8x16xf32>
    %cst_405 = arith.constant 0.000000e+00 : f32
    %1080 = vector.broadcast %cst_405 : f32 to vector<8x16xf32>
    %1081 = arith.cmpf ogt, %1079, %1080 : vector<8x16xf32>
    %cst_406 = arith.constant 0.00999999977 : f32
    %1082 = vector.broadcast %cst_406 : f32 to vector<8x16xf32>
    %1083 = arith.mulf %1082, %1079 : vector<8x16xf32>
    %1084 = arith.select %1081, %1079, %1083 : vector<8x16xi1>, vector<8x16xf32>
    %c0_407 = arith.constant 0 : index
    %c192_408 = arith.constant 192 : index
    %1085 = vector.load %arg3[%c0_407, %c192_408] : memref<16x256xf32, #tpu.memory_space<vmem>>, vector<16x16xf32>
    %cst_409 = arith.constant dense<0.000000e+00> : vector<8x16xf32>
    %1086 = tpu.matmul %1084, %1085, %cst_409 {dimension_numbers = #tpu.dot_dimension_numbers<[1], [0], [0], [1], [0, 0, 1, 1], [], []>} : vector<8x16xf32>, vector<16x16xf32>, vector<8x16xf32> -> vector<8x16xf32>
    %1087 = vector.extract_strided_slice %1055 {offsets = [2, 0], sizes = [1, 16], strides = [1, 1]} : vector<4x16xf32> to vector<1x16xf32>
    %1088 = vector.extract_strided_slice %1055 {offsets = [3, 0], sizes = [1, 16], strides = [1, 1]} : vector<4x16xf32> to vector<1x16xf32>
    %cst_410 = arith.constant dense<0.000000e+00> : vector<16xf32>
    %1089 = vector.multi_reduction <add>, %1086, %cst_410 [0] : vector<8x16xf32> to vector<16xf32>
    %1090 = vector.shape_cast %1089 : vector<16xf32> to vector<1x16xf32>
    %cst_411 = arith.constant 8.000000e+00 : f32
    %1091 = vector.broadcast %cst_411 : f32 to vector<1x16xf32>
    %1092 = arith.divf %1090, %1091 : vector<1x16xf32>
    %1093 = vector.broadcast %1092 : vector<1x16xf32> to vector<8x16xf32>
    %1094 = arith.subf %1086, %1093 : vector<8x16xf32>
    %1095 = arith.mulf %1094, %1094 : vector<8x16xf32>
    %cst_412 = arith.constant dense<0.000000e+00> : vector<16xf32>
    %1096 = vector.multi_reduction <add>, %1095, %cst_412 [0] : vector<8x16xf32> to vector<16xf32>
    %1097 = vector.shape_cast %1096 : vector<16xf32> to vector<1x16xf32>
    %cst_413 = arith.constant 8.000000e+00 : f32
    %1098 = vector.broadcast %cst_413 : f32 to vector<1x16xf32>
    %1099 = arith.divf %1097, %1098 : vector<1x16xf32>
    %cst_414 = arith.constant 9.99999974E-6 : f32
    %1100 = vector.broadcast %cst_414 : f32 to vector<1x16xf32>
    %1101 = arith.addf %1099, %1100 : vector<1x16xf32>
    %1102 = math.rsqrt %1101 : vector<1x16xf32>
    %1103 = arith.mulf %1102, %1087 : vector<1x16xf32>
    %1104 = vector.broadcast %1103 : vector<1x16xf32> to vector<8x16xf32>
    %1105 = arith.mulf %1094, %1104 : vector<8x16xf32>
    %1106 = vector.broadcast %1088 : vector<1x16xf32> to vector<8x16xf32>
    %1107 = arith.addf %1105, %1106 : vector<8x16xf32>
    %cst_415 = arith.constant 0.000000e+00 : f32
    %1108 = vector.broadcast %cst_415 : f32 to vector<8x16xf32>
    %1109 = arith.cmpf ogt, %1107, %1108 : vector<8x16xf32>
    %cst_416 = arith.constant 0.00999999977 : f32
    %1110 = vector.broadcast %cst_416 : f32 to vector<8x16xf32>
    %1111 = arith.mulf %1110, %1107 : vector<8x16xf32>
    %1112 = arith.select %1109, %1107, %1111 : vector<8x16xi1>, vector<8x16xf32>
    %c0_417 = arith.constant 0 : index
    %c768_418 = arith.constant 768 : index
    %1113 = vector.load %arg4[%c0_417, %c768_418] : memref<16x1024xf32, #tpu.memory_space<vmem>>, vector<16x64xf32>
    %cst_419 = arith.constant dense<0.000000e+00> : vector<8x64xf32>
    %1114 = tpu.matmul %1112, %1113, %cst_419 {dimension_numbers = #tpu.dot_dimension_numbers<[1], [0], [0], [1], [0, 0, 1, 1], [], []>} : vector<8x16xf32>, vector<16x64xf32>, vector<8x64xf32> -> vector<8x64xf32>
    %1115 = vector.extract_strided_slice %1056 {offsets = [0, 0], sizes = [1, 64], strides = [1, 1]} : vector<2x64xf32> to vector<1x64xf32>
    %1116 = vector.extract_strided_slice %1056 {offsets = [1, 0], sizes = [1, 64], strides = [1, 1]} : vector<2x64xf32> to vector<1x64xf32>
    %cst_420 = arith.constant dense<0.000000e+00> : vector<64xf32>
    %1117 = vector.multi_reduction <add>, %1114, %cst_420 [0] : vector<8x64xf32> to vector<64xf32>
    %1118 = vector.shape_cast %1117 : vector<64xf32> to vector<1x64xf32>
    %cst_421 = arith.constant 8.000000e+00 : f32
    %1119 = vector.broadcast %cst_421 : f32 to vector<1x64xf32>
    %1120 = arith.divf %1118, %1119 : vector<1x64xf32>
    %1121 = vector.broadcast %1120 : vector<1x64xf32> to vector<8x64xf32>
    %1122 = arith.subf %1114, %1121 : vector<8x64xf32>
    %1123 = arith.mulf %1122, %1122 : vector<8x64xf32>
    %cst_422 = arith.constant dense<0.000000e+00> : vector<64xf32>
    %1124 = vector.multi_reduction <add>, %1123, %cst_422 [0] : vector<8x64xf32> to vector<64xf32>
    %1125 = vector.shape_cast %1124 : vector<64xf32> to vector<1x64xf32>
    %cst_423 = arith.constant 8.000000e+00 : f32
    %1126 = vector.broadcast %cst_423 : f32 to vector<1x64xf32>
    %1127 = arith.divf %1125, %1126 : vector<1x64xf32>
    %cst_424 = arith.constant 9.99999974E-6 : f32
    %1128 = vector.broadcast %cst_424 : f32 to vector<1x64xf32>
    %1129 = arith.addf %1127, %1128 : vector<1x64xf32>
    %1130 = math.rsqrt %1129 : vector<1x64xf32>
    %1131 = arith.mulf %1130, %1115 : vector<1x64xf32>
    %1132 = vector.broadcast %1131 : vector<1x64xf32> to vector<8x64xf32>
    %1133 = arith.mulf %1122, %1132 : vector<8x64xf32>
    %1134 = vector.broadcast %1116 : vector<1x64xf32> to vector<8x64xf32>
    %1135 = arith.addf %1133, %1134 : vector<8x64xf32>
    %1136 = arith.addf %1135, %1054 : vector<8x64xf32>
    %cst_425 = arith.constant 0.000000e+00 : f32
    %1137 = vector.broadcast %cst_425 : f32 to vector<8x64xf32>
    %1138 = arith.cmpf ogt, %1136, %1137 : vector<8x64xf32>
    %cst_426 = arith.constant 0.00999999977 : f32
    %1139 = vector.broadcast %cst_426 : f32 to vector<8x64xf32>
    %1140 = arith.mulf %1139, %1136 : vector<8x64xf32>
    %1141 = arith.select %1138, %1136, %1140 : vector<8x64xi1>, vector<8x64xf32>
    %c0_427 = arith.constant 0 : index
    %c208 = arith.constant 208 : index
    %1142 = vector.load %arg5[%c0_427, %c208] : memref<4x256xf32, #tpu.memory_space<vmem>>, vector<4x16xf32>
    %c0_428 = arith.constant 0 : index
    %c832 = arith.constant 832 : index
    %1143 = vector.load %arg6[%c0_428, %c832] : memref<2x1024xf32, #tpu.memory_space<vmem>>, vector<2x64xf32>
    %c0_429 = arith.constant 0 : index
    %c208_430 = arith.constant 208 : index
    %1144 = vector.load %arg2[%c0_429, %c208_430] : memref<64x256xf32, #tpu.memory_space<vmem>>, vector<64x16xf32>
    %cst_431 = arith.constant dense<0.000000e+00> : vector<8x16xf32>
    %1145 = tpu.matmul %1141, %1144, %cst_431 {dimension_numbers = #tpu.dot_dimension_numbers<[1], [0], [0], [1], [0, 0, 1, 1], [], []>} : vector<8x64xf32>, vector<64x16xf32>, vector<8x16xf32> -> vector<8x16xf32>
    %1146 = vector.extract_strided_slice %1142 {offsets = [0, 0], sizes = [1, 16], strides = [1, 1]} : vector<4x16xf32> to vector<1x16xf32>
    %1147 = vector.extract_strided_slice %1142 {offsets = [1, 0], sizes = [1, 16], strides = [1, 1]} : vector<4x16xf32> to vector<1x16xf32>
    %cst_432 = arith.constant dense<0.000000e+00> : vector<16xf32>
    %1148 = vector.multi_reduction <add>, %1145, %cst_432 [0] : vector<8x16xf32> to vector<16xf32>
    %1149 = vector.shape_cast %1148 : vector<16xf32> to vector<1x16xf32>
    %cst_433 = arith.constant 8.000000e+00 : f32
    %1150 = vector.broadcast %cst_433 : f32 to vector<1x16xf32>
    %1151 = arith.divf %1149, %1150 : vector<1x16xf32>
    %1152 = vector.broadcast %1151 : vector<1x16xf32> to vector<8x16xf32>
    %1153 = arith.subf %1145, %1152 : vector<8x16xf32>
    %1154 = arith.mulf %1153, %1153 : vector<8x16xf32>
    %cst_434 = arith.constant dense<0.000000e+00> : vector<16xf32>
    %1155 = vector.multi_reduction <add>, %1154, %cst_434 [0] : vector<8x16xf32> to vector<16xf32>
    %1156 = vector.shape_cast %1155 : vector<16xf32> to vector<1x16xf32>
    %cst_435 = arith.constant 8.000000e+00 : f32
    %1157 = vector.broadcast %cst_435 : f32 to vector<1x16xf32>
    %1158 = arith.divf %1156, %1157 : vector<1x16xf32>
    %cst_436 = arith.constant 9.99999974E-6 : f32
    %1159 = vector.broadcast %cst_436 : f32 to vector<1x16xf32>
    %1160 = arith.addf %1158, %1159 : vector<1x16xf32>
    %1161 = math.rsqrt %1160 : vector<1x16xf32>
    %1162 = arith.mulf %1161, %1146 : vector<1x16xf32>
    %1163 = vector.broadcast %1162 : vector<1x16xf32> to vector<8x16xf32>
    %1164 = arith.mulf %1153, %1163 : vector<8x16xf32>
    %1165 = vector.broadcast %1147 : vector<1x16xf32> to vector<8x16xf32>
    %1166 = arith.addf %1164, %1165 : vector<8x16xf32>
    %cst_437 = arith.constant 0.000000e+00 : f32
    %1167 = vector.broadcast %cst_437 : f32 to vector<8x16xf32>
    %1168 = arith.cmpf ogt, %1166, %1167 : vector<8x16xf32>
    %cst_438 = arith.constant 0.00999999977 : f32
    %1169 = vector.broadcast %cst_438 : f32 to vector<8x16xf32>
    %1170 = arith.mulf %1169, %1166 : vector<8x16xf32>
    %1171 = arith.select %1168, %1166, %1170 : vector<8x16xi1>, vector<8x16xf32>
    %c0_439 = arith.constant 0 : index
    %c208_440 = arith.constant 208 : index
    %1172 = vector.load %arg3[%c0_439, %c208_440] : memref<16x256xf32, #tpu.memory_space<vmem>>, vector<16x16xf32>
    %cst_441 = arith.constant dense<0.000000e+00> : vector<8x16xf32>
    %1173 = tpu.matmul %1171, %1172, %cst_441 {dimension_numbers = #tpu.dot_dimension_numbers<[1], [0], [0], [1], [0, 0, 1, 1], [], []>} : vector<8x16xf32>, vector<16x16xf32>, vector<8x16xf32> -> vector<8x16xf32>
    %1174 = vector.extract_strided_slice %1142 {offsets = [2, 0], sizes = [1, 16], strides = [1, 1]} : vector<4x16xf32> to vector<1x16xf32>
    %1175 = vector.extract_strided_slice %1142 {offsets = [3, 0], sizes = [1, 16], strides = [1, 1]} : vector<4x16xf32> to vector<1x16xf32>
    %cst_442 = arith.constant dense<0.000000e+00> : vector<16xf32>
    %1176 = vector.multi_reduction <add>, %1173, %cst_442 [0] : vector<8x16xf32> to vector<16xf32>
    %1177 = vector.shape_cast %1176 : vector<16xf32> to vector<1x16xf32>
    %cst_443 = arith.constant 8.000000e+00 : f32
    %1178 = vector.broadcast %cst_443 : f32 to vector<1x16xf32>
    %1179 = arith.divf %1177, %1178 : vector<1x16xf32>
    %1180 = vector.broadcast %1179 : vector<1x16xf32> to vector<8x16xf32>
    %1181 = arith.subf %1173, %1180 : vector<8x16xf32>
    %1182 = arith.mulf %1181, %1181 : vector<8x16xf32>
    %cst_444 = arith.constant dense<0.000000e+00> : vector<16xf32>
    %1183 = vector.multi_reduction <add>, %1182, %cst_444 [0] : vector<8x16xf32> to vector<16xf32>
    %1184 = vector.shape_cast %1183 : vector<16xf32> to vector<1x16xf32>
    %cst_445 = arith.constant 8.000000e+00 : f32
    %1185 = vector.broadcast %cst_445 : f32 to vector<1x16xf32>
    %1186 = arith.divf %1184, %1185 : vector<1x16xf32>
    %cst_446 = arith.constant 9.99999974E-6 : f32
    %1187 = vector.broadcast %cst_446 : f32 to vector<1x16xf32>
    %1188 = arith.addf %1186, %1187 : vector<1x16xf32>
    %1189 = math.rsqrt %1188 : vector<1x16xf32>
    %1190 = arith.mulf %1189, %1174 : vector<1x16xf32>
    %1191 = vector.broadcast %1190 : vector<1x16xf32> to vector<8x16xf32>
    %1192 = arith.mulf %1181, %1191 : vector<8x16xf32>
    %1193 = vector.broadcast %1175 : vector<1x16xf32> to vector<8x16xf32>
    %1194 = arith.addf %1192, %1193 : vector<8x16xf32>
    %cst_447 = arith.constant 0.000000e+00 : f32
    %1195 = vector.broadcast %cst_447 : f32 to vector<8x16xf32>
    %1196 = arith.cmpf ogt, %1194, %1195 : vector<8x16xf32>
    %cst_448 = arith.constant 0.00999999977 : f32
    %1197 = vector.broadcast %cst_448 : f32 to vector<8x16xf32>
    %1198 = arith.mulf %1197, %1194 : vector<8x16xf32>
    %1199 = arith.select %1196, %1194, %1198 : vector<8x16xi1>, vector<8x16xf32>
    %c0_449 = arith.constant 0 : index
    %c832_450 = arith.constant 832 : index
    %1200 = vector.load %arg4[%c0_449, %c832_450] : memref<16x1024xf32, #tpu.memory_space<vmem>>, vector<16x64xf32>
    %cst_451 = arith.constant dense<0.000000e+00> : vector<8x64xf32>
    %1201 = tpu.matmul %1199, %1200, %cst_451 {dimension_numbers = #tpu.dot_dimension_numbers<[1], [0], [0], [1], [0, 0, 1, 1], [], []>} : vector<8x16xf32>, vector<16x64xf32>, vector<8x64xf32> -> vector<8x64xf32>
    %1202 = vector.extract_strided_slice %1143 {offsets = [0, 0], sizes = [1, 64], strides = [1, 1]} : vector<2x64xf32> to vector<1x64xf32>
    %1203 = vector.extract_strided_slice %1143 {offsets = [1, 0], sizes = [1, 64], strides = [1, 1]} : vector<2x64xf32> to vector<1x64xf32>
    %cst_452 = arith.constant dense<0.000000e+00> : vector<64xf32>
    %1204 = vector.multi_reduction <add>, %1201, %cst_452 [0] : vector<8x64xf32> to vector<64xf32>
    %1205 = vector.shape_cast %1204 : vector<64xf32> to vector<1x64xf32>
    %cst_453 = arith.constant 8.000000e+00 : f32
    %1206 = vector.broadcast %cst_453 : f32 to vector<1x64xf32>
    %1207 = arith.divf %1205, %1206 : vector<1x64xf32>
    %1208 = vector.broadcast %1207 : vector<1x64xf32> to vector<8x64xf32>
    %1209 = arith.subf %1201, %1208 : vector<8x64xf32>
    %1210 = arith.mulf %1209, %1209 : vector<8x64xf32>
    %cst_454 = arith.constant dense<0.000000e+00> : vector<64xf32>
    %1211 = vector.multi_reduction <add>, %1210, %cst_454 [0] : vector<8x64xf32> to vector<64xf32>
    %1212 = vector.shape_cast %1211 : vector<64xf32> to vector<1x64xf32>
    %cst_455 = arith.constant 8.000000e+00 : f32
    %1213 = vector.broadcast %cst_455 : f32 to vector<1x64xf32>
    %1214 = arith.divf %1212, %1213 : vector<1x64xf32>
    %cst_456 = arith.constant 9.99999974E-6 : f32
    %1215 = vector.broadcast %cst_456 : f32 to vector<1x64xf32>
    %1216 = arith.addf %1214, %1215 : vector<1x64xf32>
    %1217 = math.rsqrt %1216 : vector<1x64xf32>
    %1218 = arith.mulf %1217, %1202 : vector<1x64xf32>
    %1219 = vector.broadcast %1218 : vector<1x64xf32> to vector<8x64xf32>
    %1220 = arith.mulf %1209, %1219 : vector<8x64xf32>
    %1221 = vector.broadcast %1203 : vector<1x64xf32> to vector<8x64xf32>
    %1222 = arith.addf %1220, %1221 : vector<8x64xf32>
    %1223 = arith.addf %1222, %1141 : vector<8x64xf32>
    %cst_457 = arith.constant 0.000000e+00 : f32
    %1224 = vector.broadcast %cst_457 : f32 to vector<8x64xf32>
    %1225 = arith.cmpf ogt, %1223, %1224 : vector<8x64xf32>
    %cst_458 = arith.constant 0.00999999977 : f32
    %1226 = vector.broadcast %cst_458 : f32 to vector<8x64xf32>
    %1227 = arith.mulf %1226, %1223 : vector<8x64xf32>
    %1228 = arith.select %1225, %1223, %1227 : vector<8x64xi1>, vector<8x64xf32>
    %c0_459 = arith.constant 0 : index
    %c224 = arith.constant 224 : index
    %1229 = vector.load %arg5[%c0_459, %c224] : memref<4x256xf32, #tpu.memory_space<vmem>>, vector<4x16xf32>
    %c0_460 = arith.constant 0 : index
    %c896 = arith.constant 896 : index
    %1230 = vector.load %arg6[%c0_460, %c896] : memref<2x1024xf32, #tpu.memory_space<vmem>>, vector<2x64xf32>
    %c0_461 = arith.constant 0 : index
    %c224_462 = arith.constant 224 : index
    %1231 = vector.load %arg2[%c0_461, %c224_462] : memref<64x256xf32, #tpu.memory_space<vmem>>, vector<64x16xf32>
    %cst_463 = arith.constant dense<0.000000e+00> : vector<8x16xf32>
    %1232 = tpu.matmul %1228, %1231, %cst_463 {dimension_numbers = #tpu.dot_dimension_numbers<[1], [0], [0], [1], [0, 0, 1, 1], [], []>} : vector<8x64xf32>, vector<64x16xf32>, vector<8x16xf32> -> vector<8x16xf32>
    %1233 = vector.extract_strided_slice %1229 {offsets = [0, 0], sizes = [1, 16], strides = [1, 1]} : vector<4x16xf32> to vector<1x16xf32>
    %1234 = vector.extract_strided_slice %1229 {offsets = [1, 0], sizes = [1, 16], strides = [1, 1]} : vector<4x16xf32> to vector<1x16xf32>
    %cst_464 = arith.constant dense<0.000000e+00> : vector<16xf32>
    %1235 = vector.multi_reduction <add>, %1232, %cst_464 [0] : vector<8x16xf32> to vector<16xf32>
    %1236 = vector.shape_cast %1235 : vector<16xf32> to vector<1x16xf32>
    %cst_465 = arith.constant 8.000000e+00 : f32
    %1237 = vector.broadcast %cst_465 : f32 to vector<1x16xf32>
    %1238 = arith.divf %1236, %1237 : vector<1x16xf32>
    %1239 = vector.broadcast %1238 : vector<1x16xf32> to vector<8x16xf32>
    %1240 = arith.subf %1232, %1239 : vector<8x16xf32>
    %1241 = arith.mulf %1240, %1240 : vector<8x16xf32>
    %cst_466 = arith.constant dense<0.000000e+00> : vector<16xf32>
    %1242 = vector.multi_reduction <add>, %1241, %cst_466 [0] : vector<8x16xf32> to vector<16xf32>
    %1243 = vector.shape_cast %1242 : vector<16xf32> to vector<1x16xf32>
    %cst_467 = arith.constant 8.000000e+00 : f32
    %1244 = vector.broadcast %cst_467 : f32 to vector<1x16xf32>
    %1245 = arith.divf %1243, %1244 : vector<1x16xf32>
    %cst_468 = arith.constant 9.99999974E-6 : f32
    %1246 = vector.broadcast %cst_468 : f32 to vector<1x16xf32>
    %1247 = arith.addf %1245, %1246 : vector<1x16xf32>
    %1248 = math.rsqrt %1247 : vector<1x16xf32>
    %1249 = arith.mulf %1248, %1233 : vector<1x16xf32>
    %1250 = vector.broadcast %1249 : vector<1x16xf32> to vector<8x16xf32>
    %1251 = arith.mulf %1240, %1250 : vector<8x16xf32>
    %1252 = vector.broadcast %1234 : vector<1x16xf32> to vector<8x16xf32>
    %1253 = arith.addf %1251, %1252 : vector<8x16xf32>
    %cst_469 = arith.constant 0.000000e+00 : f32
    %1254 = vector.broadcast %cst_469 : f32 to vector<8x16xf32>
    %1255 = arith.cmpf ogt, %1253, %1254 : vector<8x16xf32>
    %cst_470 = arith.constant 0.00999999977 : f32
    %1256 = vector.broadcast %cst_470 : f32 to vector<8x16xf32>
    %1257 = arith.mulf %1256, %1253 : vector<8x16xf32>
    %1258 = arith.select %1255, %1253, %1257 : vector<8x16xi1>, vector<8x16xf32>
    %c0_471 = arith.constant 0 : index
    %c224_472 = arith.constant 224 : index
    %1259 = vector.load %arg3[%c0_471, %c224_472] : memref<16x256xf32, #tpu.memory_space<vmem>>, vector<16x16xf32>
    %cst_473 = arith.constant dense<0.000000e+00> : vector<8x16xf32>
    %1260 = tpu.matmul %1258, %1259, %cst_473 {dimension_numbers = #tpu.dot_dimension_numbers<[1], [0], [0], [1], [0, 0, 1, 1], [], []>} : vector<8x16xf32>, vector<16x16xf32>, vector<8x16xf32> -> vector<8x16xf32>
    %1261 = vector.extract_strided_slice %1229 {offsets = [2, 0], sizes = [1, 16], strides = [1, 1]} : vector<4x16xf32> to vector<1x16xf32>
    %1262 = vector.extract_strided_slice %1229 {offsets = [3, 0], sizes = [1, 16], strides = [1, 1]} : vector<4x16xf32> to vector<1x16xf32>
    %cst_474 = arith.constant dense<0.000000e+00> : vector<16xf32>
    %1263 = vector.multi_reduction <add>, %1260, %cst_474 [0] : vector<8x16xf32> to vector<16xf32>
    %1264 = vector.shape_cast %1263 : vector<16xf32> to vector<1x16xf32>
    %cst_475 = arith.constant 8.000000e+00 : f32
    %1265 = vector.broadcast %cst_475 : f32 to vector<1x16xf32>
    %1266 = arith.divf %1264, %1265 : vector<1x16xf32>
    %1267 = vector.broadcast %1266 : vector<1x16xf32> to vector<8x16xf32>
    %1268 = arith.subf %1260, %1267 : vector<8x16xf32>
    %1269 = arith.mulf %1268, %1268 : vector<8x16xf32>
    %cst_476 = arith.constant dense<0.000000e+00> : vector<16xf32>
    %1270 = vector.multi_reduction <add>, %1269, %cst_476 [0] : vector<8x16xf32> to vector<16xf32>
    %1271 = vector.shape_cast %1270 : vector<16xf32> to vector<1x16xf32>
    %cst_477 = arith.constant 8.000000e+00 : f32
    %1272 = vector.broadcast %cst_477 : f32 to vector<1x16xf32>
    %1273 = arith.divf %1271, %1272 : vector<1x16xf32>
    %cst_478 = arith.constant 9.99999974E-6 : f32
    %1274 = vector.broadcast %cst_478 : f32 to vector<1x16xf32>
    %1275 = arith.addf %1273, %1274 : vector<1x16xf32>
    %1276 = math.rsqrt %1275 : vector<1x16xf32>
    %1277 = arith.mulf %1276, %1261 : vector<1x16xf32>
    %1278 = vector.broadcast %1277 : vector<1x16xf32> to vector<8x16xf32>
    %1279 = arith.mulf %1268, %1278 : vector<8x16xf32>
    %1280 = vector.broadcast %1262 : vector<1x16xf32> to vector<8x16xf32>
    %1281 = arith.addf %1279, %1280 : vector<8x16xf32>
    %cst_479 = arith.constant 0.000000e+00 : f32
    %1282 = vector.broadcast %cst_479 : f32 to vector<8x16xf32>
    %1283 = arith.cmpf ogt, %1281, %1282 : vector<8x16xf32>
    %cst_480 = arith.constant 0.00999999977 : f32
    %1284 = vector.broadcast %cst_480 : f32 to vector<8x16xf32>
    %1285 = arith.mulf %1284, %1281 : vector<8x16xf32>
    %1286 = arith.select %1283, %1281, %1285 : vector<8x16xi1>, vector<8x16xf32>
    %c0_481 = arith.constant 0 : index
    %c896_482 = arith.constant 896 : index
    %1287 = vector.load %arg4[%c0_481, %c896_482] : memref<16x1024xf32, #tpu.memory_space<vmem>>, vector<16x64xf32>
    %cst_483 = arith.constant dense<0.000000e+00> : vector<8x64xf32>
    %1288 = tpu.matmul %1286, %1287, %cst_483 {dimension_numbers = #tpu.dot_dimension_numbers<[1], [0], [0], [1], [0, 0, 1, 1], [], []>} : vector<8x16xf32>, vector<16x64xf32>, vector<8x64xf32> -> vector<8x64xf32>
    %1289 = vector.extract_strided_slice %1230 {offsets = [0, 0], sizes = [1, 64], strides = [1, 1]} : vector<2x64xf32> to vector<1x64xf32>
    %1290 = vector.extract_strided_slice %1230 {offsets = [1, 0], sizes = [1, 64], strides = [1, 1]} : vector<2x64xf32> to vector<1x64xf32>
    %cst_484 = arith.constant dense<0.000000e+00> : vector<64xf32>
    %1291 = vector.multi_reduction <add>, %1288, %cst_484 [0] : vector<8x64xf32> to vector<64xf32>
    %1292 = vector.shape_cast %1291 : vector<64xf32> to vector<1x64xf32>
    %cst_485 = arith.constant 8.000000e+00 : f32
    %1293 = vector.broadcast %cst_485 : f32 to vector<1x64xf32>
    %1294 = arith.divf %1292, %1293 : vector<1x64xf32>
    %1295 = vector.broadcast %1294 : vector<1x64xf32> to vector<8x64xf32>
    %1296 = arith.subf %1288, %1295 : vector<8x64xf32>
    %1297 = arith.mulf %1296, %1296 : vector<8x64xf32>
    %cst_486 = arith.constant dense<0.000000e+00> : vector<64xf32>
    %1298 = vector.multi_reduction <add>, %1297, %cst_486 [0] : vector<8x64xf32> to vector<64xf32>
    %1299 = vector.shape_cast %1298 : vector<64xf32> to vector<1x64xf32>
    %cst_487 = arith.constant 8.000000e+00 : f32
    %1300 = vector.broadcast %cst_487 : f32 to vector<1x64xf32>
    %1301 = arith.divf %1299, %1300 : vector<1x64xf32>
    %cst_488 = arith.constant 9.99999974E-6 : f32
    %1302 = vector.broadcast %cst_488 : f32 to vector<1x64xf32>
    %1303 = arith.addf %1301, %1302 : vector<1x64xf32>
    %1304 = math.rsqrt %1303 : vector<1x64xf32>
    %1305 = arith.mulf %1304, %1289 : vector<1x64xf32>
    %1306 = vector.broadcast %1305 : vector<1x64xf32> to vector<8x64xf32>
    %1307 = arith.mulf %1296, %1306 : vector<8x64xf32>
    %1308 = vector.broadcast %1290 : vector<1x64xf32> to vector<8x64xf32>
    %1309 = arith.addf %1307, %1308 : vector<8x64xf32>
    %1310 = arith.addf %1309, %1228 : vector<8x64xf32>
    %cst_489 = arith.constant 0.000000e+00 : f32
    %1311 = vector.broadcast %cst_489 : f32 to vector<8x64xf32>
    %1312 = arith.cmpf ogt, %1310, %1311 : vector<8x64xf32>
    %cst_490 = arith.constant 0.00999999977 : f32
    %1313 = vector.broadcast %cst_490 : f32 to vector<8x64xf32>
    %1314 = arith.mulf %1313, %1310 : vector<8x64xf32>
    %1315 = arith.select %1312, %1310, %1314 : vector<8x64xi1>, vector<8x64xf32>
    %c0_491 = arith.constant 0 : index
    %c240 = arith.constant 240 : index
    %1316 = vector.load %arg5[%c0_491, %c240] : memref<4x256xf32, #tpu.memory_space<vmem>>, vector<4x16xf32>
    %c0_492 = arith.constant 0 : index
    %c960 = arith.constant 960 : index
    %1317 = vector.load %arg6[%c0_492, %c960] : memref<2x1024xf32, #tpu.memory_space<vmem>>, vector<2x64xf32>
    %c0_493 = arith.constant 0 : index
    %c240_494 = arith.constant 240 : index
    %1318 = vector.load %arg2[%c0_493, %c240_494] : memref<64x256xf32, #tpu.memory_space<vmem>>, vector<64x16xf32>
    %cst_495 = arith.constant dense<0.000000e+00> : vector<8x16xf32>
    %1319 = tpu.matmul %1315, %1318, %cst_495 {dimension_numbers = #tpu.dot_dimension_numbers<[1], [0], [0], [1], [0, 0, 1, 1], [], []>} : vector<8x64xf32>, vector<64x16xf32>, vector<8x16xf32> -> vector<8x16xf32>
    %1320 = vector.extract_strided_slice %1316 {offsets = [0, 0], sizes = [1, 16], strides = [1, 1]} : vector<4x16xf32> to vector<1x16xf32>
    %1321 = vector.extract_strided_slice %1316 {offsets = [1, 0], sizes = [1, 16], strides = [1, 1]} : vector<4x16xf32> to vector<1x16xf32>
    %cst_496 = arith.constant dense<0.000000e+00> : vector<16xf32>
    %1322 = vector.multi_reduction <add>, %1319, %cst_496 [0] : vector<8x16xf32> to vector<16xf32>
    %1323 = vector.shape_cast %1322 : vector<16xf32> to vector<1x16xf32>
    %cst_497 = arith.constant 8.000000e+00 : f32
    %1324 = vector.broadcast %cst_497 : f32 to vector<1x16xf32>
    %1325 = arith.divf %1323, %1324 : vector<1x16xf32>
    %1326 = vector.broadcast %1325 : vector<1x16xf32> to vector<8x16xf32>
    %1327 = arith.subf %1319, %1326 : vector<8x16xf32>
    %1328 = arith.mulf %1327, %1327 : vector<8x16xf32>
    %cst_498 = arith.constant dense<0.000000e+00> : vector<16xf32>
    %1329 = vector.multi_reduction <add>, %1328, %cst_498 [0] : vector<8x16xf32> to vector<16xf32>
    %1330 = vector.shape_cast %1329 : vector<16xf32> to vector<1x16xf32>
    %cst_499 = arith.constant 8.000000e+00 : f32
    %1331 = vector.broadcast %cst_499 : f32 to vector<1x16xf32>
    %1332 = arith.divf %1330, %1331 : vector<1x16xf32>
    %cst_500 = arith.constant 9.99999974E-6 : f32
    %1333 = vector.broadcast %cst_500 : f32 to vector<1x16xf32>
    %1334 = arith.addf %1332, %1333 : vector<1x16xf32>
    %1335 = math.rsqrt %1334 : vector<1x16xf32>
    %1336 = arith.mulf %1335, %1320 : vector<1x16xf32>
    %1337 = vector.broadcast %1336 : vector<1x16xf32> to vector<8x16xf32>
    %1338 = arith.mulf %1327, %1337 : vector<8x16xf32>
    %1339 = vector.broadcast %1321 : vector<1x16xf32> to vector<8x16xf32>
    %1340 = arith.addf %1338, %1339 : vector<8x16xf32>
    %cst_501 = arith.constant 0.000000e+00 : f32
    %1341 = vector.broadcast %cst_501 : f32 to vector<8x16xf32>
    %1342 = arith.cmpf ogt, %1340, %1341 : vector<8x16xf32>
    %cst_502 = arith.constant 0.00999999977 : f32
    %1343 = vector.broadcast %cst_502 : f32 to vector<8x16xf32>
    %1344 = arith.mulf %1343, %1340 : vector<8x16xf32>
    %1345 = arith.select %1342, %1340, %1344 : vector<8x16xi1>, vector<8x16xf32>
    %c0_503 = arith.constant 0 : index
    %c240_504 = arith.constant 240 : index
    %1346 = vector.load %arg3[%c0_503, %c240_504] : memref<16x256xf32, #tpu.memory_space<vmem>>, vector<16x16xf32>
    %cst_505 = arith.constant dense<0.000000e+00> : vector<8x16xf32>
    %1347 = tpu.matmul %1345, %1346, %cst_505 {dimension_numbers = #tpu.dot_dimension_numbers<[1], [0], [0], [1], [0, 0, 1, 1], [], []>} : vector<8x16xf32>, vector<16x16xf32>, vector<8x16xf32> -> vector<8x16xf32>
    %1348 = vector.extract_strided_slice %1316 {offsets = [2, 0], sizes = [1, 16], strides = [1, 1]} : vector<4x16xf32> to vector<1x16xf32>
    %1349 = vector.extract_strided_slice %1316 {offsets = [3, 0], sizes = [1, 16], strides = [1, 1]} : vector<4x16xf32> to vector<1x16xf32>
    %cst_506 = arith.constant dense<0.000000e+00> : vector<16xf32>
    %1350 = vector.multi_reduction <add>, %1347, %cst_506 [0] : vector<8x16xf32> to vector<16xf32>
    %1351 = vector.shape_cast %1350 : vector<16xf32> to vector<1x16xf32>
    %cst_507 = arith.constant 8.000000e+00 : f32
    %1352 = vector.broadcast %cst_507 : f32 to vector<1x16xf32>
    %1353 = arith.divf %1351, %1352 : vector<1x16xf32>
    %1354 = vector.broadcast %1353 : vector<1x16xf32> to vector<8x16xf32>
    %1355 = arith.subf %1347, %1354 : vector<8x16xf32>
    %1356 = arith.mulf %1355, %1355 : vector<8x16xf32>
    %cst_508 = arith.constant dense<0.000000e+00> : vector<16xf32>
    %1357 = vector.multi_reduction <add>, %1356, %cst_508 [0] : vector<8x16xf32> to vector<16xf32>
    %1358 = vector.shape_cast %1357 : vector<16xf32> to vector<1x16xf32>
    %cst_509 = arith.constant 8.000000e+00 : f32
    %1359 = vector.broadcast %cst_509 : f32 to vector<1x16xf32>
    %1360 = arith.divf %1358, %1359 : vector<1x16xf32>
    %cst_510 = arith.constant 9.99999974E-6 : f32
    %1361 = vector.broadcast %cst_510 : f32 to vector<1x16xf32>
    %1362 = arith.addf %1360, %1361 : vector<1x16xf32>
    %1363 = math.rsqrt %1362 : vector<1x16xf32>
    %1364 = arith.mulf %1363, %1348 : vector<1x16xf32>
    %1365 = vector.broadcast %1364 : vector<1x16xf32> to vector<8x16xf32>
    %1366 = arith.mulf %1355, %1365 : vector<8x16xf32>
    %1367 = vector.broadcast %1349 : vector<1x16xf32> to vector<8x16xf32>
    %1368 = arith.addf %1366, %1367 : vector<8x16xf32>
    %cst_511 = arith.constant 0.000000e+00 : f32
    %1369 = vector.broadcast %cst_511 : f32 to vector<8x16xf32>
    %1370 = arith.cmpf ogt, %1368, %1369 : vector<8x16xf32>
    %cst_512 = arith.constant 0.00999999977 : f32
    %1371 = vector.broadcast %cst_512 : f32 to vector<8x16xf32>
    %1372 = arith.mulf %1371, %1368 : vector<8x16xf32>
    %1373 = arith.select %1370, %1368, %1372 : vector<8x16xi1>, vector<8x16xf32>
    %c0_513 = arith.constant 0 : index
    %c960_514 = arith.constant 960 : index
    %1374 = vector.load %arg4[%c0_513, %c960_514] : memref<16x1024xf32, #tpu.memory_space<vmem>>, vector<16x64xf32>
    %cst_515 = arith.constant dense<0.000000e+00> : vector<8x64xf32>
    %1375 = tpu.matmul %1373, %1374, %cst_515 {dimension_numbers = #tpu.dot_dimension_numbers<[1], [0], [0], [1], [0, 0, 1, 1], [], []>} : vector<8x16xf32>, vector<16x64xf32>, vector<8x64xf32> -> vector<8x64xf32>
    %1376 = vector.extract_strided_slice %1317 {offsets = [0, 0], sizes = [1, 64], strides = [1, 1]} : vector<2x64xf32> to vector<1x64xf32>
    %1377 = vector.extract_strided_slice %1317 {offsets = [1, 0], sizes = [1, 64], strides = [1, 1]} : vector<2x64xf32> to vector<1x64xf32>
    %cst_516 = arith.constant dense<0.000000e+00> : vector<64xf32>
    %1378 = vector.multi_reduction <add>, %1375, %cst_516 [0] : vector<8x64xf32> to vector<64xf32>
    %1379 = vector.shape_cast %1378 : vector<64xf32> to vector<1x64xf32>
    %cst_517 = arith.constant 8.000000e+00 : f32
    %1380 = vector.broadcast %cst_517 : f32 to vector<1x64xf32>
    %1381 = arith.divf %1379, %1380 : vector<1x64xf32>
    %1382 = vector.broadcast %1381 : vector<1x64xf32> to vector<8x64xf32>
    %1383 = arith.subf %1375, %1382 : vector<8x64xf32>
    %1384 = arith.mulf %1383, %1383 : vector<8x64xf32>
    %cst_518 = arith.constant dense<0.000000e+00> : vector<64xf32>
    %1385 = vector.multi_reduction <add>, %1384, %cst_518 [0] : vector<8x64xf32> to vector<64xf32>
    %1386 = vector.shape_cast %1385 : vector<64xf32> to vector<1x64xf32>
    %cst_519 = arith.constant 8.000000e+00 : f32
    %1387 = vector.broadcast %cst_519 : f32 to vector<1x64xf32>
    %1388 = arith.divf %1386, %1387 : vector<1x64xf32>
    %cst_520 = arith.constant 9.99999974E-6 : f32
    %1389 = vector.broadcast %cst_520 : f32 to vector<1x64xf32>
    %1390 = arith.addf %1388, %1389 : vector<1x64xf32>
    %1391 = math.rsqrt %1390 : vector<1x64xf32>
    %1392 = arith.mulf %1391, %1376 : vector<1x64xf32>
    %1393 = vector.broadcast %1392 : vector<1x64xf32> to vector<8x64xf32>
    %1394 = arith.mulf %1383, %1393 : vector<8x64xf32>
    %1395 = vector.broadcast %1377 : vector<1x64xf32> to vector<8x64xf32>
    %1396 = arith.addf %1394, %1395 : vector<8x64xf32>
    %1397 = arith.addf %1396, %1315 : vector<8x64xf32>
    %cst_521 = arith.constant 0.000000e+00 : f32
    %1398 = vector.broadcast %cst_521 : f32 to vector<8x64xf32>
    %1399 = arith.cmpf ogt, %1397, %1398 : vector<8x64xf32>
    %cst_522 = arith.constant 0.00999999977 : f32
    %1400 = vector.broadcast %cst_522 : f32 to vector<8x64xf32>
    %1401 = arith.mulf %1400, %1397 : vector<8x64xf32>
    %1402 = arith.select %1399, %1397, %1401 : vector<8x64xi1>, vector<8x64xf32>
    %c0_523 = arith.constant 0 : index
    %c0_524 = arith.constant 0 : index
    %1403 = vector.load %arg7[%c0_523, %c0_524] : memref<67x16xf32, #tpu.memory_space<vmem>>, vector<64x16xf32>
    %c64_525 = arith.constant 64 : index
    %c0_526 = arith.constant 0 : index
    %1404 = vector.load %arg7[%c64_525, %c0_526] : memref<67x16xf32, #tpu.memory_space<vmem>>, vector<1x16xf32>
    %c65 = arith.constant 65 : index
    %c0_527 = arith.constant 0 : index
    %1405 = vector.load %arg7[%c65, %c0_527] : memref<67x16xf32, #tpu.memory_space<vmem>>, vector<1x16xf32>
    %c66 = arith.constant 66 : index
    %c0_528 = arith.constant 0 : index
    %1406 = vector.load %arg7[%c66, %c0_528] : memref<67x16xf32, #tpu.memory_space<vmem>>, vector<1x1xf32>
    %cst_529 = arith.constant dense<0.000000e+00> : vector<8x16xf32>
    %1407 = tpu.matmul %1402, %1403, %cst_529 {dimension_numbers = #tpu.dot_dimension_numbers<[1], [0], [0], [1], [0, 0, 1, 1], [], []>} : vector<8x64xf32>, vector<64x16xf32>, vector<8x16xf32> -> vector<8x16xf32>
    %1408 = vector.broadcast %1404 : vector<1x16xf32> to vector<8x16xf32>
    %1409 = arith.addf %1407, %1408 : vector<8x16xf32>
    %cst_530 = arith.constant 0.000000e+00 : f32
    %1410 = vector.broadcast %cst_530 : f32 to vector<8x16xf32>
    %1411 = arith.cmpf ogt, %1409, %1410 : vector<8x16xf32>
    %cst_531 = arith.constant 0.00999999977 : f32
    %1412 = vector.broadcast %cst_531 : f32 to vector<8x16xf32>
    %1413 = arith.mulf %1412, %1409 : vector<8x16xf32>
    %1414 = arith.select %1411, %1409, %1413 : vector<8x16xi1>, vector<8x16xf32>
    %1415 = vector.broadcast %1405 : vector<1x16xf32> to vector<8x16xf32>
    %1416 = arith.mulf %1414, %1415 : vector<8x16xf32>
    %cst_532 = arith.constant dense<0.000000e+00> : vector<8xf32>
    %1417 = vector.multi_reduction <add>, %1416, %cst_532 [1] : vector<8x16xf32> to vector<8xf32>
    %1418 = vector.shape_cast %1417 : vector<8xf32> to vector<8x1xf32>
    %1419 = vector.broadcast %1406 : vector<1x1xf32> to vector<8x1xf32>
    %1420 = arith.addf %1418, %1419 : vector<8x1xf32>
    %c0_533 = arith.constant 0 : index
    %c0_534 = arith.constant 0 : index
    %1421 = vector.load %arg8[%c0_533, %c0_534] : memref<8x1xf32, #tpu.memory_space<vmem>>, vector<8x1xf32>
    tpu.vector_store %arg8[%c0_533, %c0_534], %1420 {strides = array<i32>} : memref<8x1xf32, #tpu.memory_space<vmem>>, vector<8x1xf32>,
    return
  }
}

</mosaic_0001>

<bundles_post_ra>
// kernel: tpu_custom_call.1
= control target key start
LH: loop header
LB: loop body
LE: loop exit
PB: predicated region body
PF: predicated region fallthrough
CT: control target
= control target key end

     0   :  { %13 = vsyncpa [#allocation3], 0  ;;  %s8460_s0 = inlined_call_operand.vmem [shape: f32[8,6], index: 0, kind: input, shape index: {}]   ;;  %s8461_s1 = inlined_call_operand.vmem [shape: f32[7,64], index: 1, kind: input, shape index: {}]   ;;  %s8462_s2 = inlined_call_operand.hbm [shape: f32[64,256], index: 2, kind: input, shape index: {}]   ;;  %s8463_s3 = inlined_call_operand.vmem [shape: f32[16,256], index: 3, kind: input, shape index: {}]   ;;  %s8464_s4 = inlined_call_operand.hbm [shape: f32[16,1024], index: 4, kind: input, shape index: {}]   ;;  %s8465_s5 = inlined_call_operand.vmem [shape: f32[4,256], index: 5, kind: input, shape index: {}]   ;;  %s8466_s6 = inlined_call_operand.vmem [shape: f32[2,1024], index: 6, kind: input, shape index: {}]   ;;  %s8467_s7 = inlined_call_operand.vmem [shape: f32[67,16], index: 7, kind: input, shape index: {}]   ;;  %s8468_s8 = inlined_call_operand.vmem [shape: f32[8,1], index: 8, kind: output, shape index: {}]  }
   0x1   :  { %14 = vsyncpa [#allocation5], 0  ;;  %s7137_s27 = smov [#allocation2]  }
   0x2   :  { %s24_s28 = sshll.u32 %s7137_s27, 4  ;;  %s25_s28 = int_to_ptr.vmem [resolvable:$true] %s24_s28 }
   0x3   :  { %s7101_s29 = scalar_lea.vmem %s25_s28, 2048  ;;  %p7106_p1 = scmp.lt.s32.totalorder %s25_s28, %s25_s28 }
   0x4   :  { %p7102_p0 = scmp.ne.s32.totalorder %s25_s28, %s7101_s29  ;;  %p7107_p2 = scmp.lt.s32.totalorder %s7101_s29, %s7101_s29 }
   0x6   :  { %p7108_p3 = por %p7107_p2, %p7106_p1 }
   0x8   :  { %p7109_p4 = pnand %p7108_p3, %p7102_p0 }
   0xa   :  { %7112 = shalt.err (!%p7109_p4)
}
   0xb   :  { %s7138_s30 = smov 256   ;;  %s7139_s9 = smov 16  }
   0xc   :  { %30 = dma.hbm_to_vmem [thread:$0]  %s8462_s2, 2048, %s25_s28, [#allocation3], %s7138_s30, %s7138_s30, %s7139_s9  }
   0xd   :  { %s7140_s12 = smov [#allocation4]  }
   0xe   :  { %s38_s13 = sshll.u32 %s7140_s12, 4  ;;  %s39_s13 = int_to_ptr.vmem [resolvable:$true] %s38_s13 }
   0xf   :  { %s7121_s14 = scalar_lea.vmem %s39_s13, 2048  ;;  %p7126_p6 = scmp.lt.s32.totalorder %s39_s13, %s39_s13 }
  0x10   :  { %p7122_p5 = scmp.ne.s32.totalorder %s39_s13, %s7121_s14  ;;  %p7127_p7 = scmp.lt.s32.totalorder %s7121_s14, %s7121_s14 }
  0x12   :  { %p7128_p8 = por %p7127_p7, %p7126_p6 }
  0x14   :  { %p7129_p9 = pnand %p7128_p8, %p7122_p5 }
  0x16   :  { %7132 = shalt.err (!%p7129_p9)
}
  0x17   :  { %s7141_s15 = smov 1024   ;;  %s7142_s16 = smov 64  }
  0x18   :  { %44 = dma.hbm_to_vmem [thread:$0]  %s8464_s4, 2048, %s39_s13, [#allocation5], %s7141_s15, %s7141_s15, %s7142_s16  }
  0x19   :  { %7133 = dma.done.wait [#allocation3], 2048  }
  0x1a   :  { %7134 = vsyncadd [#allocation3], 4294965248 }
  0x1b   :  { %7135 = dma.done.wait [#allocation5], 2048  }
  0x1c   :  { %7136 = vsyncadd [#allocation5], 4294965248  ;;  %v7143_v0 = vmov 0.0   ;;  %vm7144_vm0 = vmmov 0   ;;  %vm68_vm1 = vcmask 1045504   ;;  %vm64_vm2 = vcmask 48128  }
  0x1d   :  { %6412 = vmatprep.subr.mxu0 %v7143_v0  ;;  %6414 = vmatprep.mubr.msk.f32.mxu0 %vm7144_vm0, %v7143_v0  ;;  %v58_v1 = vld [vmem:[%s8461_s1] sm:$0x3f]  ;;  %v7215_v3 = vld [vmem:[#allocation2 + $0x70] sm:$0xff]  ;;  %v6106_v11 = vld [vmem:[%s8461_s1 + $0x6] ss:$0 sm:$0xff]  ;;  %vm155_vm4 = vcmask 523264   ;;  %v252_v40 = vlaneseq }
  0x1e   :  { %6417 = vmatprep.subr.mxu1 %v7143_v0  ;;  %6433 = vmatprep.mubr.msk.f32.mxu1 %vm7144_vm0, %v7143_v0  ;;  %v57_v2 = vld [vmem:[%s8460_s0] sm:$0xff]  ;;  %v7221_v5 = vld [vmem:[#allocation2 + $0x50] sm:$0xff]  ;;  %vm229_vm5 = vcmask 130048   ;;  %s7145_s27 = smov 112   ;;  %s7146_s30 = smov 96  }
  0x1f   :  { %6413 = vmatpush3.msk.msra.mxu0 %vm68_vm1, %v58_v1  ;;  %6418 = vmatpush3.msra.mxu1 %v7215_v3  ;;  %v7218_v4 = vld [vmem:[#allocation2 + $0x60] sm:$0xff]  ;;  %v7232_v7 = vld [vmem:[#allocation2 + $0x30] sm:$0xff]  ;;  %v7275_v41 = vshrl.u32 %v252_v40, 7  ;;  %s7147_s10 = smov 80   ;;  %s7148_s15 = smov 48  }
  0x20   :  { %6415 = vmatmul.mubr.msk.f32.vlgmr.msra.gmra.mxu0 %vm64_vm2, %v57_v2  ;;  %6419 = vmatprep.subr.mxu1 %v7143_v0  ;;  %v7226_v6 = vld [vmem:[#allocation2 + $0x40] sm:$0xff]  ;;  %v7242_v9 = vld [vmem:[#allocation2 + $0x10] sm:$0xff]  ;;  %s7149_s19 = smov 32  }
  0x21   :  { %6420 = vmatpush3.msra.mxu1 %v7218_v4  ;;  %6436 = vmatprep.subr.mxu0 %v7143_v0  ;;  %v7238_v8 = vld [vmem:[#allocation2 + $0x20] sm:$0xff]  ;;  %v7262_v17 = vld [vmem:[%s8463_s3 + $0x10] sm:$0xff]  ;;  %v7281_v43 = vsub.s32 0, %v7275_v41  ;;  %v7284_v44 = vsub.s32 1, %v7275_v41  ;;  %v363_v56 = vsub.s32 2, %v7275_v41  ;;  %v374_v57 = vsub.s32 3, %v7275_v41 }
  0x22   :  { %6421 = vmatprep.subr.mxu1 %v7143_v0  ;;  %6440 = vmatprep.mubr.msk.f32.mxu0 %vm7144_vm0, %v7143_v0  ;;  %v7245_v10 = vld [vmem:[#allocation2] sm:$0xff] }
  0x23   :  { %6422 = vmatpush3.msra.mxu1 %v7221_v5  ;;  %v7267_v18 = vld [vmem:[%s8463_s3] sm:$0xff]  ;;  %6437 = vmatpush3.msra.mxu0 %v7262_v17 }
  0x24   :  { %6423 = vmatprep.subr.mxu1 %v7143_v0  ;;  %6438 = vmatprep.subr.mxu0 %v7143_v0  ;;  %v145_v42 = vld [vmem:[%s8465_s5] sm:$0xf] }
  0x25   :  { %6424 = vmatpush3.msra.mxu1 %v7226_v6  ;;  %6439 = vmatpush3.msra.mxu0 %v7267_v18  ;;  %v7288_v48 = vrot.slane %v145_v42, %v7284_v44  ;;  %v381_v53 = vld [vmem:[#allocation4 + $0x40] sm:$0xff]  ;;  %v7309_v55 = vrot.slane %v145_v42, %v7281_v43  ;;  %v7327_v58 = vrot.slane %v145_v42, %v363_v56 }
  0x26   :  { %6425 = vmatprep.subr.mxu1 %v7143_v0  ;;  %6443 = vmatprep.subr.mxu0 %v7143_v0  ;;  %v380_v54 = vld [vmem:[#allocation4] sm:$0xff]  ;;  %v7331_v59 = vrot.slane %v145_v42, %v374_v57 }
  0x27   :  { %6426 = vmatpush3.msra.mxu1 %v7232_v7  ;;  %512 = vrot.lane.b32.xlu0 %v7215_v3, %s7145_s27 }
  0x28   :  { %6427 = vmatprep.subr.mxu1 %v7143_v0  ;;  %508 = vrot.lane.b32.xlu1 %v7221_v5, %s7145_s27 }
  0x29   :  { %6428 = vmatpush3.msra.mxu1 %v7238_v8 }
  0x2a   :  { %6429 = vmatprep.subr.mxu1 %v7143_v0 }
  0x2b   :  { %6430 = vmatpush3.msra.mxu1 %v7242_v9  ;;  %510 = vrot.lane.b32.xlu0 %v7218_v4, %s7145_s27 }
  0x2c   :  { %6431 = vmatprep.subr.mxu1 %v7143_v0  ;;  %506 = vrot.lane.b32.xlu1 %v7226_v6, %s7145_s27 }
  0x2d   :  { %6432 = vmatpush3.msra.mxu1 %v7245_v10 }
  0x2e   :  { %6483 = vmatprep.subr.mxu1 %v7143_v0 }
  0x2f   :  { %504 = vrot.lane.b32.xlu0 %v7232_v7, %s7145_s27 }
  0x30   :  { %502 = vrot.lane.b32.xlu1 %v7238_v8, %s7145_s27 }
  0x33   :  { %500 = vrot.lane.b32.xlu0 %v7242_v9, %s7145_s27 }
  0x34   :  { %498 = vrot.lane.b32.xlu1 %v7245_v10, %s7145_s27 }
  0x37   :  { %619 = vrot.lane.b32.xlu0 %v7309_v55, %s7145_s27 }
  0x38   :  { %629 = vrot.lane.b32.xlu1 %v7288_v48, %s7145_s27 }
  0x3b   :  { %640 = vrot.lane.b32.xlu0 %v7262_v17, %s7145_s27 }
  0x3c   :  { %638 = vrot.lane.b32.xlu1 %v7267_v18, %s7145_s27 }
  0x3f   :  { %737 = vrot.lane.b32.xlu0 %v7327_v58, %s7145_s27 }
  0x40   :  { %747 = vrot.lane.b32.xlu1 %v7331_v59, %s7145_s27 }
  0x43   :  { %758 = vrot.lane.b32.xlu0 %v381_v53, %s7142_s16 }
  0x44   :  { %756 = vrot.lane.b32.xlu1 %v380_v54, %s7142_s16 }
  0x47   :  { %893 = vrot.lane.b32.xlu0 %v7215_v3, %s7146_s30 }
  0x4b   :  { %891 = vrot.lane.b32.xlu0 %v7218_v4, %s7146_s30 }
  0x4f   :  { %887 = vrot.lane.b32.xlu0 %v7226_v6, %s7146_s30 }
  0x53   :  { %885 = vrot.lane.b32.xlu0 %v7232_v7, %s7146_s30 }
  0x57   :  { %881 = vrot.lane.b32.xlu0 %v7242_v9, %s7146_s30 }
  0x5b   :  { %996 = vrot.lane.b32.xlu0 %v7309_v55, %s7146_s30 }
  0x5f   :  { %1014 = vrot.lane.b32.xlu0 %v7262_v17, %s7146_s30 }
  0x63   :  { %1111 = vrot.lane.b32.xlu0 %v7327_v58, %s7146_s30 }
  0x67   :  { %1251 = vrot.lane.b32.xlu0 %v7215_v3, %s7147_s10 }
  0x6b   :  { %1247 = vrot.lane.b32.xlu0 %v7221_v5, %s7147_s10 }
  0x6f   :  { %1243 = vrot.lane.b32.xlu0 %v7232_v7, %s7147_s10 }
  0x73   :  { %1239 = vrot.lane.b32.xlu0 %v7242_v9, %s7147_s10 }
  0x77   :  { %1354 = vrot.lane.b32.xlu0 %v7309_v55, %s7147_s10 }
  0x7b   :  { %1372 = vrot.lane.b32.xlu0 %v7262_v17, %s7147_s10 }
  0x7f   :  { %1469 = vrot.lane.b32.xlu0 %v7327_v58, %s7147_s10 }
  0xe0   :  { %v138_v12 = vpop.f32.mrf.mxu0 }
  0xe1   :  { %v139_v13 = vadd.f32 %v6106_v11, %v138_v12 }
  0xe2   :  { %v6416_v14 = vpop.f32.mrf.mxu0 }
  0xe3   :  { %vm142_vm3 = vcmp.gt.f32.partialorder %v139_v13, 0.0  ;;  %v143_v15 = vmul.f32 0.01, %v139_v13 }
  0xe5   :  { %v7253_v16 = vsel %vm142_vm3, %v139_v13, %v143_v15 }
  0xe6   :  { %6434 = vmatmul.mubr.msk.f32.vlgmr.msra.gmra.mxu1 %vm155_vm4, %v7253_v16 }
  0xe7   :  { %6499 = vmatprep.mubr.msk.f32.mxu1 %vm7144_vm0, %v7143_v0 }
 0x1a6   :  { %v225_v19 = vpop.f32.mrf.mxu1 }
 0x1a7   :  { %v230_v20 = vsel %vm229_vm5, %v225_v19, 0.0 }
 0x1a8   :  { %v231_v21 = vrot.slane %v230_v20, 4  ;;  %v6435_v22 = vpop.f32.mrf.mxu1 }
 0x1aa   :  { %v232_v23 = vadd.f32 %v231_v21, %v230_v20 }
 0x1ac   :  { %v233_v24 = vrot.slane %v232_v23, 2 }
 0x1ae   :  { %v234_v25 = vadd.f32 %v233_v24, %v232_v23 }
 0x1b0   :  { %v235_v26 = vrot.slane %v234_v25, 1 }
 0x1b2   :  { %v236_v27 = vadd.f32 %v235_v26, %v234_v25 }
 0x1b4   :  { %v238_v28 = vmul.f32 0.125, %v236_v27 }
 0x1b6   :  { %v239_v29 = vsub.f32 %v225_v19, %v238_v28 }
 0x1b8   :  { %v240_v30 = vmul.f32 %v239_v29, %v239_v29 }
 0x1ba   :  { %v241_v31 = vsel %vm229_vm5, %v240_v30, 0.0 }
 0x1bb   :  { %v242_v32 = vrot.slane %v241_v31, 4 }
 0x1bd   :  { %v243_v33 = vadd.f32 %v242_v32, %v241_v31 }
 0x1bf   :  { %v244_v34 = vrot.slane %v243_v33, 2 }
 0x1c1   :  { %v245_v35 = vadd.f32 %v244_v34, %v243_v33 }
 0x1c3   :  { %v246_v36 = vrot.slane %v245_v35, 1 }
 0x1c5   :  { %v247_v37 = vadd.f32 %v246_v36, %v245_v35  ;;  %v513_v36 = vpop.permute.xlu0 %512 }
 0x1c7   :  { %v248_v38 = vmul.f32 0.125, %v247_v37 }
 0x1c9   :  { %v249_v39 = vadd.f32 1e-05, %v248_v38  ;;  %v511_v37 = vpop.permute.xlu0 %510  ;;  %v509_v38 = vpop.permute.xlu1 %508 }
 0x1cb   :  { %6977 = vrsqrt.f32 %v249_v39 }
 0x1cd   :  { %v507_v39 = vpop.permute.xlu1 %506  ;;  %v505_v40 = vpop.permute.xlu0 %504 }
 0x1d8   :  { %v6978_v45 = vpop.eup %6977 }
 0x1d9   :  { %v251_v46 = vmul.f32 %v6978_v45, %v145_v42  ;;  %v503_v42 = vpop.permute.xlu1 %502  ;;  %v501_v45 = vpop.permute.xlu0 %500 }
 0x1db   :  { %v255_v47 = vrot.slane %v251_v46, %v7281_v43 }
 0x1dd   :  { %v256_v49 = vmul.f32 %v255_v47, %v239_v29  ;;  %v499_v46 = vpop.permute.xlu1 %498 }
 0x1df   :  { %v261_v50 = vadd.f32 %v7288_v48, %v256_v49 }
 0x1e1   :  { %vm262_vm6 = vcmp.gt.f32.partialorder %v261_v50, 0.0  ;;  %v263_v51 = vmul.f32 0.01, %v261_v50 }
 0x1e3   :  { %v264_v52 = vsel %vm262_vm6, %v261_v50, %v263_v51 }
 0x1e4   :  { %6441 = vmatmul.mubr.msk.f32.vlgmr.msra.gmra.mxu0 %vm229_vm5, %v264_v52 }
 0x1e5   :  { %6447 = vmatprep.mubr.msk.f32.mxu0 %vm7144_vm0, %v7143_v0  ;;  %6444 = vmatpush3.msra.mxu0 %v381_v53 }
 0x1e6   :  { %6445 = vmatprep.subr.mxu0 %v7143_v0 }
 0x1e7   :  { %6446 = vmatpush3.msra.mxu0 %v380_v54 }
 0x1e8   :  { %6450 = vmatprep.subr.mxu0 %v7143_v0 }
 0x2a4   :  { %v336_v60 = vpop.f32.mrf.mxu0 }
 0x2a5   :  { %v340_v61 = vsel %vm229_vm5, %v336_v60, 0.0 }
 0x2a6   :  { %v341_v62 = vrot.slane %v340_v61, 4  ;;  %v6442_v63 = vpop.f32.mrf.mxu0 }
 0x2a8   :  { %v342_v1 = vadd.f32 %v341_v62, %v340_v61 }
 0x2aa   :  { %v343_v2 = vrot.slane %v342_v1, 2 }
 0x2ac   :  { %v344_v11 = vadd.f32 %v343_v2, %v342_v1 }
 0x2ae   :  { %v345_v12 = vrot.slane %v344_v11, 1 }
 0x2b0   :  { %v346_v13 = vadd.f32 %v345_v12, %v344_v11 }
 0x2b2   :  { %v347_v14 = vmul.f32 0.125, %v346_v13 }
 0x2b4   :  { %v348_v15 = vsub.f32 %v336_v60, %v347_v14 }
 0x2b6   :  { %v349_v19 = vmul.f32 %v348_v15, %v348_v15 }
 0x2b8   :  { %v350_v20 = vsel %vm229_vm5, %v349_v19, 0.0 }
 0x2b9   :  { %v351_v21 = vrot.slane %v350_v20, 4 }
 0x2bb   :  { %v352_v22 = vadd.f32 %v351_v21, %v350_v20 }
 0x2bd   :  { %v353_v23 = vrot.slane %v352_v22, 2 }
 0x2bf   :  { %v354_v24 = vadd.f32 %v353_v23, %v352_v22  ;;  %v7360_v22 = vld [vmem:[%s8466_s6] sm:$0x3] }
 0x2c1   :  { %v355_v25 = vrot.slane %v354_v24, 1 }
 0x2c3   :  { %v356_v26 = vadd.f32 %v355_v25, %v354_v24 }
 0x2c5   :  { %v357_v27 = vmul.f32 0.125, %v356_v26  ;;  %v7366_v26 = vrot.slane %v7360_v22, %v7284_v44 }
 0x2c7   :  { %v358_v28 = vadd.f32 1e-05, %v357_v27 }
 0x2c9   :  { %6979 = vrsqrt.f32 %v358_v28 }
 0x2d6   :  { %v6980_v29 = vpop.eup %6979 }
 0x2d7   :  { %v366_v30 = vmul.f32 %v6980_v29, %v7327_v58 }
 0x2d9   :  { %v370_v31 = vrot.slane %v366_v30, %v7281_v43 }
 0x2db   :  { %v371_v32 = vmul.f32 %v370_v31, %v348_v15 }
 0x2dd   :  { %v376_v33 = vadd.f32 %v7331_v59, %v371_v32  ;;  %v630_v32 = vpop.permute.xlu1 %629 }
 0x2df   :  { %vm377_vm7 = vcmp.gt.f32.partialorder %v376_v33, 0.0  ;;  %v378_v34 = vmul.f32 0.01, %v376_v33 }
 0x2e1   :  { %v379_v35 = vsel %vm377_vm7, %v376_v33, %v378_v34  ;;  %v620_v33 = vpop.permute.xlu0 %619 }
 0x2e2   :  { %6448 = vmatmul.mubr.msk.f32.vlgmr.msra.gmra.mxu0 %vm229_vm5, %v379_v35  ;;  %v639_v35 = vpop.permute.xlu1 %638 }
 0x2e3   :  { %6466 = vmatprep.mubr.msk.f32.mxu0 %vm7144_vm0, %v7143_v0  ;;  %6451 = vmatpush3.msra.mxu0 %v513_v36 }
 0x2e4   :  { %6452 = vmatprep.subr.mxu0 %v7143_v0 }
 0x2e5   :  { %6453 = vmatpush3.msra.mxu0 %v511_v37  ;;  %v641_v34 = vpop.permute.xlu0 %640 }
 0x2e6   :  { %6454 = vmatprep.subr.mxu0 %v7143_v0 }
 0x2e7   :  { %6455 = vmatpush3.msra.mxu0 %v509_v38 }
 0x2e8   :  { %6456 = vmatprep.subr.mxu0 %v7143_v0 }
 0x2e9   :  { %6457 = vmatpush3.msra.mxu0 %v507_v39 }
 0x2ea   :  { %6458 = vmatprep.subr.mxu0 %v7143_v0 }
 0x2eb   :  { %6459 = vmatpush3.msra.mxu0 %v505_v40 }
 0x2ec   :  { %6460 = vmatprep.subr.mxu0 %v7143_v0 }
 0x2ed   :  { %6461 = vmatpush3.msra.mxu0 %v503_v42 }
 0x2ee   :  { %6462 = vmatprep.subr.mxu0 %v7143_v0 }
 0x2ef   :  { %6463 = vmatpush3.msra.mxu0 %v501_v45 }
 0x2f0   :  { %6464 = vmatprep.subr.mxu0 %v7143_v0 }
 0x2f1   :  { %6465 = vmatpush3.msra.mxu0 %v499_v46 }
 0x2f2   :  { %6469 = vmatprep.subr.mxu0 %v7143_v0 }
 0x3a2   :  { %v451_v47 = vpop.f32.mrf.mxu0 }
 0x3a3   :  { %v455_v49 = vsel %vm155_vm4, %v451_v47, 0.0 }
 0x3a4   :  { %v456_v50 = vrot.slane %v455_v49, 4  ;;  %v6449_v51 = vpop.f32.mrf.mxu0 }
 0x3a6   :  { %v457_v52 = vadd.f32 %v456_v50, %v455_v49 }
 0x3a8   :  { %v458_v53 = vrot.slane %v457_v52, 2 }
 0x3aa   :  { %v459_v54 = vadd.f32 %v458_v53, %v457_v52 }
 0x3ac   :  { %v460_v60 = vrot.slane %v459_v54, 1 }
 0x3ae   :  { %v461_v61 = vadd.f32 %v460_v60, %v459_v54 }
 0x3b0   :  { %v462_v62 = vmul.f32 0.125, %v461_v61 }
 0x3b2   :  { %v463_v63 = vsub.f32 %v451_v47, %v462_v62 }
 0x3b4   :  { %v464_v1 = vmul.f32 %v463_v63, %v463_v63 }
 0x3b6   :  { %v465_v2 = vsel %vm155_vm4, %v464_v1, 0.0 }
 0x3b7   :  { %v466_v11 = vrot.slane %v465_v2, 4 }
 0x3b9   :  { %v467_v12 = vadd.f32 %v466_v11, %v465_v2 }
 0x3bb   :  { %v468_v13 = vrot.slane %v467_v12, 2 }
 0x3bd   :  { %v469_v14 = vadd.f32 %v468_v13, %v467_v12 }
 0x3bf   :  { %v470_v15 = vrot.slane %v469_v14, 1 }
 0x3c1   :  { %v471_v19 = vadd.f32 %v470_v15, %v469_v14 }
 0x3c3   :  { %v472_v20 = vmul.f32 0.125, %v471_v19 }
 0x3c5   :  { %v473_v21 = vadd.f32 1e-05, %v472_v20  ;;  %v748_v20 = vpop.permute.xlu1 %747 }
 0x3c7   :  { %6981 = vrsqrt.f32 %v473_v21  ;;  %v738_v21 = vpop.permute.xlu0 %737 }
 0x3d4   :  { %v6982_v23 = vpop.eup %6981 }
 0x3d5   :  { %v475_v24 = vmul.f32 %v6982_v23, %v7360_v22  ;;  %v759_v23 = vpop.permute.xlu0 %758 }
 0x3d7   :  { %v479_v25 = vrot.slane %v475_v24, %v7281_v43  ;;  %v757_v24 = vpop.permute.xlu1 %756 }
 0x3d9   :  { %v480_v27 = vmul.f32 %v479_v25, %v463_v63  ;;  %v859_v25 = vrot.slane %v7360_v22, %v7281_v43 }
 0x3db   :  { %v485_v28 = vadd.f32 %v7366_v26, %v480_v27  ;;  %860 = vrot.lane.b32.xlu1 %v859_v25, %s7142_s16 }
 0x3dd   :  { %v486_v29 = vadd.f32 %v485_v28, %v7253_v16 }
 0x3df   :  { %vm487_vm8 = vcmp.gt.f32.partialorder %v486_v29, 0.0  ;;  %v488_v30 = vmul.f32 0.01, %v486_v29  ;;  %889 = vrot.lane.b32.xlu1 %v7221_v5, %s7146_s30 }
 0x3e1   :  { %v7370_v31 = vsel %vm487_vm8, %v486_v29, %v488_v30 }
 0x3e2   :  { %6467 = vmatmul.mubr.msk.f32.vlgmr.msra.gmra.mxu0 %vm155_vm4, %v7370_v31 }
 0x3e3   :  { %6473 = vmatprep.mubr.msk.f32.mxu0 %vm7144_vm0, %v7143_v0  ;;  %6470 = vmatpush3.msra.mxu0 %v641_v34 }
 0x3e4   :  { %6471 = vmatprep.subr.mxu0 %v7143_v0  ;;  %870 = vrot.lane.b32.xlu1 %v7366_v26, %s7142_s16 }
 0x3e5   :  { %6472 = vmatpush3.msra.mxu0 %v639_v35 }
 0x3e6   :  { %6476 = vmatprep.subr.mxu0 %v7143_v0 }
 0x3e8   :  { %883 = vrot.lane.b32.xlu1 %v7238_v8, %s7146_s30 }
 0x3ec   :  { %879 = vrot.lane.b32.xlu1 %v7245_v10, %s7146_s30 }
 0x3f0   :  { %1005 = vrot.lane.b32.xlu1 %v7288_v48, %s7146_s30 }
 0x3f4   :  { %1012 = vrot.lane.b32.xlu1 %v7267_v18, %s7146_s30 }
 0x3f8   :  { %1120 = vrot.lane.b32.xlu1 %v7331_v59, %s7146_s30 }
 0x3fc   :  { %1249 = vrot.lane.b32.xlu1 %v7218_v4, %s7147_s10 }
 0x400   :  { %1245 = vrot.lane.b32.xlu1 %v7226_v6, %s7147_s10 }
 0x404   :  { %1241 = vrot.lane.b32.xlu1 %v7238_v8, %s7147_s10 }
 0x408   :  { %1237 = vrot.lane.b32.xlu1 %v7245_v10, %s7147_s10 }
 0x40c   :  { %1363 = vrot.lane.b32.xlu1 %v7288_v48, %s7147_s10 }
 0x410   :  { %1370 = vrot.lane.b32.xlu1 %v7267_v18, %s7147_s10 }
 0x414   :  { %1478 = vrot.lane.b32.xlu1 %v7331_v59, %s7147_s10 }
 0x4a2   :  { %v591_v16 = vpop.f32.mrf.mxu0 }
 0x4a3   :  { %v595_v36 = vsel %vm229_vm5, %v591_v16, 0.0 }
 0x4a4   :  { %v596_v37 = vrot.slane %v595_v36, 4  ;;  %v6468_v38 = vpop.f32.mrf.mxu0 }
 0x4a6   :  { %v597_v39 = vadd.f32 %v596_v37, %v595_v36 }
 0x4a8   :  { %v598_v40 = vrot.slane %v597_v39, 2 }
 0x4aa   :  { %v599_v42 = vadd.f32 %v598_v40, %v597_v39 }
 0x4ac   :  { %v600_v45 = vrot.slane %v599_v42, 1 }
 0x4ae   :  { %v601_v46 = vadd.f32 %v600_v45, %v599_v42 }
 0x4b0   :  { %v602_v47 = vmul.f32 0.125, %v601_v46 }
 0x4b2   :  { %v603_v49 = vsub.f32 %v591_v16, %v602_v47 }
 0x4b4   :  { %v604_v50 = vmul.f32 %v603_v49, %v603_v49 }
 0x4b6   :  { %v605_v51 = vsel %vm229_vm5, %v604_v50, 0.0 }
 0x4b7   :  { %v606_v52 = vrot.slane %v605_v51, 4 }
 0x4b9   :  { %v607_v53 = vadd.f32 %v606_v52, %v605_v51 }
 0x4bb   :  { %v608_v54 = vrot.slane %v607_v53, 2 }
 0x4bd   :  { %v609_v60 = vadd.f32 %v608_v54, %v607_v53 }
 0x4bf   :  { %v610_v61 = vrot.slane %v609_v60, 1 }
 0x4c1   :  { %v611_v62 = vadd.f32 %v610_v61, %v609_v60 }
 0x4c3   :  { %v612_v63 = vmul.f32 0.125, %v611_v62  ;;  %v894_v62 = vpop.permute.xlu0 %893 }
 0x4c4   :  { %6484 = vmatpush3.msra.mxu1 %v894_v62 }
 0x4c5   :  { %v613_v1 = vadd.f32 1e-05, %v612_v63  ;;  %6485 = vmatprep.subr.mxu1 %v7143_v0  ;;  %v861_v63 = vpop.permute.xlu1 %860 }
 0x4c7   :  { %6983 = vrsqrt.f32 %v613_v1  ;;  %v892_v1 = vpop.permute.xlu0 %891 }
 0x4c8   :  { %6486 = vmatpush3.msra.mxu1 %v892_v1 }
 0x4c9   :  { %6487 = vmatprep.subr.mxu1 %v7143_v0 }
 0x4d4   :  { %v6984_v2 = vpop.eup %6983 }
 0x4d5   :  { %v622_v11 = vmul.f32 %v6984_v2, %v620_v33  ;;  %v890_v2 = vpop.permute.xlu1 %889 }
 0x4d6   :  { %6488 = vmatpush3.msra.mxu1 %v890_v2 }
 0x4d7   :  { %v626_v12 = vrot.slane %v622_v11, %v7281_v43  ;;  %v888_v11 = vpop.permute.xlu0 %887  ;;  %6489 = vmatprep.subr.mxu1 %v7143_v0 }
 0x4d8   :  { %6490 = vmatpush3.msra.mxu1 %v888_v11 }
 0x4d9   :  { %v627_v13 = vmul.f32 %v626_v12, %v603_v49  ;;  %v871_v12 = vpop.permute.xlu1 %870  ;;  %6491 = vmatprep.subr.mxu1 %v7143_v0 }
 0x4db   :  { %v632_v14 = vadd.f32 %v630_v32, %v627_v13  ;;  %v886_v13 = vpop.permute.xlu0 %885 }
 0x4dc   :  { %6492 = vmatpush3.msra.mxu1 %v886_v13 }
 0x4dd   :  { %vm633_vm9 = vcmp.gt.f32.partialorder %v632_v14, 0.0  ;;  %v634_v15 = vmul.f32 0.01, %v632_v14  ;;  %6493 = vmatprep.subr.mxu1 %v7143_v0 }
 0x4df   :  { %v635_v19 = vsel %vm633_vm9, %v632_v14, %v634_v15  ;;  %v884_v14 = vpop.permute.xlu1 %883  ;;  %v882_v15 = vpop.permute.xlu0 %881 }
 0x4e0   :  { %6474 = vmatmul.mubr.msk.f32.vlgmr.msra.gmra.mxu0 %vm229_vm5, %v635_v19  ;;  %6494 = vmatpush3.msra.mxu1 %v884_v14 }
 0x4e1   :  { %6480 = vmatprep.mubr.msk.f32.mxu0 %vm7144_vm0, %v7143_v0  ;;  %6477 = vmatpush3.msra.mxu0 %v759_v23 }
 0x4e2   :  { %6478 = vmatprep.subr.mxu0 %v7143_v0  ;;  %6495 = vmatprep.subr.mxu1 %v7143_v0 }
 0x4e3   :  { %6479 = vmatpush3.msra.mxu0 %v757_v24  ;;  %6496 = vmatpush3.msra.mxu1 %v882_v15  ;;  %v880_v19 = vpop.permute.xlu1 %879 }
 0x4e4   :  { %6502 = vmatprep.subr.mxu0 %v7143_v0  ;;  %6497 = vmatprep.subr.mxu1 %v7143_v0 }
 0x4e5   :  { %6498 = vmatpush3.msra.mxu1 %v880_v19 }
 0x4e6   :  { %6535 = vmatprep.subr.mxu1 %v7143_v0 }
 0x5a0   :  { %v713_v22 = vpop.f32.mrf.mxu0 }
 0x5a1   :  { %v717_v26 = vsel %vm229_vm5, %v713_v22, 0.0 }
 0x5a2   :  { %v718_v27 = vrot.slane %v717_v26, 4  ;;  %v6475_v28 = vpop.f32.mrf.mxu0 }
 0x5a4   :  { %v719_v29 = vadd.f32 %v718_v27, %v717_v26 }
 0x5a6   :  { %v720_v30 = vrot.slane %v719_v29, 2 }
 0x5a8   :  { %v721_v32 = vadd.f32 %v720_v30, %v719_v29 }
 0x5aa   :  { %v722_v33 = vrot.slane %v721_v32, 1 }
 0x5ac   :  { %v723_v34 = vadd.f32 %v722_v33, %v721_v32 }
 0x5ae   :  { %v724_v35 = vmul.f32 0.125, %v723_v34 }
 0x5b0   :  { %v725_v16 = vsub.f32 %v713_v22, %v724_v35 }
 0x5b2   :  { %v726_v36 = vmul.f32 %v725_v16, %v725_v16 }
 0x5b4   :  { %v727_v37 = vsel %vm229_vm5, %v726_v36, 0.0 }
 0x5b5   :  { %v728_v38 = vrot.slane %v727_v37, 4 }
 0x5b7   :  { %v729_v39 = vadd.f32 %v728_v38, %v727_v37 }
 0x5b9   :  { %v730_v40 = vrot.slane %v729_v39, 2 }
 0x5bb   :  { %v731_v42 = vadd.f32 %v730_v40, %v729_v39 }
 0x5bd   :  { %v732_v45 = vrot.slane %v731_v42, 1 }
 0x5bf   :  { %v733_v46 = vadd.f32 %v732_v45, %v731_v42 }
 0x5c1   :  { %v734_v47 = vmul.f32 0.125, %v733_v46 }
 0x5c3   :  { %v735_v49 = vadd.f32 1e-05, %v734_v47 }
 0x5c5   :  { %6985 = vrsqrt.f32 %v735_v49 }
 0x5d2   :  { %v6986_v50 = vpop.eup %6985 }
 0x5d3   :  { %v740_v51 = vmul.f32 %v6986_v50, %v738_v21 }
 0x5d5   :  { %v744_v52 = vrot.slane %v740_v51, %v7281_v43 }
 0x5d7   :  { %v745_v53 = vmul.f32 %v744_v52, %v725_v16 }
 0x5d9   :  { %v750_v54 = vadd.f32 %v748_v20, %v745_v53  ;;  %v1006_v53 = vpop.permute.xlu1 %1005 }
 0x5db   :  { %vm751_vm10 = vcmp.gt.f32.partialorder %v750_v54, 0.0  ;;  %v752_v60 = vmul.f32 0.01, %v750_v54 }
 0x5dd   :  { %v753_v61 = vsel %vm751_vm10, %v750_v54, %v752_v60  ;;  %v997_v54 = vpop.permute.xlu0 %996 }
 0x5de   :  { %6481 = vmatmul.mubr.msk.f32.vlgmr.msra.gmra.mxu0 %vm229_vm5, %v753_v61  ;;  %v1013_v61 = vpop.permute.xlu1 %1012 }
 0x5df   :  { %6506 = vmatprep.mubr.msk.f32.mxu0 %vm7144_vm0, %v7143_v0 }
 0x5e1   :  { %v1015_v60 = vpop.permute.xlu0 %1014 }
 0x5e2   :  { %6503 = vmatpush3.msra.mxu0 %v1015_v60 }
 0x5e3   :  { %6504 = vmatprep.subr.mxu0 %v7143_v0 }
 0x5e4   :  { %6505 = vmatpush3.msra.mxu0 %v1013_v61 }
 0x5e5   :  { %6509 = vmatprep.subr.mxu0 %v7143_v0  ;;  %v1112_v60 = vpop.permute.xlu0 %1111 }
 0x69e   :  { %v831_v20 = vpop.f32.mrf.mxu0 }
 0x69f   :  { %v835_v21 = vsel %vm155_vm4, %v831_v20, 0.0 }
 0x6a0   :  { %v836_v23 = vrot.slane %v835_v21, 4  ;;  %v6482_v24 = vpop.f32.mrf.mxu0 }
 0x6a2   :  { %v837_v25 = vadd.f32 %v836_v23, %v835_v21 }
 0x6a4   :  { %v838_v22 = vrot.slane %v837_v25, 2 }
 0x6a6   :  { %v839_v26 = vadd.f32 %v838_v22, %v837_v25 }
 0x6a8   :  { %v840_v27 = vrot.slane %v839_v26, 1 }
 0x6aa   :  { %v841_v28 = vadd.f32 %v840_v27, %v839_v26 }
 0x6ac   :  { %v842_v29 = vmul.f32 0.125, %v841_v28 }
 0x6ae   :  { %v843_v30 = vsub.f32 %v831_v20, %v842_v29 }
 0x6b0   :  { %v844_v32 = vmul.f32 %v843_v30, %v843_v30 }
 0x6b2   :  { %v845_v33 = vsel %vm155_vm4, %v844_v32, 0.0 }
 0x6b3   :  { %v846_v34 = vrot.slane %v845_v33, 4 }
 0x6b5   :  { %v847_v35 = vadd.f32 %v846_v34, %v845_v33 }
 0x6b7   :  { %v848_v16 = vrot.slane %v847_v35, 2 }
 0x6b9   :  { %v849_v36 = vadd.f32 %v848_v16, %v847_v35 }
 0x6bb   :  { %v850_v37 = vrot.slane %v849_v36, 1 }
 0x6bd   :  { %v851_v38 = vadd.f32 %v850_v37, %v849_v36  ;;  %v1128_v37 = vld [vmem:[#allocation4 + $0x48] sm:$0xff] }
 0x6be   :  { %1489 = vrot.lane.b32.xlu0 %v1128_v37, %s7142_s16 }
 0x6bf   :  { %v852_v39 = vmul.f32 0.125, %v851_v38  ;;  %v1127_v38 = vld [vmem:[#allocation4 + $0x8] sm:$0xff] }
 0x6c0   :  { %1487 = vrot.lane.b32.xlu1 %v1127_v38, %s7142_s16 }
 0x6c1   :  { %v853_v40 = vadd.f32 1e-05, %v852_v39 }
 0x6c2   :  { %1624 = vrot.lane.b32.xlu0 %v7215_v3, %s7142_s16 }
 0x6c3   :  { %6987 = vrsqrt.f32 %v853_v40 }
 0x6c6   :  { %1622 = vrot.lane.b32.xlu0 %v7218_v4, %s7142_s16 }
 0x6ca   :  { %1618 = vrot.lane.b32.xlu0 %v7226_v6, %s7142_s16 }
 0x6ce   :  { %1616 = vrot.lane.b32.xlu0 %v7232_v7, %s7142_s16 }
 0x6d0   :  { %v6988_v42 = vpop.eup %6987 }
 0x6d1   :  { %v863_v45 = vmul.f32 %v6988_v42, %v861_v63 }
 0x6d2   :  { %1612 = vrot.lane.b32.xlu0 %v7242_v9, %s7142_s16 }
 0x6d3   :  { %v867_v46 = vrot.slane %v863_v45, %v7281_v43 }
 0x6d5   :  { %v868_v47 = vmul.f32 %v867_v46, %v843_v30 }
 0x6d6   :  { %1727 = vrot.lane.b32.xlu0 %v7309_v55, %s7142_s16 }
 0x6d7   :  { %v873_v49 = vadd.f32 %v871_v12, %v868_v47 }
 0x6d9   :  { %v874_v50 = vadd.f32 %v873_v49, %v7370_v31 }
 0x6da   :  { %1745 = vrot.lane.b32.xlu0 %v7262_v17, %s7142_s16 }
 0x6db   :  { %v876_v51 = vmul.f32 0.01, %v874_v50  ;;  %vm875_vm11 = vcmp.gt.f32.partialorder %v874_v50, 0.0 }
 0x6dd   :  { %v7437_v52 = vsel %vm875_vm11, %v874_v50, %v876_v51 }
 0x6de   :  { %6500 = vmatmul.mubr.msk.f32.vlgmr.msra.gmra.mxu1 %vm155_vm4, %v7437_v52  ;;  %1842 = vrot.lane.b32.xlu0 %v7327_v58, %s7142_s16 }
 0x6df   :  { %6539 = vmatprep.mubr.msk.f32.mxu1 %vm7144_vm0, %v7143_v0 }
 0x79e   :  { %v972_v31 = vpop.f32.mrf.mxu1 }
 0x79f   :  { %v976_v62 = vsel %vm229_vm5, %v972_v31, 0.0 }
 0x7a0   :  { %v977_v63 = vrot.slane %v976_v62, 4  ;;  %v6501_v1 = vpop.f32.mrf.mxu1 }
 0x7a2   :  { %v978_v2 = vadd.f32 %v977_v63, %v976_v62  ;;  %v1121_v63 = vpop.permute.xlu1 %1120 }
 0x7a4   :  { %v979_v11 = vrot.slane %v978_v2, 2 }
 0x7a6   :  { %v980_v12 = vadd.f32 %v979_v11, %v978_v2 }
 0x7a8   :  { %v981_v13 = vrot.slane %v980_v12, 1 }
 0x7aa   :  { %v982_v14 = vadd.f32 %v981_v13, %v980_v12  ;;  %v1252_v13 = vpop.permute.xlu0 %1251 }
 0x7ac   :  { %v983_v15 = vmul.f32 0.125, %v982_v14  ;;  %v1250_v14 = vpop.permute.xlu1 %1249 }
 0x7ae   :  { %v984_v19 = vsub.f32 %v972_v31, %v983_v15  ;;  %v1248_v15 = vpop.permute.xlu0 %1247 }
 0x7b0   :  { %v985_v20 = vmul.f32 %v984_v19, %v984_v19 }
 0x7b2   :  { %v986_v21 = vsel %vm229_vm5, %v985_v20, 0.0  ;;  %v1244_v20 = vpop.permute.xlu0 %1243 }
 0x7b3   :  { %v987_v23 = vrot.slane %v986_v21, 4 }
 0x7b5   :  { %v988_v24 = vadd.f32 %v987_v23, %v986_v21 }
 0x7b6   :  { %v1240_v23 = vpop.permute.xlu0 %1239 }
 0x7b7   :  { %v989_v25 = vrot.slane %v988_v24, 2 }
 0x7b9   :  { %v990_v22 = vadd.f32 %v989_v25, %v988_v24 }
 0x7bb   :  { %v991_v26 = vrot.slane %v990_v22, 1 }
 0x7bd   :  { %v992_v27 = vadd.f32 %v991_v26, %v990_v22 }
 0x7bf   :  { %v993_v28 = vmul.f32 0.125, %v992_v27 }
 0x7c1   :  { %v994_v29 = vadd.f32 1e-05, %v993_v28 }
 0x7c3   :  { %6989 = vrsqrt.f32 %v994_v29 }
 0x7d0   :  { %v6990_v30 = vpop.eup %6989 }
 0x7d1   :  { %v999_v32 = vmul.f32 %v6990_v30, %v997_v54 }
 0x7d3   :  { %v1003_v33 = vrot.slane %v999_v32, %v7281_v43 }
 0x7d5   :  { %v1004_v34 = vmul.f32 %v1003_v33, %v984_v19  ;;  %v1246_v19 = vpop.permute.xlu1 %1245 }
 0x7d7   :  { %v1008_v35 = vadd.f32 %v1006_v53, %v1004_v34 }
 0x7d9   :  { %vm1009_vm12 = vcmp.gt.f32.partialorder %v1008_v35, 0.0  ;;  %v1010_v16 = vmul.f32 0.01, %v1008_v35  ;;  %v1242_v21 = vpop.permute.xlu1 %1241 }
 0x7db   :  { %v1011_v36 = vsel %vm1009_vm12, %v1008_v35, %v1010_v16 }
 0x7dc   :  { %6507 = vmatmul.mubr.msk.f32.vlgmr.msra.gmra.mxu0 %vm229_vm5, %v1011_v36 }
 0x7dd   :  { %6513 = vmatprep.mubr.msk.f32.mxu0 %vm7144_vm0, %v7143_v0  ;;  %6510 = vmatpush3.msra.mxu0 %v1128_v37  ;;  %v1238_v24 = vpop.permute.xlu1 %1237 }
 0x7de   :  { %6511 = vmatprep.subr.mxu0 %v7143_v0 }
 0x7df   :  { %6512 = vmatpush3.msra.mxu0 %v1127_v38 }
 0x7e0   :  { %6516 = vmatprep.subr.mxu0 %v7143_v0 }
 0x89c   :  { %v1087_v3 = vpop.f32.mrf.mxu0 }
 0x89d   :  { %v1091_v4 = vsel %vm229_vm5, %v1087_v3, 0.0 }
 0x89e   :  { %v1092_v5 = vrot.slane %v1091_v4, 4  ;;  %v6508_v6 = vpop.f32.mrf.mxu0 }
 0x8a0   :  { %v1093_v8 = vadd.f32 %v1092_v5, %v1091_v4 }
 0x8a2   :  { %v1094_v10 = vrot.slane %v1093_v8, 2 }
 0x8a4   :  { %v1095_v7 = vadd.f32 %v1094_v10, %v1093_v8 }
 0x8a6   :  { %v1096_v18 = vrot.slane %v1095_v7, 1 }
 0x8a8   :  { %v1097_v39 = vadd.f32 %v1096_v18, %v1095_v7  ;;  %v878_v7 = vld [vmem:[%s8466_s6 + $0x2] sm:$0x3] }
 0x8aa   :  { %v1098_v9 = vmul.f32 0.125, %v1097_v39 }
 0x8ac   :  { %v1099_v40 = vsub.f32 %v1087_v3, %v1098_v9 }
 0x8ae   :  { %v1100_v42 = vmul.f32 %v1099_v40, %v1099_v40 }
 0x8b0   :  { %v1101_v45 = vsel %vm229_vm5, %v1100_v42, 0.0 }
 0x8b1   :  { %v1102_v46 = vrot.slane %v1101_v45, 4 }
 0x8b3   :  { %v1103_v17 = vadd.f32 %v1102_v46, %v1101_v45 }
 0x8b5   :  { %v1104_v47 = vrot.slane %v1103_v17, 2 }
 0x8b7   :  { %v1105_v49 = vadd.f32 %v1104_v47, %v1103_v17 }
 0x8b9   :  { %v1106_v50 = vrot.slane %v1105_v49, 1 }
 0x8bb   :  { %v1107_v51 = vadd.f32 %v1106_v50, %v1105_v49  ;;  %v1364_v49 = vpop.permute.xlu1 %1363  ;;  %v1355_v50 = vpop.permute.xlu0 %1354 }
 0x8bd   :  { %v1108_v53 = vmul.f32 0.125, %v1107_v51 }
 0x8bf   :  { %v1109_v54 = vadd.f32 1e-05, %v1108_v53  ;;  %v1373_v51 = vpop.permute.xlu0 %1372  ;;  %v1371_v53 = vpop.permute.xlu1 %1370 }
 0x8c0   :  { %6536 = vmatpush3.msra.mxu1 %v1373_v51 }
 0x8c1   :  { %6991 = vrsqrt.f32 %v1109_v54  ;;  %6537 = vmatprep.subr.mxu1 %v7143_v0 }
 0x8c2   :  { %6538 = vmatpush3.msra.mxu1 %v1371_v53 }
 0x8c3   :  { %6542 = vmatprep.subr.mxu1 %v7143_v0 }
 0x8ce   :  { %v6992_v61 = vpop.eup %6991 }
 0x8cf   :  { %v1114_v31 = vmul.f32 %v6992_v61, %v1112_v60 }
 0x8d1   :  { %v1118_v62 = vrot.slane %v1114_v31, %v7281_v43 }
 0x8d3   :  { %v1119_v1 = vmul.f32 %v1118_v62, %v1099_v40  ;;  %v1231_v40 = vrot.slane %v878_v7, %v7284_v44 }
 0x8d5   :  { %v1123_v2 = vadd.f32 %v1121_v63, %v1119_v1 }
 0x8d7   :  { %vm1124_vm13 = vcmp.gt.f32.partialorder %v1123_v2, 0.0  ;;  %v1125_v11 = vmul.f32 0.01, %v1123_v2 }
 0x8d9   :  { %v1126_v12 = vsel %vm1124_vm13, %v1123_v2, %v1125_v11 }
 0x8da   :  { %6514 = vmatmul.mubr.msk.f32.vlgmr.msra.gmra.mxu0 %vm229_vm5, %v1126_v12 }
 0x8db   :  { %6532 = vmatprep.mubr.msk.f32.mxu0 %vm7144_vm0, %v7143_v0  ;;  %6517 = vmatpush3.msra.mxu0 %v1252_v13 }
 0x8dc   :  { %6518 = vmatprep.subr.mxu0 %v7143_v0 }
 0x8dd   :  { %6519 = vmatpush3.msra.mxu0 %v1250_v14 }
 0x8de   :  { %6520 = vmatprep.subr.mxu0 %v7143_v0 }
 0x8df   :  { %6521 = vmatpush3.msra.mxu0 %v1248_v15 }
 0x8e0   :  { %6522 = vmatprep.subr.mxu0 %v7143_v0 }
 0x8e1   :  { %6523 = vmatpush3.msra.mxu0 %v1246_v19 }
 0x8e2   :  { %6524 = vmatprep.subr.mxu0 %v7143_v0 }
 0x8e3   :  { %6525 = vmatpush3.msra.mxu0 %v1244_v20 }
 0x8e4   :  { %6526 = vmatprep.subr.mxu0 %v7143_v0 }
 0x8e5   :  { %6527 = vmatpush3.msra.mxu0 %v1242_v21 }
 0x8e6   :  { %6528 = vmatprep.subr.mxu0 %v7143_v0 }
 0x8e7   :  { %6529 = vmatpush3.msra.mxu0 %v1240_v23 }
 0x8e8   :  { %6530 = vmatprep.subr.mxu0 %v7143_v0 }
 0x8e9   :  { %6531 = vmatpush3.msra.mxu0 %v1238_v24 }
 0x8ea   :  { %6568 = vmatprep.subr.mxu0 %v7143_v0 }
 0x99a   :  { %v1198_v25 = vpop.f32.mrf.mxu0 }
 0x99b   :  { %v1202_v22 = vsel %vm155_vm4, %v1198_v25, 0.0 }
 0x99c   :  { %v1203_v26 = vrot.slane %v1202_v22, 4  ;;  %v6515_v27 = vpop.f32.mrf.mxu0 }
 0x99e   :  { %v1204_v28 = vadd.f32 %v1203_v26, %v1202_v22 }
 0x9a0   :  { %v1205_v29 = vrot.slane %v1204_v28, 2 }
 0x9a2   :  { %v1206_v30 = vadd.f32 %v1205_v29, %v1204_v28 }
 0x9a4   :  { %v1207_v32 = vrot.slane %v1206_v30, 1 }
 0x9a6   :  { %v1208_v33 = vadd.f32 %v1207_v32, %v1206_v30 }
 0x9a8   :  { %v1209_v34 = vmul.f32 0.125, %v1208_v33 }
 0x9aa   :  { %v1210_v35 = vsub.f32 %v1198_v25, %v1209_v34  ;;  %v1479_v34 = vpop.permute.xlu1 %1478 }
 0x9ac   :  { %v1211_v16 = vmul.f32 %v1210_v35, %v1210_v35 }
 0x9ae   :  { %v1212_v36 = vsel %vm155_vm4, %v1211_v16, 0.0 }
 0x9af   :  { %v1213_v37 = vrot.slane %v1212_v36, 4 }
 0x9b1   :  { %v1214_v38 = vadd.f32 %v1213_v37, %v1212_v36  ;;  %v1488_v36 = vpop.permute.xlu1 %1487  ;;  %v1590_v37 = vrot.slane %v878_v7, %v7281_v43 }
 0x9b3   :  { %v1215_v3 = vrot.slane %v1214_v38, 2  ;;  %1591 = vrot.lane.b32.xlu1 %v1590_v37, %s7142_s16 }
 0x9b5   :  { %v1216_v4 = vadd.f32 %v1215_v3, %v1214_v38  ;;  %v7539_v38 = vld [vmem:[#allocation2 + $0x50] sm:$0xff]  ;;  %v7544_v3 = vld [vmem:[#allocation2 + $0x20] sm:$0xff] }
 0x9b7   :  { %v1217_v5 = vrot.slane %v1216_v4, 1  ;;  %1620 = vrot.lane.b32.xlu1 %v7539_v38, %s7142_s16 }
 0x9b9   :  { %v1218_v6 = vadd.f32 %v1217_v5, %v1216_v4  ;;  %v7548_v4 = vld [vmem:[#allocation2] sm:$0xff] }
 0x9ba   :  { %v7557_v5 = vld [vmem:[%s8463_s3] sm:$0xff] }
 0x9bb   :  { %v1219_v8 = vmul.f32 0.125, %v1218_v6  ;;  %1601 = vrot.lane.b32.xlu1 %v1231_v40, %s7142_s16 }
 0x9bd   :  { %v1220_v10 = vadd.f32 1e-05, %v1219_v8 }
 0x9bf   :  { %6993 = vrsqrt.f32 %v1220_v10  ;;  %1614 = vrot.lane.b32.xlu1 %v7544_v3, %s7142_s16 }
 0x9c3   :  { %1610 = vrot.lane.b32.xlu1 %v7548_v4, %s7142_s16 }
 0x9c7   :  { %1736 = vrot.lane.b32.xlu1 %v7288_v48, %s7142_s16 }
 0x9cb   :  { %1743 = vrot.lane.b32.xlu1 %v7557_v5, %s7142_s16 }
 0x9cc   :  { %v6994_v18 = vpop.eup %6993 }
 0x9cd   :  { %v1222_v39 = vmul.f32 %v6994_v18, %v878_v7 }
 0x9cf   :  { %v1226_v9 = vrot.slane %v1222_v39, %v7281_v43  ;;  %1851 = vrot.lane.b32.xlu1 %v7331_v59, %s7142_s16 }
 0x9d1   :  { %v1227_v42 = vmul.f32 %v1226_v9, %v1210_v35  ;;  %v1470_v35 = vpop.permute.xlu0 %1469 }
 0x9d3   :  { %v1232_v45 = vadd.f32 %v1231_v40, %v1227_v42 }
 0x9d5   :  { %v1233_v46 = vadd.f32 %v1232_v45, %v7437_v52  ;;  %v1490_v16 = vpop.permute.xlu0 %1489 }
 0x9d7   :  { %vm1234_vm14 = vcmp.gt.f32.partialorder %v1233_v46, 0.0  ;;  %v1235_v17 = vmul.f32 0.01, %v1233_v46 }
 0x9d9   :  { %v7521_v47 = vsel %vm1234_vm14, %v1233_v46, %v1235_v17 }
 0x9da   :  { %6533 = vmatmul.mubr.msk.f32.vlgmr.msra.gmra.mxu0 %vm155_vm4, %v7521_v47 }
 0x9db   :  { %6572 = vmatprep.mubr.msk.f32.mxu0 %vm7144_vm0, %v7143_v0 }
 0xa9a   :  { %v1330_v52 = vpop.f32.mrf.mxu0 }
 0xa9b   :  { %v1334_v54 = vsel %vm229_vm5, %v1330_v52, 0.0 }
 0xa9c   :  { %v1335_v60 = vrot.slane %v1334_v54, 4  ;;  %v6534_v61 = vpop.f32.mrf.mxu0 }
 0xa9e   :  { %v1336_v31 = vadd.f32 %v1335_v60, %v1334_v54 }
 0xaa0   :  { %v1337_v62 = vrot.slane %v1336_v31, 2 }
 0xaa2   :  { %v1338_v63 = vadd.f32 %v1337_v62, %v1336_v31 }
 0xaa4   :  { %v1339_v1 = vrot.slane %v1338_v63, 1 }
 0xaa6   :  { %v1340_v2 = vadd.f32 %v1339_v1, %v1338_v63 }
 0xaa8   :  { %v1341_v11 = vmul.f32 0.125, %v1340_v2 }
 0xaaa   :  { %v1342_v12 = vsub.f32 %v1330_v52, %v1341_v11 }
 0xaac   :  { %v1343_v13 = vmul.f32 %v1342_v12, %v1342_v12 }
 0xaae   :  { %v1344_v14 = vsel %vm229_vm5, %v1343_v13, 0.0 }
 0xaaf   :  { %v1345_v15 = vrot.slane %v1344_v14, 4 }
 0xab1   :  { %v1346_v19 = vadd.f32 %v1345_v15, %v1344_v14  ;;  %v1625_v14 = vpop.permute.xlu0 %1624  ;;  %v1592_v15 = vpop.permute.xlu1 %1591 }
 0xab3   :  { %v1347_v20 = vrot.slane %v1346_v19, 2 }
 0xab5   :  { %v1348_v21 = vadd.f32 %v1347_v20, %v1346_v19  ;;  %v1623_v19 = vpop.permute.xlu0 %1622  ;;  %v1621_v20 = vpop.permute.xlu1 %1620 }
 0xab7   :  { %v1349_v23 = vrot.slane %v1348_v21, 1 }
 0xab9   :  { %v1350_v24 = vadd.f32 %v1349_v23, %v1348_v21  ;;  %v1619_v21 = vpop.permute.xlu0 %1618  ;;  %v1602_v23 = vpop.permute.xlu1 %1601 }
 0xabb   :  { %v1351_v25 = vmul.f32 0.125, %v1350_v24 }
 0xabd   :  { %v1352_v22 = vadd.f32 1e-05, %v1351_v25  ;;  %v1617_v24 = vpop.permute.xlu0 %1616  ;;  %v1615_v25 = vpop.permute.xlu1 %1614 }
 0xabf   :  { %6995 = vrsqrt.f32 %v1352_v22 }
 0xac1   :  { %v1613_v22 = vpop.permute.xlu0 %1612 }
 0xacc   :  { %v6996_v26 = vpop.eup %6995 }
 0xacd   :  { %v1357_v27 = vmul.f32 %v6996_v26, %v1355_v50  ;;  %v1611_v26 = vpop.permute.xlu1 %1610 }
 0xacf   :  { %v1361_v28 = vrot.slane %v1357_v27, %v7281_v43 }
 0xad1   :  { %v1362_v29 = vmul.f32 %v1361_v28, %v1342_v12 }
 0xad3   :  { %v1366_v30 = vadd.f32 %v1364_v49, %v1362_v29 }
 0xad5   :  { %vm1367_vm15 = vcmp.gt.f32.partialorder %v1366_v30, 0.0  ;;  %v1368_v32 = vmul.f32 0.01, %v1366_v30 }
 0xad7   :  { %v1369_v33 = vsel %vm1367_vm15, %v1366_v30, %v1368_v32 }
 0xad8   :  { %6540 = vmatmul.mubr.msk.f32.vlgmr.msra.gmra.mxu1 %vm229_vm5, %v1369_v33 }
 0xad9   :  { %6546 = vmatprep.mubr.msk.f32.mxu1 %vm7144_vm0, %v7143_v0  ;;  %6543 = vmatpush3.msra.mxu1 %v1490_v16 }
 0xada   :  { %6544 = vmatprep.subr.mxu1 %v7143_v0 }
 0xadb   :  { %6545 = vmatpush3.msra.mxu1 %v1488_v36 }
 0xadc   :  { %6549 = vmatprep.subr.mxu1 %v7143_v0 }
 0xb98   :  { %v1445_v6 = vpop.f32.mrf.mxu1 }
 0xb99   :  { %v1449_v8 = vsel %vm229_vm5, %v1445_v6, 0.0 }
 0xb9a   :  { %v1450_v10 = vrot.slane %v1449_v8, 4  ;;  %v6541_v7 = vpop.f32.mrf.mxu1 }
 0xb9c   :  { %v1451_v18 = vadd.f32 %v1450_v10, %v1449_v8 }
 0xb9e   :  { %v1452_v39 = vrot.slane %v1451_v18, 2 }
 0xba0   :  { %v1453_v9 = vadd.f32 %v1452_v39, %v1451_v18 }
 0xba2   :  { %v1454_v40 = vrot.slane %v1453_v9, 1 }
 0xba4   :  { %v1455_v42 = vadd.f32 %v1454_v40, %v1453_v9 }
 0xba6   :  { %v1456_v45 = vmul.f32 0.125, %v1455_v42 }
 0xba8   :  { %v1457_v46 = vsub.f32 %v1445_v6, %v1456_v45 }
 0xbaa   :  { %v1458_v17 = vmul.f32 %v1457_v46, %v1457_v46 }
 0xbac   :  { %v1459_v49 = vsel %vm229_vm5, %v1458_v17, 0.0 }
 0xbad   :  { %v1460_v50 = vrot.slane %v1459_v49, 4 }
 0xbaf   :  { %v1461_v51 = vadd.f32 %v1460_v50, %v1459_v49 }
 0xbb1   :  { %v1462_v53 = vrot.slane %v1461_v51, 2 }
 0xbb3   :  { %v1463_v52 = vadd.f32 %v1462_v53, %v1461_v51 }
 0xbb5   :  { %v1464_v54 = vrot.slane %v1463_v52, 1 }
 0xbb7   :  { %v1465_v60 = vadd.f32 %v1464_v54, %v1463_v52 }
 0xbb9   :  { %v1466_v61 = vmul.f32 0.125, %v1465_v60  ;;  %v1737_v60 = vpop.permute.xlu1 %1736 }
 0xbbb   :  { %v1467_v31 = vadd.f32 1e-05, %v1466_v61  ;;  %v1728_v61 = vpop.permute.xlu0 %1727 }
 0xbbd   :  { %6997 = vrsqrt.f32 %v1467_v31 }
 0xbbf   :  { %v1746_v31 = vpop.permute.xlu0 %1745 }
 0xbc0   :  { %6569 = vmatpush3.msra.mxu0 %v1746_v31 }
 0xbc1   :  { %6570 = vmatprep.subr.mxu0 %v7143_v0 }
 0xbca   :  { %v6998_v62 = vpop.eup %6997 }
 0xbcb   :  { %v1472_v63 = vmul.f32 %v6998_v62, %v1470_v35  ;;  %v1744_v62 = vpop.permute.xlu1 %1743 }
 0xbcc   :  { %6571 = vmatpush3.msra.mxu0 %v1744_v62 }
 0xbcd   :  { %v1476_v1 = vrot.slane %v1472_v63, %v7281_v43  ;;  %6575 = vmatprep.subr.mxu0 %v7143_v0 }
 0xbcf   :  { %v1477_v2 = vmul.f32 %v1476_v1, %v1457_v46 }
 0xbd1   :  { %v1481_v11 = vadd.f32 %v1479_v34, %v1477_v2 }
 0xbd3   :  { %vm1482_vm1 = vcmp.gt.f32.partialorder %v1481_v11, 0.0  ;;  %v1483_v12 = vmul.f32 0.01, %v1481_v11 }
 0xbd5   :  { %v1484_v13 = vsel %vm1482_vm1, %v1481_v11, %v1483_v12 }
 0xbd6   :  { %6547 = vmatmul.mubr.msk.f32.vlgmr.msra.gmra.mxu1 %vm229_vm5, %v1484_v13 }
 0xbd7   :  { %6565 = vmatprep.mubr.msk.f32.mxu1 %vm7144_vm0, %v7143_v0  ;;  %6550 = vmatpush3.msra.mxu1 %v1625_v14 }
 0xbd8   :  { %6551 = vmatprep.subr.mxu1 %v7143_v0 }
 0xbd9   :  { %6552 = vmatpush3.msra.mxu1 %v1623_v19 }
 0xbda   :  { %6553 = vmatprep.subr.mxu1 %v7143_v0 }
 0xbdb   :  { %6554 = vmatpush3.msra.mxu1 %v1621_v20 }
 0xbdc   :  { %6555 = vmatprep.subr.mxu1 %v7143_v0 }
 0xbdd   :  { %6556 = vmatpush3.msra.mxu1 %v1619_v21 }
 0xbde   :  { %6557 = vmatprep.subr.mxu1 %v7143_v0 }
 0xbdf   :  { %6558 = vmatpush3.msra.mxu1 %v1617_v24 }
 0xbe0   :  { %6559 = vmatprep.subr.mxu1 %v7143_v0 }
 0xbe1   :  { %6560 = vmatpush3.msra.mxu1 %v1615_v25 }
 0xbe2   :  { %6561 = vmatprep.subr.mxu1 %v7143_v0 }
 0xbe3   :  { %6562 = vmatpush3.msra.mxu1 %v1613_v22 }
 0xbe4   :  { %6563 = vmatprep.subr.mxu1 %v7143_v0 }
 0xbe5   :  { %6564 = vmatpush3.msra.mxu1 %v1611_v26 }
 0xbe6   :  { %6601 = vmatprep.subr.mxu1 %v7143_v0 }
 0xc96   :  { %v1562_v27 = vpop.f32.mrf.mxu1 }
 0xc97   :  { %v1566_v28 = vsel %vm155_vm4, %v1562_v27, 0.0 }
 0xc98   :  { %v1567_v29 = vrot.slane %v1566_v28, 4  ;;  %v6548_v30 = vpop.f32.mrf.mxu1 }
 0xc9a   :  { %v1568_v32 = vadd.f32 %v1567_v29, %v1566_v28 }
 0xc9c   :  { %v1569_v33 = vrot.slane %v1568_v32, 2 }
 0xc9e   :  { %v1570_v34 = vadd.f32 %v1569_v33, %v1568_v32 }
 0xca0   :  { %v1571_v35 = vrot.slane %v1570_v34, 1 }
 0xca2   :  { %v1572_v16 = vadd.f32 %v1571_v35, %v1570_v34 }
 0xca4   :  { %v1573_v36 = vmul.f32 0.125, %v1572_v16 }
 0xca6   :  { %v1574_v37 = vsub.f32 %v1562_v27, %v1573_v36 }
 0xca8   :  { %v1575_v6 = vmul.f32 %v1574_v37, %v1574_v37 }
 0xcaa   :  { %v1576_v8 = vsel %vm155_vm4, %v1575_v6, 0.0  ;;  %v1859_v6 = vld [vmem:[#allocation4 + $0x50] sm:$0xff] }
 0xcab   :  { %v1577_v10 = vrot.slane %v1576_v8, 4 }
 0xcad   :  { %v1578_v7 = vadd.f32 %v1577_v10, %v1576_v8  ;;  %v1858_v8 = vld [vmem:[#allocation4 + $0x10] sm:$0xff] }
 0xcae   :  { %v7597_v10 = vld [vmem:[#allocation2 + $0x70] sm:$0xff] }
 0xcaf   :  { %v1579_v18 = vrot.slane %v1578_v7, 2  ;;  %1982 = vrot.lane.b32.xlu0 %v7597_v10, %s7148_s15 }
 0xcb1   :  { %v1580_v39 = vadd.f32 %v1579_v18, %v1578_v7  ;;  %v7601_v7 = vld [vmem:[#allocation2 + $0x60] sm:$0xff] }
 0xcb2   :  { %1980 = vrot.lane.b32.xlu1 %v7601_v7, %s7148_s15  ;;  %v7607_v18 = vld [vmem:[#allocation2 + $0x40] sm:$0xff] }
 0xcb3   :  { %v1581_v9 = vrot.slane %v1580_v39, 1  ;;  %1978 = vrot.lane.b32.xlu0 %v7539_v38, %s7148_s15 }
 0xcb5   :  { %v1582_v40 = vadd.f32 %v1581_v9, %v1580_v39  ;;  %v7611_v39 = vld [vmem:[#allocation2 + $0x30] sm:$0xff] }
 0xcb6   :  { %1976 = vrot.lane.b32.xlu1 %v7607_v18, %s7148_s15  ;;  %v7617_v9 = vld [vmem:[#allocation2 + $0x10] sm:$0xff] }
 0xcb7   :  { %v1583_v42 = vmul.f32 0.125, %v1582_v40  ;;  %1974 = vrot.lane.b32.xlu0 %v7611_v39, %s7148_s15  ;;  %v7630_v40 = vld [vmem:[%s8463_s3 + $0x10] sm:$0xff] }
 0xcb9   :  { %v1584_v45 = vadd.f32 1e-05, %v1583_v42 }
 0xcba   :  { %1972 = vrot.lane.b32.xlu1 %v7544_v3, %s7148_s15 }
 0xcbb   :  { %6999 = vrsqrt.f32 %v1584_v45  ;;  %1970 = vrot.lane.b32.xlu0 %v7617_v9, %s7148_s15 }
 0xcbe   :  { %1968 = vrot.lane.b32.xlu1 %v7548_v4, %s7148_s15 }
 0xcbf   :  { %2085 = vrot.lane.b32.xlu0 %v7309_v55, %s7148_s15 }
 0xcc2   :  { %2094 = vrot.lane.b32.xlu1 %v7288_v48, %s7148_s15 }
 0xcc3   :  { %2103 = vrot.lane.b32.xlu0 %v7630_v40, %s7148_s15 }
 0xcc6   :  { %2101 = vrot.lane.b32.xlu1 %v7557_v5, %s7148_s15 }
 0xcc7   :  { %2200 = vrot.lane.b32.xlu0 %v7327_v58, %s7148_s15 }
 0xcc8   :  { %v7000_v46 = vpop.eup %6999 }
 0xcc9   :  { %v1594_v17 = vmul.f32 %v7000_v46, %v1592_v15 }
 0xcca   :  { %2209 = vrot.lane.b32.xlu1 %v7331_v59, %s7148_s15 }
 0xccb   :  { %v1598_v49 = vrot.slane %v1594_v17, %v7281_v43  ;;  %2220 = vrot.lane.b32.xlu0 %v1859_v6, %s7142_s16 }
 0xccd   :  { %v1599_v50 = vmul.f32 %v1598_v49, %v1574_v37 }
 0xcce   :  { %2218 = vrot.lane.b32.xlu1 %v1858_v8, %s7142_s16 }
 0xccf   :  { %v1604_v51 = vadd.f32 %v1602_v23, %v1599_v50  ;;  %2355 = vrot.lane.b32.xlu0 %v7597_v10, %s7149_s19 }
 0xcd1   :  { %v1605_v53 = vadd.f32 %v1604_v51, %v7521_v47 }
 0xcd3   :  { %v1607_v52 = vmul.f32 0.01, %v1605_v53  ;;  %vm1606_vm2 = vcmp.gt.f32.partialorder %v1605_v53, 0.0  ;;  %2353 = vrot.lane.b32.xlu0 %v7601_v7, %s7149_s19 }
 0xcd5   :  { %v7581_v54 = vsel %vm1606_vm2, %v1605_v53, %v1607_v52 }
 0xcd6   :  { %6566 = vmatmul.mubr.msk.f32.vlgmr.msra.gmra.mxu1 %vm155_vm4, %v7581_v54 }
 0xcd7   :  { %6605 = vmatprep.mubr.msk.f32.mxu1 %vm7144_vm0, %v7143_v0  ;;  %2349 = vrot.lane.b32.xlu0 %v7607_v18, %s7149_s19 }
 0xcdb   :  { %2347 = vrot.lane.b32.xlu0 %v7611_v39, %s7149_s19 }
 0xcdf   :  { %2343 = vrot.lane.b32.xlu0 %v7617_v9, %s7149_s19 }
 0xce3   :  { %2458 = vrot.lane.b32.xlu0 %v7309_v55, %s7149_s19 }
 0xce7   :  { %2476 = vrot.lane.b32.xlu0 %v7630_v40, %s7149_s19 }
 0xceb   :  { %2573 = vrot.lane.b32.xlu0 %v7327_v58, %s7149_s19 }
 0xcef   :  { %2713 = vrot.lane.b32.xlu0 %v7597_v10, %s7139_s9 }
 0xcf3   :  { %2709 = vrot.lane.b32.xlu0 %v7539_v38, %s7139_s9 }
 0xcf7   :  { %2705 = vrot.lane.b32.xlu0 %v7611_v39, %s7139_s9 }
 0xcfb   :  { %2701 = vrot.lane.b32.xlu0 %v7617_v9, %s7139_s9 }
 0xcff   :  { %2816 = vrot.lane.b32.xlu0 %v7309_v55, %s7139_s9 }
 0xd03   :  { %2834 = vrot.lane.b32.xlu0 %v7630_v40, %s7139_s9 }
 0xd07   :  { %2931 = vrot.lane.b32.xlu0 %v7327_v58, %s7139_s9 }
 0xd96   :  { %v1703_v47 = vpop.f32.mrf.mxu1 }
 0xd97   :  { %v1707_v63 = vsel %vm229_vm5, %v1703_v47, 0.0 }
 0xd98   :  { %v1708_v1 = vrot.slane %v1707_v63, 4  ;;  %v6567_v2 = vpop.f32.mrf.mxu1 }
 0xd9a   :  { %v1709_v11 = vadd.f32 %v1708_v1, %v1707_v63 }
 0xd9c   :  { %v1710_v12 = vrot.slane %v1709_v11, 2 }
 0xd9e   :  { %v1711_v13 = vadd.f32 %v1710_v12, %v1709_v11 }
 0xda0   :  { %v1712_v14 = vrot.slane %v1711_v13, 1 }
 0xda2   :  { %v1713_v15 = vadd.f32 %v1712_v14, %v1711_v13 }
 0xda4   :  { %v1714_v19 = vmul.f32 0.125, %v1713_v15  ;;  %v1843_v15 = vpop.permute.xlu0 %1842 }
 0xda6   :  { %v1715_v20 = vsub.f32 %v1703_v47, %v1714_v19 }
 0xda8   :  { %v1716_v21 = vmul.f32 %v1715_v20, %v1715_v20 }
 0xdaa   :  { %v1717_v23 = vsel %vm229_vm5, %v1716_v21, 0.0 }
 0xdab   :  { %v1718_v24 = vrot.slane %v1717_v23, 4 }
 0xdad   :  { %v1719_v25 = vadd.f32 %v1718_v24, %v1717_v23  ;;  %v1852_v23 = vpop.permute.xlu1 %1851 }
 0xdaf   :  { %v1720_v22 = vrot.slane %v1719_v25, 2 }
 0xdb1   :  { %v1721_v26 = vadd.f32 %v1720_v22, %v1719_v25 }
 0xdb3   :  { %v1722_v27 = vrot.slane %v1721_v26, 1 }
 0xdb5   :  { %v1723_v28 = vadd.f32 %v1722_v27, %v1721_v26  ;;  %v1983_v27 = vpop.permute.xlu0 %1982 }
 0xdb7   :  { %v1724_v29 = vmul.f32 0.125, %v1723_v28  ;;  %v1981_v28 = vpop.permute.xlu1 %1980 }
 0xdb9   :  { %v1725_v30 = vadd.f32 1e-05, %v1724_v29  ;;  %v1979_v29 = vpop.permute.xlu0 %1978 }
 0xdbb   :  { %7001 = vrsqrt.f32 %v1725_v30  ;;  %v1977_v30 = vpop.permute.xlu1 %1976 }
 0xdc8   :  { %v7002_v32 = vpop.eup %7001 }
 0xdc9   :  { %v1730_v33 = vmul.f32 %v7002_v32, %v1728_v61  ;;  %v1975_v32 = vpop.permute.xlu0 %1974 }
 0xdcb   :  { %v1734_v34 = vrot.slane %v1730_v33, %v7281_v43  ;;  %v1973_v33 = vpop.permute.xlu1 %1972 }
 0xdcd   :  { %v1735_v35 = vmul.f32 %v1734_v34, %v1715_v20  ;;  %v1971_v34 = vpop.permute.xlu0 %1970 }
 0xdcf   :  { %v1739_v16 = vadd.f32 %v1737_v60, %v1735_v35  ;;  %v1969_v35 = vpop.permute.xlu1 %1968 }
 0xdd1   :  { %vm1740_vm3 = vcmp.gt.f32.partialorder %v1739_v16, 0.0  ;;  %v1741_v36 = vmul.f32 0.01, %v1739_v16 }
 0xdd3   :  { %v1742_v37 = vsel %vm1740_vm3, %v1739_v16, %v1741_v36 }
 0xdd4   :  { %6573 = vmatmul.mubr.msk.f32.vlgmr.msra.gmra.mxu0 %vm229_vm5, %v1742_v37 }
 0xdd5   :  { %6579 = vmatprep.mubr.msk.f32.mxu0 %vm7144_vm0, %v7143_v0  ;;  %6576 = vmatpush3.msra.mxu0 %v1859_v6 }
 0xdd6   :  { %6577 = vmatprep.subr.mxu0 %v7143_v0 }
 0xdd7   :  { %6578 = vmatpush3.msra.mxu0 %v1858_v8 }
 0xdd8   :  { %6582 = vmatprep.subr.mxu0 %v7143_v0 }
 0xe94   :  { %v1818_v42 = vpop.f32.mrf.mxu0 }
 0xe95   :  { %v1822_v45 = vsel %vm229_vm5, %v1818_v42, 0.0 }
 0xe96   :  { %v1823_v46 = vrot.slane %v1822_v45, 4  ;;  %v6574_v17 = vpop.f32.mrf.mxu0 }
 0xe98   :  { %v1824_v49 = vadd.f32 %v1823_v46, %v1822_v45 }
 0xe9a   :  { %v1825_v50 = vrot.slane %v1824_v49, 2 }
 0xe9c   :  { %v1826_v51 = vadd.f32 %v1825_v50, %v1824_v49 }
 0xe9e   :  { %v1827_v53 = vrot.slane %v1826_v51, 1 }
 0xea0   :  { %v1828_v52 = vadd.f32 %v1827_v53, %v1826_v51 }
 0xea2   :  { %v1829_v60 = vmul.f32 0.125, %v1828_v52 }
 0xea4   :  { %v1830_v61 = vsub.f32 %v1818_v42, %v1829_v60 }
 0xea6   :  { %v1831_v31 = vmul.f32 %v1830_v61, %v1830_v61 }
 0xea8   :  { %v1832_v62 = vsel %vm229_vm5, %v1831_v31, 0.0 }
 0xea9   :  { %v1833_v47 = vrot.slane %v1832_v62, 4 }
 0xeab   :  { %v1834_v63 = vadd.f32 %v1833_v47, %v1832_v62 }
 0xead   :  { %v1835_v1 = vrot.slane %v1834_v63, 2 }
 0xeaf   :  { %v1836_v2 = vadd.f32 %v1835_v1, %v1834_v63 }
 0xeb1   :  { %v1837_v11 = vrot.slane %v1836_v2, 1 }
 0xeb3   :  { %v1838_v12 = vadd.f32 %v1837_v11, %v1836_v2  ;;  %v7661_v2 = vld [vmem:[%s8466_s6 + $0x4] sm:$0x3] }
 0xeb5   :  { %v1839_v13 = vmul.f32 0.125, %v1838_v12 }
 0xeb7   :  { %v1840_v14 = vadd.f32 1e-05, %v1839_v13 }
 0xeb9   :  { %7003 = vrsqrt.f32 %v1840_v14  ;;  %v7667_v14 = vrot.slane %v7661_v2, %v7284_v44 }
 0xec6   :  { %v7004_v19 = vpop.eup %7003 }
 0xec7   :  { %v1845_v20 = vmul.f32 %v7004_v19, %v1843_v15 }
 0xec9   :  { %v1849_v21 = vrot.slane %v1845_v20, %v7281_v43 }
 0xecb   :  { %v1850_v24 = vmul.f32 %v1849_v21, %v1830_v61 }
 0xecd   :  { %v1854_v25 = vadd.f32 %v1852_v23, %v1850_v24  ;;  %v2095_v24 = vpop.permute.xlu1 %2094 }
 0xecf   :  { %vm1855_vm6 = vcmp.gt.f32.partialorder %v1854_v25, 0.0  ;;  %v1856_v22 = vmul.f32 0.01, %v1854_v25 }
 0xed1   :  { %v1857_v26 = vsel %vm1855_vm6, %v1854_v25, %v1856_v22  ;;  %v2086_v25 = vpop.permute.xlu0 %2085 }
 0xed2   :  { %6580 = vmatmul.mubr.msk.f32.vlgmr.msra.gmra.mxu0 %vm229_vm5, %v1857_v26  ;;  %v2102_v26 = vpop.permute.xlu1 %2101 }
 0xed3   :  { %6598 = vmatprep.mubr.msk.f32.mxu0 %vm7144_vm0, %v7143_v0  ;;  %6583 = vmatpush3.msra.mxu0 %v1983_v27 }
 0xed4   :  { %6584 = vmatprep.subr.mxu0 %v7143_v0 }
 0xed5   :  { %6585 = vmatpush3.msra.mxu0 %v1981_v28  ;;  %v2104_v22 = vpop.permute.xlu0 %2103 }
 0xed6   :  { %6586 = vmatprep.subr.mxu0 %v7143_v0  ;;  %6602 = vmatpush3.msra.mxu1 %v2104_v22 }
 0xed7   :  { %6587 = vmatpush3.msra.mxu0 %v1979_v29  ;;  %6603 = vmatprep.subr.mxu1 %v7143_v0 }
 0xed8   :  { %6588 = vmatprep.subr.mxu0 %v7143_v0  ;;  %6604 = vmatpush3.msra.mxu1 %v2102_v26 }
 0xed9   :  { %6589 = vmatpush3.msra.mxu0 %v1977_v30  ;;  %6608 = vmatprep.subr.mxu1 %v7143_v0 }
 0xeda   :  { %6590 = vmatprep.subr.mxu0 %v7143_v0 }
 0xedb   :  { %6591 = vmatpush3.msra.mxu0 %v1975_v32 }
 0xedc   :  { %6592 = vmatprep.subr.mxu0 %v7143_v0 }
 0xedd   :  { %6593 = vmatpush3.msra.mxu0 %v1973_v33 }
 0xede   :  { %6594 = vmatprep.subr.mxu0 %v7143_v0 }
 0xedf   :  { %6595 = vmatpush3.msra.mxu0 %v1971_v34 }
 0xee0   :  { %6596 = vmatprep.subr.mxu0 %v7143_v0 }
 0xee1   :  { %6597 = vmatpush3.msra.mxu0 %v1969_v35 }
 0xee2   :  { %6634 = vmatprep.subr.mxu0 %v7143_v0 }
 0xf92   :  { %v1929_v16 = vpop.f32.mrf.mxu0 }
 0xf93   :  { %v1933_v36 = vsel %vm155_vm4, %v1929_v16, 0.0 }
 0xf94   :  { %v1934_v37 = vrot.slane %v1933_v36, 4  ;;  %v6581_v6 = vpop.f32.mrf.mxu0 }
 0xf96   :  { %v1935_v8 = vadd.f32 %v1934_v37, %v1933_v36 }
 0xf98   :  { %v1936_v42 = vrot.slane %v1935_v8, 2 }
 0xf9a   :  { %v1937_v45 = vadd.f32 %v1936_v42, %v1935_v8 }
 0xf9c   :  { %v1938_v46 = vrot.slane %v1937_v45, 1 }
 0xf9e   :  { %v1939_v17 = vadd.f32 %v1938_v46, %v1937_v45 }
 0xfa0   :  { %v1940_v49 = vmul.f32 0.125, %v1939_v17 }
 0xfa2   :  { %v1941_v50 = vsub.f32 %v1929_v16, %v1940_v49 }
 0xfa4   :  { %v1942_v51 = vmul.f32 %v1941_v50, %v1941_v50 }
 0xfa6   :  { %v1943_v53 = vsel %vm155_vm4, %v1942_v51, 0.0 }
 0xfa7   :  { %v1944_v52 = vrot.slane %v1943_v53, 4 }
 0xfa9   :  { %v1945_v60 = vadd.f32 %v1944_v52, %v1943_v53 }
 0xfab   :  { %v1946_v61 = vrot.slane %v1945_v60, 2 }
 0xfad   :  { %v1947_v31 = vadd.f32 %v1946_v61, %v1945_v60 }
 0xfaf   :  { %v1948_v62 = vrot.slane %v1947_v31, 1 }
 0xfb1   :  { %v1949_v47 = vadd.f32 %v1948_v62, %v1947_v31 }
 0xfb3   :  { %v1950_v63 = vmul.f32 0.125, %v1949_v47 }
 0xfb5   :  { %v1951_v1 = vadd.f32 1e-05, %v1950_v63  ;;  %v7685_v63 = vpop.permute.xlu1 %2209 }
 0xfb7   :  { %7005 = vrsqrt.f32 %v1951_v1  ;;  %v2201_v1 = vpop.permute.xlu0 %2200 }
 0xfc4   :  { %v7006_v11 = vpop.eup %7005 }
 0xfc5   :  { %v1953_v12 = vmul.f32 %v7006_v11, %v7661_v2  ;;  %v2221_v11 = vpop.permute.xlu0 %2220 }
 0xfc7   :  { %v1957_v13 = vrot.slane %v1953_v12, %v7281_v43  ;;  %v2219_v12 = vpop.permute.xlu1 %2218 }
 0xfc9   :  { %v1958_v15 = vmul.f32 %v1957_v13, %v1941_v50  ;;  %v2321_v13 = vrot.slane %v7661_v2, %v7281_v43 }
 0xfcb   :  { %v1963_v19 = vadd.f32 %v7667_v14, %v1958_v15  ;;  %2322 = vrot.lane.b32.xlu1 %v2321_v13, %s7142_s16 }
 0xfcd   :  { %v1964_v20 = vadd.f32 %v1963_v19, %v7581_v54 }
 0xfcf   :  { %vm1965_vm7 = vcmp.gt.f32.partialorder %v1964_v20, 0.0  ;;  %v1966_v21 = vmul.f32 0.01, %v1964_v20  ;;  %2351 = vrot.lane.b32.xlu1 %v7539_v38, %s7149_s19 }
 0xfd1   :  { %v7671_v23 = vsel %vm1965_vm7, %v1964_v20, %v1966_v21 }
 0xfd2   :  { %6599 = vmatmul.mubr.msk.f32.vlgmr.msra.gmra.mxu0 %vm155_vm4, %v7671_v23 }
 0xfd3   :  { %6638 = vmatprep.mubr.msk.f32.mxu0 %vm7144_vm0, %v7143_v0  ;;  %2332 = vrot.lane.b32.xlu1 %v7667_v14, %s7142_s16 }
 0xfd7   :  { %2345 = vrot.lane.b32.xlu1 %v7544_v3, %s7149_s19 }
 0xfdb   :  { %2341 = vrot.lane.b32.xlu1 %v7548_v4, %s7149_s19 }
 0xfdf   :  { %2467 = vrot.lane.b32.xlu1 %v7288_v48, %s7149_s19 }
 0xfe3   :  { %2474 = vrot.lane.b32.xlu1 %v7557_v5, %s7149_s19 }
 0xfe7   :  { %2582 = vrot.lane.b32.xlu1 %v7331_v59, %s7149_s19 }
 0xfeb   :  { %2711 = vrot.lane.b32.xlu1 %v7601_v7, %s7139_s9 }
 0xfef   :  { %2707 = vrot.lane.b32.xlu1 %v7607_v18, %s7139_s9 }
 0xff3   :  { %2703 = vrot.lane.b32.xlu1 %v7544_v3, %s7139_s9 }
 0xff7   :  { %2699 = vrot.lane.b32.xlu1 %v7548_v4, %s7139_s9 }
 0xffb   :  { %2825 = vrot.lane.b32.xlu1 %v7288_v48, %s7139_s9 }
 0xfff   :  { %2832 = vrot.lane.b32.xlu1 %v7557_v5, %s7139_s9 }
0x1003   :  { %2940 = vrot.lane.b32.xlu1 %v7331_v59, %s7139_s9 }
0x1092   :  { %v2061_v54 = vpop.f32.mrf.mxu0 }
0x1093   :  { %v2065_v27 = vsel %vm229_vm5, %v2061_v54, 0.0 }
0x1094   :  { %v2066_v28 = vrot.slane %v2065_v27, 4  ;;  %v6600_v29 = vpop.f32.mrf.mxu0 }
0x1096   :  { %v2067_v30 = vadd.f32 %v2066_v28, %v2065_v27 }
0x1098   :  { %v2068_v32 = vrot.slane %v2067_v30, 2 }
0x109a   :  { %v2069_v33 = vadd.f32 %v2068_v32, %v2067_v30  ;;  %v2356_v30 = vpop.permute.xlu0 %2355  ;;  %v2323_v32 = vpop.permute.xlu1 %2322 }
0x109c   :  { %v2070_v34 = vrot.slane %v2069_v33, 1 }
0x109e   :  { %v2071_v35 = vadd.f32 %v2070_v34, %v2069_v33  ;;  %v2354_v33 = vpop.permute.xlu0 %2353  ;;  %v2352_v34 = vpop.permute.xlu1 %2351 }
0x10a0   :  { %v2072_v16 = vmul.f32 0.125, %v2071_v35 }
0x10a2   :  { %v2073_v36 = vsub.f32 %v2061_v54, %v2072_v16  ;;  %v2350_v35 = vpop.permute.xlu0 %2349  ;;  %v2333_v16 = vpop.permute.xlu1 %2332 }
0x10a4   :  { %v2074_v37 = vmul.f32 %v2073_v36, %v2073_v36 }
0x10a6   :  { %v2075_v6 = vsel %vm229_vm5, %v2074_v37, 0.0  ;;  %v2346_v37 = vpop.permute.xlu1 %2345 }
0x10a7   :  { %v2076_v8 = vrot.slane %v2075_v6, 4 }
0x10a9   :  { %v2077_v42 = vadd.f32 %v2076_v8, %v2075_v6 }
0x10aa   :  { %v2342_v8 = vpop.permute.xlu1 %2341 }
0x10ab   :  { %v2078_v45 = vrot.slane %v2077_v42, 2 }
0x10ad   :  { %v2079_v46 = vadd.f32 %v2078_v45, %v2077_v42 }
0x10af   :  { %v2080_v17 = vrot.slane %v2079_v46, 1 }
0x10b1   :  { %v2081_v49 = vadd.f32 %v2080_v17, %v2079_v46 }
0x10b3   :  { %v2082_v50 = vmul.f32 0.125, %v2081_v49 }
0x10b5   :  { %v2083_v51 = vadd.f32 1e-05, %v2082_v50 }
0x10b7   :  { %7007 = vrsqrt.f32 %v2083_v51 }
0x10c4   :  { %v7008_v53 = vpop.eup %7007 }
0x10c5   :  { %v2088_v52 = vmul.f32 %v7008_v53, %v2086_v25 }
0x10c7   :  { %v2092_v60 = vrot.slane %v2088_v52, %v7281_v43 }
0x10c9   :  { %v2093_v61 = vmul.f32 %v2092_v60, %v2073_v36  ;;  %v2348_v36 = vpop.permute.xlu0 %2347 }
0x10cb   :  { %v2097_v31 = vadd.f32 %v2095_v24, %v2093_v61 }
0x10cd   :  { %vm2098_vm8 = vcmp.gt.f32.partialorder %v2097_v31, 0.0  ;;  %v2099_v62 = vmul.f32 0.01, %v2097_v31  ;;  %v2344_v6 = vpop.permute.xlu0 %2343 }
0x10cf   :  { %v2100_v47 = vsel %vm2098_vm8, %v2097_v31, %v2099_v62 }
0x10d0   :  { %6606 = vmatmul.mubr.msk.f32.vlgmr.msra.gmra.mxu1 %vm229_vm5, %v2100_v47 }
0x10d1   :  { %6612 = vmatprep.mubr.msk.f32.mxu1 %vm7144_vm0, %v7143_v0  ;;  %6609 = vmatpush3.msra.mxu1 %v2221_v11 }
0x10d2   :  { %6610 = vmatprep.subr.mxu1 %v7143_v0 }
0x10d3   :  { %6611 = vmatpush3.msra.mxu1 %v2219_v12 }
0x10d4   :  { %6615 = vmatprep.subr.mxu1 %v7143_v0 }
0x1190   :  { %v2176_v38 = vpop.f32.mrf.mxu1 }
0x1191   :  { %v2180_v3 = vsel %vm229_vm5, %v2176_v38, 0.0 }
0x1192   :  { %v2181_v4 = vrot.slane %v2180_v3, 4  ;;  %v6607_v55 = vpop.f32.mrf.mxu1 }
0x1194   :  { %v2182_v10 = vadd.f32 %v2181_v4, %v2180_v3 }
0x1196   :  { %v2183_v7 = vrot.slane %v2182_v10, 2 }
0x1198   :  { %v2184_v48 = vadd.f32 %v2183_v7, %v2182_v10 }
0x119a   :  { %v2185_v18 = vrot.slane %v2184_v48, 1 }
0x119c   :  { %v2186_v39 = vadd.f32 %v2185_v18, %v2184_v48 }
0x119e   :  { %v2187_v9 = vmul.f32 0.125, %v2186_v39 }
0x11a0   :  { %v2188_v40 = vsub.f32 %v2176_v38, %v2187_v9 }
0x11a2   :  { %v2189_v2 = vmul.f32 %v2188_v40, %v2188_v40 }
0x11a4   :  { %v2190_v5 = vsel %vm229_vm5, %v2189_v2, 0.0  ;;  %v2459_v2 = vpop.permute.xlu0 %2458 }
0x11a5   :  { %v2191_v14 = vrot.slane %v2190_v5, 4 }
0x11a7   :  { %v2192_v58 = vadd.f32 %v2191_v14, %v2190_v5 }
0x11a8   :  { %v2477_v5 = vpop.permute.xlu0 %2476 }
0x11a9   :  { %v2193_v15 = vrot.slane %v2192_v58, 2  ;;  %6635 = vmatpush3.msra.mxu0 %v2477_v5 }
0x11aa   :  { %6636 = vmatprep.subr.mxu0 %v7143_v0 }
0x11ab   :  { %v2194_v19 = vadd.f32 %v2193_v15, %v2192_v58 }
0x11ad   :  { %v2195_v59 = vrot.slane %v2194_v19, 1 }
0x11af   :  { %v2196_v20 = vadd.f32 %v2195_v59, %v2194_v19 }
0x11b1   :  { %v2197_v21 = vmul.f32 0.125, %v2196_v20 }
0x11b3   :  { %v2198_v24 = vadd.f32 1e-05, %v2197_v21 }
0x11b5   :  { %7009 = vrsqrt.f32 %v2198_v24 }
0x11c2   :  { %v7010_v25 = vpop.eup %7009 }
0x11c3   :  { %v2203_v22 = vmul.f32 %v7010_v25, %v2201_v1 }
0x11c5   :  { %v2207_v26 = vrot.slane %v2203_v22, %v7281_v43 }
0x11c7   :  { %v2208_v54 = vmul.f32 %v2207_v26, %v2188_v40  ;;  %v2468_v40 = vpop.permute.xlu1 %2467 }
0x11c9   :  { %v2212_v27 = vadd.f32 %v7685_v63, %v2208_v54 }
0x11cb   :  { %vm2213_vm9 = vcmp.gt.f32.partialorder %v2212_v27, 0.0  ;;  %v2214_v28 = vmul.f32 0.01, %v2212_v27  ;;  %v2475_v14 = vpop.permute.xlu1 %2474 }
0x11cc   :  { %6637 = vmatpush3.msra.mxu0 %v2475_v14 }
0x11cd   :  { %v2215_v29 = vsel %vm2213_vm9, %v2212_v27, %v2214_v28  ;;  %6641 = vmatprep.subr.mxu0 %v7143_v0 }
0x11ce   :  { %6613 = vmatmul.mubr.msk.f32.vlgmr.msra.gmra.mxu1 %vm229_vm5, %v2215_v29 }
0x11cf   :  { %6631 = vmatprep.mubr.msk.f32.mxu1 %vm7144_vm0, %v7143_v0  ;;  %6616 = vmatpush3.msra.mxu1 %v2356_v30  ;;  %v2583_v5 = vpop.permute.xlu1 %2582 }
0x11d0   :  { %6617 = vmatprep.subr.mxu1 %v7143_v0 }
0x11d1   :  { %6618 = vmatpush3.msra.mxu1 %v2354_v33 }
0x11d2   :  { %6619 = vmatprep.subr.mxu1 %v7143_v0 }
0x11d3   :  { %6620 = vmatpush3.msra.mxu1 %v2352_v34 }
0x11d4   :  { %6621 = vmatprep.subr.mxu1 %v7143_v0 }
0x11d5   :  { %6622 = vmatpush3.msra.mxu1 %v2350_v35 }
0x11d6   :  { %6623 = vmatprep.subr.mxu1 %v7143_v0 }
0x11d7   :  { %6624 = vmatpush3.msra.mxu1 %v2348_v36 }
0x11d8   :  { %6625 = vmatprep.subr.mxu1 %v7143_v0 }
0x11d9   :  { %6626 = vmatpush3.msra.mxu1 %v2346_v37 }
0x11da   :  { %6627 = vmatprep.subr.mxu1 %v7143_v0 }
0x11db   :  { %6628 = vmatpush3.msra.mxu1 %v2344_v6 }
0x11dc   :  { %6629 = vmatprep.subr.mxu1 %v7143_v0 }
0x11dd   :  { %6630 = vmatpush3.msra.mxu1 %v2342_v8 }
0x11de   :  { %6667 = vmatprep.subr.mxu1 %v7143_v0 }
0x128e   :  { %v2293_v42 = vpop.f32.mrf.mxu1 }
0x128f   :  { %v2297_v45 = vsel %vm155_vm4, %v2293_v42, 0.0 }
0x1290   :  { %v2298_v46 = vrot.slane %v2297_v45, 4  ;;  %v6614_v17 = vpop.f32.mrf.mxu1 }
0x1291   :  { %v2590_v17 = vld [vmem:[#allocation4 + $0x58] sm:$0xff] }
0x1292   :  { %v2299_v49 = vadd.f32 %v2298_v46, %v2297_v45  ;;  %2951 = vrot.lane.b32.xlu0 %v2590_v17, %s7142_s16 }
0x1294   :  { %v2300_v50 = vrot.slane %v2299_v49, 2 }
0x1296   :  { %v2301_v51 = vadd.f32 %v2300_v50, %v2299_v49  ;;  %v2589_v49 = vld [vmem:[#allocation4 + $0x18] sm:$0xff] }
0x1297   :  { %2949 = vrot.lane.b32.xlu1 %v2589_v49, %s7142_s16 }
0x1298   :  { %v2302_v53 = vrot.slane %v2301_v51, 1 }
0x129a   :  { %v2303_v52 = vadd.f32 %v2302_v53, %v2301_v51 }
0x129c   :  { %v2304_v60 = vmul.f32 0.125, %v2303_v52 }
0x129e   :  { %v2305_v61 = vsub.f32 %v2293_v42, %v2304_v60 }
0x12a0   :  { %v2306_v31 = vmul.f32 %v2305_v61, %v2305_v61 }
0x12a2   :  { %v2307_v62 = vsel %vm155_vm4, %v2306_v31, 0.0 }
0x12a3   :  { %v2308_v47 = vrot.slane %v2307_v62, 4 }
0x12a5   :  { %v2309_v63 = vadd.f32 %v2308_v47, %v2307_v62 }
0x12a7   :  { %v2310_v1 = vrot.slane %v2309_v63, 2 }
0x12a9   :  { %v2311_v11 = vadd.f32 %v2310_v1, %v2309_v63 }
0x12ab   :  { %v2312_v12 = vrot.slane %v2311_v11, 1 }
0x12ad   :  { %v2313_v13 = vadd.f32 %v2312_v12, %v2311_v11 }
0x12af   :  { %v2314_v38 = vmul.f32 0.125, %v2313_v13 }
0x12b1   :  { %v2315_v3 = vadd.f32 1e-05, %v2314_v38 }
0x12b3   :  { %7011 = vrsqrt.f32 %v2315_v3 }
0x12c0   :  { %v7012_v4 = vpop.eup %7011 }
0x12c1   :  { %v2325_v55 = vmul.f32 %v7012_v4, %v2323_v32 }
0x12c3   :  { %v2329_v10 = vrot.slane %v2325_v55, %v7281_v43 }
0x12c5   :  { %v2330_v7 = vmul.f32 %v2329_v10, %v2305_v61 }
0x12c7   :  { %v2335_v48 = vadd.f32 %v2333_v16, %v2330_v7 }
0x12c9   :  { %v2336_v18 = vadd.f32 %v2335_v48, %v7671_v23 }
0x12cb   :  { %v2338_v39 = vmul.f32 0.01, %v2336_v18  ;;  %vm2337_vm10 = vcmp.gt.f32.partialorder %v2336_v18, 0.0 }
0x12cd   :  { %v7769_v9 = vsel %vm2337_vm10, %v2336_v18, %v2338_v39  ;;  %v2574_v18 = vpop.permute.xlu0 %2573 }
0x12ce   :  { %6632 = vmatmul.mubr.msk.f32.vlgmr.msra.gmra.mxu1 %vm155_vm4, %v7769_v9 }
0x12cf   :  { %6671 = vmatprep.mubr.msk.f32.mxu1 %vm7144_vm0, %v7143_v0 }
0x138e   :  { %v2434_v23 = vpop.f32.mrf.mxu1 }
0x138f   :  { %v2438_v58 = vsel %vm229_vm5, %v2434_v23, 0.0 }
0x1390   :  { %v2439_v15 = vrot.slane %v2438_v58, 4  ;;  %v6633_v19 = vpop.f32.mrf.mxu1 }
0x1391   :  { %v2714_v19 = vpop.permute.xlu0 %2713 }
0x1392   :  { %v2440_v59 = vadd.f32 %v2439_v15, %v2438_v58 }
0x1394   :  { %v2441_v20 = vrot.slane %v2440_v59, 2 }
0x1396   :  { %v2442_v21 = vadd.f32 %v2441_v20, %v2440_v59  ;;  %v2712_v59 = vpop.permute.xlu1 %2711  ;;  %v2710_v20 = vpop.permute.xlu0 %2709 }
0x1398   :  { %v2443_v24 = vrot.slane %v2442_v21, 1 }
0x139a   :  { %v2444_v25 = vadd.f32 %v2443_v24, %v2442_v21  ;;  %v7798_v21 = vld [vmem:[%s8466_s6 + $0x6] sm:$0x3]  ;;  %v2708_v24 = vpop.permute.xlu1 %2707 }
0x139c   :  { %v2445_v22 = vmul.f32 0.125, %v2444_v25  ;;  %v2693_v25 = vrot.slane %v7798_v21, %v7284_v44 }
0x139e   :  { %v2446_v26 = vsub.f32 %v2434_v23, %v2445_v22  ;;  %v2706_v22 = vpop.permute.xlu0 %2705  ;;  %3063 = vrot.lane.b32.xlu1 %v2693_v25, %s7142_s16 }
0x13a0   :  { %v2447_v54 = vmul.f32 %v2446_v26, %v2446_v26 }
0x13a2   :  { %v2448_v27 = vsel %vm229_vm5, %v2447_v54, 0.0  ;;  %v2702_v54 = vpop.permute.xlu0 %2701 }
0x13a3   :  { %v2449_v28 = vrot.slane %v2448_v27, 4 }
0x13a5   :  { %v2450_v29 = vadd.f32 %v2449_v28, %v2448_v27 }
0x13a7   :  { %v2451_v30 = vrot.slane %v2450_v29, 2 }
0x13a9   :  { %v2452_v32 = vadd.f32 %v2451_v30, %v2450_v29 }
0x13ab   :  { %v2453_v33 = vrot.slane %v2452_v32, 1 }
0x13ad   :  { %v2454_v34 = vadd.f32 %v2453_v33, %v2452_v32 }
0x13af   :  { %v2455_v35 = vmul.f32 0.125, %v2454_v34 }
0x13b1   :  { %v2456_v16 = vadd.f32 1e-05, %v2455_v35 }
0x13b3   :  { %7013 = vrsqrt.f32 %v2456_v16 }
0x13c0   :  { %v7014_v36 = vpop.eup %7013 }
0x13c1   :  { %v2461_v37 = vmul.f32 %v7014_v36, %v2459_v2 }
0x13c3   :  { %v2465_v6 = vrot.slane %v2461_v37, %v7281_v43 }
0x13c5   :  { %v2466_v8 = vmul.f32 %v2465_v6, %v2446_v26  ;;  %v2704_v26 = vpop.permute.xlu1 %2703 }
0x13c7   :  { %v2470_v42 = vadd.f32 %v2468_v40, %v2466_v8 }
0x13c9   :  { %vm2471_vm11 = vcmp.gt.f32.partialorder %v2470_v42, 0.0  ;;  %v2472_v45 = vmul.f32 0.01, %v2470_v42  ;;  %v2700_v27 = vpop.permute.xlu1 %2699 }
0x13cb   :  { %v2473_v46 = vsel %vm2471_vm11, %v2470_v42, %v2472_v45 }
0x13cc   :  { %6639 = vmatmul.mubr.msk.f32.vlgmr.msra.gmra.mxu0 %vm229_vm5, %v2473_v46 }
0x13cd   :  { %6645 = vmatprep.mubr.msk.f32.mxu0 %vm7144_vm0, %v7143_v0  ;;  %6642 = vmatpush3.msra.mxu0 %v2590_v17 }
0x13ce   :  { %6643 = vmatprep.subr.mxu0 %v7143_v0 }
0x13cf   :  { %6644 = vmatpush3.msra.mxu0 %v2589_v49 }
0x13d0   :  { %6648 = vmatprep.subr.mxu0 %v7143_v0 }
0x148c   :  { %v2549_v50 = vpop.f32.mrf.mxu0 }
0x148d   :  { %v2553_v51 = vsel %vm229_vm5, %v2549_v50, 0.0 }
0x148e   :  { %v2554_v53 = vrot.slane %v2553_v51, 4  ;;  %v6640_v52 = vpop.f32.mrf.mxu0 }
0x1490   :  { %v2555_v60 = vadd.f32 %v2554_v53, %v2553_v51 }
0x1492   :  { %v2556_v61 = vrot.slane %v2555_v60, 2 }
0x1494   :  { %v2557_v31 = vadd.f32 %v2556_v61, %v2555_v60 }
0x1496   :  { %v2558_v62 = vrot.slane %v2557_v31, 1 }
0x1498   :  { %v2559_v47 = vadd.f32 %v2558_v62, %v2557_v31 }
0x149a   :  { %v2560_v63 = vmul.f32 0.125, %v2559_v47 }
0x149c   :  { %v2561_v1 = vsub.f32 %v2549_v50, %v2560_v63 }
0x149e   :  { %v2562_v11 = vmul.f32 %v2561_v1, %v2561_v1 }
0x14a0   :  { %v2563_v12 = vsel %vm229_vm5, %v2562_v11, 0.0 }
0x14a1   :  { %v2564_v13 = vrot.slane %v2563_v12, 4 }
0x14a3   :  { %v2565_v38 = vadd.f32 %v2564_v13, %v2563_v12  ;;  %v2826_v12 = vpop.permute.xlu1 %2825  ;;  %v2817_v13 = vpop.permute.xlu0 %2816 }
0x14a5   :  { %v2566_v3 = vrot.slane %v2565_v38, 2 }
0x14a7   :  { %v2567_v4 = vadd.f32 %v2566_v3, %v2565_v38  ;;  %v2835_v38 = vpop.permute.xlu0 %2834  ;;  %v2833_v3 = vpop.permute.xlu1 %2832 }
0x14a8   :  { %6668 = vmatpush3.msra.mxu1 %v2835_v38 }
0x14a9   :  { %v2568_v55 = vrot.slane %v2567_v4, 1  ;;  %6669 = vmatprep.subr.mxu1 %v7143_v0 }
0x14aa   :  { %6670 = vmatpush3.msra.mxu1 %v2833_v3 }
0x14ab   :  { %v2569_v10 = vadd.f32 %v2568_v55, %v2567_v4  ;;  %6674 = vmatprep.subr.mxu1 %v7143_v0 }
0x14ad   :  { %v2570_v7 = vmul.f32 0.125, %v2569_v10 }
0x14af   :  { %v2571_v48 = vadd.f32 1e-05, %v2570_v7 }
0x14b1   :  { %7015 = vrsqrt.f32 %v2571_v48 }
0x14be   :  { %v7016_v39 = vpop.eup %7015 }
0x14bf   :  { %v2576_v40 = vmul.f32 %v7016_v39, %v2574_v18 }
0x14c1   :  { %v2580_v2 = vrot.slane %v2576_v40, %v7281_v43 }
0x14c3   :  { %v2581_v14 = vmul.f32 %v2580_v2, %v2561_v1 }
0x14c5   :  { %v2585_v23 = vadd.f32 %v2583_v5, %v2581_v14 }
0x14c7   :  { %vm2586_vm12 = vcmp.gt.f32.partialorder %v2585_v23, 0.0  ;;  %v2587_v58 = vmul.f32 0.01, %v2585_v23 }
0x14c9   :  { %v2588_v15 = vsel %vm2586_vm12, %v2585_v23, %v2587_v58 }
0x14ca   :  { %6646 = vmatmul.mubr.msk.f32.vlgmr.msra.gmra.mxu0 %vm229_vm5, %v2588_v15 }
0x14cb   :  { %6664 = vmatprep.mubr.msk.f32.mxu0 %vm7144_vm0, %v7143_v0  ;;  %6649 = vmatpush3.msra.mxu0 %v2714_v19 }
0x14cc   :  { %6650 = vmatprep.subr.mxu0 %v7143_v0 }
0x14cd   :  { %6651 = vmatpush3.msra.mxu0 %v2712_v59 }
0x14ce   :  { %6652 = vmatprep.subr.mxu0 %v7143_v0 }
0x14cf   :  { %6653 = vmatpush3.msra.mxu0 %v2710_v20 }
0x14d0   :  { %6654 = vmatprep.subr.mxu0 %v7143_v0 }
0x14d1   :  { %6655 = vmatpush3.msra.mxu0 %v2708_v24 }
0x14d2   :  { %6656 = vmatprep.subr.mxu0 %v7143_v0 }
0x14d3   :  { %6657 = vmatpush3.msra.mxu0 %v2706_v22 }
0x14d4   :  { %6658 = vmatprep.subr.mxu0 %v7143_v0 }
0x14d5   :  { %6659 = vmatpush3.msra.mxu0 %v2704_v26 }
0x14d6   :  { %6660 = vmatprep.subr.mxu0 %v7143_v0 }
0x14d7   :  { %6661 = vmatpush3.msra.mxu0 %v2702_v54 }
0x14d8   :  { %6662 = vmatprep.subr.mxu0 %v7143_v0 }
0x14d9   :  { %6663 = vmatpush3.msra.mxu0 %v2700_v27 }
0x14da   :  { %6700 = vmatprep.subr.mxu0 %v7143_v0 }
0x158a   :  { %v2660_v28 = vpop.f32.mrf.mxu0 }
0x158b   :  { %v2664_v29 = vsel %vm155_vm4, %v2660_v28, 0.0 }
0x158c   :  { %v2665_v30 = vrot.slane %v2664_v29, 4  ;;  %v6647_v32 = vpop.f32.mrf.mxu0 }
0x158e   :  { %v2666_v33 = vadd.f32 %v2665_v30, %v2664_v29 }
0x1590   :  { %v2667_v34 = vrot.slane %v2666_v33, 2 }
0x1592   :  { %v2668_v35 = vadd.f32 %v2667_v34, %v2666_v33  ;;  %v2941_v33 = vpop.permute.xlu1 %2940  ;;  %v2932_v34 = vpop.permute.xlu0 %2931 }
0x1594   :  { %v2669_v16 = vrot.slane %v2668_v35, 1 }
0x1596   :  { %v2670_v36 = vadd.f32 %v2669_v16, %v2668_v35  ;;  %v2952_v35 = vpop.permute.xlu0 %2951  ;;  %v2950_v16 = vpop.permute.xlu1 %2949 }
0x1598   :  { %v2671_v37 = vmul.f32 0.125, %v2670_v36  ;;  %v3052_v36 = vrot.slane %v7798_v21, %v7281_v43 }
0x159a   :  { %v2672_v6 = vsub.f32 %v2660_v28, %v2671_v37  ;;  %3053 = vrot.lane.b32.xlu0 %v3052_v36, %s7142_s16 }
0x159c   :  { %v2673_v8 = vmul.f32 %v2672_v6, %v2672_v6 }
0x159e   :  { %v2674_v42 = vsel %vm155_vm4, %v2673_v8, 0.0 }
0x159f   :  { %v2675_v45 = vrot.slane %v2674_v42, 4 }
0x15a1   :  { %v2676_v46 = vadd.f32 %v2675_v45, %v2674_v42 }
0x15a3   :  { %v2677_v17 = vrot.slane %v2676_v46, 2 }
0x15a5   :  { %v2678_v49 = vadd.f32 %v2677_v17, %v2676_v46 }
0x15a7   :  { %v2679_v50 = vrot.slane %v2678_v49, 1 }
0x15a9   :  { %v2680_v51 = vadd.f32 %v2679_v50, %v2678_v49 }
0x15ab   :  { %v2681_v53 = vmul.f32 0.125, %v2680_v51 }
0x15ad   :  { %v2682_v52 = vadd.f32 1e-05, %v2681_v53 }
0x15af   :  { %7017 = vrsqrt.f32 %v2682_v52 }
0x15bc   :  { %v7018_v60 = vpop.eup %7017 }
0x15bd   :  { %v2684_v61 = vmul.f32 %v7018_v60, %v7798_v21 }
0x15bf   :  { %v2688_v31 = vrot.slane %v2684_v61, %v7281_v43 }
0x15c1   :  { %v2689_v62 = vmul.f32 %v2688_v31, %v2672_v6 }
0x15c3   :  { %v2694_v47 = vadd.f32 %v2693_v25, %v2689_v62 }
0x15c5   :  { %v2695_v63 = vadd.f32 %v2694_v47, %v7769_v9 }
0x15c7   :  { %vm2696_vm13 = vcmp.gt.f32.partialorder %v2695_v63, 0.0  ;;  %v2697_v1 = vmul.f32 0.01, %v2695_v63 }
0x15c9   :  { %v7814_v11 = vsel %vm2696_vm13, %v2695_v63, %v2697_v1 }
0x15ca   :  { %6665 = vmatmul.mubr.msk.f32.vlgmr.msra.gmra.mxu0 %vm155_vm4, %v7814_v11 }
0x15cb   :  { %6704 = vmatprep.mubr.msk.f32.mxu0 %vm7144_vm0, %v7143_v0 }
0x168a   :  { %v2792_v9 = vpop.f32.mrf.mxu0 }
0x168b   :  { %v2796_v4 = vsel %vm229_vm5, %v2792_v9, 0.0 }
0x168c   :  { %v2797_v55 = vrot.slane %v2796_v4, 4  ;;  %v6666_v10 = vpop.f32.mrf.mxu0 }
0x168e   :  { %v2798_v7 = vadd.f32 %v2797_v55, %v2796_v4 }
0x1690   :  { %v2799_v48 = vrot.slane %v2798_v7, 2 }
0x1692   :  { %v2800_v18 = vadd.f32 %v2799_v48, %v2798_v7  ;;  %v7839_v7 = vld [vmem:[#allocation2 + $0x78] sm:$0xff]  ;;  %v7845_v48 = vld [vmem:[#allocation2 + $0x68] sm:$0xff] }
0x1693   :  { %3435 = vrot.lane.b32.xlu0 %v7839_v7, %s7145_s27  ;;  %3433 = vrot.lane.b32.xlu1 %v7845_v48, %s7145_s27 }
0x1694   :  { %v2801_v39 = vrot.slane %v2800_v18, 1 }
0x1696   :  { %v2802_v40 = vadd.f32 %v2801_v39, %v2800_v18  ;;  %v7851_v18 = vld [vmem:[#allocation2 + $0x58] sm:$0xff]  ;;  %v7854_v39 = vld [vmem:[#allocation2 + $0x48] sm:$0xff] }
0x1697   :  { %3431 = vrot.lane.b32.xlu0 %v7851_v18, %s7145_s27  ;;  %3429 = vrot.lane.b32.xlu1 %v7854_v39, %s7145_s27 }
0x1698   :  { %v2803_v2 = vmul.f32 0.125, %v2802_v40  ;;  %v7863_v40 = vld [vmem:[#allocation2 + $0x38] sm:$0xff] }
0x169a   :  { %v2804_v5 = vsub.f32 %v2792_v9, %v2803_v2  ;;  %v7869_v2 = vld [vmem:[#allocation2 + $0x28] sm:$0xff] }
0x169b   :  { %3427 = vrot.lane.b32.xlu0 %v7863_v40, %s7145_s27  ;;  %3425 = vrot.lane.b32.xlu1 %v7869_v2, %s7145_s27 }
0x169c   :  { %v2805_v14 = vmul.f32 %v2804_v5, %v2804_v5 }
0x169e   :  { %v2806_v23 = vsel %vm229_vm5, %v2805_v14, 0.0  ;;  %v7878_v14 = vld [vmem:[#allocation2 + $0x8] sm:$0xff] }
0x169f   :  { %v2807_v58 = vrot.slane %v2806_v23, 4  ;;  %3421 = vrot.lane.b32.xlu1 %v7878_v14, %s7145_s27 }
0x16a1   :  { %v2808_v15 = vadd.f32 %v2807_v58, %v2806_v23 }
0x16a3   :  { %v2809_v19 = vrot.slane %v2808_v15, 2 }
0x16a5   :  { %v2810_v59 = vadd.f32 %v2809_v19, %v2808_v15 }
0x16a7   :  { %v2811_v20 = vrot.slane %v2810_v59, 1 }
0x16a9   :  { %v2812_v24 = vadd.f32 %v2811_v20, %v2810_v59 }
0x16ab   :  { %v2813_v25 = vmul.f32 0.125, %v2812_v24 }
0x16ad   :  { %v2814_v22 = vadd.f32 1e-05, %v2813_v25 }
0x16af   :  { %7019 = vrsqrt.f32 %v2814_v22 }
0x16bc   :  { %v7020_v26 = vpop.eup %7019 }
0x16bd   :  { %v2819_v54 = vmul.f32 %v7020_v26, %v2817_v13 }
0x16bf   :  { %v2823_v27 = vrot.slane %v2819_v54, %v7281_v43 }
0x16c1   :  { %v2824_v28 = vmul.f32 %v2823_v27, %v2804_v5  ;;  %v7875_v5 = vld [vmem:[#allocation2 + $0x18] sm:$0xff] }
0x16c2   :  { %3423 = vrot.lane.b32.xlu0 %v7875_v5, %s7145_s27 }
0x16c3   :  { %v2828_v29 = vadd.f32 %v2826_v12, %v2824_v28 }
0x16c5   :  { %vm2829_vm14 = vcmp.gt.f32.partialorder %v2828_v29, 0.0  ;;  %v2830_v30 = vmul.f32 0.01, %v2828_v29 }
0x16c7   :  { %v2831_v32 = vsel %vm2829_vm14, %v2828_v29, %v2830_v30 }
0x16c8   :  { %6672 = vmatmul.mubr.msk.f32.vlgmr.msra.gmra.mxu1 %vm229_vm5, %v2831_v32 }
0x16c9   :  { %6678 = vmatprep.mubr.msk.f32.mxu1 %vm7144_vm0, %v7143_v0  ;;  %6675 = vmatpush3.msra.mxu1 %v2952_v35 }
0x16ca   :  { %6676 = vmatprep.subr.mxu1 %v7143_v0 }
0x16cb   :  { %6677 = vmatpush3.msra.mxu1 %v2950_v16 }
0x16cc   :  { %6681 = vmatprep.subr.mxu1 %v7143_v0 }
0x1788   :  { %v2907_v37 = vpop.f32.mrf.mxu1 }
0x1789   :  { %v2911_v6 = vsel %vm229_vm5, %v2907_v37, 0.0 }
0x178a   :  { %v2912_v8 = vrot.slane %v2911_v6, 4  ;;  %v6673_v42 = vpop.f32.mrf.mxu1 }
0x178c   :  { %v2913_v45 = vadd.f32 %v2912_v8, %v2911_v6 }
0x178e   :  { %v2914_v46 = vrot.slane %v2913_v45, 2 }
0x1790   :  { %v2915_v17 = vadd.f32 %v2914_v46, %v2913_v45  ;;  %v3064_v45 = vpop.permute.xlu1 %3063 }
0x1792   :  { %v2916_v49 = vrot.slane %v2915_v17, 1 }
0x1794   :  { %v2917_v50 = vadd.f32 %v2916_v49, %v2915_v17 }
0x1796   :  { %v2918_v51 = vmul.f32 0.125, %v2917_v50 }
0x1798   :  { %v2919_v53 = vsub.f32 %v2907_v37, %v2918_v51  ;;  %v3054_v37 = vpop.permute.xlu0 %3053 }
0x179a   :  { %v2920_v52 = vmul.f32 %v2919_v53, %v2919_v53 }
0x179c   :  { %v2921_v60 = vsel %vm229_vm5, %v2920_v52, 0.0 }
0x179d   :  { %v2922_v21 = vrot.slane %v2921_v60, 4 }
0x179f   :  { %v2923_v61 = vadd.f32 %v2922_v21, %v2921_v60  ;;  %v7914_v21 = vld [vmem:[%s8463_s3 + $0x8] sm:$0xff] }
0x17a1   :  { %v2924_v31 = vrot.slane %v2923_v61, 2 }
0x17a3   :  { %v2925_v62 = vadd.f32 %v2924_v31, %v2923_v61 }
0x17a5   :  { %v2926_v47 = vrot.slane %v2925_v62, 1 }
0x17a7   :  { %v2927_v63 = vadd.f32 %v2926_v47, %v2925_v62 }
0x17a9   :  { %v2928_v1 = vmul.f32 0.125, %v2927_v63 }
0x17ab   :  { %v2929_v12 = vadd.f32 1e-05, %v2928_v1 }
0x17ad   :  { %7021 = vrsqrt.f32 %v2929_v12 }
0x17ba   :  { %v7022_v13 = vpop.eup %7021 }
0x17bb   :  { %v2934_v38 = vmul.f32 %v7022_v13, %v2932_v34 }
0x17bd   :  { %v2938_v3 = vrot.slane %v2934_v38, %v7281_v43 }
0x17bf   :  { %v2939_v9 = vmul.f32 %v2938_v3, %v2919_v53  ;;  %v3071_v53 = vld [vmem:[%s8465_s5 + $0x4] sm:$0xf] }
0x17c0   :  { %v7901_v52 = vrot.slane %v3071_v53, %v7284_v44  ;;  %v7904_v60 = vrot.slane %v3071_v53, %v7281_v43  ;;  %v7928_v61 = vrot.slane %v3071_v53, %v374_v57  ;;  %v7934_v31 = vrot.slane %v3071_v53, %v363_v56 }
0x17c1   :  { %v2943_v4 = vadd.f32 %v2941_v33, %v2939_v9 }
0x17c2   :  { %3552 = vrot.lane.b32.xlu1 %v7901_v52, %s7145_s27  ;;  %3542 = vrot.lane.b32.xlu0 %v7904_v60, %s7145_s27 }
0x17c3   :  { %vm2944_vm15 = vcmp.gt.f32.partialorder %v2943_v4, 0.0  ;;  %v2945_v55 = vmul.f32 0.01, %v2943_v4 }
0x17c5   :  { %v2946_v10 = vsel %vm2944_vm15, %v2943_v4, %v2945_v55 }
0x17c6   :  { %6679 = vmatmul.mubr.msk.f32.vlgmr.msra.gmra.mxu1 %vm229_vm5, %v2946_v10  ;;  %3561 = vrot.lane.b32.xlu1 %v7914_v21, %s7145_s27 }
0x17c7   :  { %6697 = vmatprep.mubr.msk.f32.mxu1 %vm7144_vm0, %v7143_v0  ;;  %6682 = vmatpush3.msra.mxu1 %v7839_v7 }
0x17c8   :  { %6683 = vmatprep.subr.mxu1 %v7143_v0 }
0x17c9   :  { %6684 = vmatpush3.msra.mxu1 %v7845_v48 }
0x17ca   :  { %6685 = vmatprep.subr.mxu1 %v7143_v0  ;;  %3670 = vrot.lane.b32.xlu1 %v7928_v61, %s7145_s27 }
0x17cb   :  { %6686 = vmatpush3.msra.mxu1 %v7851_v18 }
0x17cc   :  { %6687 = vmatprep.subr.mxu1 %v7143_v0 }
0x17cd   :  { %6688 = vmatpush3.msra.mxu1 %v7854_v39 }
0x17ce   :  { %6689 = vmatprep.subr.mxu1 %v7143_v0 }
0x17cf   :  { %6690 = vmatpush3.msra.mxu1 %v7863_v40 }
0x17d0   :  { %6691 = vmatprep.subr.mxu1 %v7143_v0 }
0x17d1   :  { %6692 = vmatpush3.msra.mxu1 %v7869_v2 }
0x17d2   :  { %6693 = vmatprep.subr.mxu1 %v7143_v0 }
0x17d3   :  { %6694 = vmatpush3.msra.mxu1 %v7875_v5 }
0x17d4   :  { %6695 = vmatprep.subr.mxu1 %v7143_v0 }
0x17d5   :  { %6696 = vmatpush3.msra.mxu1 %v7878_v14 }
0x17d6   :  { %6733 = vmatprep.subr.mxu1 %v7143_v0 }
0x1886   :  { %v3024_v23 = vpop.f32.mrf.mxu1 }
0x1887   :  { %v3028_v58 = vsel %vm155_vm4, %v3024_v23, 0.0 }
0x1888   :  { %v3029_v15 = vrot.slane %v3028_v58, 4  ;;  %v6680_v19 = vpop.f32.mrf.mxu1 }
0x188a   :  { %v3030_v59 = vadd.f32 %v3029_v15, %v3028_v58 }
0x188c   :  { %v3031_v20 = vrot.slane %v3030_v59, 2 }
0x188e   :  { %v3032_v24 = vadd.f32 %v3031_v20, %v3030_v59 }
0x1890   :  { %v3033_v25 = vrot.slane %v3032_v24, 1 }
0x1892   :  { %v3034_v22 = vadd.f32 %v3033_v25, %v3032_v24 }
0x1894   :  { %v3035_v26 = vmul.f32 0.125, %v3034_v22 }
0x1896   :  { %v3036_v54 = vsub.f32 %v3024_v23, %v3035_v26 }
0x1898   :  { %v3037_v27 = vmul.f32 %v3036_v54, %v3036_v54 }
0x189a   :  { %v3038_v28 = vsel %vm155_vm4, %v3037_v27, 0.0 }
0x189b   :  { %v3039_v29 = vrot.slane %v3038_v28, 4 }
0x189d   :  { %v3040_v30 = vadd.f32 %v3039_v29, %v3038_v28  ;;  %v3304_v29 = vld [vmem:[#allocation4 + $0x60] sm:$0xff] }
0x189f   :  { %v3041_v32 = vrot.slane %v3040_v30, 2 }
0x18a1   :  { %v3042_v33 = vadd.f32 %v3041_v32, %v3040_v30  ;;  %v3303_v30 = vld [vmem:[#allocation4 + $0x20] sm:$0xff] }
0x18a2   :  { %3679 = vrot.lane.b32.xlu1 %v3303_v30, %s7142_s16 }
0x18a3   :  { %v3043_v34 = vrot.slane %v3042_v33, 1 }
0x18a5   :  { %v3044_v35 = vadd.f32 %v3043_v34, %v3042_v33 }
0x18a7   :  { %v3045_v16 = vmul.f32 0.125, %v3044_v35 }
0x18a9   :  { %v3046_v36 = vadd.f32 1e-05, %v3045_v16 }
0x18ab   :  { %7023 = vrsqrt.f32 %v3046_v36 }
0x18b8   :  { %v7024_v6 = vpop.eup %7023 }
0x18b9   :  { %v3056_v8 = vmul.f32 %v7024_v6, %v3054_v37 }
0x18bb   :  { %v3060_v42 = vrot.slane %v3056_v8, %v7281_v43 }
0x18bd   :  { %v3061_v46 = vmul.f32 %v3060_v42, %v3036_v54 }
0x18bf   :  { %v3066_v17 = vadd.f32 %v3064_v45, %v3061_v46 }
0x18c1   :  { %v3067_v49 = vadd.f32 %v3066_v17, %v7814_v11  ;;  %v7909_v11 = vld [vmem:[%s8463_s3 + $0x18] sm:$0xff] }
0x18c2   :  { %6701 = vmatpush3.msra.mxu0 %v7909_v11  ;;  %3563 = vrot.lane.b32.xlu0 %v7909_v11, %s7145_s27 }
0x18c3   :  { %v3069_v50 = vmul.f32 0.01, %v3067_v49  ;;  %vm3068_vm1 = vcmp.gt.f32.partialorder %v3067_v49, 0.0  ;;  %6702 = vmatprep.subr.mxu0 %v7143_v0 }
0x18c4   :  { %6703 = vmatpush3.msra.mxu0 %v7914_v21 }
0x18c5   :  { %v7891_v51 = vsel %vm3068_vm1, %v3067_v49, %v3069_v50  ;;  %6707 = vmatprep.subr.mxu0 %v7143_v0 }
0x18c6   :  { %6698 = vmatmul.mubr.msk.f32.vlgmr.msra.gmra.mxu1 %vm155_vm4, %v7891_v51  ;;  %3660 = vrot.lane.b32.xlu0 %v7934_v31, %s7145_s27 }
0x18c7   :  { %6737 = vmatprep.mubr.msk.f32.mxu1 %vm7144_vm0, %v7143_v0 }
0x18ca   :  { %3681 = vrot.lane.b32.xlu0 %v3304_v29, %s7142_s16 }
0x18ce   :  { %3816 = vrot.lane.b32.xlu0 %v7839_v7, %s7146_s30 }
0x18d2   :  { %3814 = vrot.lane.b32.xlu0 %v7845_v48, %s7146_s30 }
0x18d6   :  { %3810 = vrot.lane.b32.xlu0 %v7854_v39, %s7146_s30 }
0x18da   :  { %3808 = vrot.lane.b32.xlu0 %v7863_v40, %s7146_s30 }
0x18de   :  { %3804 = vrot.lane.b32.xlu0 %v7875_v5, %s7146_s30 }
0x18e2   :  { %3919 = vrot.lane.b32.xlu0 %v7904_v60, %s7146_s30 }
0x18e6   :  { %3937 = vrot.lane.b32.xlu0 %v7909_v11, %s7146_s30 }
0x18ea   :  { %4034 = vrot.lane.b32.xlu0 %v7934_v31, %s7146_s30 }
0x18ee   :  { %4174 = vrot.lane.b32.xlu0 %v7839_v7, %s7147_s10 }
0x18f2   :  { %4170 = vrot.lane.b32.xlu0 %v7851_v18, %s7147_s10 }
0x18f6   :  { %4166 = vrot.lane.b32.xlu0 %v7863_v40, %s7147_s10 }
0x18fa   :  { %4162 = vrot.lane.b32.xlu0 %v7875_v5, %s7147_s10 }
0x18fe   :  { %4277 = vrot.lane.b32.xlu0 %v7904_v60, %s7147_s10 }
0x1902   :  { %4295 = vrot.lane.b32.xlu0 %v7909_v11, %s7147_s10 }
0x1906   :  { %4392 = vrot.lane.b32.xlu0 %v7934_v31, %s7147_s10 }
0x1986   :  { %v3150_v62 = vpop.f32.mrf.mxu1 }
0x1987   :  { %v3154_v47 = vsel %vm229_vm5, %v3150_v62, 0.0 }
0x1988   :  { %v3155_v63 = vrot.slane %v3154_v47, 4  ;;  %v6699_v1 = vpop.f32.mrf.mxu1 }
0x198a   :  { %v3156_v57 = vadd.f32 %v3155_v63, %v3154_v47 }
0x198c   :  { %v3157_v12 = vrot.slane %v3156_v57, 2 }
0x198e   :  { %v3158_v13 = vadd.f32 %v3157_v12, %v3156_v57 }
0x1990   :  { %v3159_v38 = vrot.slane %v3158_v13, 1 }
0x1992   :  { %v3160_v3 = vadd.f32 %v3159_v38, %v3158_v13 }
0x1994   :  { %v3161_v9 = vmul.f32 0.125, %v3160_v3 }
0x1996   :  { %v3162_v41 = vsub.f32 %v3150_v62, %v3161_v9 }
0x1998   :  { %v3163_v56 = vmul.f32 %v3162_v41, %v3162_v41 }
0x199a   :  { %v3164_v4 = vsel %vm229_vm5, %v3163_v56, 0.0 }
0x199b   :  { %v3165_v55 = vrot.slane %v3164_v4, 4 }
0x199d   :  { %v3166_v10 = vadd.f32 %v3165_v55, %v3164_v4  ;;  %v3436_v4 = vpop.permute.xlu0 %3435  ;;  %v3434_v55 = vpop.permute.xlu1 %3433 }
0x199f   :  { %v3167_v23 = vrot.slane %v3166_v10, 2 }
0x19a1   :  { %v3168_v58 = vadd.f32 %v3167_v23, %v3166_v10  ;;  %v3432_v10 = vpop.permute.xlu0 %3431  ;;  %v3430_v23 = vpop.permute.xlu1 %3429 }
0x19a3   :  { %v3169_v15 = vrot.slane %v3168_v58, 1 }
0x19a5   :  { %v3170_v19 = vadd.f32 %v3169_v15, %v3168_v58  ;;  %v3428_v58 = vpop.permute.xlu0 %3427  ;;  %v3426_v15 = vpop.permute.xlu1 %3425 }
0x19a7   :  { %v3171_v59 = vmul.f32 0.125, %v3170_v19 }
0x19a9   :  { %v3172_v20 = vadd.f32 1e-05, %v3171_v59  ;;  %v3424_v19 = vpop.permute.xlu0 %3423  ;;  %v3422_v59 = vpop.permute.xlu1 %3421 }
0x19ab   :  { %7025 = vrsqrt.f32 %v3172_v20 }
0x19b8   :  { %v7026_v24 = vpop.eup %7025 }
0x19b9   :  { %v3174_v25 = vmul.f32 %v7026_v24, %v3071_v53 }
0x19bb   :  { %v3178_v22 = vrot.slane %v3174_v25, %v7281_v43 }
0x19bd   :  { %v3179_v26 = vmul.f32 %v3178_v22, %v3162_v41 }
0x19bf   :  { %v3184_v54 = vadd.f32 %v7901_v52, %v3179_v26 }
0x19c1   :  { %vm3185_vm2 = vcmp.gt.f32.partialorder %v3184_v54, 0.0  ;;  %v3186_v27 = vmul.f32 0.01, %v3184_v54 }
0x19c3   :  { %v3187_v28 = vsel %vm3185_vm2, %v3184_v54, %v3186_v27 }
0x19c4   :  { %6705 = vmatmul.mubr.msk.f32.vlgmr.msra.gmra.mxu0 %vm229_vm5, %v3187_v28 }
0x19c5   :  { %6711 = vmatprep.mubr.msk.f32.mxu0 %vm7144_vm0, %v7143_v0  ;;  %6708 = vmatpush3.msra.mxu0 %v3304_v29 }
0x19c6   :  { %6709 = vmatprep.subr.mxu0 %v7143_v0 }
0x19c7   :  { %6710 = vmatpush3.msra.mxu0 %v3303_v30 }
0x19c8   :  { %6714 = vmatprep.subr.mxu0 %v7143_v0 }
0x1a84   :  { %v3259_v32 = vpop.f32.mrf.mxu0 }
0x1a85   :  { %v3263_v33 = vsel %vm229_vm5, %v3259_v32, 0.0 }
0x1a86   :  { %v3264_v34 = vrot.slane %v3263_v33, 4  ;;  %v6706_v35 = vpop.f32.mrf.mxu0 }
0x1a88   :  { %v3265_v16 = vadd.f32 %v3264_v34, %v3263_v33 }
0x1a8a   :  { %v3266_v36 = vrot.slane %v3265_v16, 2 }
0x1a8c   :  { %v3267_v37 = vadd.f32 %v3266_v36, %v3265_v16 }
0x1a8e   :  { %v3268_v6 = vrot.slane %v3267_v37, 1 }
0x1a90   :  { %v3269_v8 = vadd.f32 %v3268_v6, %v3267_v37 }
0x1a92   :  { %v3270_v42 = vmul.f32 0.125, %v3269_v8 }
0x1a94   :  { %v3271_v45 = vsub.f32 %v3259_v32, %v3270_v42 }
0x1a96   :  { %v3272_v46 = vmul.f32 %v3271_v45, %v3271_v45 }
0x1a98   :  { %v3273_v17 = vsel %vm229_vm5, %v3272_v46, 0.0  ;;  %v3072_v46 = vld [vmem:[%s8466_s6 + $0x8] sm:$0x3] }
0x1a99   :  { %v3274_v49 = vrot.slane %v3273_v17, 4 }
0x1a9b   :  { %v3275_v50 = vadd.f32 %v3274_v49, %v3273_v17 }
0x1a9d   :  { %v3276_v53 = vrot.slane %v3275_v50, 2 }
0x1a9f   :  { %v3277_v62 = vadd.f32 %v3276_v53, %v3275_v50  ;;  %v3407_v53 = vrot.slane %v3072_v46, %v7284_v44 }
0x1aa1   :  { %v3278_v47 = vrot.slane %v3277_v62, 1 }
0x1aa3   :  { %v3279_v63 = vadd.f32 %v3278_v47, %v3277_v62 }
0x1aa5   :  { %v3280_v1 = vmul.f32 0.125, %v3279_v63 }
0x1aa7   :  { %v3281_v57 = vadd.f32 1e-05, %v3280_v1 }
0x1aa9   :  { %7027 = vrsqrt.f32 %v3281_v57 }
0x1ab6   :  { %v7028_v12 = vpop.eup %7027 }
0x1ab7   :  { %v3289_v13 = vmul.f32 %v7028_v12, %v7934_v31  ;;  %v3553_v12 = vpop.permute.xlu1 %3552 }
0x1ab9   :  { %v3293_v38 = vrot.slane %v3289_v13, %v7281_v43  ;;  %v3543_v13 = vpop.permute.xlu0 %3542 }
0x1abb   :  { %v3294_v3 = vmul.f32 %v3293_v38, %v3271_v45 }
0x1abd   :  { %v3299_v9 = vadd.f32 %v7928_v61, %v3294_v3  ;;  %v3564_v38 = vpop.permute.xlu0 %3563  ;;  %v3562_v3 = vpop.permute.xlu1 %3561 }
0x1abe   :  { %6734 = vmatpush3.msra.mxu1 %v3564_v38 }
0x1abf   :  { %vm3300_vm3 = vcmp.gt.f32.partialorder %v3299_v9, 0.0  ;;  %v3301_v41 = vmul.f32 0.01, %v3299_v9  ;;  %6735 = vmatprep.subr.mxu1 %v7143_v0 }
0x1ac0   :  { %6736 = vmatpush3.msra.mxu1 %v3562_v3 }
0x1ac1   :  { %v3302_v56 = vsel %vm3300_vm3, %v3299_v9, %v3301_v41  ;;  %6740 = vmatprep.subr.mxu1 %v7143_v0 }
0x1ac2   :  { %6712 = vmatmul.mubr.msk.f32.vlgmr.msra.gmra.mxu0 %vm229_vm5, %v3302_v56 }
0x1ac3   :  { %6730 = vmatprep.mubr.msk.f32.mxu0 %vm7144_vm0, %v7143_v0  ;;  %6715 = vmatpush3.msra.mxu0 %v3436_v4 }
0x1ac4   :  { %6716 = vmatprep.subr.mxu0 %v7143_v0 }
0x1ac5   :  { %6717 = vmatpush3.msra.mxu0 %v3434_v55 }
0x1ac6   :  { %6718 = vmatprep.subr.mxu0 %v7143_v0 }
0x1ac7   :  { %6719 = vmatpush3.msra.mxu0 %v3432_v10 }
0x1ac8   :  { %6720 = vmatprep.subr.mxu0 %v7143_v0 }
0x1ac9   :  { %6721 = vmatpush3.msra.mxu0 %v3430_v23 }
0x1aca   :  { %6722 = vmatprep.subr.mxu0 %v7143_v0 }
0x1acb   :  { %6723 = vmatpush3.msra.mxu0 %v3428_v58 }
0x1acc   :  { %6724 = vmatprep.subr.mxu0 %v7143_v0 }
0x1acd   :  { %6725 = vmatpush3.msra.mxu0 %v3426_v15 }
0x1ace   :  { %6726 = vmatprep.subr.mxu0 %v7143_v0 }
0x1acf   :  { %6727 = vmatpush3.msra.mxu0 %v3424_v19 }
0x1ad0   :  { %6728 = vmatprep.subr.mxu0 %v7143_v0 }
0x1ad1   :  { %6729 = vmatpush3.msra.mxu0 %v3422_v59 }
0x1ad2   :  { %6766 = vmatprep.subr.mxu0 %v7143_v0 }
0x1b82   :  { %v3374_v20 = vpop.f32.mrf.mxu0 }
0x1b83   :  { %v3378_v24 = vsel %vm155_vm4, %v3374_v20, 0.0 }
0x1b84   :  { %v3379_v25 = vrot.slane %v3378_v24, 4  ;;  %v6713_v22 = vpop.f32.mrf.mxu0 }
0x1b86   :  { %v3380_v26 = vadd.f32 %v3379_v25, %v3378_v24 }
0x1b88   :  { %v3381_v54 = vrot.slane %v3380_v26, 2 }
0x1b8a   :  { %v3382_v27 = vadd.f32 %v3381_v54, %v3380_v26 }
0x1b8c   :  { %v3383_v28 = vrot.slane %v3382_v27, 1 }
0x1b8e   :  { %v3384_v29 = vadd.f32 %v3383_v28, %v3382_v27 }
0x1b90   :  { %v3385_v30 = vmul.f32 0.125, %v3384_v29 }
0x1b92   :  { %v3386_v32 = vsub.f32 %v3374_v20, %v3385_v30 }
0x1b94   :  { %v3387_v33 = vmul.f32 %v3386_v32, %v3386_v32 }
0x1b96   :  { %v3388_v34 = vsel %vm155_vm4, %v3387_v33, 0.0 }
0x1b97   :  { %v3389_v35 = vrot.slane %v3388_v34, 4 }
0x1b99   :  { %v3390_v16 = vadd.f32 %v3389_v35, %v3388_v34 }
0x1b9b   :  { %v3391_v36 = vrot.slane %v3390_v16, 2 }
0x1b9d   :  { %v3392_v37 = vadd.f32 %v3391_v36, %v3390_v16 }
0x1b9f   :  { %v3393_v6 = vrot.slane %v3392_v37, 1 }
0x1ba1   :  { %v3394_v8 = vadd.f32 %v3393_v6, %v3392_v37  ;;  %v3671_v37 = vpop.permute.xlu1 %3670  ;;  %v3661_v6 = vpop.permute.xlu0 %3660 }
0x1ba3   :  { %v3395_v42 = vmul.f32 0.125, %v3394_v8 }
0x1ba5   :  { %v3396_v45 = vadd.f32 1e-05, %v3395_v42  ;;  %v3682_v8 = vpop.permute.xlu0 %3681  ;;  %v3680_v42 = vpop.permute.xlu1 %3679 }
0x1ba7   :  { %7029 = vrsqrt.f32 %v3396_v45  ;;  %v3782_v45 = vrot.slane %v3072_v46, %v7281_v43 }
0x1ba9   :  { %3783 = vrot.lane.b32.xlu1 %v3782_v45, %s7142_s16 }
0x1bad   :  { %3812 = vrot.lane.b32.xlu1 %v7851_v18, %s7146_s30 }
0x1bb1   :  { %3793 = vrot.lane.b32.xlu1 %v3407_v53, %s7142_s16 }
0x1bb4   :  { %v7030_v17 = vpop.eup %7029 }
0x1bb5   :  { %v3398_v49 = vmul.f32 %v7030_v17, %v3072_v46  ;;  %3806 = vrot.lane.b32.xlu1 %v7869_v2, %s7146_s30 }
0x1bb7   :  { %v3402_v50 = vrot.slane %v3398_v49, %v7281_v43 }
0x1bb9   :  { %v3403_v62 = vmul.f32 %v3402_v50, %v3386_v32  ;;  %3802 = vrot.lane.b32.xlu1 %v7878_v14, %s7146_s30 }
0x1bbb   :  { %v3408_v47 = vadd.f32 %v3407_v53, %v3403_v62 }
0x1bbd   :  { %v3409_v63 = vadd.f32 %v3408_v47, %v7891_v51  ;;  %3928 = vrot.lane.b32.xlu1 %v7901_v52, %s7146_s30 }
0x1bbf   :  { %vm3410_vm6 = vcmp.gt.f32.partialorder %v3409_v63, 0.0  ;;  %v3411_v1 = vmul.f32 0.01, %v3409_v63 }
0x1bc1   :  { %v8005_v57 = vsel %vm3410_vm6, %v3409_v63, %v3411_v1  ;;  %3935 = vrot.lane.b32.xlu1 %v7914_v21, %s7146_s30 }
0x1bc2   :  { %6731 = vmatmul.mubr.msk.f32.vlgmr.msra.gmra.mxu0 %vm155_vm4, %v8005_v57 }
0x1bc3   :  { %6770 = vmatprep.mubr.msk.f32.mxu0 %vm7144_vm0, %v7143_v0 }
0x1bc5   :  { %4043 = vrot.lane.b32.xlu1 %v7928_v61, %s7146_s30 }
0x1bc9   :  { %4172 = vrot.lane.b32.xlu1 %v7845_v48, %s7147_s10 }
0x1bcd   :  { %4168 = vrot.lane.b32.xlu1 %v7854_v39, %s7147_s10 }
0x1bd1   :  { %4164 = vrot.lane.b32.xlu1 %v7869_v2, %s7147_s10 }
0x1bd5   :  { %4160 = vrot.lane.b32.xlu1 %v7878_v14, %s7147_s10 }
0x1bd9   :  { %4286 = vrot.lane.b32.xlu1 %v7901_v52, %s7147_s10 }
0x1bdd   :  { %4293 = vrot.lane.b32.xlu1 %v7914_v21, %s7147_s10 }
0x1be1   :  { %4401 = vrot.lane.b32.xlu1 %v7928_v61, %s7147_s10 }
0x1c82   :  { %v3514_v51 = vpop.f32.mrf.mxu0 }
0x1c83   :  { %v3518_v9 = vsel %vm229_vm5, %v3514_v51, 0.0 }
0x1c84   :  { %v3519_v41 = vrot.slane %v3518_v9, 4  ;;  %v6732_v56 = vpop.f32.mrf.mxu0 }
0x1c86   :  { %v3520_v4 = vadd.f32 %v3519_v41, %v3518_v9 }
0x1c88   :  { %v3521_v55 = vrot.slane %v3520_v4, 2 }
0x1c8a   :  { %v3522_v10 = vadd.f32 %v3521_v55, %v3520_v4 }
0x1c8c   :  { %v3523_v23 = vrot.slane %v3522_v10, 1 }
0x1c8e   :  { %v3524_v58 = vadd.f32 %v3523_v23, %v3522_v10 }
0x1c90   :  { %v3525_v15 = vmul.f32 0.125, %v3524_v58 }
0x1c92   :  { %v3526_v19 = vsub.f32 %v3514_v51, %v3525_v15 }
0x1c94   :  { %v3527_v59 = vmul.f32 %v3526_v19, %v3526_v19 }
0x1c96   :  { %v3528_v20 = vsel %vm229_vm5, %v3527_v59, 0.0 }
0x1c97   :  { %v3529_v24 = vrot.slane %v3528_v20, 4 }
0x1c99   :  { %v3530_v25 = vadd.f32 %v3529_v24, %v3528_v20  ;;  %v3817_v20 = vpop.permute.xlu0 %3816  ;;  %v3784_v24 = vpop.permute.xlu1 %3783 }
0x1c9b   :  { %v3531_v22 = vrot.slane %v3530_v25, 2 }
0x1c9d   :  { %v3532_v26 = vadd.f32 %v3531_v22, %v3530_v25  ;;  %v3815_v25 = vpop.permute.xlu0 %3814  ;;  %v3813_v22 = vpop.permute.xlu1 %3812 }
0x1c9f   :  { %v3533_v54 = vrot.slane %v3532_v26, 1 }
0x1ca1   :  { %v3534_v27 = vadd.f32 %v3533_v54, %v3532_v26  ;;  %v3811_v26 = vpop.permute.xlu0 %3810  ;;  %v3794_v54 = vpop.permute.xlu1 %3793 }
0x1ca3   :  { %v3535_v28 = vmul.f32 0.125, %v3534_v27 }
0x1ca5   :  { %v3536_v29 = vadd.f32 1e-05, %v3535_v28  ;;  %v3809_v27 = vpop.permute.xlu0 %3808  ;;  %v3807_v28 = vpop.permute.xlu1 %3806 }
0x1ca7   :  { %7031 = vrsqrt.f32 %v3536_v29 }
0x1ca9   :  { %v3805_v29 = vpop.permute.xlu0 %3804 }
0x1cb4   :  { %v7032_v30 = vpop.eup %7031 }
0x1cb5   :  { %v3545_v32 = vmul.f32 %v7032_v30, %v3543_v13  ;;  %v3803_v30 = vpop.permute.xlu1 %3802 }
0x1cb7   :  { %v3549_v33 = vrot.slane %v3545_v32, %v7281_v43 }
0x1cb9   :  { %v3550_v34 = vmul.f32 %v3549_v33, %v3526_v19 }
0x1cbb   :  { %v3555_v35 = vadd.f32 %v3553_v12, %v3550_v34 }
0x1cbd   :  { %vm3556_vm7 = vcmp.gt.f32.partialorder %v3555_v35, 0.0  ;;  %v3557_v16 = vmul.f32 0.01, %v3555_v35 }
0x1cbf   :  { %v3558_v36 = vsel %vm3556_vm7, %v3555_v35, %v3557_v16 }
0x1cc0   :  { %6738 = vmatmul.mubr.msk.f32.vlgmr.msra.gmra.mxu1 %vm229_vm5, %v3558_v36 }
0x1cc1   :  { %6744 = vmatprep.mubr.msk.f32.mxu1 %vm7144_vm0, %v7143_v0  ;;  %6741 = vmatpush3.msra.mxu1 %v3682_v8 }
0x1cc2   :  { %6742 = vmatprep.subr.mxu1 %v7143_v0 }
0x1cc3   :  { %6743 = vmatpush3.msra.mxu1 %v3680_v42 }
0x1cc4   :  { %6747 = vmatprep.subr.mxu1 %v7143_v0 }
0x1d80   :  { %v3636_v46 = vpop.f32.mrf.mxu1 }
0x1d81   :  { %v3640_v17 = vsel %vm229_vm5, %v3636_v46, 0.0 }
0x1d82   :  { %v3641_v49 = vrot.slane %v3640_v17, 4  ;;  %v6739_v50 = vpop.f32.mrf.mxu1 }
0x1d84   :  { %v3642_v53 = vadd.f32 %v3641_v49, %v3640_v17 }
0x1d86   :  { %v3643_v62 = vrot.slane %v3642_v53, 2 }
0x1d88   :  { %v3644_v2 = vadd.f32 %v3643_v62, %v3642_v53 }
0x1d8a   :  { %v3645_v47 = vrot.slane %v3644_v2, 1 }
0x1d8c   :  { %v3646_v63 = vadd.f32 %v3645_v47, %v3644_v2 }
0x1d8e   :  { %v3647_v14 = vmul.f32 0.125, %v3646_v63 }
0x1d90   :  { %v3648_v1 = vsub.f32 %v3636_v46, %v3647_v14 }
0x1d92   :  { %v3649_v12 = vmul.f32 %v3648_v1, %v3648_v1 }
0x1d94   :  { %v3650_v13 = vsel %vm229_vm5, %v3649_v12, 0.0 }
0x1d95   :  { %v3651_v38 = vrot.slane %v3650_v13, 4 }
0x1d97   :  { %v3652_v21 = vadd.f32 %v3651_v38, %v3650_v13 }
0x1d99   :  { %v3653_v3 = vrot.slane %v3652_v21, 2 }
0x1d9b   :  { %v3654_v51 = vadd.f32 %v3653_v3, %v3652_v21 }
0x1d9d   :  { %v3655_v9 = vrot.slane %v3654_v51, 1 }
0x1d9f   :  { %v3656_v41 = vadd.f32 %v3655_v9, %v3654_v51 }
0x1da1   :  { %v3657_v56 = vmul.f32 0.125, %v3656_v41  ;;  %v3920_v41 = vpop.permute.xlu0 %3919 }
0x1da3   :  { %v3658_v4 = vadd.f32 1e-05, %v3657_v56  ;;  %v3929_v56 = vpop.permute.xlu1 %3928 }
0x1da5   :  { %7033 = vrsqrt.f32 %v3658_v4  ;;  %v3938_v4 = vpop.permute.xlu0 %3937 }
0x1da6   :  { %6767 = vmatpush3.msra.mxu0 %v3938_v4 }
0x1da7   :  { %6768 = vmatprep.subr.mxu0 %v7143_v0 }
0x1db2   :  { %v7034_v55 = vpop.eup %7033 }
0x1db3   :  { %v3663_v10 = vmul.f32 %v7034_v55, %v3661_v6  ;;  %v3936_v55 = vpop.permute.xlu1 %3935 }
0x1db4   :  { %6769 = vmatpush3.msra.mxu0 %v3936_v55 }
0x1db5   :  { %v3667_v23 = vrot.slane %v3663_v10, %v7281_v43  ;;  %6773 = vmatprep.subr.mxu0 %v7143_v0 }
0x1db7   :  { %v3668_v58 = vmul.f32 %v3667_v23, %v3648_v1  ;;  %v4044_v55 = vpop.permute.xlu1 %4043 }
0x1db9   :  { %v3673_v15 = vadd.f32 %v3671_v37, %v3668_v58 }
0x1dbb   :  { %vm3674_vm8 = vcmp.gt.f32.partialorder %v3673_v15, 0.0  ;;  %v3675_v19 = vmul.f32 0.01, %v3673_v15 }
0x1dbd   :  { %v3676_v59 = vsel %vm3674_vm8, %v3673_v15, %v3675_v19 }
0x1dbe   :  { %6745 = vmatmul.mubr.msk.f32.vlgmr.msra.gmra.mxu1 %vm229_vm5, %v3676_v59 }
0x1dbf   :  { %6763 = vmatprep.mubr.msk.f32.mxu1 %vm7144_vm0, %v7143_v0  ;;  %6748 = vmatpush3.msra.mxu1 %v3817_v20 }
0x1dc0   :  { %6749 = vmatprep.subr.mxu1 %v7143_v0 }
0x1dc1   :  { %6750 = vmatpush3.msra.mxu1 %v3815_v25 }
0x1dc2   :  { %6751 = vmatprep.subr.mxu1 %v7143_v0 }
0x1dc3   :  { %6752 = vmatpush3.msra.mxu1 %v3813_v22 }
0x1dc4   :  { %6753 = vmatprep.subr.mxu1 %v7143_v0 }
0x1dc5   :  { %6754 = vmatpush3.msra.mxu1 %v3811_v26 }
0x1dc6   :  { %6755 = vmatprep.subr.mxu1 %v7143_v0 }
0x1dc7   :  { %6756 = vmatpush3.msra.mxu1 %v3809_v27 }
0x1dc8   :  { %6757 = vmatprep.subr.mxu1 %v7143_v0 }
0x1dc9   :  { %6758 = vmatpush3.msra.mxu1 %v3807_v28 }
0x1dca   :  { %6759 = vmatprep.subr.mxu1 %v7143_v0 }
0x1dcb   :  { %6760 = vmatpush3.msra.mxu1 %v3805_v29 }
0x1dcc   :  { %6761 = vmatprep.subr.mxu1 %v7143_v0 }
0x1dcd   :  { %6762 = vmatpush3.msra.mxu1 %v3803_v30 }
0x1dce   :  { %6799 = vmatprep.subr.mxu1 %v7143_v0 }
0x1e7e   :  { %v3754_v32 = vpop.f32.mrf.mxu1 }
0x1e7f   :  { %v3758_v33 = vsel %vm155_vm4, %v3754_v32, 0.0 }
0x1e80   :  { %v3759_v34 = vrot.slane %v3758_v33, 4  ;;  %v6746_v35 = vpop.f32.mrf.mxu1 }
0x1e82   :  { %v3760_v16 = vadd.f32 %v3759_v34, %v3758_v33 }
0x1e84   :  { %v3761_v36 = vrot.slane %v3760_v16, 2 }
0x1e86   :  { %v3762_v37 = vadd.f32 %v3761_v36, %v3760_v16 }
0x1e88   :  { %v3763_v6 = vrot.slane %v3762_v37, 1 }
0x1e8a   :  { %v3764_v8 = vadd.f32 %v3763_v6, %v3762_v37 }
0x1e8c   :  { %v3765_v42 = vmul.f32 0.125, %v3764_v8 }
0x1e8e   :  { %v3766_v45 = vsub.f32 %v3754_v32, %v3765_v42 }
0x1e90   :  { %v3767_v46 = vmul.f32 %v3766_v45, %v3766_v45 }
0x1e92   :  { %v3768_v17 = vsel %vm155_vm4, %v3767_v46, 0.0  ;;  %v4051_v46 = vld [vmem:[#allocation4 + $0x68] sm:$0xff] }
0x1e93   :  { %v3769_v49 = vrot.slane %v3768_v17, 4  ;;  %4412 = vrot.lane.b32.xlu0 %v4051_v46, %s7142_s16 }
0x1e95   :  { %v3770_v50 = vadd.f32 %v3769_v49, %v3768_v17  ;;  %v4050_v17 = vld [vmem:[#allocation4 + $0x28] sm:$0xff] }
0x1e96   :  { %4410 = vrot.lane.b32.xlu1 %v4050_v17, %s7142_s16 }
0x1e97   :  { %v3771_v53 = vrot.slane %v3770_v50, 2  ;;  %4547 = vrot.lane.b32.xlu0 %v7839_v7, %s7142_s16 }
0x1e99   :  { %v3772_v62 = vadd.f32 %v3771_v53, %v3770_v50 }
0x1e9b   :  { %v3773_v2 = vrot.slane %v3772_v62, 1  ;;  %4545 = vrot.lane.b32.xlu0 %v7845_v48, %s7142_s16 }
0x1e9d   :  { %v3774_v47 = vadd.f32 %v3773_v2, %v3772_v62 }
0x1e9f   :  { %v3775_v63 = vmul.f32 0.125, %v3774_v47  ;;  %4541 = vrot.lane.b32.xlu0 %v7854_v39, %s7142_s16 }
0x1ea1   :  { %v3776_v14 = vadd.f32 1e-05, %v3775_v63 }
0x1ea3   :  { %7035 = vrsqrt.f32 %v3776_v14  ;;  %4539 = vrot.lane.b32.xlu0 %v7863_v40, %s7142_s16 }
0x1ea7   :  { %4535 = vrot.lane.b32.xlu0 %v7875_v5, %s7142_s16 }
0x1eab   :  { %4650 = vrot.lane.b32.xlu0 %v7904_v60, %s7142_s16 }
0x1eaf   :  { %4668 = vrot.lane.b32.xlu0 %v7909_v11, %s7142_s16 }
0x1eb0   :  { %v7036_v1 = vpop.eup %7035 }
0x1eb1   :  { %v3786_v12 = vmul.f32 %v7036_v1, %v3784_v24 }
0x1eb3   :  { %v3790_v13 = vrot.slane %v3786_v12, %v7281_v43  ;;  %4765 = vrot.lane.b32.xlu0 %v7934_v31, %s7142_s16 }
0x1eb5   :  { %v3791_v38 = vmul.f32 %v3790_v13, %v3766_v45 }
0x1eb7   :  { %v3796_v21 = vadd.f32 %v3794_v54, %v3791_v38  ;;  %4905 = vrot.lane.b32.xlu0 %v7839_v7, %s7148_s15 }
0x1eb9   :  { %v3797_v3 = vadd.f32 %v3796_v21, %v8005_v57 }
0x1ebb   :  { %vm3798_vm9 = vcmp.gt.f32.partialorder %v3797_v3, 0.0  ;;  %v3799_v51 = vmul.f32 0.01, %v3797_v3  ;;  %4901 = vrot.lane.b32.xlu0 %v7851_v18, %s7148_s15 }
0x1ebd   :  { %v8068_v9 = vsel %vm3798_vm9, %v3797_v3, %v3799_v51  ;;  %v4035_v51 = vpop.permute.xlu0 %4034 }
0x1ebe   :  { %6764 = vmatmul.mubr.msk.f32.vlgmr.msra.gmra.mxu1 %vm155_vm4, %v8068_v9 }
0x1ebf   :  { %6803 = vmatprep.mubr.msk.f32.mxu1 %vm7144_vm0, %v7143_v0  ;;  %4897 = vrot.lane.b32.xlu0 %v7863_v40, %s7148_s15 }
0x1ec3   :  { %4893 = vrot.lane.b32.xlu0 %v7875_v5, %s7148_s15 }
0x1ec7   :  { %5008 = vrot.lane.b32.xlu0 %v7904_v60, %s7148_s15 }
0x1ecb   :  { %5026 = vrot.lane.b32.xlu0 %v7909_v11, %s7148_s15 }
0x1ecf   :  { %5123 = vrot.lane.b32.xlu0 %v7934_v31, %s7148_s15 }
0x1f7e   :  { %v3895_v57 = vpop.f32.mrf.mxu1 }
0x1f7f   :  { %v3899_v10 = vsel %vm229_vm5, %v3895_v57, 0.0 }
0x1f80   :  { %v3900_v23 = vrot.slane %v3899_v10, 4  ;;  %v6765_v58 = vpop.f32.mrf.mxu1 }
0x1f82   :  { %v3901_v15 = vadd.f32 %v3900_v23, %v3899_v10 }
0x1f84   :  { %v3902_v19 = vrot.slane %v3901_v15, 2 }
0x1f86   :  { %v3903_v59 = vadd.f32 %v3902_v19, %v3901_v15  ;;  %v4175_v15 = vpop.permute.xlu0 %4174  ;;  %v4173_v19 = vpop.permute.xlu1 %4172 }
0x1f88   :  { %v3904_v20 = vrot.slane %v3903_v59, 1 }
0x1f8a   :  { %v3905_v24 = vadd.f32 %v3904_v20, %v3903_v59  ;;  %v4171_v59 = vpop.permute.xlu0 %4170  ;;  %v4169_v20 = vpop.permute.xlu1 %4168 }
0x1f8c   :  { %v3906_v25 = vmul.f32 0.125, %v3905_v24 }
0x1f8e   :  { %v3907_v22 = vsub.f32 %v3895_v57, %v3906_v25  ;;  %v4167_v24 = vpop.permute.xlu0 %4166  ;;  %v4165_v25 = vpop.permute.xlu1 %4164 }
0x1f90   :  { %v3908_v26 = vmul.f32 %v3907_v22, %v3907_v22 }
0x1f92   :  { %v3909_v54 = vsel %vm229_vm5, %v3908_v26, 0.0  ;;  %v4161_v26 = vpop.permute.xlu1 %4160 }
0x1f93   :  { %v3910_v27 = vrot.slane %v3909_v54, 4 }
0x1f95   :  { %v3911_v28 = vadd.f32 %v3910_v27, %v3909_v54 }
0x1f97   :  { %v3912_v29 = vrot.slane %v3911_v28, 2 }
0x1f99   :  { %v3913_v30 = vadd.f32 %v3912_v29, %v3911_v28 }
0x1f9b   :  { %v3914_v32 = vrot.slane %v3913_v30, 1 }
0x1f9d   :  { %v3915_v33 = vadd.f32 %v3914_v32, %v3913_v30 }
0x1f9f   :  { %v3916_v34 = vmul.f32 0.125, %v3915_v33 }
0x1fa1   :  { %v3917_v35 = vadd.f32 1e-05, %v3916_v34 }
0x1fa3   :  { %7037 = vrsqrt.f32 %v3917_v35 }
0x1fb0   :  { %v7038_v16 = vpop.eup %7037 }
0x1fb1   :  { %v3922_v36 = vmul.f32 %v7038_v16, %v3920_v41 }
0x1fb3   :  { %v3926_v37 = vrot.slane %v3922_v36, %v7281_v43 }
0x1fb5   :  { %v3927_v6 = vmul.f32 %v3926_v37, %v3907_v22  ;;  %v4163_v22 = vpop.permute.xlu0 %4162 }
0x1fb7   :  { %v3931_v8 = vadd.f32 %v3929_v56, %v3927_v6 }
0x1fb9   :  { %vm3932_vm10 = vcmp.gt.f32.partialorder %v3931_v8, 0.0  ;;  %v3933_v42 = vmul.f32 0.01, %v3931_v8 }
0x1fbb   :  { %v3934_v45 = vsel %vm3932_vm10, %v3931_v8, %v3933_v42 }
0x1fbc   :  { %6771 = vmatmul.mubr.msk.f32.vlgmr.msra.gmra.mxu0 %vm229_vm5, %v3934_v45 }
0x1fbd   :  { %6777 = vmatprep.mubr.msk.f32.mxu0 %vm7144_vm0, %v7143_v0  ;;  %6774 = vmatpush3.msra.mxu0 %v4051_v46 }
0x1fbe   :  { %6775 = vmatprep.subr.mxu0 %v7143_v0 }
0x1fbf   :  { %6776 = vmatpush3.msra.mxu0 %v4050_v17 }
0x1fc0   :  { %6780 = vmatprep.subr.mxu0 %v7143_v0 }
0x207c   :  { %v4010_v48 = vpop.f32.mrf.mxu0 }
0x207d   :  { %v4014_v7 = vsel %vm229_vm5, %v4010_v48, 0.0 }
0x207e   :  { %v4015_v39 = vrot.slane %v4014_v7, 4  ;;  %v6772_v18 = vpop.f32.mrf.mxu0 }
0x207f   :  { %v3801_v18 = vld [vmem:[%s8466_s6 + $0xa] sm:$0x3] }
0x2080   :  { %v4016_v49 = vadd.f32 %v4015_v39, %v4014_v7 }
0x2082   :  { %v4017_v50 = vrot.slane %v4016_v49, 2 }
0x2084   :  { %v4018_v40 = vadd.f32 %v4017_v50, %v4016_v49 }
0x2086   :  { %v4019_v53 = vrot.slane %v4018_v40, 1 }
0x2088   :  { %v4020_v62 = vadd.f32 %v4019_v53, %v4018_v40  ;;  %v4154_v53 = vrot.slane %v3801_v18, %v7284_v44 }
0x208a   :  { %v4021_v5 = vmul.f32 0.125, %v4020_v62 }
0x208c   :  { %v4022_v2 = vsub.f32 %v4010_v48, %v4021_v5 }
0x208e   :  { %v4023_v47 = vmul.f32 %v4022_v2, %v4022_v2 }
0x2090   :  { %v4024_v63 = vsel %vm229_vm5, %v4023_v47, 0.0 }
0x2091   :  { %v4025_v14 = vrot.slane %v4024_v63, 4 }
0x2093   :  { %v4026_v11 = vadd.f32 %v4025_v14, %v4024_v63  ;;  %v4278_v14 = vpop.permute.xlu0 %4277 }
0x2095   :  { %v4027_v1 = vrot.slane %v4026_v11, 2 }
0x2097   :  { %v4028_v12 = vadd.f32 %v4027_v1, %v4026_v11  ;;  %v4287_v11 = vpop.permute.xlu1 %4286  ;;  %v4296_v1 = vpop.permute.xlu0 %4295 }
0x2098   :  { %6800 = vmatpush3.msra.mxu1 %v4296_v1 }
0x2099   :  { %v4029_v13 = vrot.slane %v4028_v12, 1  ;;  %6801 = vmatprep.subr.mxu1 %v7143_v0 }
0x209b   :  { %v4030_v38 = vadd.f32 %v4029_v13, %v4028_v12  ;;  %v4294_v12 = vpop.permute.xlu1 %4293 }
0x209c   :  { %6802 = vmatpush3.msra.mxu1 %v4294_v12 }
0x209d   :  { %v4031_v21 = vmul.f32 0.125, %v4030_v38  ;;  %6806 = vmatprep.subr.mxu1 %v7143_v0 }
0x209f   :  { %v4032_v3 = vadd.f32 1e-05, %v4031_v21 }
0x20a1   :  { %7039 = vrsqrt.f32 %v4032_v3 }
0x20ae   :  { %v7040_v41 = vpop.eup %7039 }
0x20af   :  { %v4037_v56 = vmul.f32 %v7040_v41, %v4035_v51 }
0x20b1   :  { %v4041_v4 = vrot.slane %v4037_v56, %v7281_v43 }
0x20b3   :  { %v4042_v57 = vmul.f32 %v4041_v4, %v4022_v2 }
0x20b5   :  { %v4046_v10 = vadd.f32 %v4044_v55, %v4042_v57 }
0x20b7   :  { %vm4047_vm11 = vcmp.gt.f32.partialorder %v4046_v10, 0.0  ;;  %v4048_v23 = vmul.f32 0.01, %v4046_v10 }
0x20b9   :  { %v4049_v58 = vsel %vm4047_vm11, %v4046_v10, %v4048_v23 }
0x20ba   :  { %6778 = vmatmul.mubr.msk.f32.vlgmr.msra.gmra.mxu0 %vm229_vm5, %v4049_v58 }
0x20bb   :  { %6796 = vmatprep.mubr.msk.f32.mxu0 %vm7144_vm0, %v7143_v0  ;;  %6781 = vmatpush3.msra.mxu0 %v4175_v15 }
0x20bc   :  { %6782 = vmatprep.subr.mxu0 %v7143_v0 }
0x20bd   :  { %6783 = vmatpush3.msra.mxu0 %v4173_v19 }
0x20be   :  { %6784 = vmatprep.subr.mxu0 %v7143_v0 }
0x20bf   :  { %6785 = vmatpush3.msra.mxu0 %v4171_v59 }
0x20c0   :  { %6786 = vmatprep.subr.mxu0 %v7143_v0 }
0x20c1   :  { %6787 = vmatpush3.msra.mxu0 %v4169_v20 }
0x20c2   :  { %6788 = vmatprep.subr.mxu0 %v7143_v0 }
0x20c3   :  { %6789 = vmatpush3.msra.mxu0 %v4167_v24 }
0x20c4   :  { %6790 = vmatprep.subr.mxu0 %v7143_v0 }
0x20c5   :  { %6791 = vmatpush3.msra.mxu0 %v4165_v25 }
0x20c6   :  { %6792 = vmatprep.subr.mxu0 %v7143_v0 }
0x20c7   :  { %6793 = vmatpush3.msra.mxu0 %v4163_v22 }
0x20c8   :  { %6794 = vmatprep.subr.mxu0 %v7143_v0 }
0x20c9   :  { %6795 = vmatpush3.msra.mxu0 %v4161_v26 }
0x20ca   :  { %6832 = vmatprep.subr.mxu0 %v7143_v0 }
0x217a   :  { %v4121_v54 = vpop.f32.mrf.mxu0 }
0x217b   :  { %v4125_v27 = vsel %vm155_vm4, %v4121_v54, 0.0 }
0x217c   :  { %v4126_v28 = vrot.slane %v4125_v27, 4  ;;  %v6779_v29 = vpop.f32.mrf.mxu0 }
0x217e   :  { %v4127_v30 = vadd.f32 %v4126_v28, %v4125_v27 }
0x2180   :  { %v4128_v32 = vrot.slane %v4127_v30, 2 }
0x2182   :  { %v4129_v33 = vadd.f32 %v4128_v32, %v4127_v30 }
0x2184   :  { %v4130_v34 = vrot.slane %v4129_v33, 1 }
0x2186   :  { %v4131_v35 = vadd.f32 %v4130_v34, %v4129_v33  ;;  %v4393_v33 = vpop.permute.xlu0 %4392  ;;  %v4402_v34 = vpop.permute.xlu1 %4401 }
0x2188   :  { %v4132_v16 = vmul.f32 0.125, %v4131_v35 }
0x218a   :  { %v4133_v36 = vsub.f32 %v4121_v54, %v4132_v16  ;;  %v4413_v35 = vpop.permute.xlu0 %4412  ;;  %v4411_v16 = vpop.permute.xlu1 %4410 }
0x218c   :  { %v4134_v37 = vmul.f32 %v4133_v36, %v4133_v36 }
0x218e   :  { %v4135_v6 = vsel %vm155_vm4, %v4134_v37, 0.0  ;;  %v8156_v37 = vld [vmem:[#allocation2 + $0x58] sm:$0xff] }
0x218f   :  { %v4136_v8 = vrot.slane %v4135_v6, 4 }
0x2191   :  { %v4137_v42 = vadd.f32 %v4136_v8, %v4135_v6  ;;  %v8161_v6 = vld [vmem:[#allocation2 + $0x28] sm:$0xff] }
0x2192   :  { %v8165_v8 = vld [vmem:[#allocation2 + $0x8] sm:$0xff] }
0x2193   :  { %v4138_v45 = vrot.slane %v4137_v42, 2 }
0x2195   :  { %v4139_v46 = vadd.f32 %v4138_v45, %v4137_v42  ;;  %v8174_v42 = vld [vmem:[%s8463_s3 + $0x8] sm:$0xff] }
0x2196   :  { %v8180_v45 = vld [vmem:[#allocation2 + $0x68] sm:$0xff] }
0x2197   :  { %v4140_v17 = vrot.slane %v4139_v46, 1 }
0x2199   :  { %v4141_v48 = vadd.f32 %v4140_v17, %v4139_v46  ;;  %v8184_v46 = vld [vmem:[#allocation2 + $0x48] sm:$0xff] }
0x219b   :  { %v4142_v7 = vmul.f32 0.125, %v4141_v48 }
0x219d   :  { %v4143_v39 = vadd.f32 1e-05, %v4142_v7 }
0x219f   :  { %7041 = vrsqrt.f32 %v4143_v39 }
0x21ac   :  { %v7042_v49 = vpop.eup %7041 }
0x21ad   :  { %v4145_v50 = vmul.f32 %v7042_v49, %v3801_v18 }
0x21af   :  { %v4149_v40 = vrot.slane %v4145_v50, %v7281_v43 }
0x21b1   :  { %v4150_v62 = vmul.f32 %v4149_v40, %v4133_v36  ;;  %v4513_v36 = vrot.slane %v3801_v18, %v7281_v43 }
0x21b3   :  { %v4155_v5 = vadd.f32 %v4154_v53, %v4150_v62  ;;  %4514 = vrot.lane.b32.xlu1 %v4513_v36, %s7142_s16 }
0x21b5   :  { %v4156_v2 = vadd.f32 %v4155_v5, %v8068_v9 }
0x21b7   :  { %vm4157_vm12 = vcmp.gt.f32.partialorder %v4156_v2, 0.0  ;;  %v4158_v47 = vmul.f32 0.01, %v4156_v2  ;;  %4543 = vrot.lane.b32.xlu1 %v8156_v37, %s7142_s16 }
0x21b9   :  { %v8138_v63 = vsel %vm4157_vm12, %v4156_v2, %v4158_v47 }
0x21ba   :  { %6797 = vmatmul.mubr.msk.f32.vlgmr.msra.gmra.mxu0 %vm155_vm4, %v8138_v63 }
0x21bb   :  { %6836 = vmatprep.mubr.msk.f32.mxu0 %vm7144_vm0, %v7143_v0  ;;  %4524 = vrot.lane.b32.xlu1 %v4154_v53, %s7142_s16 }
0x21bf   :  { %4537 = vrot.lane.b32.xlu1 %v8161_v6, %s7142_s16 }
0x21c3   :  { %4533 = vrot.lane.b32.xlu1 %v8165_v8, %s7142_s16 }
0x21c7   :  { %4659 = vrot.lane.b32.xlu1 %v7901_v52, %s7142_s16 }
0x21cb   :  { %4666 = vrot.lane.b32.xlu1 %v8174_v42, %s7142_s16 }
0x21cf   :  { %4774 = vrot.lane.b32.xlu1 %v7928_v61, %s7142_s16 }
0x21d3   :  { %4903 = vrot.lane.b32.xlu1 %v8180_v45, %s7148_s15 }
0x21d7   :  { %4899 = vrot.lane.b32.xlu1 %v8184_v46, %s7148_s15 }
0x21db   :  { %4895 = vrot.lane.b32.xlu1 %v8161_v6, %s7148_s15 }
0x21df   :  { %4891 = vrot.lane.b32.xlu1 %v8165_v8, %s7148_s15 }
0x21e3   :  { %5017 = vrot.lane.b32.xlu1 %v7901_v52, %s7148_s15 }
0x21e7   :  { %5024 = vrot.lane.b32.xlu1 %v8174_v42, %s7148_s15 }
0x21eb   :  { %5132 = vrot.lane.b32.xlu1 %v7928_v61, %s7148_s15 }
0x227a   :  { %v4253_v9 = vpop.f32.mrf.mxu0 }
0x227b   :  { %v4257_v13 = vsel %vm229_vm5, %v4253_v9, 0.0 }
0x227c   :  { %v4258_v38 = vrot.slane %v4257_v13, 4  ;;  %v6798_v21 = vpop.f32.mrf.mxu0 }
0x227e   :  { %v4259_v3 = vadd.f32 %v4258_v38, %v4257_v13 }
0x2280   :  { %v4260_v51 = vrot.slane %v4259_v3, 2 }
0x2282   :  { %v4261_v41 = vadd.f32 %v4260_v51, %v4259_v3 }
0x2284   :  { %v4262_v56 = vrot.slane %v4261_v41, 1 }
0x2286   :  { %v4263_v4 = vadd.f32 %v4262_v56, %v4261_v41 }
0x2288   :  { %v4264_v55 = vmul.f32 0.125, %v4263_v4 }
0x228a   :  { %v4265_v57 = vsub.f32 %v4253_v9, %v4264_v55 }
0x228c   :  { %v4266_v10 = vmul.f32 %v4265_v57, %v4265_v57 }
0x228e   :  { %v4267_v23 = vsel %vm229_vm5, %v4266_v10, 0.0  ;;  %v4548_v10 = vpop.permute.xlu0 %4547 }
0x228f   :  { %v4268_v58 = vrot.slane %v4267_v23, 4 }
0x2291   :  { %v4269_v15 = vadd.f32 %v4268_v58, %v4267_v23  ;;  %v4515_v23 = vpop.permute.xlu1 %4514 }
0x2292   :  { %v4546_v58 = vpop.permute.xlu0 %4545 }
0x2293   :  { %v4270_v19 = vrot.slane %v4269_v15, 2 }
0x2295   :  { %v4271_v59 = vadd.f32 %v4270_v19, %v4269_v15  ;;  %v4544_v15 = vpop.permute.xlu1 %4543 }
0x2296   :  { %v4542_v19 = vpop.permute.xlu0 %4541 }
0x2297   :  { %v4272_v20 = vrot.slane %v4271_v59, 1 }
0x2299   :  { %v4273_v24 = vadd.f32 %v4272_v20, %v4271_v59  ;;  %v4525_v59 = vpop.permute.xlu1 %4524 }
0x229a   :  { %v4540_v20 = vpop.permute.xlu0 %4539 }
0x229b   :  { %v4274_v25 = vmul.f32 0.125, %v4273_v24 }
0x229d   :  { %v4275_v22 = vadd.f32 1e-05, %v4274_v25  ;;  %v4538_v24 = vpop.permute.xlu1 %4537 }
0x229e   :  { %v4536_v25 = vpop.permute.xlu0 %4535 }
0x229f   :  { %7043 = vrsqrt.f32 %v4275_v22 }
0x22a1   :  { %v4534_v22 = vpop.permute.xlu1 %4533 }
0x22ac   :  { %v7044_v26 = vpop.eup %7043 }
0x22ad   :  { %v4280_v54 = vmul.f32 %v7044_v26, %v4278_v14 }
0x22af   :  { %v4284_v27 = vrot.slane %v4280_v54, %v7281_v43 }
0x22b1   :  { %v4285_v28 = vmul.f32 %v4284_v27, %v4265_v57 }
0x22b3   :  { %v4289_v29 = vadd.f32 %v4287_v11, %v4285_v28 }
0x22b5   :  { %vm4290_vm13 = vcmp.gt.f32.partialorder %v4289_v29, 0.0  ;;  %v4291_v30 = vmul.f32 0.01, %v4289_v29 }
0x22b7   :  { %v4292_v32 = vsel %vm4290_vm13, %v4289_v29, %v4291_v30 }
0x22b8   :  { %6804 = vmatmul.mubr.msk.f32.vlgmr.msra.gmra.mxu1 %vm229_vm5, %v4292_v32 }
0x22b9   :  { %6810 = vmatprep.mubr.msk.f32.mxu1 %vm7144_vm0, %v7143_v0  ;;  %6807 = vmatpush3.msra.mxu1 %v4413_v35 }
0x22ba   :  { %6808 = vmatprep.subr.mxu1 %v7143_v0 }
0x22bb   :  { %6809 = vmatpush3.msra.mxu1 %v4411_v16 }
0x22bc   :  { %6813 = vmatprep.subr.mxu1 %v7143_v0 }
0x2378   :  { %v4368_v17 = vpop.f32.mrf.mxu1 }
0x2379   :  { %v4372_v48 = vsel %vm229_vm5, %v4368_v17, 0.0 }
0x237a   :  { %v4373_v7 = vrot.slane %v4372_v48, 4  ;;  %v6805_v39 = vpop.f32.mrf.mxu1 }
0x237c   :  { %v4374_v18 = vadd.f32 %v4373_v7, %v4372_v48 }
0x237e   :  { %v4375_v49 = vrot.slane %v4374_v18, 2 }
0x2380   :  { %v4376_v50 = vadd.f32 %v4375_v49, %v4374_v18 }
0x2382   :  { %v4377_v40 = vrot.slane %v4376_v50, 1 }
0x2384   :  { %v4378_v53 = vadd.f32 %v4377_v40, %v4376_v50 }
0x2386   :  { %v4379_v62 = vmul.f32 0.125, %v4378_v53 }
0x2388   :  { %v4380_v5 = vsub.f32 %v4368_v17, %v4379_v62 }
0x238a   :  { %v4381_v2 = vmul.f32 %v4380_v5, %v4380_v5 }
0x238c   :  { %v4382_v47 = vsel %vm229_vm5, %v4381_v2, 0.0 }
0x238d   :  { %v4383_v14 = vrot.slane %v4382_v47, 4 }
0x238f   :  { %v4384_v11 = vadd.f32 %v4383_v14, %v4382_v47 }
0x2391   :  { %v4385_v1 = vrot.slane %v4384_v11, 2 }
0x2393   :  { %v4386_v12 = vadd.f32 %v4385_v1, %v4384_v11 }
0x2395   :  { %v4387_v9 = vrot.slane %v4386_v12, 1 }
0x2397   :  { %v4388_v13 = vadd.f32 %v4387_v9, %v4386_v12  ;;  %v4651_v9 = vpop.permute.xlu0 %4650 }
0x2399   :  { %v4389_v38 = vmul.f32 0.125, %v4388_v13  ;;  %v4660_v13 = vpop.permute.xlu1 %4659 }
0x239b   :  { %v4390_v21 = vadd.f32 1e-05, %v4389_v38  ;;  %v4669_v38 = vpop.permute.xlu0 %4668 }
0x239c   :  { %6833 = vmatpush3.msra.mxu0 %v4669_v38 }
0x239d   :  { %7045 = vrsqrt.f32 %v4390_v21  ;;  %v4667_v21 = vpop.permute.xlu1 %4666  ;;  %6834 = vmatprep.subr.mxu0 %v7143_v0 }
0x239e   :  { %6835 = vmatpush3.msra.mxu0 %v4667_v21 }
0x239f   :  { %6839 = vmatprep.subr.mxu0 %v7143_v0 }
0x23aa   :  { %v7046_v3 = vpop.eup %7045 }
0x23ab   :  { %v4395_v51 = vmul.f32 %v7046_v3, %v4393_v33 }
0x23ad   :  { %v4399_v41 = vrot.slane %v4395_v51, %v7281_v43 }
0x23af   :  { %v4400_v56 = vmul.f32 %v4399_v41, %v4380_v5 }
0x23b1   :  { %v4404_v4 = vadd.f32 %v4402_v34, %v4400_v56 }
0x23b3   :  { %vm4405_vm14 = vcmp.gt.f32.partialorder %v4404_v4, 0.0  ;;  %v4406_v55 = vmul.f32 0.01, %v4404_v4 }
0x23b5   :  { %v4407_v57 = vsel %vm4405_vm14, %v4404_v4, %v4406_v55 }
0x23b6   :  { %6811 = vmatmul.mubr.msk.f32.vlgmr.msra.gmra.mxu1 %vm229_vm5, %v4407_v57 }
0x23b7   :  { %6829 = vmatprep.mubr.msk.f32.mxu1 %vm7144_vm0, %v7143_v0  ;;  %6814 = vmatpush3.msra.mxu1 %v4548_v10 }
0x23b8   :  { %6815 = vmatprep.subr.mxu1 %v7143_v0 }
0x23b9   :  { %6816 = vmatpush3.msra.mxu1 %v4546_v58 }
0x23ba   :  { %6817 = vmatprep.subr.mxu1 %v7143_v0 }
0x23bb   :  { %6818 = vmatpush3.msra.mxu1 %v4544_v15 }
0x23bc   :  { %6819 = vmatprep.subr.mxu1 %v7143_v0 }
0x23bd   :  { %6820 = vmatpush3.msra.mxu1 %v4542_v19 }
0x23be   :  { %6821 = vmatprep.subr.mxu1 %v7143_v0 }
0x23bf   :  { %6822 = vmatpush3.msra.mxu1 %v4540_v20 }
0x23c0   :  { %6823 = vmatprep.subr.mxu1 %v7143_v0 }
0x23c1   :  { %6824 = vmatpush3.msra.mxu1 %v4538_v24 }
0x23c2   :  { %6825 = vmatprep.subr.mxu1 %v7143_v0 }
0x23c3   :  { %6826 = vmatpush3.msra.mxu1 %v4536_v25 }
0x23c4   :  { %6827 = vmatprep.subr.mxu1 %v7143_v0 }
0x23c5   :  { %6828 = vmatpush3.msra.mxu1 %v4534_v22 }
0x23c6   :  { %6865 = vmatprep.subr.mxu1 %v7143_v0 }
0x2476   :  { %v4485_v26 = vpop.f32.mrf.mxu1 }
0x2477   :  { %v4489_v54 = vsel %vm155_vm4, %v4485_v26, 0.0 }
0x2478   :  { %v4490_v27 = vrot.slane %v4489_v54, 4  ;;  %v6812_v28 = vpop.f32.mrf.mxu1 }
0x247a   :  { %v4491_v29 = vadd.f32 %v4490_v27, %v4489_v54 }
0x247c   :  { %v4492_v30 = vrot.slane %v4491_v29, 2 }
0x247e   :  { %v4493_v32 = vadd.f32 %v4492_v30, %v4491_v29 }
0x2480   :  { %v4494_v33 = vrot.slane %v4493_v32, 1 }
0x2482   :  { %v4495_v34 = vadd.f32 %v4494_v33, %v4493_v32 }
0x2484   :  { %v4496_v35 = vmul.f32 0.125, %v4495_v34 }
0x2486   :  { %v4497_v16 = vsub.f32 %v4485_v26, %v4496_v35 }
0x2488   :  { %v4498_v36 = vmul.f32 %v4497_v16, %v4497_v16 }
0x248a   :  { %v4499_v17 = vsel %vm155_vm4, %v4498_v36, 0.0  ;;  %v4781_v36 = vld [vmem:[#allocation4 + $0x30] sm:$0xff] }
0x248b   :  { %v4500_v48 = vrot.slane %v4499_v17, 4  ;;  %5141 = vrot.lane.b32.xlu1 %v4781_v36, %s7142_s16 }
0x248d   :  { %v4501_v7 = vadd.f32 %v4500_v48, %v4499_v17  ;;  %v7089_v17 = vld [vmem:[#allocation2 + $0x78] sm:$0xff] }
0x248e   :  { %v7090_v48 = vld [vmem:[#allocation2 + $0x38] sm:$0xff] }
0x248f   :  { %v4502_v39 = vrot.slane %v4501_v7, 2 }
0x2491   :  { %v4503_v18 = vadd.f32 %v4502_v39, %v4501_v7  ;;  %v7091_v7 = vld [vmem:[#allocation2 + $0x18] sm:$0xff] }
0x2492   :  { %v7092_v39 = vld [vmem:[%s8463_s3 + $0x18] sm:$0xff] }
0x2493   :  { %v4504_v49 = vrot.slane %v4503_v18, 1 }
0x2495   :  { %v4505_v50 = vadd.f32 %v4504_v49, %v4503_v18 }
0x2497   :  { %v4506_v40 = vmul.f32 0.125, %v4505_v50 }
0x2499   :  { %v4507_v53 = vadd.f32 1e-05, %v4506_v40 }
0x249b   :  { %7047 = vrsqrt.f32 %v4507_v53 }
0x24a8   :  { %v7048_v62 = vpop.eup %7047 }
0x24a9   :  { %v4517_v5 = vmul.f32 %v7048_v62, %v4515_v23 }
0x24ab   :  { %v4521_v2 = vrot.slane %v4517_v5, %v7281_v43 }
0x24ad   :  { %v4522_v47 = vmul.f32 %v4521_v2, %v4497_v16  ;;  %v4782_v16 = vld [vmem:[#allocation4 + $0x70] sm:$0xff] }
0x24ae   :  { %5143 = vrot.lane.b32.xlu0 %v4782_v16, %s7142_s16 }
0x24af   :  { %v4527_v14 = vadd.f32 %v4525_v59, %v4522_v47 }
0x24b1   :  { %v4528_v11 = vadd.f32 %v4527_v14, %v8138_v63 }
0x24b2   :  { %5278 = vrot.lane.b32.xlu0 %v7089_v17, %s7149_s19 }
0x24b3   :  { %vm4529_vm15 = vcmp.gt.f32.partialorder %v4528_v11, 0.0  ;;  %v4530_v1 = vmul.f32 0.01, %v4528_v11 }
0x24b5   :  { %v8216_v12 = vsel %vm4529_vm15, %v4528_v11, %v4530_v1 }
0x24b6   :  { %6830 = vmatmul.mubr.msk.f32.vlgmr.msra.gmra.mxu1 %vm155_vm4, %v8216_v12  ;;  %5276 = vrot.lane.b32.xlu0 %v8180_v45, %s7149_s19 }
0x24b7   :  { %6869 = vmatprep.mubr.msk.f32.mxu1 %vm7144_vm0, %v7143_v0 }
0x24ba   :  { %5272 = vrot.lane.b32.xlu0 %v8184_v46, %s7149_s19 }
0x24be   :  { %5270 = vrot.lane.b32.xlu0 %v7090_v48, %s7149_s19 }
0x24c2   :  { %5266 = vrot.lane.b32.xlu0 %v7091_v7, %s7149_s19 }
0x24c6   :  { %5381 = vrot.lane.b32.xlu0 %v7904_v60, %s7149_s19 }
0x24ca   :  { %5399 = vrot.lane.b32.xlu0 %v7092_v39, %s7149_s19 }
0x24ce   :  { %5496 = vrot.lane.b32.xlu0 %v7934_v31, %s7149_s19 }
0x24d2   :  { %5636 = vrot.lane.b32.xlu0 %v7089_v17, %s7139_s9 }
0x24d6   :  { %5632 = vrot.lane.b32.xlu0 %v8156_v37, %s7139_s9 }
0x24da   :  { %5628 = vrot.lane.b32.xlu0 %v7090_v48, %s7139_s9 }
0x24de   :  { %5624 = vrot.lane.b32.xlu0 %v7091_v7, %s7139_s9 }
0x24e2   :  { %5739 = vrot.lane.b32.xlu0 %v7904_v60, %s7139_s9 }
0x24e6   :  { %5757 = vrot.lane.b32.xlu0 %v7092_v39, %s7139_s9 }
0x24ea   :  { %5854 = vrot.lane.b32.xlu0 %v7934_v31, %s7139_s9 }
0x2576   :  { %v4626_v63 = vpop.f32.mrf.mxu1 }
0x2577   :  { %v4630_v3 = vsel %vm229_vm5, %v4626_v63, 0.0 }
0x2578   :  { %v4631_v51 = vrot.slane %v4630_v3, 4  ;;  %v6831_v41 = vpop.f32.mrf.mxu1 }
0x2579   :  { %v4766_v41 = vpop.permute.xlu0 %4765 }
0x257a   :  { %v4632_v56 = vadd.f32 %v4631_v51, %v4630_v3 }
0x257c   :  { %v4633_v4 = vrot.slane %v4632_v56, 2 }
0x257e   :  { %v4634_v55 = vadd.f32 %v4633_v4, %v4632_v56 }
0x2580   :  { %v4635_v57 = vrot.slane %v4634_v55, 1 }
0x2582   :  { %v4636_v10 = vadd.f32 %v4635_v57, %v4634_v55  ;;  %v4775_v57 = vpop.permute.xlu1 %4774 }
0x2584   :  { %v4637_v23 = vmul.f32 0.125, %v4636_v10 }
0x2586   :  { %v4638_v58 = vsub.f32 %v4626_v63, %v4637_v23 }
0x2588   :  { %v4639_v15 = vmul.f32 %v4638_v58, %v4638_v58 }
0x258a   :  { %v4640_v19 = vsel %vm229_vm5, %v4639_v15, 0.0 }
0x258b   :  { %v4641_v59 = vrot.slane %v4640_v19, 4 }
0x258d   :  { %v4642_v20 = vadd.f32 %v4641_v59, %v4640_v19  ;;  %v4906_v19 = vpop.permute.xlu0 %4905  ;;  %v4904_v59 = vpop.permute.xlu1 %4903 }
0x258f   :  { %v4643_v24 = vrot.slane %v4642_v20, 2 }
0x2591   :  { %v4644_v25 = vadd.f32 %v4643_v24, %v4642_v20  ;;  %v4902_v20 = vpop.permute.xlu0 %4901  ;;  %v4900_v24 = vpop.permute.xlu1 %4899 }
0x2593   :  { %v4645_v22 = vrot.slane %v4644_v25, 1 }
0x2595   :  { %v4646_v26 = vadd.f32 %v4645_v22, %v4644_v25  ;;  %v4898_v25 = vpop.permute.xlu0 %4897  ;;  %v4896_v22 = vpop.permute.xlu1 %4895 }
0x2597   :  { %v4647_v54 = vmul.f32 0.125, %v4646_v26 }
0x2599   :  { %v4648_v27 = vadd.f32 1e-05, %v4647_v54  ;;  %v4894_v26 = vpop.permute.xlu0 %4893  ;;  %v4892_v54 = vpop.permute.xlu1 %4891 }
0x259b   :  { %7049 = vrsqrt.f32 %v4648_v27 }
0x25a8   :  { %v7050_v28 = vpop.eup %7049 }
0x25a9   :  { %v4653_v29 = vmul.f32 %v7050_v28, %v4651_v9 }
0x25ab   :  { %v4657_v30 = vrot.slane %v4653_v29, %v7281_v43 }
0x25ad   :  { %v4658_v32 = vmul.f32 %v4657_v30, %v4638_v58 }
0x25af   :  { %v4662_v33 = vadd.f32 %v4660_v13, %v4658_v32 }
0x25b1   :  { %vm4663_vm1 = vcmp.gt.f32.partialorder %v4662_v33, 0.0  ;;  %v4664_v34 = vmul.f32 0.01, %v4662_v33 }
0x25b3   :  { %v4665_v35 = vsel %vm4663_vm1, %v4662_v33, %v4664_v34 }
0x25b4   :  { %6837 = vmatmul.mubr.msk.f32.vlgmr.msra.gmra.mxu0 %vm229_vm5, %v4665_v35 }
0x25b5   :  { %6843 = vmatprep.mubr.msk.f32.mxu0 %vm7144_vm0, %v7143_v0  ;;  %6840 = vmatpush3.msra.mxu0 %v4782_v16 }
0x25b6   :  { %6841 = vmatprep.subr.mxu0 %v7143_v0 }
0x25b7   :  { %6842 = vmatpush3.msra.mxu0 %v4781_v36 }
0x25b8   :  { %6846 = vmatprep.subr.mxu0 %v7143_v0 }
0x2674   :  { %v4741_v18 = vpop.f32.mrf.mxu0 }
0x2675   :  { %v4745_v49 = vsel %vm229_vm5, %v4741_v18, 0.0 }
0x2676   :  { %v4746_v50 = vrot.slane %v4745_v49, 4  ;;  %v6838_v40 = vpop.f32.mrf.mxu0 }
0x2678   :  { %v4747_v53 = vadd.f32 %v4746_v50, %v4745_v49 }
0x267a   :  { %v4748_v62 = vrot.slane %v4747_v53, 2 }
0x267c   :  { %v4749_v5 = vadd.f32 %v4748_v62, %v4747_v53 }
0x267e   :  { %v4750_v2 = vrot.slane %v4749_v5, 1 }
0x2680   :  { %v4751_v47 = vadd.f32 %v4750_v2, %v4749_v5  ;;  %v4532_v2 = vld [vmem:[%s8466_s6 + $0xc] sm:$0x3] }
0x2682   :  { %v4752_v14 = vmul.f32 0.125, %v4751_v47 }
0x2684   :  { %v4753_v11 = vsub.f32 %v4741_v18, %v4752_v14 }
0x2686   :  { %v4754_v1 = vmul.f32 %v4753_v11, %v4753_v11 }
0x2688   :  { %v4755_v60 = vsel %vm229_vm5, %v4754_v1, 0.0  ;;  %v4885_v1 = vrot.slane %v4532_v2, %v7284_v44 }
0x2689   :  { %v4756_v9 = vrot.slane %v4755_v60, 4 }
0x268b   :  { %v4757_v13 = vadd.f32 %v4756_v9, %v4755_v60 }
0x268d   :  { %v4758_v38 = vrot.slane %v4757_v13, 2 }
0x268f   :  { %v4759_v21 = vadd.f32 %v4758_v38, %v4757_v13 }
0x2691   :  { %v4760_v31 = vrot.slane %v4759_v21, 1 }
0x2693   :  { %v4761_v63 = vadd.f32 %v4760_v31, %v4759_v21  ;;  %v5009_v31 = vpop.permute.xlu0 %5008 }
0x2695   :  { %v4762_v3 = vmul.f32 0.125, %v4761_v63  ;;  %v5018_v63 = vpop.permute.xlu1 %5017 }
0x2697   :  { %v4763_v51 = vadd.f32 1e-05, %v4762_v3  ;;  %v5027_v3 = vpop.permute.xlu0 %5026 }
0x2698   :  { %6866 = vmatpush3.msra.mxu1 %v5027_v3 }
0x2699   :  { %7051 = vrsqrt.f32 %v4763_v51  ;;  %v5025_v51 = vpop.permute.xlu1 %5024  ;;  %6867 = vmatprep.subr.mxu1 %v7143_v0 }
0x269a   :  { %6868 = vmatpush3.msra.mxu1 %v5025_v51 }
0x269b   :  { %6872 = vmatprep.subr.mxu1 %v7143_v0 }
0x26a6   :  { %v7052_v56 = vpop.eup %7051 }
0x26a7   :  { %v4768_v4 = vmul.f32 %v7052_v56, %v4766_v41 }
0x26a9   :  { %v4772_v55 = vrot.slane %v4768_v4, %v7281_v43 }
0x26ab   :  { %v4773_v10 = vmul.f32 %v4772_v55, %v4753_v11 }
0x26ad   :  { %v4777_v23 = vadd.f32 %v4775_v57, %v4773_v10 }
0x26af   :  { %vm4778_vm2 = vcmp.gt.f32.partialorder %v4777_v23, 0.0  ;;  %v4779_v58 = vmul.f32 0.01, %v4777_v23 }
0x26b1   :  { %v4780_v15 = vsel %vm4778_vm2, %v4777_v23, %v4779_v58 }
0x26b2   :  { %6844 = vmatmul.mubr.msk.f32.vlgmr.msra.gmra.mxu0 %vm229_vm5, %v4780_v15 }
0x26b3   :  { %6862 = vmatprep.mubr.msk.f32.mxu0 %vm7144_vm0, %v7143_v0  ;;  %6847 = vmatpush3.msra.mxu0 %v4906_v19 }
0x26b4   :  { %6848 = vmatprep.subr.mxu0 %v7143_v0 }
0x26b5   :  { %6849 = vmatpush3.msra.mxu0 %v4904_v59 }
0x26b6   :  { %6850 = vmatprep.subr.mxu0 %v7143_v0 }
0x26b7   :  { %6851 = vmatpush3.msra.mxu0 %v4902_v20 }
0x26b8   :  { %6852 = vmatprep.subr.mxu0 %v7143_v0 }
0x26b9   :  { %6853 = vmatpush3.msra.mxu0 %v4900_v24 }
0x26ba   :  { %6854 = vmatprep.subr.mxu0 %v7143_v0 }
0x26bb   :  { %6855 = vmatpush3.msra.mxu0 %v4898_v25 }
0x26bc   :  { %6856 = vmatprep.subr.mxu0 %v7143_v0 }
0x26bd   :  { %6857 = vmatpush3.msra.mxu0 %v4896_v22 }
0x26be   :  { %6858 = vmatprep.subr.mxu0 %v7143_v0 }
0x26bf   :  { %6859 = vmatpush3.msra.mxu0 %v4894_v26 }
0x26c0   :  { %6860 = vmatprep.subr.mxu0 %v7143_v0 }
0x26c1   :  { %6861 = vmatpush3.msra.mxu0 %v4892_v54 }
0x26c2   :  { %6898 = vmatprep.subr.mxu0 %v7143_v0 }
0x2772   :  { %v4852_v27 = vpop.f32.mrf.mxu0 }
0x2773   :  { %v4856_v28 = vsel %vm155_vm4, %v4852_v27, 0.0 }
0x2774   :  { %v4857_v29 = vrot.slane %v4856_v28, 4  ;;  %v6845_v30 = vpop.f32.mrf.mxu0 }
0x2776   :  { %v4858_v32 = vadd.f32 %v4857_v29, %v4856_v28 }
0x2778   :  { %v4859_v33 = vrot.slane %v4858_v32, 2 }
0x277a   :  { %v4860_v34 = vadd.f32 %v4859_v33, %v4858_v32 }
0x277c   :  { %v4861_v35 = vrot.slane %v4860_v34, 1 }
0x277e   :  { %v4862_v16 = vadd.f32 %v4861_v35, %v4860_v34 }
0x2780   :  { %v4863_v36 = vmul.f32 0.125, %v4862_v16 }
0x2782   :  { %v4864_v17 = vsub.f32 %v4852_v27, %v4863_v36 }
0x2784   :  { %v4865_v48 = vmul.f32 %v4864_v17, %v4864_v17 }
0x2786   :  { %v4866_v7 = vsel %vm155_vm4, %v4865_v48, 0.0  ;;  %v5133_v48 = vpop.permute.xlu1 %5132 }
0x2787   :  { %v4867_v39 = vrot.slane %v4866_v7, 4 }
0x2789   :  { %v4868_v18 = vadd.f32 %v4867_v39, %v4866_v7 }
0x278a   :  { %v5142_v39 = vpop.permute.xlu1 %5141 }
0x278b   :  { %v4869_v49 = vrot.slane %v4868_v18, 2 }
0x278d   :  { %v4870_v50 = vadd.f32 %v4869_v49, %v4868_v18  ;;  %v5244_v18 = vrot.slane %v4532_v2, %v7281_v43 }
0x278f   :  { %v4871_v40 = vrot.slane %v4870_v50, 1  ;;  %5245 = vrot.lane.b32.xlu1 %v5244_v18, %s7142_s16 }
0x2791   :  { %v4872_v53 = vadd.f32 %v4871_v40, %v4870_v50 }
0x2793   :  { %v4873_v62 = vmul.f32 0.125, %v4872_v53  ;;  %5274 = vrot.lane.b32.xlu1 %v8156_v37, %s7149_s19 }
0x2795   :  { %v4874_v5 = vadd.f32 1e-05, %v4873_v62 }
0x2797   :  { %7053 = vrsqrt.f32 %v4874_v5  ;;  %5255 = vrot.lane.b32.xlu1 %v4885_v1, %s7142_s16 }
0x279b   :  { %5268 = vrot.lane.b32.xlu1 %v8161_v6, %s7149_s19 }
0x279f   :  { %5264 = vrot.lane.b32.xlu1 %v8165_v8, %s7149_s19 }
0x27a3   :  { %5390 = vrot.lane.b32.xlu1 %v7901_v52, %s7149_s19 }
0x27a4   :  { %v7054_v47 = vpop.eup %7053 }
0x27a5   :  { %v4876_v14 = vmul.f32 %v7054_v47, %v4532_v2 }
0x27a7   :  { %v4880_v11 = vrot.slane %v4876_v14, %v7281_v43  ;;  %5397 = vrot.lane.b32.xlu1 %v8174_v42, %s7149_s19 }
0x27a9   :  { %v4881_v60 = vmul.f32 %v4880_v11, %v4864_v17  ;;  %v5124_v17 = vpop.permute.xlu0 %5123 }
0x27ab   :  { %v4886_v9 = vadd.f32 %v4885_v1, %v4881_v60  ;;  %5505 = vrot.lane.b32.xlu1 %v7928_v61, %s7149_s19 }
0x27ad   :  { %v4887_v13 = vadd.f32 %v4886_v9, %v8216_v12  ;;  %v5144_v7 = vpop.permute.xlu0 %5143 }
0x27af   :  { %vm4888_vm3 = vcmp.gt.f32.partialorder %v4887_v13, 0.0  ;;  %v4889_v38 = vmul.f32 0.01, %v4887_v13  ;;  %5634 = vrot.lane.b32.xlu1 %v8180_v45, %s7139_s9 }
0x27b1   :  { %v8281_v21 = vsel %vm4888_vm3, %v4887_v13, %v4889_v38 }
0x27b2   :  { %6863 = vmatmul.mubr.msk.f32.vlgmr.msra.gmra.mxu0 %vm155_vm4, %v8281_v21 }
0x27b3   :  { %6902 = vmatprep.mubr.msk.f32.mxu0 %vm7144_vm0, %v7143_v0  ;;  %5630 = vrot.lane.b32.xlu1 %v8184_v46, %s7139_s9 }
0x27b7   :  { %5626 = vrot.lane.b32.xlu1 %v8161_v6, %s7139_s9 }
0x27bb   :  { %5622 = vrot.lane.b32.xlu1 %v8165_v8, %s7139_s9 }
0x27bf   :  { %5748 = vrot.lane.b32.xlu1 %v7901_v52, %s7139_s9 }
0x27c3   :  { %5755 = vrot.lane.b32.xlu1 %v8174_v42, %s7139_s9 }
0x27c7   :  { %5863 = vrot.lane.b32.xlu1 %v7928_v61, %s7139_s9 }
0x2872   :  { %v4984_v12 = vpop.f32.mrf.mxu0 }
0x2873   :  { %v4988_v41 = vsel %vm229_vm5, %v4984_v12, 0.0 }
0x2874   :  { %v4989_v56 = vrot.slane %v4988_v41, 4  ;;  %v6864_v4 = vpop.f32.mrf.mxu0 }
0x2876   :  { %v4990_v55 = vadd.f32 %v4989_v56, %v4988_v41  ;;  %v5279_v41 = vpop.permute.xlu0 %5278  ;;  %v5246_v56 = vpop.permute.xlu1 %5245 }
0x2878   :  { %v4991_v57 = vrot.slane %v4990_v55, 2 }
0x287a   :  { %v4992_v10 = vadd.f32 %v4991_v57, %v4990_v55  ;;  %v5277_v4 = vpop.permute.xlu0 %5276  ;;  %v5275_v55 = vpop.permute.xlu1 %5274 }
0x287c   :  { %v4993_v23 = vrot.slane %v4992_v10, 1 }
0x287e   :  { %v4994_v58 = vadd.f32 %v4993_v23, %v4992_v10  ;;  %v5273_v57 = vpop.permute.xlu0 %5272  ;;  %v5256_v10 = vpop.permute.xlu1 %5255 }
0x2880   :  { %v4995_v15 = vmul.f32 0.125, %v4994_v58 }
0x2882   :  { %v4996_v19 = vsub.f32 %v4984_v12, %v4995_v15  ;;  %v5271_v23 = vpop.permute.xlu0 %5270  ;;  %v5269_v58 = vpop.permute.xlu1 %5268 }
0x2884   :  { %v4997_v59 = vmul.f32 %v4996_v19, %v4996_v19 }
0x2886   :  { %v4998_v20 = vsel %vm229_vm5, %v4997_v59, 0.0  ;;  %v5267_v15 = vpop.permute.xlu0 %5266 }
0x2887   :  { %v4999_v24 = vrot.slane %v4998_v20, 4 }
0x2889   :  { %v5000_v25 = vadd.f32 %v4999_v24, %v4998_v20 }
0x288b   :  { %v5001_v22 = vrot.slane %v5000_v25, 2 }
0x288d   :  { %v5002_v26 = vadd.f32 %v5001_v22, %v5000_v25 }
0x288f   :  { %v5003_v54 = vrot.slane %v5002_v26, 1 }
0x2891   :  { %v5004_v27 = vadd.f32 %v5003_v54, %v5002_v26 }
0x2893   :  { %v5005_v28 = vmul.f32 0.125, %v5004_v27 }
0x2895   :  { %v5006_v29 = vadd.f32 1e-05, %v5005_v28 }
0x2897   :  { %7055 = vrsqrt.f32 %v5006_v29 }
0x28a4   :  { %v7056_v30 = vpop.eup %7055 }
0x28a5   :  { %v5011_v32 = vmul.f32 %v7056_v30, %v5009_v31 }
0x28a7   :  { %v5015_v33 = vrot.slane %v5011_v32, %v7281_v43 }
0x28a9   :  { %v5016_v34 = vmul.f32 %v5015_v33, %v4996_v19  ;;  %v5265_v19 = vpop.permute.xlu1 %5264 }
0x28ab   :  { %v5020_v35 = vadd.f32 %v5018_v63, %v5016_v34 }
0x28ad   :  { %vm5021_vm6 = vcmp.gt.f32.partialorder %v5020_v35, 0.0  ;;  %v5022_v16 = vmul.f32 0.01, %v5020_v35 }
0x28af   :  { %v5023_v36 = vsel %vm5021_vm6, %v5020_v35, %v5022_v16 }
0x28b0   :  { %6870 = vmatmul.mubr.msk.f32.vlgmr.msra.gmra.mxu1 %vm229_vm5, %v5023_v36 }
0x28b1   :  { %6876 = vmatprep.mubr.msk.f32.mxu1 %vm7144_vm0, %v7143_v0  ;;  %6873 = vmatpush3.msra.mxu1 %v5144_v7 }
0x28b2   :  { %6874 = vmatprep.subr.mxu1 %v7143_v0 }
0x28b3   :  { %6875 = vmatpush3.msra.mxu1 %v5142_v39 }
0x28b4   :  { %6879 = vmatprep.subr.mxu1 %v7143_v0 }
0x2970   :  { %v5099_v37 = vpop.f32.mrf.mxu1 }
0x2971   :  { %v5103_v45 = vsel %vm229_vm5, %v5099_v37, 0.0 }
0x2972   :  { %v5104_v49 = vrot.slane %v5103_v45, 4  ;;  %v6871_v46 = vpop.f32.mrf.mxu1 }
0x2974   :  { %v5105_v50 = vadd.f32 %v5104_v49, %v5103_v45 }
0x2976   :  { %v5106_v40 = vrot.slane %v5105_v50, 2 }
0x2978   :  { %v5107_v6 = vadd.f32 %v5106_v40, %v5105_v50 }
0x297a   :  { %v5108_v53 = vrot.slane %v5107_v6, 1 }
0x297c   :  { %v5109_v62 = vadd.f32 %v5108_v53, %v5107_v6  ;;  %v5382_v53 = vpop.permute.xlu0 %5381 }
0x297e   :  { %v5110_v8 = vmul.f32 0.125, %v5109_v62  ;;  %v5391_v62 = vpop.permute.xlu1 %5390 }
0x2980   :  { %v5111_v5 = vsub.f32 %v5099_v37, %v5110_v8  ;;  %v5400_v8 = vpop.permute.xlu0 %5399 }
0x2981   :  { %6899 = vmatpush3.msra.mxu0 %v5400_v8 }
0x2982   :  { %v5112_v2 = vmul.f32 %v5111_v5, %v5111_v5  ;;  %6900 = vmatprep.subr.mxu0 %v7143_v0 }
0x2984   :  { %v5113_v52 = vsel %vm229_vm5, %v5112_v2, 0.0 }
0x2985   :  { %v5114_v47 = vrot.slane %v5113_v52, 4 }
0x2987   :  { %v5115_v42 = vadd.f32 %v5114_v47, %v5113_v52 }
0x2989   :  { %v5116_v14 = vrot.slane %v5115_v42, 2 }
0x298b   :  { %v5117_v11 = vadd.f32 %v5116_v14, %v5115_v42 }
0x298d   :  { %v5118_v61 = vrot.slane %v5117_v11, 1 }
0x298f   :  { %v5119_v1 = vadd.f32 %v5118_v61, %v5117_v11 }
0x2991   :  { %v5120_v60 = vmul.f32 0.125, %v5119_v1 }
0x2993   :  { %v5121_v9 = vadd.f32 1e-05, %v5120_v60 }
0x2995   :  { %7057 = vrsqrt.f32 %v5121_v9 }
0x29a2   :  { %v7058_v13 = vpop.eup %7057 }
0x29a3   :  { %v5126_v38 = vmul.f32 %v7058_v13, %v5124_v17 }
0x29a5   :  { %v5130_v31 = vrot.slane %v5126_v38, %v7281_v43 }
0x29a7   :  { %v5131_v63 = vmul.f32 %v5130_v31, %v5111_v5  ;;  %v5398_v5 = vpop.permute.xlu1 %5397 }
0x29a8   :  { %6901 = vmatpush3.msra.mxu0 %v5398_v5 }
0x29a9   :  { %v5135_v3 = vadd.f32 %v5133_v48, %v5131_v63  ;;  %6905 = vmatprep.subr.mxu0 %v7143_v0 }
0x29ab   :  { %vm5136_vm7 = vcmp.gt.f32.partialorder %v5135_v3, 0.0  ;;  %v5137_v51 = vmul.f32 0.01, %v5135_v3 }
0x29ad   :  { %v5138_v12 = vsel %vm5136_vm7, %v5135_v3, %v5137_v51 }
0x29ae   :  { %6877 = vmatmul.mubr.msk.f32.vlgmr.msra.gmra.mxu1 %vm229_vm5, %v5138_v12 }
0x29af   :  { %6895 = vmatprep.mubr.msk.f32.mxu1 %vm7144_vm0, %v7143_v0  ;;  %6880 = vmatpush3.msra.mxu1 %v5279_v41 }
0x29b0   :  { %6881 = vmatprep.subr.mxu1 %v7143_v0 }
0x29b1   :  { %6882 = vmatpush3.msra.mxu1 %v5277_v4 }
0x29b2   :  { %6883 = vmatprep.subr.mxu1 %v7143_v0 }
0x29b3   :  { %6884 = vmatpush3.msra.mxu1 %v5275_v55 }
0x29b4   :  { %6885 = vmatprep.subr.mxu1 %v7143_v0 }
0x29b5   :  { %6886 = vmatpush3.msra.mxu1 %v5273_v57 }
0x29b6   :  { %6887 = vmatprep.subr.mxu1 %v7143_v0 }
0x29b7   :  { %6888 = vmatpush3.msra.mxu1 %v5271_v23 }
0x29b8   :  { %6889 = vmatprep.subr.mxu1 %v7143_v0 }
0x29b9   :  { %6890 = vmatpush3.msra.mxu1 %v5269_v58 }
0x29ba   :  { %6891 = vmatprep.subr.mxu1 %v7143_v0 }
0x29bb   :  { %6892 = vmatpush3.msra.mxu1 %v5267_v15 }
0x29bc   :  { %6893 = vmatprep.subr.mxu1 %v7143_v0 }
0x29bd   :  { %6894 = vmatpush3.msra.mxu1 %v5265_v19 }
0x29be   :  { %6931 = vmatprep.subr.mxu1 %v7143_v0 }
0x2a6e   :  { %v5216_v59 = vpop.f32.mrf.mxu1 }
0x2a6f   :  { %v5220_v20 = vsel %vm155_vm4, %v5216_v59, 0.0 }
0x2a70   :  { %v5221_v24 = vrot.slane %v5220_v20, 4  ;;  %v6878_v25 = vpop.f32.mrf.mxu1 }
0x2a72   :  { %v5222_v22 = vadd.f32 %v5221_v24, %v5220_v20  ;;  %v5512_v20 = vld [vmem:[#allocation4 + $0x38] sm:$0xff] }
0x2a73   :  { %5872 = vrot.lane.b32.xlu1 %v5512_v20, %s7142_s16 }
0x2a74   :  { %v5223_v26 = vrot.slane %v5222_v22, 2 }
0x2a76   :  { %v5224_v54 = vadd.f32 %v5223_v26, %v5222_v22 }
0x2a78   :  { %v5225_v27 = vrot.slane %v5224_v54, 1 }
0x2a7a   :  { %v5226_v28 = vadd.f32 %v5225_v27, %v5224_v54 }
0x2a7c   :  { %v5227_v29 = vmul.f32 0.125, %v5226_v28 }
0x2a7e   :  { %v5228_v30 = vsub.f32 %v5216_v59, %v5227_v29  ;;  %v5513_v59 = vld [vmem:[#allocation4 + $0x78] sm:$0xff] }
0x2a7f   :  { %5874 = vrot.lane.b32.xlu0 %v5513_v59, %s7142_s16 }
0x2a80   :  { %v5229_v32 = vmul.f32 %v5228_v30, %v5228_v30 }
0x2a82   :  { %v5230_v33 = vsel %vm155_vm4, %v5229_v32, 0.0 }
0x2a83   :  { %v5231_v34 = vrot.slane %v5230_v33, 4 }
0x2a85   :  { %v5232_v35 = vadd.f32 %v5231_v34, %v5230_v33 }
0x2a87   :  { %v5233_v16 = vrot.slane %v5232_v35, 2 }
0x2a89   :  { %v5234_v36 = vadd.f32 %v5233_v16, %v5232_v35 }
0x2a8b   :  { %v5235_v17 = vrot.slane %v5234_v36, 1 }
0x2a8d   :  { %v5236_v48 = vadd.f32 %v5235_v17, %v5234_v36 }
0x2a8f   :  { %v5237_v7 = vmul.f32 0.125, %v5236_v48 }
0x2a91   :  { %v5238_v39 = vadd.f32 1e-05, %v5237_v7 }
0x2a93   :  { %7059 = vrsqrt.f32 %v5238_v39 }
0x2aa0   :  { %v7060_v18 = vpop.eup %7059 }
0x2aa1   :  { %v5248_v37 = vmul.f32 %v7060_v18, %v5246_v56 }
0x2aa3   :  { %v5252_v45 = vrot.slane %v5248_v37, %v7281_v43 }
0x2aa5   :  { %v5253_v49 = vmul.f32 %v5252_v45, %v5228_v30  ;;  %v5497_v45 = vpop.permute.xlu0 %5496 }
0x2aa7   :  { %v5258_v46 = vadd.f32 %v5256_v10, %v5253_v49 }
0x2aa9   :  { %v5259_v50 = vadd.f32 %v5258_v46, %v8281_v21 }
0x2aab   :  { %vm5260_vm8 = vcmp.gt.f32.partialorder %v5259_v50, 0.0  ;;  %v5261_v40 = vmul.f32 0.01, %v5259_v50 }
0x2aad   :  { %v8344_v6 = vsel %vm5260_vm8, %v5259_v50, %v5261_v40  ;;  %v5506_v40 = vpop.permute.xlu1 %5505 }
0x2aae   :  { %6896 = vmatmul.mubr.msk.f32.vlgmr.msra.gmra.mxu1 %vm155_vm4, %v8344_v6 }
0x2aaf   :  { %6935 = vmatprep.mubr.msk.f32.mxu1 %vm7144_vm0, %v7143_v0 }
0x2b6e   :  { %v5357_v21 = vpop.f32.mrf.mxu1 }
0x2b6f   :  { %v5361_v2 = vsel %vm229_vm5, %v5357_v21, 0.0 }
0x2b70   :  { %v5362_v52 = vrot.slane %v5361_v2, 4  ;;  %v6897_v47 = vpop.f32.mrf.mxu1 }
0x2b71   :  { %v8373_v47 = vld [vmem:[%s8466_s6 + $0xe] sm:$0x3] }
0x2b72   :  { %v5363_v42 = vadd.f32 %v5362_v52, %v5361_v2  ;;  %v5635_v2 = vpop.permute.xlu1 %5634 }
0x2b74   :  { %v5364_v14 = vrot.slane %v5363_v42, 2 }
0x2b76   :  { %v5365_v11 = vadd.f32 %v5364_v14, %v5363_v42  ;;  %v5631_v42 = vpop.permute.xlu1 %5630  ;;  %v5616_v14 = vrot.slane %v8373_v47, %v7284_v44 }
0x2b78   :  { %v5366_v61 = vrot.slane %v5365_v11, 1  ;;  %5986 = vrot.lane.b32.xlu1 %v5616_v14, %s7142_s16 }
0x2b7a   :  { %v5367_v1 = vadd.f32 %v5366_v61, %v5365_v11  ;;  %v5627_v61 = vpop.permute.xlu1 %5626 }
0x2b7c   :  { %v5368_v60 = vmul.f32 0.125, %v5367_v1 }
0x2b7e   :  { %v5369_v9 = vsub.f32 %v5357_v21, %v5368_v60  ;;  %v5637_v21 = vpop.permute.xlu0 %5636  ;;  %v5623_v60 = vpop.permute.xlu1 %5622 }
0x2b80   :  { %v5370_v13 = vmul.f32 %v5369_v9, %v5369_v9 }
0x2b82   :  { %v5371_v38 = vsel %vm229_vm5, %v5370_v13, 0.0  ;;  %v5633_v52 = vpop.permute.xlu0 %5632 }
0x2b83   :  { %v5372_v31 = vrot.slane %v5371_v38, 4 }
0x2b85   :  { %v5373_v63 = vadd.f32 %v5372_v31, %v5371_v38 }
0x2b86   :  { %v5629_v11 = vpop.permute.xlu0 %5628 }
0x2b87   :  { %v5374_v3 = vrot.slane %v5373_v63, 2 }
0x2b89   :  { %v5375_v51 = vadd.f32 %v5374_v3, %v5373_v63 }
0x2b8a   :  { %v5625_v1 = vpop.permute.xlu0 %5624 }
0x2b8b   :  { %v5376_v12 = vrot.slane %v5375_v51, 1 }
0x2b8d   :  { %v5377_v41 = vadd.f32 %v5376_v12, %v5375_v51 }
0x2b8f   :  { %v5378_v56 = vmul.f32 0.125, %v5377_v41 }
0x2b91   :  { %v5379_v4 = vadd.f32 1e-05, %v5378_v56 }
0x2b93   :  { %7061 = vrsqrt.f32 %v5379_v4 }
0x2ba0   :  { %v7062_v55 = vpop.eup %7061 }
0x2ba1   :  { %v5384_v57 = vmul.f32 %v7062_v55, %v5382_v53 }
0x2ba3   :  { %v5388_v10 = vrot.slane %v5384_v57, %v7281_v43 }
0x2ba5   :  { %v5389_v23 = vmul.f32 %v5388_v10, %v5369_v9 }
0x2ba7   :  { %v5393_v58 = vadd.f32 %v5391_v62, %v5389_v23 }
0x2ba9   :  { %vm5394_vm9 = vcmp.gt.f32.partialorder %v5393_v58, 0.0  ;;  %v5395_v15 = vmul.f32 0.01, %v5393_v58 }
0x2bab   :  { %v5396_v19 = vsel %vm5394_vm9, %v5393_v58, %v5395_v15 }
0x2bac   :  { %6903 = vmatmul.mubr.msk.f32.vlgmr.msra.gmra.mxu0 %vm229_vm5, %v5396_v19 }
0x2bad   :  { %6909 = vmatprep.mubr.msk.f32.mxu0 %vm7144_vm0, %v7143_v0  ;;  %6906 = vmatpush3.msra.mxu0 %v5513_v59 }
0x2bae   :  { %6907 = vmatprep.subr.mxu0 %v7143_v0 }
0x2baf   :  { %6908 = vmatpush3.msra.mxu0 %v5512_v20 }
0x2bb0   :  { %6912 = vmatprep.subr.mxu0 %v7143_v0 }
0x2c6c   :  { %v5472_v24 = vpop.f32.mrf.mxu0 }
0x2c6d   :  { %v5476_v25 = vsel %vm229_vm5, %v5472_v24, 0.0 }
0x2c6e   :  { %v5477_v22 = vrot.slane %v5476_v25, 4  ;;  %v6904_v26 = vpop.f32.mrf.mxu0 }
0x2c70   :  { %v5478_v54 = vadd.f32 %v5477_v22, %v5476_v25 }
0x2c72   :  { %v5479_v27 = vrot.slane %v5478_v54, 2 }
0x2c74   :  { %v5480_v28 = vadd.f32 %v5479_v27, %v5478_v54 }
0x2c76   :  { %v5481_v29 = vrot.slane %v5480_v28, 1 }
0x2c78   :  { %v5482_v30 = vadd.f32 %v5481_v29, %v5480_v28 }
0x2c7a   :  { %v5483_v32 = vmul.f32 0.125, %v5482_v30  ;;  %v5740_v30 = vpop.permute.xlu0 %5739 }
0x2c7c   :  { %v5484_v33 = vsub.f32 %v5472_v24, %v5483_v32  ;;  %v5749_v32 = vpop.permute.xlu1 %5748 }
0x2c7e   :  { %v5485_v34 = vmul.f32 %v5484_v33, %v5484_v33 }
0x2c80   :  { %v5486_v35 = vsel %vm229_vm5, %v5485_v34, 0.0  ;;  %v5756_v34 = vpop.permute.xlu1 %5755 }
0x2c81   :  { %v5487_v16 = vrot.slane %v5486_v35, 4 }
0x2c83   :  { %v5488_v36 = vadd.f32 %v5487_v16, %v5486_v35 }
0x2c85   :  { %v5489_v17 = vrot.slane %v5488_v36, 2 }
0x2c87   :  { %v5490_v48 = vadd.f32 %v5489_v17, %v5488_v36 }
0x2c89   :  { %v5491_v7 = vrot.slane %v5490_v48, 1 }
0x2c8b   :  { %v5492_v39 = vadd.f32 %v5491_v7, %v5490_v48 }
0x2c8d   :  { %v5493_v18 = vmul.f32 0.125, %v5492_v39 }
0x2c8f   :  { %v5494_v37 = vadd.f32 1e-05, %v5493_v18 }
0x2c91   :  { %7063 = vrsqrt.f32 %v5494_v37 }
0x2c9e   :  { %v7064_v49 = vpop.eup %7063 }
0x2c9f   :  { %v5499_v46 = vmul.f32 %v7064_v49, %v5497_v45 }
0x2ca1   :  { %v5503_v50 = vrot.slane %v5499_v46, %v7281_v43 }
0x2ca3   :  { %v5504_v53 = vmul.f32 %v5503_v50, %v5484_v33  ;;  %v5758_v33 = vpop.permute.xlu0 %5757 }
0x2ca4   :  { %6932 = vmatpush3.msra.mxu1 %v5758_v33 }
0x2ca5   :  { %v5508_v62 = vadd.f32 %v5506_v40, %v5504_v53  ;;  %6933 = vmatprep.subr.mxu1 %v7143_v0 }
0x2ca6   :  { %6934 = vmatpush3.msra.mxu1 %v5756_v34 }
0x2ca7   :  { %vm5509_vm10 = vcmp.gt.f32.partialorder %v5508_v62, 0.0  ;;  %v5510_v8 = vmul.f32 0.01, %v5508_v62  ;;  %6938 = vmatprep.subr.mxu1 %v7143_v0 }
0x2ca9   :  { %v5511_v5 = vsel %vm5509_vm10, %v5508_v62, %v5510_v8 }
0x2caa   :  { %6910 = vmatmul.mubr.msk.f32.vlgmr.msra.gmra.mxu0 %vm229_vm5, %v5511_v5 }
0x2cab   :  { %6928 = vmatprep.mubr.msk.f32.mxu0 %vm7144_vm0, %v7143_v0  ;;  %6913 = vmatpush3.msra.mxu0 %v5637_v21 }
0x2cac   :  { %6914 = vmatprep.subr.mxu0 %v7143_v0 }
0x2cad   :  { %6915 = vmatpush3.msra.mxu0 %v5635_v2 }
0x2cae   :  { %6916 = vmatprep.subr.mxu0 %v7143_v0 }
0x2caf   :  { %6917 = vmatpush3.msra.mxu0 %v5633_v52 }
0x2cb0   :  { %6918 = vmatprep.subr.mxu0 %v7143_v0 }
0x2cb1   :  { %6919 = vmatpush3.msra.mxu0 %v5631_v42 }
0x2cb2   :  { %6920 = vmatprep.subr.mxu0 %v7143_v0 }
0x2cb3   :  { %6921 = vmatpush3.msra.mxu0 %v5629_v11 }
0x2cb4   :  { %6922 = vmatprep.subr.mxu0 %v7143_v0 }
0x2cb5   :  { %6923 = vmatpush3.msra.mxu0 %v5627_v61 }
0x2cb6   :  { %6924 = vmatprep.subr.mxu0 %v7143_v0 }
0x2cb7   :  { %6925 = vmatpush3.msra.mxu0 %v5625_v1 }
0x2cb8   :  { %6926 = vmatprep.subr.mxu0 %v7143_v0 }
0x2cb9   :  { %6927 = vmatpush3.msra.mxu0 %v5623_v60 }
0x2d6a   :  { %v5583_v44 = vpop.f32.mrf.mxu0 }
0x2d6b   :  { %v5587_v9 = vsel %vm155_vm4, %v5583_v44, 0.0 }
0x2d6c   :  { %v5588_v13 = vrot.slane %v5587_v9, 4  ;;  %v6911_v38 = vpop.f32.mrf.mxu0 }
0x2d6e   :  { %v5589_v31 = vadd.f32 %v5588_v13, %v5587_v9  ;;  %v5864_v9 = vpop.permute.xlu1 %5863 }
0x2d70   :  { %v5590_v63 = vrot.slane %v5589_v31, 2 }
0x2d72   :  { %v5591_v3 = vadd.f32 %v5590_v63, %v5589_v31  ;;  %v5873_v38 = vpop.permute.xlu1 %5872  ;;  %v5975_v31 = vrot.slane %v8373_v47, %v7281_v43 }
0x2d74   :  { %v5592_v51 = vrot.slane %v5591_v3, 1  ;;  %5976 = vrot.lane.b32.xlu0 %v5975_v31, %s7142_s16 }
0x2d76   :  { %v5593_v12 = vadd.f32 %v5592_v51, %v5591_v3  ;;  %v5987_v31 = vpop.permute.xlu1 %5986 }
0x2d78   :  { %v5594_v41 = vmul.f32 0.125, %v5593_v12 }
0x2d7a   :  { %v5595_v56 = vsub.f32 %v5583_v44, %v5594_v41  ;;  %v5855_v44 = vpop.permute.xlu0 %5854 }
0x2d7c   :  { %v5596_v4 = vmul.f32 %v5595_v56, %v5595_v56 }
0x2d7e   :  { %v5597_v55 = vsel %vm155_vm4, %v5596_v4, 0.0  ;;  %v5875_v13 = vpop.permute.xlu0 %5874 }
0x2d7f   :  { %v5598_v57 = vrot.slane %v5597_v55, 4 }
0x2d81   :  { %v5599_v10 = vadd.f32 %v5598_v57, %v5597_v55 }
0x2d83   :  { %v5600_v23 = vrot.slane %v5599_v10, 2 }
0x2d85   :  { %v5601_v58 = vadd.f32 %v5600_v23, %v5599_v10 }
0x2d87   :  { %v5602_v15 = vrot.slane %v5601_v58, 1 }
0x2d89   :  { %v5603_v19 = vadd.f32 %v5602_v15, %v5601_v58 }
0x2d8b   :  { %v5604_v59 = vmul.f32 0.125, %v5603_v19 }
0x2d8d   :  { %v5605_v20 = vadd.f32 1e-05, %v5604_v59 }
0x2d8f   :  { %7065 = vrsqrt.f32 %v5605_v20 }
0x2d9c   :  { %v7066_v24 = vpop.eup %7065 }
0x2d9d   :  { %v5607_v25 = vmul.f32 %v7066_v24, %v8373_v47 }
0x2d9f   :  { %v5611_v22 = vrot.slane %v5607_v25, %v7281_v43 }
0x2da1   :  { %v5612_v26 = vmul.f32 %v5611_v22, %v5595_v56 }
0x2da3   :  { %v5617_v54 = vadd.f32 %v5616_v14, %v5612_v26 }
0x2da5   :  { %v5618_v27 = vadd.f32 %v5617_v54, %v8344_v6 }
0x2da7   :  { %vm5619_vm11 = vcmp.gt.f32.partialorder %v5618_v27, 0.0  ;;  %v5620_v28 = vmul.f32 0.01, %v5618_v27 }
0x2da9   :  { %v8388_v29 = vsel %vm5619_vm11, %v5618_v27, %v5620_v28 }
0x2daa   :  { %6929 = vmatmul.mubr.msk.f32.vlgmr.msra.gmra.mxu0 %vm155_vm4, %v8388_v29 }
0x2e6a   :  { %v5715_v35 = vpop.f32.mrf.mxu0 }
0x2e6b   :  { %v5719_v6 = vsel %vm229_vm5, %v5715_v35, 0.0 }
0x2e6c   :  { %v5720_v16 = vrot.slane %v5719_v6, 4  ;;  %v6930_v36 = vpop.f32.mrf.mxu0 }
0x2e6d   :  { %v5998_v36 = vld [vmem:[%s8467_s7 + $0x20] sm:$0xff] }
0x2e6e   :  { %v5721_v17 = vadd.f32 %v5720_v16, %v5719_v6  ;;  %v6000_v6 = vld [vmem:[%s8467_s7 + $0x30] sm:$0xff]  ;;  %v5999_v16 = vld [vmem:[%s8467_s7 + $0x28] sm:$0xff] }
0x2e70   :  { %v5722_v48 = vrot.slane %v5721_v17, 2 }
0x2e72   :  { %v5723_v7 = vadd.f32 %v5722_v48, %v5721_v17  ;;  %v5997_v17 = vld [vmem:[%s8467_s7 + $0x18] sm:$0xff]  ;;  %v5996_v48 = vld [vmem:[%s8467_s7 + $0x10] sm:$0xff] }
0x2e74   :  { %v5724_v39 = vrot.slane %v5723_v7, 1 }
0x2e76   :  { %v5725_v18 = vadd.f32 %v5724_v39, %v5723_v7  ;;  %v5995_v7 = vld [vmem:[%s8467_s7 + $0x8] sm:$0xff]  ;;  %v5994_v39 = vld [vmem:[%s8467_s7] sm:$0xff] }
0x2e78   :  { %v5726_v37 = vmul.f32 0.125, %v5725_v18 }
0x2e7a   :  { %v5727_v45 = vsub.f32 %v5715_v35, %v5726_v37  ;;  %v6001_v35 = vld [vmem:[%s8467_s7 + $0x38] sm:$0xff] }
0x2e7c   :  { %v5728_v49 = vmul.f32 %v5727_v45, %v5727_v45 }
0x2e7e   :  { %v5729_v46 = vsel %vm229_vm5, %v5728_v49, 0.0 }
0x2e7f   :  { %v5730_v50 = vrot.slane %v5729_v46, 4 }
0x2e81   :  { %v5731_v40 = vadd.f32 %v5730_v50, %v5729_v46 }
0x2e83   :  { %v5732_v53 = vrot.slane %v5731_v40, 2 }
0x2e85   :  { %v5733_v62 = vadd.f32 %v5732_v53, %v5731_v40 }
0x2e87   :  { %v5734_v8 = vrot.slane %v5733_v62, 1 }
0x2e89   :  { %v5735_v5 = vadd.f32 %v5734_v8, %v5733_v62 }
0x2e8b   :  { %v5736_v21 = vmul.f32 0.125, %v5735_v5 }
0x2e8d   :  { %v5737_v2 = vadd.f32 1e-05, %v5736_v21 }
0x2e8f   :  { %7067 = vrsqrt.f32 %v5737_v2 }
0x2e9c   :  { %v7068_v52 = vpop.eup %7067 }
0x2e9d   :  { %v5742_v42 = vmul.f32 %v7068_v52, %v5740_v30 }
0x2e9f   :  { %v5746_v14 = vrot.slane %v5742_v42, %v7281_v43 }
0x2ea1   :  { %v5747_v11 = vmul.f32 %v5746_v14, %v5727_v45 }
0x2ea3   :  { %v5751_v61 = vadd.f32 %v5749_v32, %v5747_v11 }
0x2ea5   :  { %vm5752_vm12 = vcmp.gt.f32.partialorder %v5751_v61, 0.0  ;;  %v5753_v1 = vmul.f32 0.01, %v5751_v61 }
0x2ea7   :  { %v5754_v60 = vsel %vm5752_vm12, %v5751_v61, %v5753_v1 }
0x2ea8   :  { %6936 = vmatmul.mubr.msk.f32.vlgmr.msra.gmra.mxu1 %vm229_vm5, %v5754_v60 }
0x2ea9   :  { %6942 = vmatprep.mubr.msk.f32.mxu1 %vm7144_vm0, %v7143_v0  ;;  %6939 = vmatpush3.msra.mxu1 %v5875_v13 }
0x2eaa   :  { %6940 = vmatprep.subr.mxu1 %v7143_v0 }
0x2eab   :  { %6941 = vmatpush3.msra.mxu1 %v5873_v38 }
0x2eac   :  { %6945 = vmatprep.subr.mxu1 %v7143_v0 }
0x2f68   :  { %v5830_v63 = vpop.f32.mrf.mxu1 }
0x2f69   :  { %v5834_v3 = vsel %vm229_vm5, %v5830_v63, 0.0 }
0x2f6a   :  { %v5835_v51 = vrot.slane %v5834_v3, 4  ;;  %v6937_v12 = vpop.f32.mrf.mxu1 }
0x2f6c   :  { %v5836_v41 = vadd.f32 %v5835_v51, %v5834_v3 }
0x2f6e   :  { %v5837_v56 = vrot.slane %v5836_v41, 2 }
0x2f70   :  { %v5838_v4 = vadd.f32 %v5837_v56, %v5836_v41  ;;  %v6157_v56 = vld [vmem:[%s8467_s7 + $0x40] ss:$0 sm:$0xff] }
0x2f72   :  { %v5839_v55 = vrot.slane %v5838_v4, 1 }
0x2f74   :  { %v5840_v57 = vadd.f32 %v5839_v55, %v5838_v4 }
0x2f76   :  { %v5841_v10 = vmul.f32 0.125, %v5840_v57 }
0x2f78   :  { %v5842_v23 = vsub.f32 %v5830_v63, %v5841_v10 }
0x2f7a   :  { %v5843_v58 = vmul.f32 %v5842_v23, %v5842_v23 }
0x2f7c   :  { %v5844_v15 = vsel %vm229_vm5, %v5843_v58, 0.0 }
0x2f7d   :  { %v5845_v47 = vrot.slane %v5844_v15, 4 }
0x2f7f   :  { %v5846_v19 = vadd.f32 %v5845_v47, %v5844_v15  ;;  %v6160_v15 = vld [vmem:[%s8467_s7 + $0x42] ss:$0 sm:$0xff] }
0x2f81   :  { %v5847_v59 = vrot.slane %v5846_v19, 2 }
0x2f83   :  { %v5848_v20 = vadd.f32 %v5847_v59, %v5846_v19 }
0x2f85   :  { %v5849_v24 = vrot.slane %v5848_v20, 1 }
0x2f87   :  { %v5850_v25 = vadd.f32 %v5849_v24, %v5848_v20 }
0x2f89   :  { %v5851_v22 = vmul.f32 0.125, %v5850_v25 }
0x2f8b   :  { %v5852_v26 = vadd.f32 1e-05, %v5851_v22 }
0x2f8d   :  { %7069 = vrsqrt.f32 %v5852_v26 }
0x2f9a   :  { %v7070_v54 = vpop.eup %7069 }
0x2f9b   :  { %v5857_v27 = vmul.f32 %v7070_v54, %v5855_v44  ;;  %v5977_v44 = vpop.permute.xlu0 %5976 }
0x2f9d   :  { %v5861_v28 = vrot.slane %v5857_v27, %v7281_v43 }
0x2f9f   :  { %v5862_v30 = vmul.f32 %v5861_v28, %v5842_v23 }
0x2fa1   :  { %v5866_v32 = vadd.f32 %v5864_v9, %v5862_v30 }
0x2fa3   :  { %vm5867_vm13 = vcmp.gt.f32.partialorder %v5866_v32, 0.0  ;;  %v5868_v33 = vmul.f32 0.01, %v5866_v32 }
0x2fa5   :  { %v5869_v34 = vsel %vm5867_vm13, %v5866_v32, %v5868_v33 }
0x2fa6   :  { %6943 = vmatmul.mubr.msk.f32.vlgmr.msra.gmra.mxu1 %vm229_vm5, %v5869_v34 }
0x2fa7   :  { %6961 = vmatprep.mubr.msk.f32.mxu1 %vm7144_vm0, %v7143_v0  ;;  %6946 = vmatpush3.msra.mxu1 %v6001_v35 }
0x2fa8   :  { %6947 = vmatprep.subr.mxu1 %v7143_v0 }
0x2fa9   :  { %6948 = vmatpush3.msra.mxu1 %v6000_v6 }
0x2faa   :  { %6949 = vmatprep.subr.mxu1 %v7143_v0 }
0x2fab   :  { %6950 = vmatpush3.msra.mxu1 %v5999_v16 }
0x2fac   :  { %6951 = vmatprep.subr.mxu1 %v7143_v0 }
0x2fad   :  { %6952 = vmatpush3.msra.mxu1 %v5998_v36 }
0x2fae   :  { %6953 = vmatprep.subr.mxu1 %v7143_v0 }
0x2faf   :  { %6954 = vmatpush3.msra.mxu1 %v5997_v17 }
0x2fb0   :  { %6955 = vmatprep.subr.mxu1 %v7143_v0 }
0x2fb1   :  { %6956 = vmatpush3.msra.mxu1 %v5996_v48 }
0x2fb2   :  { %6957 = vmatprep.subr.mxu1 %v7143_v0 }
0x2fb3   :  { %6958 = vmatpush3.msra.mxu1 %v5995_v7 }
0x2fb4   :  { %6959 = vmatprep.subr.mxu1 %v7143_v0 }
0x2fb5   :  { %6960 = vmatpush3.msra.mxu1 %v5994_v39 }
0x3066   :  { %v5947_v18 = vpop.f32.mrf.mxu1 }
0x3067   :  { %v5951_v37 = vsel %vm155_vm4, %v5947_v18, 0.0 }
0x3068   :  { %v5952_v45 = vrot.slane %v5951_v37, 4  ;;  %v6944_v49 = vpop.f32.mrf.mxu1 }
0x306a   :  { %v5953_v46 = vadd.f32 %v5952_v45, %v5951_v37 }
0x306c   :  { %v5954_v50 = vrot.slane %v5953_v46, 2 }
0x306e   :  { %v5955_v40 = vadd.f32 %v5954_v50, %v5953_v46 }
0x3070   :  { %v5956_v53 = vrot.slane %v5955_v40, 1 }
0x3072   :  { %v5957_v62 = vadd.f32 %v5956_v53, %v5955_v40 }
0x3074   :  { %v5958_v8 = vmul.f32 0.125, %v5957_v62 }
0x3076   :  { %v5959_v5 = vsub.f32 %v5947_v18, %v5958_v8 }
0x3078   :  { %v5960_v21 = vmul.f32 %v5959_v5, %v5959_v5 }
0x307a   :  { %v5961_v2 = vsel %vm155_vm4, %v5960_v21, 0.0 }
0x307b   :  { %v5962_v52 = vrot.slane %v5961_v2, 4 }
0x307d   :  { %v5963_v42 = vadd.f32 %v5962_v52, %v5961_v2 }
0x307f   :  { %v5964_v14 = vrot.slane %v5963_v42, 2 }
0x3081   :  { %v5965_v0 = vadd.f32 %v5964_v14, %v5963_v42 }
0x3083   :  { %v5966_v11 = vrot.slane %v5965_v0, 1 }
0x3085   :  { %v5967_v61 = vadd.f32 %v5966_v11, %v5965_v0 }
0x3087   :  { %v5968_v1 = vmul.f32 0.125, %v5967_v61 }
0x3089   :  { %v5969_v60 = vadd.f32 1e-05, %v5968_v1 }
0x308b   :  { %7071 = vrsqrt.f32 %v5969_v60 }
0x3098   :  { %v7072_v9 = vpop.eup %7071 }
0x3099   :  { %v5979_v13 = vmul.f32 %v7072_v9, %v5977_v44 }
0x309b   :  { %v5983_v38 = vrot.slane %v5979_v13, %v7281_v43  ;;  %v6159_v43 = vld [vmem:[%s8467_s7 + $0x41] ss:$0 sm:$0xff] }
0x309d   :  { %v5984_v63 = vmul.f32 %v5983_v38, %v5959_v5 }
0x309f   :  { %v5989_v3 = vadd.f32 %v5987_v31, %v5984_v63 }
0x30a1   :  { %v5990_v51 = vadd.f32 %v5989_v3, %v8388_v29 }
0x30a3   :  { %vm5991_vm0 = vcmp.gt.f32.partialorder %v5990_v51, 0.0  ;;  %v5992_v12 = vmul.f32 0.01, %v5990_v51 }
0x30a5   :  { %v5993_v41 = vsel %vm5991_vm0, %v5990_v51, %v5992_v12 }
0x30a6   :  { %6962 = vmatmul.mubr.msk.f32.vlgmr.msra.gmra.mxu1 %vm155_vm4, %v5993_v41  ;;  %vm6098_vm4 = vcmask 7168  }
0x3166   :  { %v6078_v4 = vpop.f32.mrf.mxu1 }
0x3167   :  { %v6079_v55 = vadd.f32 %v6157_v56, %v6078_v4 }
0x3168   :  { %v6963_v57 = vpop.f32.mrf.mxu1 }
0x3169   :  { %vm6082_vm14 = vcmp.gt.f32.partialorder %v6079_v55, 0.0  ;;  %v6083_v10 = vmul.f32 0.01, %v6079_v55 }
0x316b   :  { %v6084_v23 = vsel %vm6082_vm14, %v6079_v55, %v6083_v10 }
0x316c   :  { %v6089_v29 = vmul.f32 %v6159_v43, %v6084_v23 }
0x316e   :  { %v6090_v58 = vsel %vm229_vm5, %v6089_v29, 0.0 }
0x316f   :  { %6091 = vadd.xlane.f32.xlu0 %v6090_v58 }
0x31f8   :  { %v6092_v47 = vpop.xlane.xlu0 %6091 }
0x31f9   :  { %v6097_v19 = vadd.f32 %v6160_v15, %v6092_v47 }
0x31fb   :  { %6099 = vst.msk [vmem:[%s8468_s8] sm:$0xff] %vm6098_vm4, %v6097_v19 }
0x31fc   :  { %6104 = vsyncpa [#allocation3], 1 }
0x31fd   :  { %6105 = vsyncpa [#allocation5], 1 }

</bundles_post_ra>
